<compile_context>
chip_gen: v5e
topology: v5e:2x2
jax: 0.10.0
libtpu: 0.0.40
codegen_flags: <defaults>
</compile_context>

<pallas_src>
import functools

import jax
import jax.numpy as jnp
from jax.experimental import pallas as pl
from jax.experimental.pallas import tpu as pltpu

NEG_SLOPE = 0.1      # LeakyReLU(c), c = 0.1 in netd_dcgan_par
BN_EPS = 1e-5        # nn.BatchNorm2d default eps
VMEM_LIMIT = 48 * 1024 * 1024   # explicit scoped-VMEM cap (< v7x 64 MiB physical)

# Compat shim for the compiler-params class name across JAX versions.
_CP = getattr(pltpu, "CompilerParams", None) or getattr(pltpu, "TPUCompilerParams")


# --------------------------------------------------------------------------
# In-kernel helpers
# --------------------------------------------------------------------------
def _conv_taps(xs_ref, w_ref):
    """4x4/stride-2/pad-1 conv of one batch tile, expressed as a 2x2/stride-1
    conv over a space-to-depth(2) input block held in VMEM.

    xs_ref: (TB, Ho+1, Wo+1, 4*Cin_p) bf16 block
    w_ref : (4, 4*Cin_p, Cout)       bf16 (tap index q = 2*qh + qw)
    returns (TB*Ho*Wo, Cout) f32
    """
    TB, Hs, Ws, C4 = xs_ref.shape
    Ho, Wo = Hs - 1, Ws - 1
    acc = None
    for qh in range(2):
        for qw in range(2):
            xt = xs_ref[:, qh:qh + Ho, qw:qw + Wo, :].reshape(TB * Ho * Wo, C4)
            part = jnp.dot(xt, w_ref[2 * qh + qw],
                           preferred_element_type=jnp.float32)
            acc = part if acc is None else acc + part
    return acc


def _bn_scale_shift(sum_v, ssq_v, gamma, beta, count):
    """Per-channel scale/shift from f32-accumulated sum / sum-of-squares."""
    inv_n = 1.0 / count
    mean = sum_v * inv_n
    var = jnp.maximum(ssq_v * inv_n - mean * mean, 0.0)   # guard f32 cancellation
    scale = gamma * jax.lax.rsqrt(var + BN_EPS)
    shift = beta - mean * scale
    return scale, shift


def _leaky(y):
    return jnp.maximum(y, NEG_SLOPE * y)


# --------------------------------------------------------------------------
# Kernels
# --------------------------------------------------------------------------
def _conv_act_kernel(xs_ref, w_ref, b_ref, o_ref):
    """Stage 1: conv + bias + LeakyReLU (no BN)."""
    y = _conv_taps(xs_ref, w_ref) + b_ref[...]
    o_ref[...] = _leaky(y).astype(o_ref.dtype)


def _conv_bn_act_kernel(count, xs_ref, w_ref, g_ref, beta_ref, o_ref,
                        sum_ref, ssq_ref):
    """Stages 2/3: conv + training-mode BatchNorm + LeakyReLU, 2-phase grid.

    grid = (2, NB).  Phase 0 accumulates per-channel sum / sum^2 of the conv
    output into VMEM scratch; phase 1 recomputes the conv (cheaper than an
    HBM round-trip of pre-BN activations), applies scale/shift + LeakyReLU and
    stores.  Conv bias omitted: cancelled exactly by BN's mean subtraction.
    """
    p = pl.program_id(0)
    b = pl.program_id(1)

    @pl.when(jnp.logical_and(p == 0, b == 0))
    def _init():
        sum_ref[...] = jnp.zeros_like(sum_ref)
        ssq_ref[...] = jnp.zeros_like(ssq_ref)

    y = _conv_taps(xs_ref, w_ref)

    @pl.when(p == 0)
    def _stats():
        sum_ref[...] += jnp.sum(y, axis=0, keepdims=True)
        ssq_ref[...] += jnp.sum(y * y, axis=0, keepdims=True)

    @pl.when(p == 1)
    def _store():
        scale, shift = _bn_scale_shift(sum_ref[...], ssq_ref[...],
                                       g_ref[...], beta_ref[...], count)
        o_ref[...] = _leaky(y * scale + shift).astype(o_ref.dtype)


def _conv_bn_head_kernel(count, x_ref, w_ref, g_ref, beta_ref, w5_ref, b5_ref,
                         o_ref, sum_ref, ssq_ref):
    """Stage 4 (conv + BN + LeakyReLU) with the final Conv2d(8d,1,4,1,0) fused.

    The final conv's receptive field is the whole 4x4 map, so per sample it is
    an elementwise multiply with a (16, 8d) weight followed by a full reduce -
    linear in batch (no N x M selector matmul).
    """
    p = pl.program_id(0)
    b = pl.program_id(1)

    @pl.when(jnp.logical_and(p == 0, b == 0))
    def _init():
        sum_ref[...] = jnp.zeros_like(sum_ref)
        ssq_ref[...] = jnp.zeros_like(ssq_ref)

    y = jnp.dot(x_ref[...], w_ref[...], preferred_element_type=jnp.float32)

    @pl.when(p == 0)
    def _stats():
        sum_ref[...] += jnp.sum(y, axis=0, keepdims=True)
        ssq_ref[...] += jnp.sum(y * y, axis=0, keepdims=True)

    @pl.when(p == 1)
    def _store():
        scale, shift = _bn_scale_shift(sum_ref[...], ssq_ref[...],
                                       g_ref[...], beta_ref[...], count)
        z = _leaky(y * scale + shift)                       # (TB*16, C8) f32
        tbh, c8 = z.shape
        z3 = z.reshape(tbh // 16, 16, c8) * w5_ref[...].astype(jnp.float32)
        s = jnp.sum(z3, axis=1)                             # (TB, C8)
        o_ref[...] = (jnp.sum(s, axis=1, keepdims=True)
                      + b5_ref[...]).astype(o_ref.dtype)


# --------------------------------------------------------------------------
# JAX-side glue (layout only; all O(activation-size), no patch blow-up)
# --------------------------------------------------------------------------
def _pad_ch(x, cp):
    c = x.shape[-1]
    if c == cp:
        return x
    return jnp.pad(x, [(0, 0)] * (x.ndim - 1) + [(0, cp - c)])


def _space_to_depth_pad1(x_nhwc, cin_p):
    """Zero-pad spatially by 1, pad channels to cin_p, 2x2 space-to-depth.
    (N,H,W,C) -> (N, H/2+1, W/2+1, 4*cin_p) bf16; channel order (rh, rw, c)."""
    N, H, W, _ = x_nhwc.shape
    x = _pad_ch(x_nhwc, cin_p)
    x = jnp.pad(x, ((0, 0), (1, 1), (1, 1), (0, 0)))
    Hs, Ws = (H + 2) // 2, (W + 2) // 2
    x = x.reshape(N, Hs, 2, Ws, 2, cin_p)
    x = x.transpose(0, 1, 3, 2, 4, 5).reshape(N, Hs, Ws, 4 * cin_p)
    return x.astype(jnp.bfloat16)


def _weights_s2d(w_hwio, cin_p):
    """(4,4,Cin,Cout) -> (4, 4*cin_p, Cout) bf16.
    Tap q = 2*qh + qw, inner K order (rh, rw, c) matching _space_to_depth_pad1."""
    _, _, Cin, Cout = w_hwio.shape
    w = jnp.pad(w_hwio, ((0, 0), (0, 0), (0, cin_p - Cin), (0, 0)))
    w = w.reshape(2, 2, 2, 2, cin_p, Cout)          # (qh, rh, qw, rw, c, o)
    w = w.transpose(0, 2, 1, 3, 4, 5).reshape(4, 4 * cin_p, Cout)
    return w.astype(jnp.bfloat16)


def _im2col(x_nhwc, KH, KW, stride, pad):
    """Wrapper-side patch extraction (only used for the tiny stage-4 head)."""
    N, H, W, C = x_nhwc.shape
    Ho = (H + 2 * pad - KH) // stride + 1
    Wo = (W + 2 * pad - KW) // stride + 1
    xp = jnp.pad(x_nhwc, ((0, 0), (pad, pad), (pad, pad), (0, 0)))
    cols = []
    for kh in range(KH):
        for kw in range(KW):
            cols.append(
                xp[:, kh:kh + stride * Ho:stride, kw:kw + stride * Wo:stride, :])
    patches = jnp.stack(cols, axis=3).reshape(N * Ho * Wo, KH * KW * C)
    return patches, Ho, Wo


def _choose_tb(n, bytes_per_sample, target_bytes=4 << 20, multiple_of=1):
    """Largest divisor of n whose per-tile footprint fits the target; prefer
    >= 2 grid steps (pipelining / megacore) when possible."""
    divs = [d for d in range(1, n + 1) if n % d == 0]
    ok = [d for d in divs if d % multiple_of == 0 or d == n]
    fit = [d for d in ok if d * bytes_per_sample <= target_bytes] or [ok[0]]
    tb = max(fit)
    if tb == n and n > 1:
        smaller = [d for d in fit if n // d >= 2]
        if smaller:
            tb = max(smaller)
    return tb


# --------------------------------------------------------------------------
# Stage wrappers
# --------------------------------------------------------------------------
def conv_lrelu(x_nhwc, w_hwio, bias):
    """Conv2d(4,2,1) + LeakyReLU(0.1); batch-tiled, in-kernel patch build."""
    N, H, W, Cin = x_nhwc.shape
    Cout = w_hwio.shape[-1]
    cin_p = -(-Cin // 8) * 8
    xs = _space_to_depth_pad1(x_nhwc, cin_p)
    wt = _weights_s2d(w_hwio, cin_p)
    Ho, Wo = H // 2, W // 2
    Hs, Ws, C4 = Ho + 1, Wo + 1, 4 * cin_p
    bps = Hs * Ws * C4 * 2 + Ho * Wo * Cout * 6
    TB = _choose_tb(N, bps)
    NB = N // TB
    Mt = TB * Ho * Wo
    b2 = bias.reshape(1, Cout).astype(jnp.float32)
    out = pl.pallas_call(
        _conv_act_kernel,
        out_shape=jax.ShapeDtypeStruct((N * Ho * Wo, Cout), jnp.bfloat16),
        grid=(NB,),
        in_specs=[pl.BlockSpec((TB, Hs, Ws, C4), lambda b: (b, 0, 0, 0)),
                  pl.BlockSpec((4, C4, Cout), lambda b: (0, 0, 0)),
                  pl.BlockSpec((1, Cout), lambda b: (0, 0))],
        out_specs=pl.BlockSpec((Mt, Cout), lambda b: (b, 0)),
        compiler_params=_CP(dimension_semantics=("parallel",),
                            vmem_limit_bytes=VMEM_LIMIT),
        cost_estimate=pl.CostEstimate(
            flops=2 * N * Ho * Wo * 4 * C4 * Cout,
            transcendentals=0,
            bytes_accessed=int(xs.size * 2 + wt.size * 2
                               + N * Ho * Wo * Cout * 2)),
    )(xs, wt, b2)
    return out.reshape(N, Ho, Wo, Cout)


def conv_bn_lrelu(x_nhwc, w_hwio, gamma, beta):
    """Conv2d(4,2,1) + BatchNorm2d (training-mode batch stats) + LeakyReLU(0.1)."""
    N, H, W, Cin = x_nhwc.shape
    Cout = w_hwio.shape[-1]
    cin_p = -(-Cin // 8) * 8
    xs = _space_to_depth_pad1(x_nhwc, cin_p)
    wt = _weights_s2d(w_hwio, cin_p)
    Ho, Wo = H // 2, W // 2
    Hs, Ws, C4 = Ho + 1, Wo + 1, 4 * cin_p
    bps = Hs * Ws * C4 * 2 + Ho * Wo * Cout * 6
    TB = _choose_tb(N, bps)
    NB = N // TB
    Mt = TB * Ho * Wo
    g2 = gamma.reshape(1, Cout).astype(jnp.float32)
    bt2 = beta.reshape(1, Cout).astype(jnp.float32)
    count = float(N * Ho * Wo)
    out = pl.pallas_call(
        functools.partial(_conv_bn_act_kernel, count),
        out_shape=jax.ShapeDtypeStruct((N * Ho * Wo, Cout), jnp.bfloat16),
        grid=(2, NB),
        in_specs=[pl.BlockSpec((TB, Hs, Ws, C4), lambda p, b: (b, 0, 0, 0)),
                  pl.BlockSpec((4, C4, Cout), lambda p, b: (0, 0, 0)),
                  pl.BlockSpec((1, Cout), lambda p, b: (0, 0)),
                  pl.BlockSpec((1, Cout), lambda p, b: (0, 0))],
        # Phase 0 never stores; park its (unwritten) output block at index 0 so
        # no garbage block is flushed and each block is written exactly once.
        out_specs=pl.BlockSpec((Mt, Cout), lambda p, b: (p * b, 0)),
        scratch_shapes=[pltpu.VMEM((1, Cout), jnp.float32),
                        pltpu.VMEM((1, Cout), jnp.float32)],
        compiler_params=_CP(dimension_semantics=("arbitrary", "arbitrary"),
                            vmem_limit_bytes=VMEM_LIMIT),
        cost_estimate=pl.CostEstimate(
            flops=2 * 2 * N * Ho * Wo * 4 * C4 * Cout,
            transcendentals=Cout,
            bytes_accessed=int(2 * xs.size * 2 + wt.size * 2
                               + N * Ho * Wo * Cout * 2)),
    )(xs, wt, g2, bt2)
    return out.reshape(N, Ho, Wo, Cout)


def conv_bn_lrelu_head(x_nhwc, w4, gamma, beta, w5, b5):
    """Stage 4 (Conv + BN + LeakyReLU) with the final Conv2d(8d,1,4,1,0) fused."""
    N, H, W, Cin = x_nhwc.shape
    Cout = w4.shape[-1]
    cin_p = -(-Cin // 8) * 8
    # Spatial is tiny here (8x8 -> 4x4): wrapper-side im2col is cheap and keeps
    # the kernel a plain 2-D matmul with 8-row-aligned per-sample groups.
    patches, Ho, Wo = _im2col(_pad_ch(x_nhwc, cin_p), 4, 4, 2, 1)
    assert (Ho, Wo) == (4, 4), (Ho, Wo)
    patches = patches.astype(jnp.bfloat16)
    K = 16 * cin_p
    wmat = jnp.pad(w4, ((0, 0), (0, 0), (0, cin_p - Cin), (0, 0))
                   ).reshape(K, Cout).astype(jnp.bfloat16)
    g2 = gamma.reshape(1, Cout).astype(jnp.float32)
    bt2 = beta.reshape(1, Cout).astype(jnp.float32)
    w5m = w5[..., 0].reshape(Ho * Wo, Cout).astype(jnp.bfloat16)
    b5m = b5.reshape(1, 1).astype(jnp.float32)
    bps = 16 * (K * 2 + Cout * 6)
    TB = _choose_tb(N, bps, multiple_of=8)   # out block (TB,1) must be 8-row aligned
    NB = N // TB
    count = float(N * Ho * Wo)
    out = pl.pallas_call(
        functools.partial(_conv_bn_head_kernel, count),
        out_shape=jax.ShapeDtypeStruct((N, 1), jnp.float32),
        grid=(2, NB),
        in_specs=[pl.BlockSpec((TB * 16, K), lambda p, b: (b, 0)),
                  pl.BlockSpec((K, Cout), lambda p, b: (0, 0)),
                  pl.BlockSpec((1, Cout), lambda p, b: (0, 0)),
                  pl.BlockSpec((1, Cout), lambda p, b: (0, 0)),
                  pl.BlockSpec((Ho * Wo, Cout), lambda p, b: (0, 0)),
                  pl.BlockSpec((1, 1), lambda p, b: (0, 0))],
        out_specs=pl.BlockSpec((TB, 1), lambda p, b: (p * b, 0)),
        scratch_shapes=[pltpu.VMEM((1, Cout), jnp.float32),
                        pltpu.VMEM((1, Cout), jnp.float32)],
        compiler_params=_CP(dimension_semantics=("arbitrary", "arbitrary"),
                            vmem_limit_bytes=VMEM_LIMIT),
        cost_estimate=pl.CostEstimate(
            flops=2 * 2 * N * 16 * K * Cout,
            transcendentals=Cout,
            bytes_accessed=int(2 * patches.size * 2 + wmat.size * 2 + N * 4)),
    )(patches, wmat, g2, bt2, w5m, b5m)
    return out


# --------------------------------------------------------------------------
# Parameters & forward
# --------------------------------------------------------------------------
def init_params(key, d=16):
    """Deterministic synthetic parameters; shapes follow netd_dcgan_par.__init__."""
    specs = [(3, d), (d, 2 * d), (2 * d, 4 * d), (4 * d, 8 * d), (8 * d, 1)]
    params = []
    for cin, cout in specs:
        key, kw_, kb_ = jax.random.split(key, 3)
        params.append(dict(
            w=0.05 * jax.random.normal(kw_, (4, 4, cin, cout), jnp.float32),
            b=0.01 * jax.random.normal(kb_, (cout,), jnp.float32),
            gamma=jnp.ones((cout,), jnp.float32),   # BatchNorm2d weight init
            beta=jnp.zeros((cout,), jnp.float32),   # BatchNorm2d bias init
        ))
    return params


def netd_dcgan_forward(x_nchw, params):
    """Forward pass of netd_dcgan_par.  Input NCHW, output (N, 1, 1, 1) NCHW."""
    # TODO(synk): nn.parallel.data_parallel (multi-GPU scatter/gather) has no
    # Pallas analogue; single-device execution is numerically identical.
    x = jnp.transpose(x_nchw, (0, 2, 3, 1))           # NCHW -> NHWC
    p = params
    # Conv(3, d) + LeakyReLU(0.1)
    x = conv_lrelu(x, p[0]['w'], p[0]['b'])
    # Conv(d, 2d) + BN + LReLU ; Conv(2d, 4d) + BN + LReLU
    x = conv_bn_lrelu(x, p[1]['w'], p[1]['gamma'], p[1]['beta'])
    x = conv_bn_lrelu(x, p[2]['w'], p[2]['gamma'], p[2]['beta'])
    # Conv(4d, 8d) + BN + LReLU with the final Conv(8d, 1, 4, 1, 0) fused in.
    logits = conv_bn_lrelu_head(x, p[3]['w'], p[3]['gamma'], p[3]['beta'],
                                p[4]['w'], p[4]['b'])
    return logits.reshape(-1, 1, 1, 1)                # (N, 1, 1, 1) NCHW


if __name__ == "__main__":
    key = jax.random.PRNGKey(0)
    k_x, k_p = jax.random.split(key)

    # Small shapes: batch=2, RGB 64x64 (spatial 64 so the final 4x4/s1/p0 conv
    # yields a 1x1 logit map), d=16.
    x = jax.random.normal(k_x, (2, 3, 64, 64), jnp.float32)
    params = init_params(k_p, d=16)

    fwd = jax.jit(netd_dcgan_forward)
    out = jax.block_until_ready(fwd(x, params))
    assert out.shape == (2, 1, 1, 1), out.shape
    assert out.dtype == jnp.float32
    assert bool(jnp.all(jnp.isfinite(out)))
    print("KERNEL_OK")
</pallas_src>

<mosaic_0001>
module attributes {stable_mosaic.version = 11 : i64} {
  func.func @_conv_act_kernel(%arg0: i32, %arg1: memref<1x33x33x32xbf16, #tpu.memory_space<vmem>>, %arg2: memref<4x32x16xbf16, #tpu.memory_space<vmem>>, %arg3: memref<1x16xf32, #tpu.memory_space<vmem>>, %arg4: memref<1024x16xbf16, #tpu.memory_space<vmem>>) attributes {dimension_semantics = [#tpu.dimension_semantics<parallel>], iteration_bounds = array<i64: 2>, scalar_prefetch = 0 : i64, scratch_operands = 0 : i64, tpu.core_type = #tpu.core_type<tc>, window_params = [{transform_indices = @transform_0, window_bounds = array<i64: 1, 33, 33, 32>}, {pipeline_mode = #tpu.pipeline_mode<synchronous>, transform_indices = @transform_1, window_bounds = array<i64: 4, 32, 16>}, {pipeline_mode = #tpu.pipeline_mode<synchronous>, transform_indices = @transform_2, window_bounds = array<i64: 1, 16>}, {transform_indices = @transform_3, window_bounds = array<i64: 1024, 16>}]} {
    %c0 = arith.constant 0 : index
    %c0_0 = arith.constant 0 : index
    %c0_1 = arith.constant 0 : index
    %c0_2 = arith.constant 0 : index
    %0 = vector.load %arg1[%c0, %c0_0, %c0_1, %c0_2] : memref<1x33x33x32xbf16, #tpu.memory_space<vmem>>, vector<1x32x32x32xbf16>
    %1 = vector.shape_cast %0 : vector<1x32x32x32xbf16> to vector<1024x32xbf16>
    %c0_3 = arith.constant 0 : index
    %c0_4 = arith.constant 0 : index
    %c0_5 = arith.constant 0 : index
    %2 = vector.load %arg2[%c0_3, %c0_4, %c0_5] : memref<4x32x16xbf16, #tpu.memory_space<vmem>>, vector<1x32x16xbf16>
    %3 = vector.shape_cast %2 : vector<1x32x16xbf16> to vector<32x16xbf16>
    %cst = arith.constant dense<0.000000e+00> : vector<1024x16xf32>
    %4 = tpu.matmul %1, %3, %cst {dimension_numbers = #tpu.dot_dimension_numbers<[1], [0], [0], [1], [0, 0, 1, 1], [], []>} : vector<1024x32xbf16>, vector<32x16xbf16>, vector<1024x16xf32> -> vector<1024x16xf32>
    %c0_6 = arith.constant 0 : index
    %c0_7 = arith.constant 0 : index
    %c1 = arith.constant 1 : index
    %c0_8 = arith.constant 0 : index
    %5 = vector.load %arg1[%c0_6, %c0_7, %c1, %c0_8] : memref<1x33x33x32xbf16, #tpu.memory_space<vmem>>, vector<1x32x32x32xbf16>
    %6 = vector.shape_cast %5 : vector<1x32x32x32xbf16> to vector<1024x32xbf16>
    %c1_9 = arith.constant 1 : index
    %c0_10 = arith.constant 0 : index
    %c0_11 = arith.constant 0 : index
    %7 = vector.load %arg2[%c1_9, %c0_10, %c0_11] : memref<4x32x16xbf16, #tpu.memory_space<vmem>>, vector<1x32x16xbf16>
    %8 = vector.shape_cast %7 : vector<1x32x16xbf16> to vector<32x16xbf16>
    %cst_12 = arith.constant dense<0.000000e+00> : vector<1024x16xf32>
    %9 = tpu.matmul %6, %8, %cst_12 {dimension_numbers = #tpu.dot_dimension_numbers<[1], [0], [0], [1], [0, 0, 1, 1], [], []>} : vector<1024x32xbf16>, vector<32x16xbf16>, vector<1024x16xf32> -> vector<1024x16xf32>
    %10 = arith.addf %4, %9 : vector<1024x16xf32>
    %c0_13 = arith.constant 0 : index
    %c1_14 = arith.constant 1 : index
    %c0_15 = arith.constant 0 : index
    %c0_16 = arith.constant 0 : index
    %11 = vector.load %arg1[%c0_13, %c1_14, %c0_15, %c0_16] : memref<1x33x33x32xbf16, #tpu.memory_space<vmem>>, vector<1x32x32x32xbf16>
    %12 = vector.shape_cast %11 : vector<1x32x32x32xbf16> to vector<1024x32xbf16>
    %c2 = arith.constant 2 : index
    %c0_17 = arith.constant 0 : index
    %c0_18 = arith.constant 0 : index
    %13 = vector.load %arg2[%c2, %c0_17, %c0_18] : memref<4x32x16xbf16, #tpu.memory_space<vmem>>, vector<1x32x16xbf16>
    %14 = vector.shape_cast %13 : vector<1x32x16xbf16> to vector<32x16xbf16>
    %cst_19 = arith.constant dense<0.000000e+00> : vector<1024x16xf32>
    %15 = tpu.matmul %12, %14, %cst_19 {dimension_numbers = #tpu.dot_dimension_numbers<[1], [0], [0], [1], [0, 0, 1, 1], [], []>} : vector<1024x32xbf16>, vector<32x16xbf16>, vector<1024x16xf32> -> vector<1024x16xf32>
    %16 = arith.addf %10, %15 : vector<1024x16xf32>
    %c0_20 = arith.constant 0 : index
    %c1_21 = arith.constant 1 : index
    %c1_22 = arith.constant 1 : index
    %c0_23 = arith.constant 0 : index
    %17 = vector.load %arg1[%c0_20, %c1_21, %c1_22, %c0_23] : memref<1x33x33x32xbf16, #tpu.memory_space<vmem>>, vector<1x32x32x32xbf16>
    %18 = vector.shape_cast %17 : vector<1x32x32x32xbf16> to vector<1024x32xbf16>
    %c3 = arith.constant 3 : index
    %c0_24 = arith.constant 0 : index
    %c0_25 = arith.constant 0 : index
    %19 = vector.load %arg2[%c3, %c0_24, %c0_25] : memref<4x32x16xbf16, #tpu.memory_space<vmem>>, vector<1x32x16xbf16>
    %20 = vector.shape_cast %19 : vector<1x32x16xbf16> to vector<32x16xbf16>
    %cst_26 = arith.constant dense<0.000000e+00> : vector<1024x16xf32>
    %21 = tpu.matmul %18, %20, %cst_26 {dimension_numbers = #tpu.dot_dimension_numbers<[1], [0], [0], [1], [0, 0, 1, 1], [], []>} : vector<1024x32xbf16>, vector<32x16xbf16>, vector<1024x16xf32> -> vector<1024x16xf32>
    %22 = arith.addf %16, %21 : vector<1024x16xf32>
    %c0_27 = arith.constant 0 : index
    %c0_28 = arith.constant 0 : index
    %23 = vector.load %arg3[%c0_27, %c0_28] : memref<1x16xf32, #tpu.memory_space<vmem>>, vector<1x16xf32>
    %24 = vector.broadcast %23 : vector<1x16xf32> to vector<1024x16xf32>
    %25 = arith.addf %22, %24 : vector<1024x16xf32>
    %cst_29 = arith.constant 1.000000e-01 : f32
    %26 = vector.broadcast %cst_29 : f32 to vector<1024x16xf32>
    %27 = arith.mulf %26, %25 : vector<1024x16xf32>
    %28 = arith.maximumf %25, %27 : vector<1024x16xf32>
    %29 = arith.truncf %28 : vector<1024x16xf32> to vector<1024x16xbf16>
    %c0_30 = arith.constant 0 : index
    %c0_31 = arith.constant 0 : index
    %30 = vector.load %arg4[%c0_30, %c0_31] : memref<1024x16xbf16, #tpu.memory_space<vmem>>, vector<1024x16xbf16>
    tpu.vector_store %arg4[%c0_30, %c0_31], %29 {strides = array<i32>} : memref<1024x16xbf16, #tpu.memory_space<vmem>>, vector<1024x16xbf16>,
    return
  }
  func.func @transform_0(%arg0: i32) -> (i32, i32, i32, i32) {
    %c0_i32 = arith.constant 0 : i32
    %c0_i32_0 = arith.constant 0 : i32
    %c0_i32_1 = arith.constant 0 : i32
    %c0_i32_2 = arith.constant 0 : i32
    return %arg0, %c0_i32, %c0_i32_0, %c0_i32_1 : i32, i32, i32, i32
  }
  func.func @transform_1(%arg0: i32) -> (i32, i32, i32) {
    %c0_i32 = arith.constant 0 : i32
    %c0_i32_0 = arith.constant 0 : i32
    %c0_i32_1 = arith.constant 0 : i32
    %c0_i32_2 = arith.constant 0 : i32
    return %c0_i32, %c0_i32_0, %c0_i32_1 : i32, i32, i32
  }
  func.func @transform_2(%arg0: i32) -> (i32, i32) {
    %c0_i32 = arith.constant 0 : i32
    %c0_i32_0 = arith.constant 0 : i32
    %c0_i32_1 = arith.constant 0 : i32
    return %c0_i32, %c0_i32_0 : i32, i32
  }
  func.func @transform_3(%arg0: i32) -> (i32, i32) {
    %c0_i32 = arith.constant 0 : i32
    %c0_i32_0 = arith.constant 0 : i32
    return %arg0, %c0_i32 : i32, i32
  }
}

module attributes {stable_mosaic.version = 11 : i64} {
  func.func @_conv_bn_act_kernel(%arg0: i32, %arg1: i32, %arg2: memref<1x17x17x64xbf16, #tpu.memory_space<vmem>>, %arg3: memref<4x64x32xbf16, #tpu.memory_space<vmem>>, %arg4: memref<1x32xf32, #tpu.memory_space<vmem>>, %arg5: memref<1x32xf32, #tpu.memory_space<vmem>>, %arg6: memref<256x32xbf16, #tpu.memory_space<vmem>>, %arg7: memref<1x32xf32, #tpu.memory_space<vmem>>, %arg8: memref<1x32xf32, #tpu.memory_space<vmem>>) attributes {dimension_semantics = [#tpu.dimension_semantics<arbitrary>, #tpu.dimension_semantics<arbitrary>], iteration_bounds = array<i64: 2, 2>, scalar_prefetch = 0 : i64, scratch_operands = 2 : i64, tpu.core_type = #tpu.core_type<tc>, window_params = [{transform_indices = @transform_0, window_bounds = array<i64: 1, 17, 17, 64>}, {pipeline_mode = #tpu.pipeline_mode<synchronous>, transform_indices = @transform_1, window_bounds = array<i64: 4, 64, 32>}, {pipeline_mode = #tpu.pipeline_mode<synchronous>, transform_indices = @transform_2, window_bounds = array<i64: 1, 32>}, {pipeline_mode = #tpu.pipeline_mode<synchronous>, transform_indices = @transform_3, window_bounds = array<i64: 1, 32>}, {transform_indices = @transform_4, window_bounds = array<i64: 256, 32>}]} {
    %c0_i32 = arith.constant 0 : i32
    %0 = arith.cmpi eq, %arg0, %c0_i32 : i32
    %c0_i32_0 = arith.constant 0 : i32
    %1 = arith.cmpi eq, %arg1, %c0_i32_0 : i32
    %2 = arith.andi %0, %1 : i1
    %3 = arith.extui %2 : i1 to i32
    %c0_i32_1 = arith.constant 0 : i32
    %4 = arith.cmpi ne, %3, %c0_i32_1 : i32
    scf.if %4 {
      %cst_32 = arith.constant 0.000000e+00 : f32
      %34 = vector.broadcast %cst_32 : f32 to vector<1x32xf32>
      %c0_33 = arith.constant 0 : index
      %c0_34 = arith.constant 0 : index
      %35 = vector.load %arg7[%c0_33, %c0_34] : memref<1x32xf32, #tpu.memory_space<vmem>>, vector<1x32xf32>
      tpu.vector_store %arg7[%c0_33, %c0_34], %34 {strides = array<i32>} : memref<1x32xf32, #tpu.memory_space<vmem>>, vector<1x32xf32>,
      %cst_35 = arith.constant 0.000000e+00 : f32
      %36 = vector.broadcast %cst_35 : f32 to vector<1x32xf32>
      %c0_36 = arith.constant 0 : index
      %c0_37 = arith.constant 0 : index
      %37 = vector.load %arg8[%c0_36, %c0_37] : memref<1x32xf32, #tpu.memory_space<vmem>>, vector<1x32xf32>
      tpu.vector_store %arg8[%c0_36, %c0_37], %36 {strides = array<i32>} : memref<1x32xf32, #tpu.memory_space<vmem>>, vector<1x32xf32>,
    } else {
    }
    %c0 = arith.constant 0 : index
    %c0_2 = arith.constant 0 : index
    %c0_3 = arith.constant 0 : index
    %c0_4 = arith.constant 0 : index
    %5 = vector.load %arg2[%c0, %c0_2, %c0_3, %c0_4] : memref<1x17x17x64xbf16, #tpu.memory_space<vmem>>, vector<1x16x16x64xbf16>
    %6 = vector.shape_cast %5 : vector<1x16x16x64xbf16> to vector<256x64xbf16>
    %c0_5 = arith.constant 0 : index
    %c0_6 = arith.constant 0 : index
    %c0_7 = arith.constant 0 : index
    %7 = vector.load %arg3[%c0_5, %c0_6, %c0_7] : memref<4x64x32xbf16, #tpu.memory_space<vmem>>, vector<1x64x32xbf16>
    %8 = vector.shape_cast %7 : vector<1x64x32xbf16> to vector<64x32xbf16>
    %cst = arith.constant dense<0.000000e+00> : vector<256x32xf32>
    %9 = tpu.matmul %6, %8, %cst {dimension_numbers = #tpu.dot_dimension_numbers<[1], [0], [0], [1], [0, 0, 1, 1], [], []>} : vector<256x64xbf16>, vector<64x32xbf16>, vector<256x32xf32> -> vector<256x32xf32>
    %c0_8 = arith.constant 0 : index
    %c0_9 = arith.constant 0 : index
    %c1 = arith.constant 1 : index
    %c0_10 = arith.constant 0 : index
    %10 = vector.load %arg2[%c0_8, %c0_9, %c1, %c0_10] : memref<1x17x17x64xbf16, #tpu.memory_space<vmem>>, vector<1x16x16x64xbf16>
    %11 = vector.shape_cast %10 : vector<1x16x16x64xbf16> to vector<256x64xbf16>
    %c1_11 = arith.constant 1 : index
    %c0_12 = arith.constant 0 : index
    %c0_13 = arith.constant 0 : index
    %12 = vector.load %arg3[%c1_11, %c0_12, %c0_13] : memref<4x64x32xbf16, #tpu.memory_space<vmem>>, vector<1x64x32xbf16>
    %13 = vector.shape_cast %12 : vector<1x64x32xbf16> to vector<64x32xbf16>
    %cst_14 = arith.constant dense<0.000000e+00> : vector<256x32xf32>
    %14 = tpu.matmul %11, %13, %cst_14 {dimension_numbers = #tpu.dot_dimension_numbers<[1], [0], [0], [1], [0, 0, 1, 1], [], []>} : vector<256x64xbf16>, vector<64x32xbf16>, vector<256x32xf32> -> vector<256x32xf32>
    %15 = arith.addf %9, %14 : vector<256x32xf32>
    %c0_15 = arith.constant 0 : index
    %c1_16 = arith.constant 1 : index
    %c0_17 = arith.constant 0 : index
    %c0_18 = arith.constant 0 : index
    %16 = vector.load %arg2[%c0_15, %c1_16, %c0_17, %c0_18] : memref<1x17x17x64xbf16, #tpu.memory_space<vmem>>, vector<1x16x16x64xbf16>
    %17 = vector.shape_cast %16 : vector<1x16x16x64xbf16> to vector<256x64xbf16>
    %c2 = arith.constant 2 : index
    %c0_19 = arith.constant 0 : index
    %c0_20 = arith.constant 0 : index
    %18 = vector.load %arg3[%c2, %c0_19, %c0_20] : memref<4x64x32xbf16, #tpu.memory_space<vmem>>, vector<1x64x32xbf16>
    %19 = vector.shape_cast %18 : vector<1x64x32xbf16> to vector<64x32xbf16>
    %cst_21 = arith.constant dense<0.000000e+00> : vector<256x32xf32>
    %20 = tpu.matmul %17, %19, %cst_21 {dimension_numbers = #tpu.dot_dimension_numbers<[1], [0], [0], [1], [0, 0, 1, 1], [], []>} : vector<256x64xbf16>, vector<64x32xbf16>, vector<256x32xf32> -> vector<256x32xf32>
    %21 = arith.addf %15, %20 : vector<256x32xf32>
    %c0_22 = arith.constant 0 : index
    %c1_23 = arith.constant 1 : index
    %c1_24 = arith.constant 1 : index
    %c0_25 = arith.constant 0 : index
    %22 = vector.load %arg2[%c0_22, %c1_23, %c1_24, %c0_25] : memref<1x17x17x64xbf16, #tpu.memory_space<vmem>>, vector<1x16x16x64xbf16>
    %23 = vector.shape_cast %22 : vector<1x16x16x64xbf16> to vector<256x64xbf16>
    %c3 = arith.constant 3 : index
    %c0_26 = arith.constant 0 : index
    %c0_27 = arith.constant 0 : index
    %24 = vector.load %arg3[%c3, %c0_26, %c0_27] : memref<4x64x32xbf16, #tpu.memory_space<vmem>>, vector<1x64x32xbf16>
    %25 = vector.shape_cast %24 : vector<1x64x32xbf16> to vector<64x32xbf16>
    %cst_28 = arith.constant dense<0.000000e+00> : vector<256x32xf32>
    %26 = tpu.matmul %23, %25, %cst_28 {dimension_numbers = #tpu.dot_dimension_numbers<[1], [0], [0], [1], [0, 0, 1, 1], [], []>} : vector<256x64xbf16>, vector<64x32xbf16>, vector<256x32xf32> -> vector<256x32xf32>
    %27 = arith.addf %21, %26 : vector<256x32xf32>
    %c0_i32_29 = arith.constant 0 : i32
    %28 = arith.cmpi eq, %arg0, %c0_i32_29 : i32
    %29 = arith.extui %28 : i1 to i32
    %c0_i32_30 = arith.constant 0 : i32
    %30 = arith.cmpi ne, %29, %c0_i32_30 : i32
    scf.if %30 {
      %c0_32 = arith.constant 0 : index
      %c0_33 = arith.constant 0 : index
      %34 = vector.load %arg7[%c0_32, %c0_33] : memref<1x32xf32, #tpu.memory_space<vmem>>, vector<1x32xf32>
      %cst_34 = arith.constant dense<0.000000e+00> : vector<32xf32>
      %35 = vector.multi_reduction <add>, %27, %cst_34 [0] : vector<256x32xf32> to vector<32xf32>
      %36 = vector.shape_cast %35 : vector<32xf32> to vector<1x32xf32>
      %37 = arith.addf %34, %36 : vector<1x32xf32>
      %c0_35 = arith.constant 0 : index
      %c0_36 = arith.constant 0 : index
      %38 = vector.load %arg7[%c0_35, %c0_36] : memref<1x32xf32, #tpu.memory_space<vmem>>, vector<1x32xf32>
      tpu.vector_store %arg7[%c0_35, %c0_36], %37 {strides = array<i32>} : memref<1x32xf32, #tpu.memory_space<vmem>>, vector<1x32xf32>,
      %c0_37 = arith.constant 0 : index
      %c0_38 = arith.constant 0 : index
      %39 = vector.load %arg8[%c0_37, %c0_38] : memref<1x32xf32, #tpu.memory_space<vmem>>, vector<1x32xf32>
      %40 = arith.mulf %27, %27 : vector<256x32xf32>
      %cst_39 = arith.constant dense<0.000000e+00> : vector<32xf32>
      %41 = vector.multi_reduction <add>, %40, %cst_39 [0] : vector<256x32xf32> to vector<32xf32>
      %42 = vector.shape_cast %41 : vector<32xf32> to vector<1x32xf32>
      %43 = arith.addf %39, %42 : vector<1x32xf32>
      %c0_40 = arith.constant 0 : index
      %c0_41 = arith.constant 0 : index
      %44 = vector.load %arg8[%c0_40, %c0_41] : memref<1x32xf32, #tpu.memory_space<vmem>>, vector<1x32xf32>
      tpu.vector_store %arg8[%c0_40, %c0_41], %43 {strides = array<i32>} : memref<1x32xf32, #tpu.memory_space<vmem>>, vector<1x32xf32>,
    } else {
    }
    %c1_i32 = arith.constant 1 : i32
    %31 = arith.cmpi eq, %arg0, %c1_i32 : i32
    %32 = arith.extui %31 : i1 to i32
    %c0_i32_31 = arith.constant 0 : i32
    %33 = arith.cmpi ne, %32, %c0_i32_31 : i32
    scf.if %33 {
      %c0_32 = arith.constant 0 : index
      %c0_33 = arith.constant 0 : index
      %34 = vector.load %arg7[%c0_32, %c0_33] : memref<1x32xf32, #tpu.memory_space<vmem>>, vector<1x32xf32>
      %c0_34 = arith.constant 0 : index
      %c0_35 = arith.constant 0 : index
      %35 = vector.load %arg8[%c0_34, %c0_35] : memref<1x32xf32, #tpu.memory_space<vmem>>, vector<1x32xf32>
      %c0_36 = arith.constant 0 : index
      %c0_37 = arith.constant 0 : index
      %36 = vector.load %arg4[%c0_36, %c0_37] : memref<1x32xf32, #tpu.memory_space<vmem>>, vector<1x32xf32>
      %c0_38 = arith.constant 0 : index
      %c0_39 = arith.constant 0 : index
      %37 = vector.load %arg5[%c0_38, %c0_39] : memref<1x32xf32, #tpu.memory_space<vmem>>, vector<1x32xf32>
      %cst_40 = arith.constant 0.001953125 : f32
      %38 = vector.broadcast %cst_40 : f32 to vector<1x32xf32>
      %39 = arith.mulf %34, %38 : vector<1x32xf32>
      %cst_41 = arith.constant 0.001953125 : f32
      %40 = vector.broadcast %cst_41 : f32 to vector<1x32xf32>
      %41 = arith.mulf %35, %40 : vector<1x32xf32>
      %42 = arith.mulf %39, %39 : vector<1x32xf32>
      %43 = arith.subf %41, %42 : vector<1x32xf32>
      %cst_42 = arith.constant 0.000000e+00 : f32
      %44 = vector.broadcast %cst_42 : f32 to vector<1x32xf32>
      %45 = arith.maximumf %43, %44 : vector<1x32xf32>
      %cst_43 = arith.constant 9.99999974E-6 : f32
      %46 = vector.broadcast %cst_43 : f32 to vector<1x32xf32>
      %47 = arith.addf %45, %46 : vector<1x32xf32>
      %48 = math.rsqrt %47 : vector<1x32xf32>
      %49 = arith.mulf %36, %48 : vector<1x32xf32>
      %50 = arith.mulf %39, %49 : vector<1x32xf32>
      %51 = arith.subf %37, %50 : vector<1x32xf32>
      %52 = vector.broadcast %49 : vector<1x32xf32> to vector<256x32xf32>
      %53 = arith.mulf %27, %52 : vector<256x32xf32>
      %54 = vector.broadcast %51 : vector<1x32xf32> to vector<256x32xf32>
      %55 = arith.addf %53, %54 : vector<256x32xf32>
      %cst_44 = arith.constant 1.000000e-01 : f32
      %56 = vector.broadcast %cst_44 : f32 to vector<256x32xf32>
      %57 = arith.mulf %56, %55 : vector<256x32xf32>
      %58 = arith.maximumf %55, %57 : vector<256x32xf32>
      %59 = arith.truncf %58 : vector<256x32xf32> to vector<256x32xbf16>
      %c0_45 = arith.constant 0 : index
      %c0_46 = arith.constant 0 : index
      %60 = vector.load %arg6[%c0_45, %c0_46] : memref<256x32xbf16, #tpu.memory_space<vmem>>, vector<256x32xbf16>
      tpu.vector_store %arg6[%c0_45, %c0_46], %59 {strides = array<i32>} : memref<256x32xbf16, #tpu.memory_space<vmem>>, vector<256x32xbf16>,
    } else {
    }
    return
  }
  func.func @transform_0(%arg0: i32, %arg1: i32) -> (i32, i32, i32, i32) {
    %c0_i32 = arith.constant 0 : i32
    %c0_i32_0 = arith.constant 0 : i32
    %c0_i32_1 = arith.constant 0 : i32
    %c0_i32_2 = arith.constant 0 : i32
    return %arg1, %c0_i32, %c0_i32_0, %c0_i32_1 : i32, i32, i32, i32
  }
  func.func @transform_1(%arg0: i32, %arg1: i32) -> (i32, i32, i32) {
    %c0_i32 = arith.constant 0 : i32
    %c0_i32_0 = arith.constant 0 : i32
    %c0_i32_1 = arith.constant 0 : i32
    %c0_i32_2 = arith.constant 0 : i32
    return %c0_i32, %c0_i32_0, %c0_i32_1 : i32, i32, i32
  }
  func.func @transform_2(%arg0: i32, %arg1: i32) -> (i32, i32) {
    %c0_i32 = arith.constant 0 : i32
    %c0_i32_0 = arith.constant 0 : i32
    %c0_i32_1 = arith.constant 0 : i32
    return %c0_i32, %c0_i32_0 : i32, i32
  }
  func.func @transform_3(%arg0: i32, %arg1: i32) -> (i32, i32) {
    %c0_i32 = arith.constant 0 : i32
    %c0_i32_0 = arith.constant 0 : i32
    %c0_i32_1 = arith.constant 0 : i32
    return %c0_i32, %c0_i32_0 : i32, i32
  }
  func.func @transform_4(%arg0: i32, %arg1: i32) -> (i32, i32) {
    %0 = arith.muli %arg0, %arg1 : i32
    %c0_i32 = arith.constant 0 : i32
    %c0_i32_0 = arith.constant 0 : i32
    return %0, %c0_i32 : i32, i32
  }
}

module attributes {stable_mosaic.version = 11 : i64} {
  func.func @_conv_bn_act_kernel(%arg0: i32, %arg1: i32, %arg2: memref<1x9x9x128xbf16, #tpu.memory_space<vmem>>, %arg3: memref<4x128x64xbf16, #tpu.memory_space<vmem>>, %arg4: memref<1x64xf32, #tpu.memory_space<vmem>>, %arg5: memref<1x64xf32, #tpu.memory_space<vmem>>, %arg6: memref<64x64xbf16, #tpu.memory_space<vmem>>, %arg7: memref<1x64xf32, #tpu.memory_space<vmem>>, %arg8: memref<1x64xf32, #tpu.memory_space<vmem>>) attributes {dimension_semantics = [#tpu.dimension_semantics<arbitrary>, #tpu.dimension_semantics<arbitrary>], iteration_bounds = array<i64: 2, 2>, scalar_prefetch = 0 : i64, scratch_operands = 2 : i64, tpu.core_type = #tpu.core_type<tc>, window_params = [{transform_indices = @transform_0, window_bounds = array<i64: 1, 9, 9, 128>}, {pipeline_mode = #tpu.pipeline_mode<synchronous>, transform_indices = @transform_1, window_bounds = array<i64: 4, 128, 64>}, {pipeline_mode = #tpu.pipeline_mode<synchronous>, transform_indices = @transform_2, window_bounds = array<i64: 1, 64>}, {pipeline_mode = #tpu.pipeline_mode<synchronous>, transform_indices = @transform_3, window_bounds = array<i64: 1, 64>}, {transform_indices = @transform_4, window_bounds = array<i64: 64, 64>}]} {
    %c0_i32 = arith.constant 0 : i32
    %0 = arith.cmpi eq, %arg0, %c0_i32 : i32
    %c0_i32_0 = arith.constant 0 : i32
    %1 = arith.cmpi eq, %arg1, %c0_i32_0 : i32
    %2 = arith.andi %0, %1 : i1
    %3 = arith.extui %2 : i1 to i32
    %c0_i32_1 = arith.constant 0 : i32
    %4 = arith.cmpi ne, %3, %c0_i32_1 : i32
    scf.if %4 {
      %cst_32 = arith.constant 0.000000e+00 : f32
      %34 = vector.broadcast %cst_32 : f32 to vector<1x64xf32>
      %c0_33 = arith.constant 0 : index
      %c0_34 = arith.constant 0 : index
      %35 = vector.load %arg7[%c0_33, %c0_34] : memref<1x64xf32, #tpu.memory_space<vmem>>, vector<1x64xf32>
      tpu.vector_store %arg7[%c0_33, %c0_34], %34 {strides = array<i32>} : memref<1x64xf32, #tpu.memory_space<vmem>>, vector<1x64xf32>,
      %cst_35 = arith.constant 0.000000e+00 : f32
      %36 = vector.broadcast %cst_35 : f32 to vector<1x64xf32>
      %c0_36 = arith.constant 0 : index
      %c0_37 = arith.constant 0 : index
      %37 = vector.load %arg8[%c0_36, %c0_37] : memref<1x64xf32, #tpu.memory_space<vmem>>, vector<1x64xf32>
      tpu.vector_store %arg8[%c0_36, %c0_37], %36 {strides = array<i32>} : memref<1x64xf32, #tpu.memory_space<vmem>>, vector<1x64xf32>,
    } else {
    }
    %c0 = arith.constant 0 : index
    %c0_2 = arith.constant 0 : index
    %c0_3 = arith.constant 0 : index
    %c0_4 = arith.constant 0 : index
    %5 = vector.load %arg2[%c0, %c0_2, %c0_3, %c0_4] : memref<1x9x9x128xbf16, #tpu.memory_space<vmem>>, vector<1x8x8x128xbf16>
    %6 = vector.shape_cast %5 : vector<1x8x8x128xbf16> to vector<64x128xbf16>
    %c0_5 = arith.constant 0 : index
    %c0_6 = arith.constant 0 : index
    %c0_7 = arith.constant 0 : index
    %7 = vector.load %arg3[%c0_5, %c0_6, %c0_7] : memref<4x128x64xbf16, #tpu.memory_space<vmem>>, vector<1x128x64xbf16>
    %8 = vector.shape_cast %7 : vector<1x128x64xbf16> to vector<128x64xbf16>
    %cst = arith.constant dense<0.000000e+00> : vector<64x64xf32>
    %9 = tpu.matmul %6, %8, %cst {dimension_numbers = #tpu.dot_dimension_numbers<[1], [0], [0], [1], [0, 0, 1, 1], [], []>} : vector<64x128xbf16>, vector<128x64xbf16>, vector<64x64xf32> -> vector<64x64xf32>
    %c0_8 = arith.constant 0 : index
    %c0_9 = arith.constant 0 : index
    %c1 = arith.constant 1 : index
    %c0_10 = arith.constant 0 : index
    %10 = vector.load %arg2[%c0_8, %c0_9, %c1, %c0_10] : memref<1x9x9x128xbf16, #tpu.memory_space<vmem>>, vector<1x8x8x128xbf16>
    %11 = vector.shape_cast %10 : vector<1x8x8x128xbf16> to vector<64x128xbf16>
    %c1_11 = arith.constant 1 : index
    %c0_12 = arith.constant 0 : index
    %c0_13 = arith.constant 0 : index
    %12 = vector.load %arg3[%c1_11, %c0_12, %c0_13] : memref<4x128x64xbf16, #tpu.memory_space<vmem>>, vector<1x128x64xbf16>
    %13 = vector.shape_cast %12 : vector<1x128x64xbf16> to vector<128x64xbf16>
    %cst_14 = arith.constant dense<0.000000e+00> : vector<64x64xf32>
    %14 = tpu.matmul %11, %13, %cst_14 {dimension_numbers = #tpu.dot_dimension_numbers<[1], [0], [0], [1], [0, 0, 1, 1], [], []>} : vector<64x128xbf16>, vector<128x64xbf16>, vector<64x64xf32> -> vector<64x64xf32>
    %15 = arith.addf %9, %14 : vector<64x64xf32>
    %c0_15 = arith.constant 0 : index
    %c1_16 = arith.constant 1 : index
    %c0_17 = arith.constant 0 : index
    %c0_18 = arith.constant 0 : index
    %16 = vector.load %arg2[%c0_15, %c1_16, %c0_17, %c0_18] : memref<1x9x9x128xbf16, #tpu.memory_space<vmem>>, vector<1x8x8x128xbf16>
    %17 = vector.shape_cast %16 : vector<1x8x8x128xbf16> to vector<64x128xbf16>
    %c2 = arith.constant 2 : index
    %c0_19 = arith.constant 0 : index
    %c0_20 = arith.constant 0 : index
    %18 = vector.load %arg3[%c2, %c0_19, %c0_20] : memref<4x128x64xbf16, #tpu.memory_space<vmem>>, vector<1x128x64xbf16>
    %19 = vector.shape_cast %18 : vector<1x128x64xbf16> to vector<128x64xbf16>
    %cst_21 = arith.constant dense<0.000000e+00> : vector<64x64xf32>
    %20 = tpu.matmul %17, %19, %cst_21 {dimension_numbers = #tpu.dot_dimension_numbers<[1], [0], [0], [1], [0, 0, 1, 1], [], []>} : vector<64x128xbf16>, vector<128x64xbf16>, vector<64x64xf32> -> vector<64x64xf32>
    %21 = arith.addf %15, %20 : vector<64x64xf32>
    %c0_22 = arith.constant 0 : index
    %c1_23 = arith.constant 1 : index
    %c1_24 = arith.constant 1 : index
    %c0_25 = arith.constant 0 : index
    %22 = vector.load %arg2[%c0_22, %c1_23, %c1_24, %c0_25] : memref<1x9x9x128xbf16, #tpu.memory_space<vmem>>, vector<1x8x8x128xbf16>
    %23 = vector.shape_cast %22 : vector<1x8x8x128xbf16> to vector<64x128xbf16>
    %c3 = arith.constant 3 : index
    %c0_26 = arith.constant 0 : index
    %c0_27 = arith.constant 0 : index
    %24 = vector.load %arg3[%c3, %c0_26, %c0_27] : memref<4x128x64xbf16, #tpu.memory_space<vmem>>, vector<1x128x64xbf16>
    %25 = vector.shape_cast %24 : vector<1x128x64xbf16> to vector<128x64xbf16>
    %cst_28 = arith.constant dense<0.000000e+00> : vector<64x64xf32>
    %26 = tpu.matmul %23, %25, %cst_28 {dimension_numbers = #tpu.dot_dimension_numbers<[1], [0], [0], [1], [0, 0, 1, 1], [], []>} : vector<64x128xbf16>, vector<128x64xbf16>, vector<64x64xf32> -> vector<64x64xf32>
    %27 = arith.addf %21, %26 : vector<64x64xf32>
    %c0_i32_29 = arith.constant 0 : i32
    %28 = arith.cmpi eq, %arg0, %c0_i32_29 : i32
    %29 = arith.extui %28 : i1 to i32
    %c0_i32_30 = arith.constant 0 : i32
    %30 = arith.cmpi ne, %29, %c0_i32_30 : i32
    scf.if %30 {
      %c0_32 = arith.constant 0 : index
      %c0_33 = arith.constant 0 : index
      %34 = vector.load %arg7[%c0_32, %c0_33] : memref<1x64xf32, #tpu.memory_space<vmem>>, vector<1x64xf32>
      %cst_34 = arith.constant dense<0.000000e+00> : vector<64xf32>
      %35 = vector.multi_reduction <add>, %27, %cst_34 [0] : vector<64x64xf32> to vector<64xf32>
      %36 = vector.shape_cast %35 : vector<64xf32> to vector<1x64xf32>
      %37 = arith.addf %34, %36 : vector<1x64xf32>
      %c0_35 = arith.constant 0 : index
      %c0_36 = arith.constant 0 : index
      %38 = vector.load %arg7[%c0_35, %c0_36] : memref<1x64xf32, #tpu.memory_space<vmem>>, vector<1x64xf32>
      tpu.vector_store %arg7[%c0_35, %c0_36], %37 {strides = array<i32>} : memref<1x64xf32, #tpu.memory_space<vmem>>, vector<1x64xf32>,
      %c0_37 = arith.constant 0 : index
      %c0_38 = arith.constant 0 : index
      %39 = vector.load %arg8[%c0_37, %c0_38] : memref<1x64xf32, #tpu.memory_space<vmem>>, vector<1x64xf32>
      %40 = arith.mulf %27, %27 : vector<64x64xf32>
      %cst_39 = arith.constant dense<0.000000e+00> : vector<64xf32>
      %41 = vector.multi_reduction <add>, %40, %cst_39 [0] : vector<64x64xf32> to vector<64xf32>
      %42 = vector.shape_cast %41 : vector<64xf32> to vector<1x64xf32>
      %43 = arith.addf %39, %42 : vector<1x64xf32>
      %c0_40 = arith.constant 0 : index
      %c0_41 = arith.constant 0 : index
      %44 = vector.load %arg8[%c0_40, %c0_41] : memref<1x64xf32, #tpu.memory_space<vmem>>, vector<1x64xf32>
      tpu.vector_store %arg8[%c0_40, %c0_41], %43 {strides = array<i32>} : memref<1x64xf32, #tpu.memory_space<vmem>>, vector<1x64xf32>,
    } else {
    }
    %c1_i32 = arith.constant 1 : i32
    %31 = arith.cmpi eq, %arg0, %c1_i32 : i32
    %32 = arith.extui %31 : i1 to i32
    %c0_i32_31 = arith.constant 0 : i32
    %33 = arith.cmpi ne, %32, %c0_i32_31 : i32
    scf.if %33 {
      %c0_32 = arith.constant 0 : index
      %c0_33 = arith.constant 0 : index
      %34 = vector.load %arg7[%c0_32, %c0_33] : memref<1x64xf32, #tpu.memory_space<vmem>>, vector<1x64xf32>
      %c0_34 = arith.constant 0 : index
      %c0_35 = arith.constant 0 : index
      %35 = vector.load %arg8[%c0_34, %c0_35] : memref<1x64xf32, #tpu.memory_space<vmem>>, vector<1x64xf32>
      %c0_36 = arith.constant 0 : index
      %c0_37 = arith.constant 0 : index
      %36 = vector.load %arg4[%c0_36, %c0_37] : memref<1x64xf32, #tpu.memory_space<vmem>>, vector<1x64xf32>
      %c0_38 = arith.constant 0 : index
      %c0_39 = arith.constant 0 : index
      %37 = vector.load %arg5[%c0_38, %c0_39] : memref<1x64xf32, #tpu.memory_space<vmem>>, vector<1x64xf32>
      %cst_40 = arith.constant 7.812500e-03 : f32
      %38 = vector.broadcast %cst_40 : f32 to vector<1x64xf32>
      %39 = arith.mulf %34, %38 : vector<1x64xf32>
      %cst_41 = arith.constant 7.812500e-03 : f32
      %40 = vector.broadcast %cst_41 : f32 to vector<1x64xf32>
      %41 = arith.mulf %35, %40 : vector<1x64xf32>
      %42 = arith.mulf %39, %39 : vector<1x64xf32>
      %43 = arith.subf %41, %42 : vector<1x64xf32>
      %cst_42 = arith.constant 0.000000e+00 : f32
      %44 = vector.broadcast %cst_42 : f32 to vector<1x64xf32>
      %45 = arith.maximumf %43, %44 : vector<1x64xf32>
      %cst_43 = arith.constant 9.99999974E-6 : f32
      %46 = vector.broadcast %cst_43 : f32 to vector<1x64xf32>
      %47 = arith.addf %45, %46 : vector<1x64xf32>
      %48 = math.rsqrt %47 : vector<1x64xf32>
      %49 = arith.mulf %36, %48 : vector<1x64xf32>
      %50 = arith.mulf %39, %49 : vector<1x64xf32>
      %51 = arith.subf %37, %50 : vector<1x64xf32>
      %52 = vector.broadcast %49 : vector<1x64xf32> to vector<64x64xf32>
      %53 = arith.mulf %27, %52 : vector<64x64xf32>
      %54 = vector.broadcast %51 : vector<1x64xf32> to vector<64x64xf32>
      %55 = arith.addf %53, %54 : vector<64x64xf32>
      %cst_44 = arith.constant 1.000000e-01 : f32
      %56 = vector.broadcast %cst_44 : f32 to vector<64x64xf32>
      %57 = arith.mulf %56, %55 : vector<64x64xf32>
      %58 = arith.maximumf %55, %57 : vector<64x64xf32>
      %59 = arith.truncf %58 : vector<64x64xf32> to vector<64x64xbf16>
      %c0_45 = arith.constant 0 : index
      %c0_46 = arith.constant 0 : index
      %60 = vector.load %arg6[%c0_45, %c0_46] : memref<64x64xbf16, #tpu.memory_space<vmem>>, vector<64x64xbf16>
      tpu.vector_store %arg6[%c0_45, %c0_46], %59 {strides = array<i32>} : memref<64x64xbf16, #tpu.memory_space<vmem>>, vector<64x64xbf16>,
    } else {
    }
    return
  }
  func.func @transform_0(%arg0: i32, %arg1: i32) -> (i32, i32, i32, i32) {
    %c0_i32 = arith.constant 0 : i32
    %c0_i32_0 = arith.constant 0 : i32
    %c0_i32_1 = arith.constant 0 : i32
    %c0_i32_2 = arith.constant 0 : i32
    return %arg1, %c0_i32, %c0_i32_0, %c0_i32_1 : i32, i32, i32, i32
  }
  func.func @transform_1(%arg0: i32, %arg1: i32) -> (i32, i32, i32) {
    %c0_i32 = arith.constant 0 : i32
    %c0_i32_0 = arith.constant 0 : i32
    %c0_i32_1 = arith.constant 0 : i32
    %c0_i32_2 = arith.constant 0 : i32
    return %c0_i32, %c0_i32_0, %c0_i32_1 : i32, i32, i32
  }
  func.func @transform_2(%arg0: i32, %arg1: i32) -> (i32, i32) {
    %c0_i32 = arith.constant 0 : i32
    %c0_i32_0 = arith.constant 0 : i32
    %c0_i32_1 = arith.constant 0 : i32
    return %c0_i32, %c0_i32_0 : i32, i32
  }
  func.func @transform_3(%arg0: i32, %arg1: i32) -> (i32, i32) {
    %c0_i32 = arith.constant 0 : i32
    %c0_i32_0 = arith.constant 0 : i32
    %c0_i32_1 = arith.constant 0 : i32
    return %c0_i32, %c0_i32_0 : i32, i32
  }
  func.func @transform_4(%arg0: i32, %arg1: i32) -> (i32, i32) {
    %0 = arith.muli %arg0, %arg1 : i32
    %c0_i32 = arith.constant 0 : i32
    %c0_i32_0 = arith.constant 0 : i32
    return %0, %c0_i32 : i32, i32
  }
}

module attributes {stable_mosaic.version = 11 : i64} {
  func.func @_conv_bn_head_kernel(%arg0: i32, %arg1: i32, %arg2: memref<32x1024xbf16, #tpu.memory_space<vmem>>, %arg3: memref<1024x128xbf16, #tpu.memory_space<vmem>>, %arg4: memref<1x128xf32, #tpu.memory_space<vmem>>, %arg5: memref<1x128xf32, #tpu.memory_space<vmem>>, %arg6: memref<16x128xbf16, #tpu.memory_space<vmem>>, %arg7: memref<1x1xf32, #tpu.memory_space<vmem>>, %arg8: memref<2x1xf32, #tpu.memory_space<vmem>>, %arg9: memref<1x128xf32, #tpu.memory_space<vmem>>, %arg10: memref<1x128xf32, #tpu.memory_space<vmem>>) attributes {dimension_semantics = [#tpu.dimension_semantics<arbitrary>, #tpu.dimension_semantics<arbitrary>], iteration_bounds = array<i64: 2, 1>, scalar_prefetch = 0 : i64, scratch_operands = 2 : i64, tpu.core_type = #tpu.core_type<tc>, window_params = [{transform_indices = @transform_0, window_bounds = array<i64: 32, 1024>}, {pipeline_mode = #tpu.pipeline_mode<synchronous>, transform_indices = @transform_1, window_bounds = array<i64: 1024, 128>}, {pipeline_mode = #tpu.pipeline_mode<synchronous>, transform_indices = @transform_2, window_bounds = array<i64: 1, 128>}, {pipeline_mode = #tpu.pipeline_mode<synchronous>, transform_indices = @transform_3, window_bounds = array<i64: 1, 128>}, {pipeline_mode = #tpu.pipeline_mode<synchronous>, transform_indices = @transform_4, window_bounds = array<i64: 16, 128>}, {pipeline_mode = #tpu.pipeline_mode<synchronous>, transform_indices = @transform_5, window_bounds = array<i64: 1, 1>}, {transform_indices = @transform_6, window_bounds = array<i64: 2, 1>}]} {
    %c0_i32 = arith.constant 0 : i32
    %0 = arith.cmpi eq, %arg0, %c0_i32 : i32
    %c0_i32_0 = arith.constant 0 : i32
    %1 = arith.cmpi eq, %arg1, %c0_i32_0 : i32
    %2 = arith.andi %0, %1 : i1
    %3 = arith.extui %2 : i1 to i32
    %c0_i32_1 = arith.constant 0 : i32
    %4 = arith.cmpi ne, %3, %c0_i32_1 : i32
    scf.if %4 {
      %cst_8 = arith.constant 0.000000e+00 : f32
      %14 = vector.broadcast %cst_8 : f32 to vector<1x128xf32>
      %c0_9 = arith.constant 0 : index
      %c0_10 = arith.constant 0 : index
      %15 = vector.load %arg9[%c0_9, %c0_10] : memref<1x128xf32, #tpu.memory_space<vmem>>, vector<1x128xf32>
      tpu.vector_store %arg9[%c0_9, %c0_10], %14 {strides = array<i32>} : memref<1x128xf32, #tpu.memory_space<vmem>>, vector<1x128xf32>,
      %cst_11 = arith.constant 0.000000e+00 : f32
      %16 = vector.broadcast %cst_11 : f32 to vector<1x128xf32>
      %c0_12 = arith.constant 0 : index
      %c0_13 = arith.constant 0 : index
      %17 = vector.load %arg10[%c0_12, %c0_13] : memref<1x128xf32, #tpu.memory_space<vmem>>, vector<1x128xf32>
      tpu.vector_store %arg10[%c0_12, %c0_13], %16 {strides = array<i32>} : memref<1x128xf32, #tpu.memory_space<vmem>>, vector<1x128xf32>,
    } else {
    }
    %c0 = arith.constant 0 : index
    %c0_2 = arith.constant 0 : index
    %5 = vector.load %arg2[%c0, %c0_2] : memref<32x1024xbf16, #tpu.memory_space<vmem>>, vector<32x1024xbf16>
    %c0_3 = arith.constant 0 : index
    %c0_4 = arith.constant 0 : index
    %6 = vector.load %arg3[%c0_3, %c0_4] : memref<1024x128xbf16, #tpu.memory_space<vmem>>, vector<1024x128xbf16>
    %cst = arith.constant dense<0.000000e+00> : vector<32x128xf32>
    %7 = tpu.matmul %5, %6, %cst {dimension_numbers = #tpu.dot_dimension_numbers<[1], [0], [0], [1], [0, 0, 1, 1], [], []>} : vector<32x1024xbf16>, vector<1024x128xbf16>, vector<32x128xf32> -> vector<32x128xf32>
    %c0_i32_5 = arith.constant 0 : i32
    %8 = arith.cmpi eq, %arg0, %c0_i32_5 : i32
    %9 = arith.extui %8 : i1 to i32
    %c0_i32_6 = arith.constant 0 : i32
    %10 = arith.cmpi ne, %9, %c0_i32_6 : i32
    scf.if %10 {
      %c0_8 = arith.constant 0 : index
      %c0_9 = arith.constant 0 : index
      %14 = vector.load %arg9[%c0_8, %c0_9] : memref<1x128xf32, #tpu.memory_space<vmem>>, vector<1x128xf32>
      %cst_10 = arith.constant dense<0.000000e+00> : vector<128xf32>
      %15 = vector.multi_reduction <add>, %7, %cst_10 [0] : vector<32x128xf32> to vector<128xf32>
      %16 = vector.shape_cast %15 : vector<128xf32> to vector<1x128xf32>
      %17 = arith.addf %14, %16 : vector<1x128xf32>
      %c0_11 = arith.constant 0 : index
      %c0_12 = arith.constant 0 : index
      %18 = vector.load %arg9[%c0_11, %c0_12] : memref<1x128xf32, #tpu.memory_space<vmem>>, vector<1x128xf32>
      tpu.vector_store %arg9[%c0_11, %c0_12], %17 {strides = array<i32>} : memref<1x128xf32, #tpu.memory_space<vmem>>, vector<1x128xf32>,
      %c0_13 = arith.constant 0 : index
      %c0_14 = arith.constant 0 : index
      %19 = vector.load %arg10[%c0_13, %c0_14] : memref<1x128xf32, #tpu.memory_space<vmem>>, vector<1x128xf32>
      %20 = arith.mulf %7, %7 : vector<32x128xf32>
      %cst_15 = arith.constant dense<0.000000e+00> : vector<128xf32>
      %21 = vector.multi_reduction <add>, %20, %cst_15 [0] : vector<32x128xf32> to vector<128xf32>
      %22 = vector.shape_cast %21 : vector<128xf32> to vector<1x128xf32>
      %23 = arith.addf %19, %22 : vector<1x128xf32>
      %c0_16 = arith.constant 0 : index
      %c0_17 = arith.constant 0 : index
      %24 = vector.load %arg10[%c0_16, %c0_17] : memref<1x128xf32, #tpu.memory_space<vmem>>, vector<1x128xf32>
      tpu.vector_store %arg10[%c0_16, %c0_17], %23 {strides = array<i32>} : memref<1x128xf32, #tpu.memory_space<vmem>>, vector<1x128xf32>,
    } else {
    }
    %c1_i32 = arith.constant 1 : i32
    %11 = arith.cmpi eq, %arg0, %c1_i32 : i32
    %12 = arith.extui %11 : i1 to i32
    %c0_i32_7 = arith.constant 0 : i32
    %13 = arith.cmpi ne, %12, %c0_i32_7 : i32
    scf.if %13 {
      %c0_8 = arith.constant 0 : index
      %c0_9 = arith.constant 0 : index
      %14 = vector.load %arg9[%c0_8, %c0_9] : memref<1x128xf32, #tpu.memory_space<vmem>>, vector<1x128xf32>
      %c0_10 = arith.constant 0 : index
      %c0_11 = arith.constant 0 : index
      %15 = vector.load %arg10[%c0_10, %c0_11] : memref<1x128xf32, #tpu.memory_space<vmem>>, vector<1x128xf32>
      %c0_12 = arith.constant 0 : index
      %c0_13 = arith.constant 0 : index
      %16 = vector.load %arg4[%c0_12, %c0_13] : memref<1x128xf32, #tpu.memory_space<vmem>>, vector<1x128xf32>
      %c0_14 = arith.constant 0 : index
      %c0_15 = arith.constant 0 : index
      %17 = vector.load %arg5[%c0_14, %c0_15] : memref<1x128xf32, #tpu.memory_space<vmem>>, vector<1x128xf32>
      %cst_16 = arith.constant 3.125000e-02 : f32
      %18 = vector.broadcast %cst_16 : f32 to vector<1x128xf32>
      %19 = arith.mulf %14, %18 : vector<1x128xf32>
      %cst_17 = arith.constant 3.125000e-02 : f32
      %20 = vector.broadcast %cst_17 : f32 to vector<1x128xf32>
      %21 = arith.mulf %15, %20 : vector<1x128xf32>
      %22 = arith.mulf %19, %19 : vector<1x128xf32>
      %23 = arith.subf %21, %22 : vector<1x128xf32>
      %cst_18 = arith.constant 0.000000e+00 : f32
      %24 = vector.broadcast %cst_18 : f32 to vector<1x128xf32>
      %25 = arith.maximumf %23, %24 : vector<1x128xf32>
      %cst_19 = arith.constant 9.99999974E-6 : f32
      %26 = vector.broadcast %cst_19 : f32 to vector<1x128xf32>
      %27 = arith.addf %25, %26 : vector<1x128xf32>
      %28 = math.rsqrt %27 : vector<1x128xf32>
      %29 = arith.mulf %16, %28 : vector<1x128xf32>
      %30 = arith.mulf %19, %29 : vector<1x128xf32>
      %31 = arith.subf %17, %30 : vector<1x128xf32>
      %32 = vector.broadcast %29 : vector<1x128xf32> to vector<32x128xf32>
      %33 = arith.mulf %7, %32 : vector<32x128xf32>
      %34 = vector.broadcast %31 : vector<1x128xf32> to vector<32x128xf32>
      %35 = arith.addf %33, %34 : vector<32x128xf32>
      %cst_20 = arith.constant 1.000000e-01 : f32
      %36 = vector.broadcast %cst_20 : f32 to vector<32x128xf32>
      %37 = arith.mulf %36, %35 : vector<32x128xf32>
      %38 = arith.maximumf %35, %37 : vector<32x128xf32>
      %39 = vector.shape_cast %38 : vector<32x128xf32> to vector<2x16x128xf32>
      %c0_21 = arith.constant 0 : index
      %c0_22 = arith.constant 0 : index
      %40 = vector.load %arg6[%c0_21, %c0_22] : memref<16x128xbf16, #tpu.memory_space<vmem>>, vector<16x128xbf16>
      %41 = arith.extf %40 : vector<16x128xbf16> to vector<16x128xf32>
      %42 = vector.shape_cast %41 : vector<16x128xf32> to vector<1x16x128xf32>
      %43 = vector.broadcast %42 : vector<1x16x128xf32> to vector<2x16x128xf32>
      %44 = arith.mulf %39, %43 : vector<2x16x128xf32>
      %cst_23 = arith.constant dense<0.000000e+00> : vector<2x128xf32>
      %45 = vector.multi_reduction <add>, %44, %cst_23 [1] : vector<2x16x128xf32> to vector<2x128xf32>
      %cst_24 = arith.constant dense<0.000000e+00> : vector<2xf32>
      %46 = vector.multi_reduction <add>, %45, %cst_24 [1] : vector<2x128xf32> to vector<2xf32>
      %47 = vector.shape_cast %46 : vector<2xf32> to vector<2x1xf32>
      %c0_25 = arith.constant 0 : index
      %c0_26 = arith.constant 0 : index
      %48 = vector.load %arg7[%c0_25, %c0_26] : memref<1x1xf32, #tpu.memory_space<vmem>>, vector<1x1xf32>
      %49 = vector.broadcast %48 : vector<1x1xf32> to vector<2x1xf32>
      %50 = arith.addf %47, %49 : vector<2x1xf32>
      %c0_27 = arith.constant 0 : index
      %c0_28 = arith.constant 0 : index
      %51 = vector.load %arg8[%c0_27, %c0_28] : memref<2x1xf32, #tpu.memory_space<vmem>>, vector<2x1xf32>
      tpu.vector_store %arg8[%c0_27, %c0_28], %50 {strides = array<i32>} : memref<2x1xf32, #tpu.memory_space<vmem>>, vector<2x1xf32>,
    } else {
    }
    return
  }
  func.func @transform_0(%arg0: i32, %arg1: i32) -> (i32, i32) {
    %c0_i32 = arith.constant 0 : i32
    %c0_i32_0 = arith.constant 0 : i32
    return %arg1, %c0_i32 : i32, i32
  }
  func.func @transform_1(%arg0: i32, %arg1: i32) -> (i32, i32) {
    %c0_i32 = arith.constant 0 : i32
    %c0_i32_0 = arith.constant 0 : i32
    %c0_i32_1 = arith.constant 0 : i32
    return %c0_i32, %c0_i32_0 : i32, i32
  }
  func.func @transform_2(%arg0: i32, %arg1: i32) -> (i32, i32) {
    %c0_i32 = arith.constant 0 : i32
    %c0_i32_0 = arith.constant 0 : i32
    %c0_i32_1 = arith.constant 0 : i32
    return %c0_i32, %c0_i32_0 : i32, i32
  }
  func.func @transform_3(%arg0: i32, %arg1: i32) -> (i32, i32) {
    %c0_i32 = arith.constant 0 : i32
    %c0_i32_0 = arith.constant 0 : i32
    %c0_i32_1 = arith.constant 0 : i32
    return %c0_i32, %c0_i32_0 : i32, i32
  }
  func.func @transform_4(%arg0: i32, %arg1: i32) -> (i32, i32) {
    %c0_i32 = arith.constant 0 : i32
    %c0_i32_0 = arith.constant 0 : i32
    %c0_i32_1 = arith.constant 0 : i32
    return %c0_i32, %c0_i32_0 : i32, i32
  }
  func.func @transform_5(%arg0: i32, %arg1: i32) -> (i32, i32) {
    %c0_i32 = arith.constant 0 : i32
    %c0_i32_0 = arith.constant 0 : i32
    %c0_i32_1 = arith.constant 0 : i32
    return %c0_i32, %c0_i32_0 : i32, i32
  }
  func.func @transform_6(%arg0: i32, %arg1: i32) -> (i32, i32) {
    %0 = arith.muli %arg0, %arg1 : i32
    %c0_i32 = arith.constant 0 : i32
    %c0_i32_0 = arith.constant 0 : i32
    return %0, %c0_i32 : i32, i32
  }
}

</mosaic_0001>

<bundles_post_ra>
// kernel: netd_dcgan_forward.5
= control target key start
LH: loop header
LB: loop body
LE: loop exit
PB: predicated region body
PF: predicated region fallthrough
CT: control target
= control target key end

     0   :  { %s3134_s15 = smov 0   ;;  %s3136_s16 = smov 0   ;;  %s3971_s0 = inlined_call_operand.vmem [shape: bf16[2,17,17,64], index: 0, kind: input, shape index: {}]   ;;  %s3972_s1 = inlined_call_operand.vmem [shape: bf16[4,64,32], index: 1, kind: input, shape index: {}]   ;;  %s3973_s2 = inlined_call_operand.vmem [shape: f32[1,32], index: 2, kind: input, shape index: {}]   ;;  %s3974_s3 = inlined_call_operand.vmem [shape: f32[1,32], index: 3, kind: input, shape index: {}]   ;;  %s3975_s4 = inlined_call_operand.vmem [shape: bf16[512,32], index: 4, kind: output, shape index: {}]  }
   0x1   :  { %s3138_s17 = smov 0   ;;  %s3140_s18 = smov 0  }
   0x2   :  { %s3142_s19 = smov 0  }
   0x3 LB: > { %s23_s20 = sadd.s32 1, %s3098_s17  ;;  %s26_s21 = sadd.s32 1, %s3102_s18  ;;  %s3106_s19 = sphi %s3142_s19, %s14_s19   ;;  %s3102_s18 = sphi %s3140_s18, %s3981_s18   ;;  %s3098_s17 = sphi %s3138_s17, %s3980_s17   ;;  %s3094_s16 = sphi %s3136_s16, %s3979_s16   ;;  %s3090_s15 = sphi %s3134_s15, %s3978_s15  }
   0x4   : > { %p24_p0 = scmp.ge.s32.totalorder %s23_s20, 2  ;;  %p2608_p1 = scmp.ge.s32.totalorder %s3106_s19, 1 }
   0x5   : > { %p176_p2 = scmp.lt.s32.totalorder %s3106_s19, 5 }
   0x6   : > { %s3983_s20 = smov (%p24_p0, %s23_s20), 0  ;;  %s3985_s21 = smov (!%p24_p0, %s26_s21), %s3102_s18 }
   0x7   : > { %p177_p3 = pnand %p2608_p1, %p176_p2  ;;  %p28_p4 = scmp.ge.s32.totalorder %s3985_s21, 2 }
   0x8   : > { %p203_p5 = scmp.lt.s32.totalorder (!%p177_p3), %s3090_s15, 1  ;;  %s208_s22 = smul.u32 (!%p177_p3), %s3090_s15, %s3094_s16 }
   0x9   : > { %s3987_s21 = smov (%p28_p4, %s3985_s21), 0  ;;  %180 = sbr.rel (%p177_p3) target bundleno = 595 (0x253), region = 36 }
   0xa   : > { %p217_p6 = scmp.eq.s32.totalorder (!%p177_p3), %s3094_s16, 0  ;;  %p218_p7 = scmp.eq.s32.totalorder (!%p177_p3), %s3090_s15, 0 }
   0xb   : > { %s2610_s23 = sshll.u32 (!%p177_p3), %s208_s22, 5 }
   0xc   : > { %p219_p8 = pnand (!%p177_p3), %p218_p7, %p217_p6  ;;  %p210_p9 = scmp.lt.s32.totalorder (!%p177_p3), %s2610_s23, 63 }
   0xe   : > { %s3989_s15 = smov (!%p203_p5, %s3090_s15), 1  ;;  %s3991_s23 = smov (!%p210_p9, %s2610_s23), 63 }
   0xf   : > { %s3024_s24 = smul.u32 204, %s3989_s15  ;;  %s2611_s28 = sshll.u32 %s3991_s23, 2 }
  0x10   : > { %s3176_s5 = scalar_lea.vmem %s3975_s4, %s2611_s28  ;;  %222 = sbr.rel (%p219_p8) target bundleno = 24 (0x18), region = 40 }
  0x11   : > { %s3171_s27 = scalar_lea.vmem %s3971_s0, %s3024_s24 }
  0x15   : > { %vm223_vm0 = vcmask 253952   ;;  %v3108_v0 = vmov 0.0  }
  0x16   : > { %224 = vst.msk [vmem:[#allocation2] sm:$0x1] %vm223_vm0, %v3108_v0 }
  0x17   : > { %225 = vst.msk [vmem:[#allocation3] sm:$0x1] %vm223_vm0, %v3108_v0 }
  0x18 PF: > { %v2999_v1 = vld [vmem:[%s3972_s1 + $0x38] sm:$0xff]  ;;  %v2998_v5 = vld [vmem:[%s3972_s1 + $0x30] sm:$0xff]  ;;  %v2997_v9 = vld [vmem:[%s3972_s1 + $0x28] sm:$0xff]  ;;  %vm282_vm1 = vsmask.f32 3328  ;;  %vm750_vm3 = vcmask 523264  }
  0x19   : > { %v2995_v2 = vld [vmem:[%s3972_s1 + $0x18] sm:$0xff]  ;;  %803 = vmatpush.bf16.msra.mxu0 %v2999_v1  ;;  %v2994_v6 = vld [vmem:[%s3972_s1 + $0x10] sm:$0xff]  ;;  %vm283_vm2 = vsmask.f32 7440  ;;  %v2993_v10 = vld [vmem:[%s3972_s1 + $0x8] sm:$0xff]  ;;  %p2972_p10 = scmp.ne.s32.totalorder %s3094_s16, 0 }
  0x1a   : > { %v3019_v3 = vld [vmem:[%s3972_s1 + $0x58] sm:$0xff]  ;;  %1044 = vmatpush.bf16.msra.mxu1 %v2995_v2  ;;  %v3018_v7 = vld [vmem:[%s3972_s1 + $0x50] sm:$0xff]  ;;  %v226_v11 = vld [vmem:[%s3171_s27] sm:$0xf] }
  0x1b   : > { %v3023_v4 = vld [vmem:[%s3972_s1 + $0x78] sm:$0xff]  ;;  %1327 = vmatpush.bf16.msra.mxu2 %v3019_v3  ;;  %v3022_v8 = vld [vmem:[%s3972_s1 + $0x70] sm:$0xff]  ;;  %v227_v12 = vld [vmem:[%s3171_s27 + $0x4] sm:$0xf]  ;;  %v286_v14 = vshrl.u32 %v226_v11, 16  ;;  %v289_v15 = vshll.u32 %v226_v11, 16 }
  0x1c   : > { %2009 = vmatpush.bf16.msra.mxu3 %v3023_v4  ;;  %v266_v13 = vld [vmem:[%s3171_s27 + $0x8] sm:$0x1]  ;;  %v295_v16 = vshll.u32 %v227_v12, 16  ;;  %v299_v17 = vshrl.u32 %v227_v12, 16  ;;  %v2884_v21 = vld [vmem:[%s3171_s27 + $0xc] sm:$0xf]  ;;  %vm3236_vm4 = vmor %vm282_vm1, %vm283_vm2 }
  0x1d   : > { %804 = vmatpush.bf16.msra.mxu0 %v2998_v5  ;;  %v3017_v18 = vld [vmem:[%s3972_s1 + $0x48] sm:$0xff]  ;;  %v305_v20 = vshll.u32 %v266_v13, 16  ;;  %v2996_v22 = vld [vmem:[%s3972_s1 + $0x20] sm:$0xff]  ;;  %v288_v24 = vrot.slane %v286_v14, 4  ;;  %v291_v25 = vrot.slane %v289_v15, 5  ;;  %v1493_v31 = vshrl.u32 %v2884_v21, 16 }
  0x1e   : > { %1045 = vmatpush.bf16.msra.mxu1 %v2994_v6  ;;  %v3021_v19 = vld [vmem:[%s3972_s1 + $0x68] sm:$0xff]  ;;  %v2992_v23 = vld [vmem:[%s3972_s1] sm:$0xff]  ;;  %v297_v26 = vrot.slane %v295_v16, 5  ;;  %v301_v27 = vrot.slane %v299_v17, 4  ;;  %v2885_v28 = vld [vmem:[%s3171_s27 + $0x10] sm:$0xf] }
  0x1f   : > { %1328 = vmatpush.bf16.msra.mxu2 %v3018_v7  ;;  %v307_v29 = vrot.slane %v305_v20, 5  ;;  %v2886_v30 = vld [vmem:[%s3171_s27 + $0x14] sm:$0x1]  ;;  %v1496_v32 = vshll.u32 %v2884_v21, 16  ;;  %v1502_v33 = vshll.u32 %v2885_v28, 16  ;;  %v292_v34 = vor.u32 %v291_v25, %v288_v24  ;;  %v3016_v40 = vld [vmem:[%s3972_s1 + $0x40] sm:$0xff] }
  0x20   : > { %2010 = vmatpush.bf16.msra.mxu3 %v3022_v8  ;;  %v302_v35 = vor.u32 %v301_v27, %v297_v26  ;;  %v1506_v36 = vshrl.u32 %v2885_v28, 16  ;;  %v1512_v37 = vshll.u32 %v2886_v30, 16  ;;  %v228_v38 = vld [vmem:[%s3171_s27 + $0xc] sm:$0xf]  ;;  %v229_v39 = vld [vmem:[%s3171_s27 + $0x10] sm:$0xf] }
  0x21   : > { %805 = vmatpush.bf16.msra.mxu0 %v2997_v9  ;;  %v3020_v41 = vld [vmem:[%s3972_s1 + $0x60] sm:$0xff]  ;;  %v1495_v43 = vrot.slane %v1493_v31, 4  ;;  %v1498_v44 = vrot.slane %v1496_v32, 5  ;;  %v1504_v45 = vrot.slane %v1502_v33, 5  ;;  %v310_v46 = vshrl.u32 %v228_v38, 16  ;;  %v3000_v59 = vld [vmem:[%s3171_s27 + $0xc] sm:$0xff] }
  0x22   : > { %1046 = vmatpush.bf16.msra.mxu1 %v2993_v10  ;;  %v293_v47 = vrot.slane %v292_v34, 4  ;;  %v303_v48 = vrot.slane %v302_v35, 4  ;;  %v1508_v49 = vrot.slane %v1506_v36, 4  ;;  %v1514_v50 = vrot.slane %v1512_v37, 5  ;;  %v2976_v51 = vld [vmem:[%s3171_s27] sm:$0xff] }
  0x23   : > { %1329 = vmatpush.bf16.msra.mxu2 %v3017_v18  ;;  %v1499_v52 = vor.u32 %v1498_v44, %v1495_v43  ;;  %v267_v53 = vld [vmem:[%s3171_s27 + $0x14] sm:$0x1]  ;;  %v312_v54 = vrot.slane %v310_v46, 4  ;;  %v313_v55 = vshll.u32 %v228_v38, 16  ;;  %v319_v56 = vshll.u32 %v229_v39, 16 }
  0x24   : > { %2011 = vmatpush.bf16.msra.mxu3 %v3021_v19  ;;  %v298_v57 = vsel %vm3236_vm4, %v293_v47, %v297_v26  ;;  %v308_v58 = vsel %vm3236_vm4, %v303_v48, %v307_v29  ;;  %v1509_v60 = vor.u32 %v1508_v49, %v1504_v45  ;;  %v323_v61 = vshrl.u32 %v229_v39, 16  ;;  %v2887_v62 = vld [vmem:[%s3171_s27 + $0x18] sm:$0xf]  ;;  %v2888_v10 = vld [vmem:[%s3171_s27 + $0x1c] sm:$0xf] }
  0x25   : > { %806 = vmatpush.bf16.msra.mxu0 %v2996_v22  ;;  %v678_v63 = vunpack.c.l.b16 %v298_v57  ;;  %v679_v0 = vunpack.c.l.b16 %v308_v58  ;;  %v1500_v1 = vrot.slane %v1499_v52, 4  ;;  %v315_v2 = vrot.slane %v313_v55, 5  ;;  %v2889_v11 = vld [vmem:[%s3171_s27 + $0x20] sm:$0x1]  ;;  %v230_v21 = vld [vmem:[%s3171_s27 + $0x18] sm:$0xf] }
  0x26   : > { %1047 = vmatpush.bf16.msra.mxu1 %v2992_v23  ;;  %v1510_v3 = vrot.slane %v1509_v60, 4  ;;  %v321_v4 = vrot.slane %v319_v56, 5  ;;  %v325_v5 = vrot.slane %v323_v61, 4  ;;  %v329_v6 = vshll.u32 %v267_v53, 16  ;;  %v231_v29 = vld [vmem:[%s3171_s27 + $0x1c] sm:$0xf] }
  0x27   : > { %1330 = vmatpush.bf16.msra.mxu2 %v3016_v40  ;;  %v710_v7 = vpack.c.b16 %v679_v0, %v678_v63  ;;  %v1505_v8 = vsel %vm3236_vm4, %v1500_v1, %v1504_v45  ;;  %v316_v9 = vor.u32 %v315_v2, %v312_v54  ;;  %v1517_v12 = vshrl.u32 %v2887_v62, 16  ;;  %v2890_v36 = vld [vmem:[%s3171_s27 + $0x24] sm:$0xf]  ;;  %v2891_v48 = vld [vmem:[%s3171_s27 + $0x28] sm:$0xf]  ;;  %v2977_v56 = vld [vmem:[%s3171_s27 + $0xc] sm:$0xff] }
  0x28   : > { %2012 = vmatpush.bf16.msra.mxu3 %v3020_v41  ;;  %v1515_v13 = vsel %vm3236_vm4, %v1510_v3, %v1514_v50  ;;  %v1885_v14 = vunpack.c.l.b16 %v1505_v8  ;;  %v326_v15 = vor.u32 %v325_v5, %v321_v4  ;;  %v331_v16 = vrot.slane %v329_v6, 5  ;;  %v268_v55 = vld [vmem:[%s3171_s27 + $0x20] sm:$0x1]  ;;  %v3001_v60 = vld [vmem:[%s3171_s27 + $0x18] sm:$0xff]  ;;  %v2892_v6 = vld [vmem:[%s3171_s27 + $0x2c] sm:$0x1] }
  0x29   : > { %2732 = vmatmul.msk.bf16.vlgmr.msra.gmra.mxu1 %vm750_vm3, %v2976_v51  ;;  %2636 = vmatmul.msk.bf16.vlgmr.msra.gmra.mxu0 %vm750_vm3, %v710_v7  ;;  %v1886_v17 = vunpack.c.l.b16 %v1515_v13  ;;  %v317_v18 = vrot.slane %v316_v9, 4  ;;  %v1519_v19 = vrot.slane %v1517_v12, 4  ;;  %v1520_v20 = vshll.u32 %v2887_v62, 16  ;;  %v232_v12 = vld [vmem:[%s3171_s27 + $0x24] sm:$0xf] }
  0x2a   : > { %2868 = vmatmul.msk.bf16.vlgmr.msra.gmra.mxu2 %vm750_vm3, %v3000_v59  ;;  %v327_v22 = vrot.slane %v326_v15, 4  ;;  %v1526_v23 = vshll.u32 %v2888_v10, 16  ;;  %v1530_v24 = vshrl.u32 %v2888_v10, 16  ;;  %v1536_v25 = vshll.u32 %v2889_v11, 16  ;;  %v233_v15 = vld [vmem:[%s3171_s27 + $0x28] sm:$0xf] }
  0x2b   : > { %v1917_v26 = vpack.c.b16 %v1886_v17, %v1885_v14  ;;  %v322_v27 = vsel %vm3236_vm4, %v317_v18, %v321_v4  ;;  %v1522_v28 = vrot.slane %v1520_v20, 5  ;;  %v334_v33 = vshrl.u32 %v230_v21, 16 }
  0x2c   : > { %v332_v30 = vsel %vm3236_vm4, %v327_v22, %v331_v16  ;;  %v1528_v31 = vrot.slane %v1526_v23, 5  ;;  %v1532_v32 = vrot.slane %v1530_v24, 4  ;;  %v1538_v35 = vrot.slane %v1536_v25, 5  ;;  %v2893_v25 = vld [vmem:[%s3171_s27 + $0x30] sm:$0xf] }
  0x2d   : > { %2956 = vmatmul.msk.bf16.vlgmr.msra.gmra.mxu3 %vm750_vm3, %v1917_v26  ;;  %v1523_v34 = vor.u32 %v1522_v28, %v1519_v19  ;;  %v337_v38 = vshll.u32 %v230_v21, 16  ;;  %v343_v39 = vshll.u32 %v231_v29, 16  ;;  %v347_v40 = vshrl.u32 %v231_v29, 16  ;;  %v2894_v26 = vld [vmem:[%s3171_s27 + $0x34] sm:$0xf] }
  0x2e   : > { %v1533_v37 = vor.u32 %v1532_v32, %v1528_v31  ;;  %v680_v41 = vunpack.c.l.b16 %v322_v27  ;;  %v681_v43 = vunpack.c.l.b16 %v332_v30  ;;  %v336_v46 = vrot.slane %v334_v33, 4 }
  0x2f   : > { %v1524_v44 = vrot.slane %v1523_v34, 4  ;;  %v339_v47 = vrot.slane %v337_v38, 5  ;;  %v1541_v49 = vshrl.u32 %v2890_v36, 16  ;;  %v345_v50 = vrot.slane %v343_v39, 5 }
  0x30   : > { %v1534_v45 = vrot.slane %v1533_v37, 4  ;;  %v349_v51 = vrot.slane %v347_v40, 4  ;;  %v1544_v52 = vshll.u32 %v2890_v36, 16  ;;  %v1550_v57 = vshll.u32 %v2891_v48, 16  ;;  %v2978_v40 = vld [vmem:[%s3171_s27 + $0x18] sm:$0xff] }
  0x31   : > { %v1529_v53 = vsel %vm3236_vm4, %v1524_v44, %v1528_v31  ;;  %v1554_v58 = vshrl.u32 %v2891_v48, 16  ;;  %v711_v59 = vpack.c.b16 %v681_v43, %v680_v41  ;;  %v340_v61 = vor.u32 %v339_v47, %v336_v46  ;;  %v269_v31 = vld [vmem:[%s3171_s27 + $0x2c] sm:$0x1]  ;;  %v3002_v43 = vld [vmem:[%s3171_s27 + $0x24] sm:$0xff] }
  0x32   : > { %v1539_v54 = vsel %vm3236_vm4, %v1534_v45, %v1538_v35  ;;  %v1543_v62 = vrot.slane %v1541_v49, 4  ;;  %v1546_v63 = vrot.slane %v1544_v52, 5  ;;  %v1887_v0 = vunpack.c.l.b16 %v1529_v53 }
  0x33   : > { %v1888_v1 = vunpack.c.l.b16 %v1539_v54  ;;  %v350_v2 = vor.u32 %v349_v51, %v345_v50  ;;  %v353_v3 = vshll.u32 %v268_v55, 16  ;;  %v1552_v4 = vrot.slane %v1550_v57, 5  ;;  %v234_v54 = vld [vmem:[%s3171_s27 + $0x30] sm:$0xf]  ;;  %v235_v55 = vld [vmem:[%s3171_s27 + $0x34] sm:$0xf] }
  0x34   : > { %v1556_v5 = vrot.slane %v1554_v58, 4  ;;  %v341_v7 = vrot.slane %v340_v61, 4  ;;  %v1547_v8 = vor.u32 %v1546_v63, %v1543_v62  ;;  %v1560_v14 = vshll.u32 %v2892_v6, 16 }
  0x35   : > { %v1918_v9 = vpack.c.b16 %v1888_v1, %v1887_v0  ;;  %v351_v10 = vrot.slane %v350_v2, 4  ;;  %v355_v11 = vrot.slane %v353_v3, 5  ;;  %v358_v18 = vshrl.u32 %v232_v12, 16 }
  0x36   : > { %v1557_v13 = vor.u32 %v1556_v5, %v1552_v4  ;;  %v346_v16 = vsel %vm3236_vm4, %v341_v7, %v345_v50  ;;  %v1548_v17 = vrot.slane %v1547_v8, 4  ;;  %v361_v20 = vshll.u32 %v232_v12, 16  ;;  %v2895_v50 = vld [vmem:[%s3171_s27 + $0x38] sm:$0x1]  ;;  %v2897_v5 = vld [vmem:[%s3171_s27 + $0x40] sm:$0xf] }
  0x37   : > { %v356_v19 = vsel %vm3236_vm4, %v351_v10, %v355_v11  ;;  %v367_v21 = vshll.u32 %v233_v15, 16  ;;  %v371_v22 = vshrl.u32 %v233_v15, 16  ;;  %v1562_v24 = vrot.slane %v1560_v14, 5  ;;  %v270_v14 = vld [vmem:[%s3171_s27 + $0x38] sm:$0x1] }
  0x38   : > { %v1558_v23 = vrot.slane %v1557_v13, 4  ;;  %v682_v27 = vunpack.c.l.b16 %v346_v16  ;;  %v683_v28 = vunpack.c.l.b16 %v356_v19  ;;  %v1553_v29 = vsel %vm3236_vm4, %v1548_v17, %v1552_v4  ;;  %v2896_v4 = vld [vmem:[%s3171_s27 + $0x3c] sm:$0xf] }
  0x39   : > { %2733 = vmatmul.msk.bf16.gmra.mxu1 %vm750_vm3, %v2977_v56  ;;  %2637 = vmatmul.msk.bf16.gmra.mxu0 %vm750_vm3, %v711_v59  ;;  %v360_v30 = vrot.slane %v358_v18, 4  ;;  %v363_v32 = vrot.slane %v361_v20, 5  ;;  %v369_v33 = vrot.slane %v367_v21, 5  ;;  %v373_v34 = vrot.slane %v371_v22, 4 }
  0x3a   : > { %2869 = vmatmul.msk.bf16.gmra.mxu2 %vm750_vm3, %v3001_v60  ;;  %v1565_v35 = vshrl.u32 %v2893_v25, 16  ;;  %v1563_v36 = vsel %vm3236_vm4, %v1558_v23, %v1562_v24  ;;  %v1568_v37 = vshll.u32 %v2893_v25, 16  ;;  %v1574_v38 = vshll.u32 %v2894_v26, 16  ;;  %v2979_v23 = vld [vmem:[%s3171_s27 + $0x24] sm:$0xff] }
  0x3b   : > { %v1578_v39 = vshrl.u32 %v2894_v26, 16  ;;  %v712_v41 = vpack.c.b16 %v683_v28, %v682_v27  ;;  %v377_v44 = vshll.u32 %v269_v31, 16  ;;  %v1889_v45 = vunpack.c.l.b16 %v1553_v29  ;;  %v3003_v27 = vld [vmem:[%s3171_s27 + $0x30] sm:$0xff] }
  0x3c   : > { %v1890_v46 = vunpack.c.l.b16 %v1563_v36  ;;  %v364_v47 = vor.u32 %v363_v32, %v360_v30  ;;  %v1567_v48 = vrot.slane %v1565_v35, 4  ;;  %v374_v49 = vor.u32 %v373_v34, %v369_v33  ;;  %v2898_v35 = vld [vmem:[%s3171_s27 + $0x44] sm:$0x1] }
  0x3d   : > { %2957 = vmatmul.msk.bf16.gmra.mxu3 %vm750_vm3, %v1918_v9  ;;  %v1570_v51 = vrot.slane %v1568_v37, 5  ;;  %v1576_v52 = vrot.slane %v1574_v38, 5  ;;  %v1580_v53 = vrot.slane %v1578_v39, 4  ;;  %v379_v57 = vrot.slane %v377_v44, 5  ;;  %v236_v44 = vld [vmem:[%s3171_s27 + $0x3c] sm:$0xf] }
  0x3e   : > { %v1919_v56 = vpack.c.b16 %v1890_v46, %v1889_v45  ;;  %v1584_v58 = vshll.u32 %v2895_v50, 16  ;;  %v365_v59 = vrot.slane %v364_v47, 4  ;;  %v375_v60 = vrot.slane %v374_v49, 4  ;;  %v237_v45 = vld [vmem:[%s3171_s27 + $0x40] sm:$0xf] }
  0x3f   : > { %v1571_v61 = vor.u32 %v1570_v51, %v1567_v48  ;;  %v1581_v62 = vor.u32 %v1580_v53, %v1576_v52  ;;  %v382_v63 = vshrl.u32 %v234_v54, 16  ;;  %v385_v0 = vshll.u32 %v234_v54, 16 }
  0x40   : > { %v391_v1 = vshll.u32 %v235_v55, 16  ;;  %v395_v2 = vshrl.u32 %v235_v55, 16  ;;  %v1586_v3 = vrot.slane %v1584_v58, 5  ;;  %v370_v6 = vsel %vm3236_vm4, %v365_v59, %v369_v33  ;;  %v2899_v55 = vld [vmem:[%s3171_s27 + $0x48] sm:$0xf] }
  0x41   : > { %v380_v7 = vsel %vm3236_vm4, %v375_v60, %v379_v57  ;;  %v1572_v8 = vrot.slane %v1571_v61, 4  ;;  %v1582_v9 = vrot.slane %v1581_v62, 4  ;;  %v384_v10 = vrot.slane %v382_v63, 4 }
  0x42   : > { %v387_v11 = vrot.slane %v385_v0, 5  ;;  %v393_v12 = vrot.slane %v391_v1, 5  ;;  %v397_v13 = vrot.slane %v395_v2, 4  ;;  %v1589_v15 = vshrl.u32 %v2896_v4, 16  ;;  %v271_v1 = vld [vmem:[%s3171_s27 + $0x44] sm:$0x1] }
  0x43   : > { %v1592_v16 = vshll.u32 %v2896_v4, 16  ;;  %v1598_v17 = vshll.u32 %v2897_v5, 16  ;;  %v1602_v18 = vshrl.u32 %v2897_v5, 16  ;;  %v684_v19 = vunpack.c.l.b16 %v370_v6  ;;  %v2980_v6 = vld [vmem:[%s3171_s27 + $0x30] sm:$0xff] }
  0x44   : > { %v685_v20 = vunpack.c.l.b16 %v380_v7  ;;  %v1577_v21 = vsel %vm3236_vm4, %v1572_v8, %v1576_v52  ;;  %v1587_v22 = vsel %vm3236_vm4, %v1582_v9, %v1586_v3  ;;  %v388_v24 = vor.u32 %v387_v11, %v384_v10  ;;  %v3004_v8 = vld [vmem:[%s3171_s27 + $0x3c] sm:$0xff] }
  0x45   : > { %v398_v25 = vor.u32 %v397_v13, %v393_v12  ;;  %v401_v26 = vshll.u32 %v270_v14, 16  ;;  %v1591_v28 = vrot.slane %v1589_v15, 4  ;;  %v1594_v29 = vrot.slane %v1592_v16, 5 }
  0x46   : > { %v1600_v30 = vrot.slane %v1598_v17, 5  ;;  %v1604_v31 = vrot.slane %v1602_v18, 4  ;;  %v713_v32 = vpack.c.b16 %v685_v20, %v684_v19  ;;  %v1891_v33 = vunpack.c.l.b16 %v1577_v21  ;;  %v2901_v18 = vld [vmem:[%s3171_s27 + $0x50] sm:$0x1] }
  0x47   : > { %v1892_v34 = vunpack.c.l.b16 %v1587_v22  ;;  %v389_v36 = vrot.slane %v388_v24, 4  ;;  %v403_v37 = vrot.slane %v401_v26, 5  ;;  %v399_v38 = vrot.slane %v398_v25, 4  ;;  %v238_v22 = vld [vmem:[%s3171_s27 + $0x48] sm:$0xf] }
  0x48   : > { %v1595_v39 = vor.u32 %v1594_v29, %v1591_v28  ;;  %v406_v51 = vshrl.u32 %v236_v44, 16  ;;  %v409_v52 = vshll.u32 %v236_v44, 16  ;;  %v415_v53 = vshll.u32 %v237_v45, 16 }
  0x49   : > { %2734 = vmatmul.msk.bf16.gmra.mxu1 %vm750_vm3, %v2978_v40  ;;  %2638 = vmatmul.msk.bf16.gmra.mxu0 %vm750_vm3, %v712_v41  ;;  %v1605_v40 = vor.u32 %v1604_v31, %v1600_v30  ;;  %v1608_v41 = vshll.u32 %v2898_v35, 16  ;;  %v394_v46 = vsel %vm3236_vm4, %v389_v36, %v393_v12  ;;  %v404_v47 = vsel %vm3236_vm4, %v399_v38, %v403_v37  ;;  %v2903_v38 = vld [vmem:[%s3171_s27 + $0x58] sm:$0xf] }
  0x4a   : > { %2870 = vmatmul.msk.bf16.gmra.mxu2 %vm750_vm3, %v3002_v43  ;;  %v1920_v43 = vpack.c.b16 %v1892_v34, %v1891_v33  ;;  %v1596_v48 = vrot.slane %v1595_v39, 4  ;;  %v419_v54 = vshrl.u32 %v237_v45, 16  ;;  %v686_v57 = vunpack.c.l.b16 %v394_v46 }
  0x4b   : > { %v1606_v49 = vrot.slane %v1605_v40, 4  ;;  %v1610_v50 = vrot.slane %v1608_v41, 5  ;;  %v687_v58 = vunpack.c.l.b16 %v404_v47  ;;  %v408_v61 = vrot.slane %v406_v51, 4 }
  0x4c   : > { %v1601_v59 = vsel %vm3236_vm4, %v1596_v48, %v1600_v30  ;;  %v411_v62 = vrot.slane %v409_v52, 5  ;;  %v417_v63 = vrot.slane %v415_v53, 5  ;;  %v421_v0 = vrot.slane %v419_v54, 4  ;;  %v272_v48 = vld [vmem:[%s3171_s27 + $0x50] sm:$0x1]  ;;  %v2981_v53 = vld [vmem:[%s3171_s27 + $0x3c] sm:$0xff] }
  0x4d   : > { %2958 = vmatmul.msk.bf16.gmra.mxu3 %vm750_vm3, %v1919_v56  ;;  %v2900_v56 = vld [vmem:[%s3171_s27 + $0x4c] sm:$0xf]  ;;  %v1611_v60 = vsel %vm3236_vm4, %v1606_v49, %v1610_v50  ;;  %v1613_v2 = vshrl.u32 %v2899_v55, 16  ;;  %v1616_v3 = vshll.u32 %v2899_v55, 16  ;;  %v714_v7 = vpack.c.b16 %v687_v58, %v686_v57 }
  0x4e   : > { %v1622_v4 = vshll.u32 %v2900_v56, 16  ;;  %v1626_v5 = vshrl.u32 %v2900_v56, 16  ;;  %v1893_v9 = vunpack.c.l.b16 %v1601_v59  ;;  %v1894_v10 = vunpack.c.l.b16 %v1611_v60  ;;  %v3005_v56 = vld [vmem:[%s3171_s27 + $0x48] sm:$0xff] }
  0x4f   : > { %v412_v11 = vor.u32 %v411_v62, %v408_v61  ;;  %v422_v12 = vor.u32 %v421_v0, %v417_v63  ;;  %v425_v13 = vshll.u32 %v271_v1, 16  ;;  %v1615_v14 = vrot.slane %v1613_v2, 4  ;;  %v2904_v1 = vld [vmem:[%s3171_s27 + $0x5c] sm:$0x1] }
  0x50   : > { %v1618_v15 = vrot.slane %v1616_v3, 5  ;;  %v1624_v16 = vrot.slane %v1622_v4, 5  ;;  %v1628_v17 = vrot.slane %v1626_v5, 4  ;;  %v1921_v19 = vpack.c.b16 %v1894_v10, %v1893_v9  ;;  %v241_v10 = vld [vmem:[%s3171_s27 + $0x58] sm:$0xf] }
  0x51   : > { %v413_v20 = vrot.slane %v412_v11, 4  ;;  %v427_v21 = vrot.slane %v425_v13, 5  ;;  %v423_v24 = vrot.slane %v422_v12, 4  ;;  %v430_v28 = vshrl.u32 %v238_v22, 16 }
  0x52   : > { %v1619_v25 = vor.u32 %v1618_v15, %v1615_v14  ;;  %v1629_v26 = vor.u32 %v1628_v17, %v1624_v16  ;;  %v433_v29 = vshll.u32 %v238_v22, 16  ;;  %v1646_v51 = vshll.u32 %v2903_v38, 16 }
  0x53   : > { %v418_v33 = vsel %vm3236_vm4, %v413_v20, %v417_v63  ;;  %v428_v34 = vsel %vm3236_vm4, %v423_v24, %v427_v21  ;;  %v432_v41 = vrot.slane %v430_v28, 4  ;;  %v1650_v52 = vshrl.u32 %v2903_v38, 16  ;;  %v3006_v38 = vld [vmem:[%s3171_s27 + $0x54] sm:$0xff] }
  0x54   : > { %v1620_v35 = vrot.slane %v1619_v25, 4  ;;  %v1630_v36 = vrot.slane %v1629_v26, 4  ;;  %v688_v46 = vunpack.c.l.b16 %v418_v33  ;;  %v689_v47 = vunpack.c.l.b16 %v428_v34  ;;  %v273_v34 = vld [vmem:[%s3171_s27 + $0x5c] sm:$0x1] }
  0x55   : > { %v449_v59 = vshll.u32 %v272_v48, 16  ;;  %v1648_v63 = vrot.slane %v1646_v51, 5  ;;  %v1652_v0 = vrot.slane %v1650_v52, 4  ;;  %v1656_v9 = vshll.u32 %v2904_v1, 16  ;;  %v2907_v48 = vld [vmem:[%s3171_s27 + $0x68] sm:$0x1] }
  0x56   : > { %v1625_v49 = vsel %vm3236_vm4, %v1620_v35, %v1624_v16  ;;  %v715_v60 = vpack.c.b16 %v689_v47, %v688_v46  ;;  %v463_v16 = vshll.u32 %v241_v10, 16  ;;  %v467_v17 = vshrl.u32 %v241_v10, 16 }
  0x57   : > { %v1895_v61 = vunpack.c.l.b16 %v1625_v49  ;;  %v451_v5 = vrot.slane %v449_v59, 5  ;;  %v1658_v21 = vrot.slane %v1656_v9, 5  ;;  %v473_v47 = vshll.u32 %v273_v34, 16 }
  0x58   : > { %v1680_v51 = vshll.u32 %v2907_v48, 16 }
  0x59   : > { %2735 = vmatmul.msk.bf16.gmra.mxu1 %vm750_vm3, %v2979_v23  ;;  %2639 = vmatmul.msk.bf16.gmra.mxu0 %vm750_vm3, %v713_v32  ;;  %v239_v23 = vld [vmem:[%s3171_s27 + $0x4c] sm:$0xf]  ;;  %v2902_v32 = vld [vmem:[%s3171_s27 + $0x54] sm:$0xf] }
  0x5a   : > { %2871 = vmatmul.msk.bf16.gmra.mxu2 %vm750_vm3, %v3003_v27  ;;  %v1632_v27 = vshll.u32 %v2901_v18, 16  ;;  %v439_v30 = vshll.u32 %v239_v23, 16  ;;  %v443_v31 = vshrl.u32 %v239_v23, 16  ;;  %v1637_v39 = vshrl.u32 %v2902_v32, 16  ;;  %v2905_v18 = vld [vmem:[%s3171_s27 + $0x60] sm:$0xf] }
  0x5b   : > { %v1640_v40 = vshll.u32 %v2902_v32, 16  ;;  %v1661_v25 = vshrl.u32 %v2905_v18, 16  ;;  %v1664_v26 = vshll.u32 %v2905_v18, 16  ;;  %v469_v32 = vrot.slane %v467_v17, 4  ;;  %v2983_v17 = vld [vmem:[%s3171_s27 + $0x54] sm:$0xff] }
  0x5c   : > { %v1634_v37 = vrot.slane %v1632_v27, 5  ;;  %v441_v44 = vrot.slane %v439_v30, 5  ;;  %v445_v45 = vrot.slane %v443_v31, 4  ;;  %v1639_v54 = vrot.slane %v1637_v39, 4  ;;  %v274_v18 = vld [vmem:[%s3171_s27 + $0x68] sm:$0x1] }
  0x5d   : > { %2959 = vmatmul.msk.bf16.gmra.mxu3 %vm750_vm3, %v1920_v43  ;;  %v435_v43 = vrot.slane %v433_v29, 5  ;;  %v1642_v55 = vrot.slane %v1640_v40, 5  ;;  %v465_v31 = vrot.slane %v463_v16, 5  ;;  %v1663_v39 = vrot.slane %v1661_v25, 4 }
  0x5e   : > { %v1635_v50 = vsel %vm3236_vm4, %v1630_v36, %v1634_v37  ;;  %v446_v58 = vor.u32 %v445_v45, %v441_v44  ;;  %v2982_v36 = vld [vmem:[%s3171_s27 + $0x48] sm:$0xff]  ;;  %v1666_v40 = vrot.slane %v1664_v26, 5 }
  0x5f   : > { %v436_v57 = vor.u32 %v435_v43, %v432_v41  ;;  %v1896_v62 = vunpack.c.l.b16 %v1635_v50  ;;  %v1643_v2 = vor.u32 %v1642_v55, %v1639_v54  ;;  %v470_v46 = vor.u32 %v469_v32, %v465_v31 }
  0x60   : > { %v447_v4 = vrot.slane %v446_v58, 4  ;;  %v1667_v49 = vor.u32 %v1666_v40, %v1663_v39  ;;  %v475_v55 = vrot.slane %v473_v47, 5  ;;  %v2912_v47 = vld [vmem:[%s3171_s27 + $0x7c] sm:$0xf] }
  0x61   : > { %v437_v3 = vrot.slane %v436_v57, 4  ;;  %v1644_v11 = vrot.slane %v1643_v2, 4  ;;  %v471_v54 = vrot.slane %v470_v46, 4  ;;  %v243_v57 = vld [vmem:[%s3171_s27 + $0x64] sm:$0xf] }
  0x62   : > { %v452_v13 = vsel %vm3236_vm4, %v447_v4, %v451_v5  ;;  %v1668_v58 = vrot.slane %v1667_v49, 4  ;;  %v487_v1 = vshll.u32 %v243_v57, 16  ;;  %v491_v2 = vshrl.u32 %v243_v57, 16  ;;  %v2909_v4 = vld [vmem:[%s3171_s27 + $0x70] sm:$0xf] }
  0x63   : > { %v442_v12 = vsel %vm3236_vm4, %v437_v3, %v441_v44  ;;  %v691_v23 = vunpack.c.l.b16 %v452_v13  ;;  %v1649_v24 = vsel %vm3236_vm4, %v1644_v11, %v1648_v63  ;;  %v2908_v3 = vld [vmem:[%s3171_s27 + $0x6c] sm:$0xf]  ;;  %v1698_v16 = vshrl.u32 %v2909_v4, 16 }
  0x64   : > { %v690_v22 = vunpack.c.l.b16 %v442_v12  ;;  %v1897_v37 = vunpack.c.l.b16 %v1649_v24  ;;  %v1685_v11 = vshrl.u32 %v2908_v3, 16  ;;  %v1688_v12 = vshll.u32 %v2908_v3, 16 }
  0x65   : > { %v489_v13 = vrot.slane %v487_v1, 5  ;;  %v2984_v1 = vld [vmem:[%s3171_s27 + $0x60] sm:$0xff] }
  0x66   : > { %v716_v35 = vpack.c.b16 %v691_v23, %v690_v22  ;;  %v1687_v24 = vrot.slane %v1685_v11, 4  ;;  %v1690_v25 = vrot.slane %v1688_v12, 5 }
  0x69   : > { %2736 = vmatmul.msk.bf16.gmra.mxu1 %vm750_vm3, %v2980_v6  ;;  %2640 = vmatmul.msk.bf16.gmra.mxu0 %vm750_vm3, %v714_v7  ;;  %v1922_v6 = vpack.c.b16 %v1896_v62, %v1895_v61  ;;  %v240_v7 = vld [vmem:[%s3171_s27 + $0x54] sm:$0xf]  ;;  %v476_v62 = vsel %vm3236_vm4, %v471_v54, %v475_v55 }
  0x6a   : > { %2872 = vmatmul.msk.bf16.gmra.mxu2 %vm750_vm3, %v3004_v8  ;;  %v1653_v8 = vor.u32 %v1652_v0, %v1648_v63  ;;  %v454_v14 = vshrl.u32 %v240_v7, 16  ;;  %v457_v15 = vshll.u32 %v240_v7, 16 }
  0x6c   : > { %v1654_v20 = vrot.slane %v1653_v8, 4  ;;  %v456_v29 = vrot.slane %v454_v14, 4  ;;  %v459_v30 = vrot.slane %v457_v15, 5  ;;  %v493_v14 = vrot.slane %v491_v2, 4 }
  0x6d   : > { %2960 = vmatmul.msk.bf16.gmra.mxu3 %vm750_vm3, %v1921_v19  ;;  %v2906_v19 = vld [vmem:[%s3171_s27 + $0x64] sm:$0xf]  ;;  %v1694_v15 = vshll.u32 %v2909_v4, 16 }
  0x6e   : > { %v1670_v27 = vshll.u32 %v2906_v19, 16  ;;  %v1674_v28 = vshrl.u32 %v2906_v19, 16  ;;  %v1659_v33 = vsel %vm3236_vm4, %v1654_v20, %v1658_v21  ;;  %v460_v45 = vor.u32 %v459_v30, %v456_v29  ;;  %v3007_v20 = vld [vmem:[%s3171_s27 + $0x60] sm:$0xff] }
  0x6f   : > { %v1898_v44 = vunpack.c.l.b16 %v1659_v33  ;;  %v494_v26 = vor.u32 %v493_v14, %v489_v13  ;;  %v1696_v29 = vrot.slane %v1694_v15, 5  ;;  %v1700_v30 = vrot.slane %v1698_v16, 4 }
  0x70   : > { %v1672_v41 = vrot.slane %v1670_v27, 5  ;;  %v1676_v43 = vrot.slane %v1674_v28, 4  ;;  %v497_v27 = vshll.u32 %v274_v18, 16  ;;  %v2910_v28 = vld [vmem:[%s3171_s27 + $0x74] sm:$0x1]  ;;  %v1691_v33 = vor.u32 %v1690_v25, %v1687_v24 }
  0x71   : > { %v1923_v52 = vpack.c.b16 %v1898_v44, %v1897_v37  ;;  %v1704_v34 = vshll.u32 %v2910_v28, 16  ;;  %v495_v37 = vrot.slane %v494_v26, 4  ;;  %v1701_v39 = vor.u32 %v1700_v30, %v1696_v29  ;;  %v246_v24 = vld [vmem:[%s3171_s27 + $0x78] sm:$0xf]  ;;  %v247_v25 = vld [vmem:[%s3171_s27 + $0x7c] sm:$0xf] }
  0x72   : > { %v1677_v50 = vor.u32 %v1676_v43, %v1672_v41  ;;  %v1673_v7 = vsel %vm3236_vm4, %v1668_v58, %v1672_v41  ;;  %v1692_v46 = vrot.slane %v1691_v33, 4  ;;  %v1718_v58 = vshll.u32 %v2912_v47, 16 }
  0x73   : > { %v1899_v21 = vunpack.c.l.b16 %v1673_v7 }
  0x74   : > { %v1678_v59 = vrot.slane %v1677_v50, 4  ;;  %v1702_v50 = vrot.slane %v1701_v39, 4 }
  0x79   : > { %2737 = vmatmul.msk.bf16.gmra.mxu1 %vm750_vm3, %v2981_v53  ;;  %2641 = vmatmul.msk.bf16.gmra.mxu0 %vm750_vm3, %v715_v60  ;;  %v461_v53 = vrot.slane %v460_v45, 4  ;;  %v1682_v60 = vrot.slane %v1680_v51, 5  ;;  %v2911_v45 = vld [vmem:[%s3171_s27 + $0x78] sm:$0xf]  ;;  %v1706_v51 = vrot.slane %v1704_v34, 5  ;;  %v526_v34 = vshrl.u32 %v246_v24, 16 }
  0x7a   : > { %2873 = vmatmul.msk.bf16.gmra.mxu2 %vm750_vm3, %v3005_v56  ;;  %v242_v56 = vld [vmem:[%s3171_s27 + $0x60] sm:$0xf]  ;;  %v1709_v54 = vshrl.u32 %v2911_v45, 16  ;;  %v1712_v55 = vshll.u32 %v2911_v45, 16  ;;  %v2915_v45 = vld [vmem:[%s3171_s27 + $0x88] sm:$0xf] }
  0x7b   : > { %v466_v61 = vsel %vm3236_vm4, %v461_v53, %v465_v31  ;;  %v478_v63 = vshrl.u32 %v242_v56, 16  ;;  %v481_v0 = vshll.u32 %v242_v56, 16  ;;  %v1683_v8 = vsel %vm3236_vm4, %v1678_v59, %v1682_v60  ;;  %v244_v31 = vld [vmem:[%s3171_s27 + $0x6c] sm:$0xf] }
  0x7c   : > { %v692_v5 = vunpack.c.l.b16 %v466_v61  ;;  %v1900_v22 = vunpack.c.l.b16 %v1683_v8  ;;  %v502_v40 = vshrl.u32 %v244_v31, 16  ;;  %v505_v41 = vshll.u32 %v244_v31, 16 }
  0x7d   : > { %2961 = vmatmul.msk.bf16.gmra.mxu3 %vm750_vm3, %v1922_v6  ;;  %v693_v6 = vunpack.c.l.b16 %v476_v62  ;;  %v480_v9 = vrot.slane %v478_v63, 4  ;;  %v483_v10 = vrot.slane %v481_v0, 5  ;;  %v1722_v59 = vshrl.u32 %v2912_v47, 16  ;;  %v275_v62 = vld [vmem:[%s3171_s27 + $0x74] sm:$0x1] }
  0x7e   : > { %v1924_v32 = vpack.c.b16 %v1900_v22, %v1899_v21  ;;  %v507_v53 = vrot.slane %v505_v41, 5  ;;  %v1697_v63 = vsel %vm3236_vm4, %v1692_v46, %v1696_v29  ;;  %v1707_v0 = vsel %vm3236_vm4, %v1702_v50, %v1706_v51 }
  0x7f   : > { %v717_v19 = vpack.c.b16 %v693_v6, %v692_v5  ;;  %v484_v23 = vor.u32 %v483_v10, %v480_v9  ;;  %v1711_v3 = vrot.slane %v1709_v54, 4  ;;  %v1714_v4 = vrot.slane %v1712_v55, 5  ;;  %v3008_v6 = vld [vmem:[%s3171_s27 + $0x6c] sm:$0xff]  ;;  %v2913_v9 = vld [vmem:[%s3171_s27 + $0x80] sm:$0x1] }
  0x80   : > { %v521_v8 = vshll.u32 %v275_v62, 16  ;;  %v1720_v10 = vrot.slane %v1718_v58, 5  ;;  %v1724_v11 = vrot.slane %v1722_v59, 4  ;;  %v1902_v14 = vunpack.c.l.b16 %v1707_v0  ;;  %v276_v55 = vld [vmem:[%s3171_s27 + $0x80] sm:$0x1]  ;;  %v2985_v59 = vld [vmem:[%s3171_s27 + $0x6c] sm:$0xff] }
  0x81   : > { %v1715_v18 = vor.u32 %v1714_v4, %v1711_v3 }
  0x82   : > { %v523_v21 = vrot.slane %v521_v8, 5  ;;  %v1725_v22 = vor.u32 %v1724_v11, %v1720_v10 }
  0x83   : > { %v1716_v28 = vrot.slane %v1715_v18, 4 }
  0x84   : > { %v1726_v33 = vrot.slane %v1725_v22, 4 }
  0x89   : > { %2738 = vmatmul.msk.bf16.gmra.mxu1 %vm750_vm3, %v2982_v36  ;;  %2642 = vmatmul.msk.bf16.gmra.mxu0 %vm750_vm3, %v716_v35  ;;  %v245_v35 = vld [vmem:[%s3171_s27 + $0x70] sm:$0xf]  ;;  %v485_v36 = vrot.slane %v484_v23, 4 }
  0x8a   : > { %2874 = vmatmul.msk.bf16.gmra.mxu2 %vm750_vm3, %v3006_v38  ;;  %v499_v38 = vrot.slane %v497_v27, 5  ;;  %v511_v43 = vshll.u32 %v245_v35, 16  ;;  %v515_v44 = vshrl.u32 %v245_v35, 16  ;;  %v529_v35 = vshll.u32 %v246_v24, 16 }
  0x8b   : > { %v490_v48 = vsel %vm3236_vm4, %v485_v36, %v489_v13  ;;  %v1901_v13 = vunpack.c.l.b16 %v1697_v63  ;;  %v535_v36 = vshll.u32 %v247_v25, 16  ;;  %v3009_v63 = vld [vmem:[%s3171_s27 + $0x78] sm:$0xff] }
  0x8c   : > { %v500_v49 = vsel %vm3236_vm4, %v495_v37, %v499_v38  ;;  %v513_v56 = vrot.slane %v511_v43, 5  ;;  %v517_v57 = vrot.slane %v515_v44, 4  ;;  %v694_v60 = vunpack.c.l.b16 %v490_v48  ;;  %v2914_v38 = vld [vmem:[%s3171_s27 + $0x84] sm:$0xf] }
  0x8d   : > { %2962 = vmatmul.msk.bf16.gmra.mxu3 %vm750_vm3, %v1923_v52  ;;  %v504_v52 = vrot.slane %v502_v40, 4  ;;  %v695_v61 = vunpack.c.l.b16 %v500_v49  ;;  %v1925_v23 = vpack.c.b16 %v1902_v14, %v1901_v13  ;;  %v539_v37 = vshrl.u32 %v247_v25, 16 }
  0x8e   : > { %v518_v7 = vor.u32 %v517_v57, %v513_v56  ;;  %v1721_v44 = vsel %vm3236_vm4, %v1716_v28, %v1720_v10  ;;  %v528_v48 = vrot.slane %v526_v34, 4  ;;  %v1733_v49 = vshrl.u32 %v2914_v38, 16  ;;  %v2917_v28 = vld [vmem:[%s3171_s27 + $0x90] sm:$0xf] }
  0x8f   : > { %v508_v2 = vor.u32 %v507_v53, %v504_v52  ;;  %v718_v12 = vpack.c.b16 %v695_v61, %v694_v60  ;;  %v1736_v50 = vshll.u32 %v2914_v38, 16  ;;  %v531_v52 = vrot.slane %v529_v35, 5  ;;  %v2918_v35 = vld [vmem:[%s3171_s27 + $0x94] sm:$0xf] }
  0x90   : > { %v3432_v53 = vrot.slane %v535_v36, 5  ;;  %v541_v54 = vrot.slane %v539_v37, 4  ;;  %v1746_v57 = vshrl.u32 %v2915_v45, 16  ;;  %v1903_v60 = vunpack.c.l.b16 %v1721_v44 }
  0x91   : > { %v532_v4 = vor.u32 %v531_v52, %v528_v48  ;;  %v1770_v48 = vshrl.u32 %v2918_v35, 16 }
  0x92   : > { %v1748_v10 = vrot.slane %v1746_v57, 4  ;;  %v2986_v57 = vld [vmem:[%s3171_s27 + $0x78] sm:$0xff] }
  0x99   : > { %2739 = vmatmul.msk.bf16.gmra.mxu1 %vm750_vm3, %v2983_v17  ;;  %2643 = vmatmul.msk.bf16.gmra.mxu0 %vm750_vm3, %v717_v19  ;;  %v509_v17 = vrot.slane %v508_v2, 4  ;;  %v1728_v19 = vshll.u32 %v2913_v9, 16  ;;  %v1738_v2 = vrot.slane %v1736_v50, 5 }
  0x9a   : > { %2875 = vmatmul.msk.bf16.gmra.mxu2 %vm750_vm3, %v3007_v20  ;;  %v519_v20 = vrot.slane %v518_v7, 4  ;;  %v2916_v7 = vld [vmem:[%s3171_s27 + $0x8c] sm:$0x1] }
  0x9b   : > { %v514_v27 = vsel %vm3236_vm4, %v509_v17, %v513_v56  ;;  %v1730_v29 = vrot.slane %v1728_v19, 5  ;;  %v1742_v56 = vshll.u32 %v2915_v45, 16  ;;  %v249_v17 = vld [vmem:[%s3171_s27 + $0x88] sm:$0xf]  ;;  %v533_v19 = vrot.slane %v532_v4, 4 }
  0x9c   : > { %v696_v41 = vunpack.c.l.b16 %v514_v27  ;;  %v563_v27 = vshrl.u32 %v249_v17, 16  ;;  %v1772_v4 = vrot.slane %v1770_v48, 4 }
  0x9d   : > { %2963 = vmatmul.msk.bf16.gmra.mxu3 %vm750_vm3, %v1924_v32  ;;  %v524_v32 = vsel %vm3236_vm4, %v519_v20, %v523_v21  ;;  %v1731_v47 = vsel %vm3236_vm4, %v1726_v33, %v1730_v29  ;;  %v3439_v9 = vrot.slane %v1742_v56, 5 }
  0x9e   : > { %v697_v43 = vunpack.c.l.b16 %v524_v32  ;;  %v1904_v0 = vunpack.c.l.b16 %v1731_v47  ;;  %v565_v45 = vrot.slane %v563_v27, 4  ;;  %v1766_v47 = vshll.u32 %v2918_v35, 16 }
  0x9f   : > { %v1749_v22 = vor.u32 %v1748_v10, %v3439_v9 }
  0xa0   : > { %v719_v3 = vpack.c.b16 %v697_v43, %v696_v41  ;;  %v1926_v14 = vpack.c.b16 %v1904_v0, %v1903_v60  ;;  %v3010_v0 = vld [vmem:[%s3171_s27 + $0x84] sm:$0xff] }
  0xa1   : > { %v1750_v37 = vrot.slane %v1749_v22, 4 }
  0xa6   : > { %v1049_v5 = vpop.f32.mrf.mxu1  ;;  %v808_v15 = vpop.f32.mrf.mxu0 }
  0xa7   : > { %v1050_v16 = vadd.f32 %v1049_v5, %v808_v15  ;;  %v542_v5 = vor.u32 %v541_v54, %v3432_v53 }
  0xa9   : > { %2740 = vmatmul.msk.bf16.gmra.mxu1 %vm750_vm3, %v2984_v1  ;;  %2644 = vmatmul.msk.bf16.gmra.mxu0 %vm750_vm3, %v718_v12  ;;  %v1735_v1 = vrot.slane %v1733_v49, 4  ;;  %v248_v12 = vld [vmem:[%s3171_s27 + $0x84] sm:$0xf]  ;;  %v543_v20 = vrot.slane %v542_v5, 4 }
  0xaa   : > { %2876 = vmatmul.msk.bf16.gmra.mxu2 %vm750_vm3, %v3008_v6  ;;  %v545_v6 = vshll.u32 %v276_v55, 16  ;;  %v553_v25 = vshll.u32 %v248_v12, 16 }
  0xab   : > { %v1739_v15 = vor.u32 %v1738_v2, %v1735_v1  ;;  %v2919_v2 = vld [vmem:[%s3171_s27 + $0x98] sm:$0x1] }
  0xac   : > { %v547_v21 = vrot.slane %v545_v6, 5  ;;  %v555_v43 = vrot.slane %v553_v25, 5  ;;  %v251_v25 = vld [vmem:[%s3171_s27 + $0x94] sm:$0xf] }
  0xad   : > { %v1332_v26 = vpop.f32.mrf.mxu2  ;;  %2964 = vmatmul.msk.bf16.gmra.mxu3 %vm750_vm3, %v1925_v23  ;;  %v550_v23 = vshrl.u32 %v248_v12, 16  ;;  %v1740_v33 = vrot.slane %v1739_v15, 4  ;;  %v1776_v12 = vshll.u32 %v2919_v2, 16  ;;  %v587_v35 = vshrl.u32 %v251_v25, 16 }
  0xae   : > { %v1412_v30 = vadd.f32 %v1332_v26, %v1050_v16  ;;  %v1051_v31 = vpop.f32.mrf.mxu1  ;;  %v810_v39 = vpop.f32.mrf.mxu0  ;;  %v1752_v16 = vshll.u32 %v2916_v7, 16  ;;  %v559_v26 = vshll.u32 %v249_v17, 16  ;;  %v548_v32 = vsel %vm3236_vm4, %v543_v20, %v547_v21  ;;  %v250_v20 = vld [vmem:[%s3171_s27 + $0x90] sm:$0xf] }
  0xaf   : > { %v1052_v40 = vadd.f32 %v1051_v31, %v810_v39  ;;  %v538_v31 = vsel %vm3236_vm4, %v533_v19, %v3432_v53  ;;  %v552_v38 = vrot.slane %v550_v23, 4  ;;  %v1757_v39 = vshrl.u32 %v2917_v28, 16  ;;  %v277_v53 = vld [vmem:[%s3171_s27 + $0x8c] sm:$0x1] }
  0xb0   : > { %v2014_v46 = vpop.f32.mrf.mxu3  ;;  %v1754_v34 = vrot.slane %v1752_v16, 5  ;;  %v561_v44 = vrot.slane %v559_v26, 5  ;;  %v698_v50 = vunpack.c.l.b16 %v538_v31  ;;  %v699_v52 = vunpack.c.l.b16 %v548_v32  ;;  %v2920_v32 = vld [vmem:[%s3171_s27 + $0x9c] sm:$0xf] }
  0xb1   : > { %v3430_v51 = vadd.f32 %v2014_v46, %v1412_v30  ;;  %v1745_v54 = vsel %vm3236_vm4, %v1740_v33, %v3439_v9  ;;  %v1759_v60 = vrot.slane %v1757_v39, 4  ;;  %v569_v1 = vshll.u32 %v277_v53, 16 }
  0xb2   : > { %v1755_v55 = vsel %vm3236_vm4, %v1750_v37, %v1754_v34  ;;  %v720_v5 = vpack.c.b16 %v699_v52, %v698_v50  ;;  %v1905_v6 = vunpack.c.l.b16 %v1745_v54  ;;  %v577_v31 = vshll.u32 %v250_v20, 16 }
  0xb3   : > { %v1906_v7 = vunpack.c.l.b16 %v1755_v55  ;;  %v571_v15 = vrot.slane %v569_v1, 5  ;;  %v583_v34 = vshll.u32 %v251_v25, 16  ;;  %v589_v54 = vrot.slane %v587_v35, 4 }
  0xb4   : > { %v579_v48 = vrot.slane %v577_v31, 5 }
  0xb5   : > { %v1334_v58 = vpop.f32.mrf.mxu2  ;;  %v1927_v19 = vpack.c.b16 %v1906_v7, %v1905_v6  ;;  %v585_v53 = vrot.slane %v583_v34, 5 }
  0xb6   : > { %v1413_v61 = vadd.f32 %v1334_v58, %v1052_v40  ;;  %v1054_v62 = vpop.f32.mrf.mxu1  ;;  %v813_v8 = vpop.f32.mrf.mxu0  ;;  %v1760_v40 = vshll.u32 %v2917_v28, 16  ;;  %v556_v58 = vor.u32 %v555_v43, %v552_v38 }
  0xb7   : > { %v1055_v11 = vadd.f32 %v1054_v62, %v813_v8  ;;  %v590_v6 = vor.u32 %v589_v54, %v585_v53 }
  0xb8   : > { %v2016_v13 = vpop.f32.mrf.mxu3  ;;  %v557_v10 = vrot.slane %v556_v58, 4  ;;  %v278_v58 = vld [vmem:[%s3171_s27 + $0x98] sm:$0x1] }
  0xb9   : > { %2741 = vmatmul.msk.bf16.gmra.mxu1 %vm750_vm3, %v2985_v59  ;;  %v3445_v18 = vadd.f32 %v2016_v13, %v1413_v61  ;;  %2645 = vmatmul.msk.bf16.gmra.mxu0 %vm750_vm3, %v719_v3  ;;  %v566_v59 = vor.u32 %v565_v45, %v561_v44  ;;  %v1762_v61 = vrot.slane %v1760_v40, 5  ;;  %v1768_v3 = vrot.slane %v1766_v47, 5 }
  0xba   : > { %2877 = vmatmul.msk.bf16.gmra.mxu2 %vm750_vm3, %v3009_v63  ;;  %v562_v22 = vsel %vm3236_vm4, %v557_v10, %v561_v44  ;;  %v1781_v45 = vshrl.u32 %v2920_v32, 16  ;;  %v593_v7 = vshll.u32 %v278_v58, 16  ;;  %v2988_v58 = vld [vmem:[%s3171_s27 + $0x90] sm:$0xff] }
  0xbb   : > { %v1773_v16 = vor.u32 %v1772_v4, %v1768_v3  ;;  %v700_v38 = vunpack.c.l.b16 %v562_v22 }
  0xbd   : > { %v1337_v24 = vpop.f32.mrf.mxu2  ;;  %2965 = vmatmul.msk.bf16.gmra.mxu3 %vm750_vm3, %v1926_v14  ;;  %v567_v14 = vrot.slane %v566_v59, 4 }
  0xbe   : > { %v1414_v29 = vadd.f32 %v1337_v24, %v1055_v11  ;;  %v1056_v30 = vpop.f32.mrf.mxu1  ;;  %v815_v36 = vpop.f32.mrf.mxu0  ;;  %v1763_v11 = vor.u32 %v1762_v61, %v1759_v60  ;;  %v1778_v24 = vrot.slane %v1776_v12, 5  ;;  %v3011_v61 = vld [vmem:[%s3171_s27 + $0x90] sm:$0xff] }
  0xbf   : > { %v1057_v41 = vadd.f32 %v1056_v30, %v815_v36  ;;  %v572_v28 = vsel %vm3236_vm4, %v567_v14, %v571_v15  ;;  %v574_v30 = vshrl.u32 %v250_v20, 16  ;;  %v2921_v36 = vld [vmem:[%s3171_s27 + $0xa0] sm:$0xf]  ;;  %v591_v20 = vrot.slane %v590_v6, 4 }
  0xc0   : > { %v2019_v46 = vpop.f32.mrf.mxu3  ;;  %v1764_v23 = vrot.slane %v1763_v11, 4  ;;  %v701_v39 = vunpack.c.l.b16 %v572_v28  ;;  %v1790_v50 = vshll.u32 %v2921_v36, 16  ;;  %v1794_v52 = vshrl.u32 %v2921_v36, 16 }
  0xc1   : > { %v3457_v49 = vadd.f32 %v2019_v46, %v1414_v29  ;;  %v1774_v29 = vrot.slane %v1773_v16, 4  ;;  %v576_v44 = vrot.slane %v574_v30, 4  ;;  %v1784_v46 = vshll.u32 %v2920_v32, 16 }
  0xc2   : > { %v1769_v40 = vsel %vm3236_vm4, %v1764_v23, %v1768_v3  ;;  %v721_v1 = vpack.c.b16 %v701_v39, %v700_v38  ;;  %v1792_v3 = vrot.slane %v1790_v50, 5  ;;  %v1796_v4 = vrot.slane %v1794_v52, 4  ;;  %v253_v23 = vld [vmem:[%s3171_s27 + $0xa0] sm:$0xf] }
  0xc3   : > { %v1779_v43 = vsel %vm3236_vm4, %v1774_v29, %v1778_v24  ;;  %v580_v2 = vor.u32 %v579_v48, %v576_v44  ;;  %v607_v35 = vshll.u32 %v253_v23, 16  ;;  %v611_v36 = vshrl.u32 %v253_v23, 16 }
  0xc4   : > { %v1797_v16 = vor.u32 %v1796_v4, %v1792_v3 }
  0xc5   : > { %v1339_v56 = vpop.f32.mrf.mxu2  ;;  %v581_v15 = vrot.slane %v580_v2, 4  ;;  %v613_v54 = vrot.slane %v611_v36, 4  ;;  %v2927_v36 = vld [vmem:[%s3171_s27 + $0xb8] sm:$0xf] }
  0xc6   : > { %v1415_v62 = vadd.f32 %v1339_v56, %v1057_v41  ;;  %v1059_v63 = vpop.f32.mrf.mxu1  ;;  %v818_v8 = vpop.f32.mrf.mxu0  ;;  %v2987_v56 = vld [vmem:[%s3171_s27 + $0x84] sm:$0xff]  ;;  %v1798_v31 = vrot.slane %v1797_v16, 4 }
  0xc7   : > { %v1060_v9 = vadd.f32 %v1059_v63, %v818_v8  ;;  %v1783_v63 = vrot.slane %v1781_v45, 4  ;;  %v2922_v8 = vld [vmem:[%s3171_s27 + $0xa4] sm:$0x1]  ;;  %v586_v29 = vsel %vm3236_vm4, %v581_v15, %v585_v53  ;;  %v609_v53 = vrot.slane %v607_v35, 5 }
  0xc8   : > { %v2021_v13 = vpop.f32.mrf.mxu3  ;;  %v702_v45 = vunpack.c.l.b16 %v586_v29 }
  0xc9   : > { %2742 = vmatmul.msk.bf16.gmra.mxu1 %vm750_vm3, %v2986_v57  ;;  %v3470_v17 = vadd.f32 %v2021_v13, %v1415_v62  ;;  %2646 = vmatmul.msk.bf16.gmra.mxu0 %vm750_vm3, %v720_v5  ;;  %v1907_v57 = vunpack.c.l.b16 %v1769_v40  ;;  %v1908_v62 = vunpack.c.l.b16 %v1779_v43  ;;  %v252_v13 = vld [vmem:[%s3171_s27 + $0x9c] sm:$0xf]  ;;  %v614_v6 = vor.u32 %v613_v54, %v609_v53 }
  0xca   : > { %2878 = vmatmul.msk.bf16.gmra.mxu2 %vm750_vm3, %v3010_v0  ;;  %v1786_v0 = vrot.slane %v1784_v46, 5  ;;  %v598_v24 = vshrl.u32 %v252_v13, 16  ;;  %v601_v25 = vshll.u32 %v252_v13, 16  ;;  %v1838_v54 = vshll.u32 %v2927_v36, 16 }
  0xcb   : > { %v1928_v11 = vpack.c.b16 %v1908_v62, %v1907_v57 }
  0xcc   : > { %v1787_v12 = vor.u32 %v1786_v0, %v1783_v63  ;;  %v600_v39 = vrot.slane %v598_v24, 4  ;;  %v603_v40 = vrot.slane %v601_v25, 5  ;;  %v255_v25 = vld [vmem:[%s3171_s27 + $0xac] sm:$0xf] }
  0xcd   : > { %v1342_v21 = vpop.f32.mrf.mxu2  ;;  %2966 = vmatmul.msk.bf16.gmra.mxu3 %vm750_vm3, %v1927_v19  ;;  %v1800_v19 = vshll.u32 %v2922_v8, 16  ;;  %v635_v35 = vshrl.u32 %v255_v25, 16 }
  0xce   : > { %v1416_v26 = vadd.f32 %v1342_v21, %v1060_v9  ;;  %v1061_v27 = vpop.f32.mrf.mxu1  ;;  %v820_v33 = vpop.f32.mrf.mxu0  ;;  %v595_v21 = vrot.slane %v593_v7, 5  ;;  %v1788_v30 = vrot.slane %v1787_v12, 4  ;;  %v2925_v12 = vld [vmem:[%s3171_s27 + $0xb0] sm:$0x1] }
  0xcf   : > { %v1062_v37 = vadd.f32 %v1061_v27, %v820_v33  ;;  %v1802_v32 = vrot.slane %v1800_v19, 5  ;;  %v1824_v24 = vshll.u32 %v2925_v12, 16 }
  0xd0   : > { %v2024_v41 = vpop.f32.mrf.mxu3  ;;  %v596_v34 = vsel %vm3236_vm4, %v591_v20, %v595_v21  ;;  %v1793_v50 = vsel %vm3236_vm4, %v1788_v30, %v1792_v3  ;;  %v254_v20 = vld [vmem:[%s3171_s27 + $0xa8] sm:$0xf]  ;;  %v615_v21 = vrot.slane %v614_v6, 4 }
  0xd1   : > { %v3486_v47 = vadd.f32 %v2024_v41, %v1416_v26  ;;  %v2923_v26 = vld [vmem:[%s3171_s27 + $0xa8] sm:$0xf]  ;;  %v2924_v41 = vld [vmem:[%s3171_s27 + $0xac] sm:$0xf]  ;;  %v703_v48 = vunpack.c.l.b16 %v596_v34  ;;  %v1803_v52 = vsel %vm3236_vm4, %v1798_v31, %v1802_v32  ;;  %v1909_v4 = vunpack.c.l.b16 %v1793_v50 }
  0xd2   : > { %v1808_v43 = vshll.u32 %v2923_v26, 16  ;;  %v1910_v3 = vunpack.c.l.b16 %v1803_v52  ;;  %v622_v31 = vshrl.u32 %v254_v20, 16  ;;  %v625_v32 = vshll.u32 %v254_v20, 16 }
  0xd3   : > { %v722_v2 = vpack.c.b16 %v703_v48, %v702_v45  ;;  %v631_v34 = vshll.u32 %v255_v25, 16 }
  0xd4   : > { %v1810_v62 = vrot.slane %v1808_v43, 5  ;;  %v1929_v19 = vpack.c.b16 %v1910_v3, %v1909_v4  ;;  %v624_v52 = vrot.slane %v622_v31, 4 }
  0xd5   : > { %v1344_v55 = vpop.f32.mrf.mxu2 }
  0xd6   : > { %v1417_v59 = vadd.f32 %v1344_v55, %v1062_v37  ;;  %v1064_v60 = vpop.f32.mrf.mxu1  ;;  %v823_v5 = vpop.f32.mrf.mxu0  ;;  %v1805_v37 = vshrl.u32 %v2923_v26, 16  ;;  %v1814_v55 = vshll.u32 %v2924_v41, 16 }
  0xd7   : > { %v1065_v9 = vadd.f32 %v1064_v60, %v823_v5  ;;  %v604_v60 = vor.u32 %v603_v40, %v600_v39 }
  0xd8   : > { %v2026_v10 = vpop.f32.mrf.mxu3  ;;  %v1816_v8 = vrot.slane %v1814_v55, 5  ;;  %v1842_v55 = vshrl.u32 %v2927_v36, 16 }
  0xd9   : > { %2743 = vmatmul.msk.bf16.gmra.mxu1 %vm750_vm3, %v2987_v56  ;;  %v3495_v14 = vadd.f32 %v2026_v10, %v1417_v59  ;;  %2647 = vmatmul.msk.bf16.gmra.mxu0 %vm750_vm3, %v721_v1  ;;  %v1818_v56 = vshrl.u32 %v2924_v41, 16  ;;  %v279_v59 = vld [vmem:[%s3171_s27 + $0xa4] sm:$0x1]  ;;  %v3012_v1 = vld [vmem:[%s3171_s27 + $0x9c] sm:$0xff]  ;;  %v1826_v41 = vrot.slane %v1824_v24, 5 }
  0xda   : > { %2879 = vmatmul.msk.bf16.gmra.mxu2 %vm750_vm3, %v3011_v61  ;;  %v1807_v61 = vrot.slane %v1805_v37, 4  ;;  %v617_v7 = vshll.u32 %v279_v59, 16  ;;  %v637_v59 = vrot.slane %v635_v35, 4 }
  0xdc   : > { %v1811_v13 = vor.u32 %v1810_v62, %v1807_v61  ;;  %v280_v61 = vld [vmem:[%s3171_s27 + $0xb0] sm:$0x1] }
  0xdd   : > { %v1347_v22 = vpop.f32.mrf.mxu2  ;;  %2967 = vmatmul.msk.bf16.gmra.mxu3 %vm750_vm3, %v1928_v11  ;;  %v605_v11 = vrot.slane %v604_v60, 4  ;;  %v641_v12 = vshll.u32 %v280_v61, 16 }
  0xde   : > { %v1418_v27 = vadd.f32 %v1347_v22, %v1065_v9  ;;  %v1066_v28 = vpop.f32.mrf.mxu1  ;;  %v825_v33 = vpop.f32.mrf.mxu0  ;;  %v1820_v9 = vrot.slane %v1818_v56, 4  ;;  %v619_v22 = vrot.slane %v617_v7, 5  ;;  %v1840_v7 = vrot.slane %v1838_v54, 5 }
  0xdf   : > { %v1067_v38 = vadd.f32 %v1066_v28, %v825_v33  ;;  %v1812_v28 = vrot.slane %v1811_v13, 4  ;;  %v2926_v33 = vld [vmem:[%s3171_s27 + $0xb4] sm:$0xf]  ;;  %v2928_v13 = vld [vmem:[%s3171_s27 + $0xbc] sm:$0x1] }
  0xe0   : > { %v2029_v44 = vpop.f32.mrf.mxu3  ;;  %v1821_v23 = vor.u32 %v1820_v9, %v1816_v8  ;;  %v1829_v45 = vshrl.u32 %v2926_v33, 16  ;;  %v1832_v48 = vshll.u32 %v2926_v33, 16  ;;  %v1848_v24 = vshll.u32 %v2928_v13, 16 }
  0xe1   : > { %v3506_v46 = vadd.f32 %v2029_v44, %v1418_v27  ;;  %v610_v27 = vsel %vm3236_vm4, %v605_v11, %v609_v53  ;;  %v1817_v44 = vsel %vm3236_vm4, %v1812_v28, %v1816_v8  ;;  %v627_v53 = vrot.slane %v625_v32, 5  ;;  %v257_v32 = vld [vmem:[%s3171_s27 + $0xb8] sm:$0xf] }
  0xe2   : > { %v704_v39 = vunpack.c.l.b16 %v610_v27  ;;  %v1822_v40 = vrot.slane %v1821_v23, 4  ;;  %v1844_v8 = vrot.slane %v1842_v55, 4  ;;  %v643_v28 = vrot.slane %v641_v12, 5 }
  0xe3   : > { %v628_v6 = vor.u32 %v627_v53, %v624_v52  ;;  %v2930_v52 = vld [vmem:[%s3171_s27 + $0xc4] sm:$0xf] }
  0xe4   : > { %v1827_v60 = vsel %vm3236_vm4, %v1822_v40, %v1826_v41  ;;  %v1845_v23 = vor.u32 %v1844_v8, %v1840_v7  ;;  %v2929_v41 = vld [vmem:[%s3171_s27 + $0xc0] sm:$0xf] }
  0xe5   : > { %v1349_v57 = vpop.f32.mrf.mxu2 }
  0xe6   : > { %v1419_v63 = vadd.f32 %v1349_v57, %v1067_v38  ;;  %v1069_v0 = vpop.f32.mrf.mxu1  ;;  %v828_v5 = vpop.f32.mrf.mxu0  ;;  %v620_v38 = vsel %vm3236_vm4, %v615_v21, %v619_v22  ;;  %v629_v22 = vrot.slane %v628_v6, 4  ;;  %v1846_v36 = vrot.slane %v1845_v23, 4 }
  0xe7   : > { %v1070_v10 = vadd.f32 %v1069_v0, %v828_v5  ;;  %v705_v57 = vunpack.c.l.b16 %v620_v38  ;;  %v1911_v0 = vunpack.c.l.b16 %v1817_v44  ;;  %v3013_v5 = vld [vmem:[%s3171_s27 + $0xa8] sm:$0xff]  ;;  %v655_v44 = vshll.u32 %v257_v32, 16 }
  0xe8   : > { %v2031_v15 = vpop.f32.mrf.mxu3 }
  0xe9   : > { %2744 = vmatmul.msk.bf16.gmra.mxu1 %vm750_vm3, %v2988_v58  ;;  %v3518_v16 = vadd.f32 %v2031_v15, %v1419_v63  ;;  %2648 = vmatmul.msk.bf16.gmra.mxu0 %vm750_vm3, %v722_v2  ;;  %v633_v58 = vrot.slane %v631_v34, 5  ;;  %v2989_v63 = vld [vmem:[%s3171_s27 + $0x9c] sm:$0xff]  ;;  %v1834_v2 = vrot.slane %v1832_v48, 5  ;;  %v723_v9 = vpack.c.b16 %v705_v57, %v704_v39 }
  0xea   : > { %2880 = vmatmul.msk.bf16.gmra.mxu2 %vm750_vm3, %v3012_v1  ;;  %v1831_v1 = vrot.slane %v1829_v45, 4  ;;  %v659_v45 = vshrl.u32 %v257_v32, 16 }
  0xeb   : > { %v638_v11 = vor.u32 %v637_v59, %v633_v58  ;;  %v634_v35 = vsel %vm3236_vm4, %v629_v22, %v633_v58  ;;  %v1853_v58 = vshrl.u32 %v2929_v41, 16  ;;  %v2931_v22 = vld [vmem:[%s3171_s27 + $0xc8] sm:$0x1] }
  0xec   : > { %v1835_v20 = vor.u32 %v1834_v2, %v1831_v1  ;;  %v1862_v1 = vshll.u32 %v2930_v52, 16  ;;  %v1866_v2 = vshrl.u32 %v2930_v52, 16 }
  0xed   : > { %v1352_v26 = vpop.f32.mrf.mxu2  ;;  %2968 = vmatmul.msk.bf16.gmra.mxu3 %vm750_vm3, %v1929_v19  ;;  %v639_v27 = vrot.slane %v638_v11, 4  ;;  %v1855_v13 = vrot.slane %v1853_v58, 4 }
  0xee   : > { %v1420_v29 = vadd.f32 %v1352_v26, %v1070_v10  ;;  %v1071_v30 = vpop.f32.mrf.mxu1  ;;  %v830_v37 = vpop.f32.mrf.mxu0  ;;  %v1912_v10 = vunpack.c.l.b16 %v1827_v60  ;;  %v1836_v31 = vrot.slane %v1835_v20, 4  ;;  %v1864_v23 = vrot.slane %v1862_v1, 5 }
  0xef   : > { %v1072_v43 = vadd.f32 %v1071_v30, %v830_v37  ;;  %v1850_v37 = vrot.slane %v1848_v24, 5  ;;  %v644_v38 = vsel %vm3236_vm4, %v639_v27, %v643_v28  ;;  %v1868_v24 = vrot.slane %v1866_v2, 4 }
  0xf0   : > { %v2034_v50 = vpop.f32.mrf.mxu3  ;;  %v1930_v26 = vpack.c.b16 %v1912_v10, %v1911_v0  ;;  %v707_v54 = vunpack.c.l.b16 %v644_v38  ;;  %v1841_v55 = vsel %vm3236_vm4, %v1836_v31, %v1840_v7  ;;  %v661_v0 = vrot.slane %v659_v45, 4 }
  0xf1   : > { %v3532_v56 = vadd.f32 %v2034_v50, %v1420_v29  ;;  %v256_v29 = vld [vmem:[%s3171_s27 + $0xb4] sm:$0xf]  ;;  %v706_v50 = vunpack.c.l.b16 %v634_v35  ;;  %v1851_v57 = vsel %vm3236_vm4, %v1846_v36, %v1850_v37  ;;  %v1913_v10 = vunpack.c.l.b16 %v1841_v55 }
  0xf2   : > { %v646_v39 = vshrl.u32 %v256_v29, 16  ;;  %v649_v40 = vshll.u32 %v256_v29, 16  ;;  %v1914_v11 = vunpack.c.l.b16 %v1851_v57  ;;  %v1872_v31 = vshll.u32 %v2931_v22, 16 }
  0xf3   : > { %v724_v8 = vpack.c.b16 %v707_v54, %v706_v50  ;;  %v1869_v35 = vor.u32 %v1868_v24, %v1864_v23 }
  0xf4   : > { %v648_v60 = vrot.slane %v646_v39, 4  ;;  %v651_v61 = vrot.slane %v649_v40, 5  ;;  %v1931_v29 = vpack.c.b16 %v1914_v11, %v1913_v10  ;;  %v1874_v45 = vrot.slane %v1872_v31, 5 }
  0xf5   : > { %v1354_v62 = vpop.f32.mrf.mxu2 }
  0xf6   : > { %v1421_v4 = vadd.f32 %v1354_v62, %v1072_v43  ;;  %v1074_v3 = vpop.f32.mrf.mxu1  ;;  %v833_v15 = vpop.f32.mrf.mxu0  ;;  %v1856_v62 = vshll.u32 %v2929_v41, 16  ;;  %v652_v12 = vor.u32 %v651_v61, %v648_v60  ;;  %v2991_v60 = vld [vmem:[%s3171_s27 + $0xb4] sm:$0xff] }
  0xf7   : > { %v1075_v19 = vadd.f32 %v1074_v3, %v833_v15  ;;  %v2990_v3 = vld [vmem:[%s3171_s27 + $0xa8] sm:$0xff] }
  0xf8   : > { %v2036_v21 = vpop.f32.mrf.mxu3  ;;  %v1858_v15 = vrot.slane %v1856_v62, 5  ;;  %v653_v32 = vrot.slane %v652_v12, 4 }
  0xf9   : > { %2745 = vmatmul.msk.bf16.gmra.mxu1 %vm750_vm3, %v2989_v63  ;;  %v3542_v25 = vadd.f32 %v2036_v21, %v1421_v4  ;;  %2649 = vmatmul.msk.bf16.gmra.mxu0 %vm750_vm3, %v723_v9  ;;  %v657_v63 = vrot.slane %v655_v44, 5  ;;  %v3014_v9 = vld [vmem:[%s3171_s27 + $0xb4] sm:$0xff]  ;;  %v1870_v44 = vrot.slane %v1869_v35, 4 }
  0xfa   : > { %2881 = vmatmul.msk.bf16.gmra.mxu2 %vm750_vm3, %v3013_v5  ;;  %v281_v5 = vld [vmem:[%s3171_s27 + $0xbc] sm:$0x1] }
  0xfb   : > { %v662_v20 = vor.u32 %v661_v0, %v657_v63  ;;  %v665_v21 = vshll.u32 %v281_v5, 16  ;;  %v658_v41 = vsel %vm3236_vm4, %v653_v32, %v657_v63  ;;  %v1875_v57 = vsel %vm3236_vm4, %v1870_v44, %v1874_v45  ;;  %v3015_v63 = vld [vmem:[%s3171_s27 + $0xc0] sm:$0xff] }
  0xfc   : > { %v1916_v2 = vunpack.c.l.b16 %v1875_v57 }
  0xfd   : > { %v1357_v30 = vpop.f32.mrf.mxu2  ;;  %2969 = vmatmul.msk.bf16.gmra.mxu3 %vm750_vm3, %v1930_v26 }
  0xfe   : > { %v1422_v33 = vadd.f32 %v1357_v30, %v1075_v19  ;;  %v1076_v34 = vpop.f32.mrf.mxu1  ;;  %v835_v43 = vpop.f32.mrf.mxu0  ;;  %v1859_v30 = vor.u32 %v1858_v15, %v1855_v13 }
  0xff   : > { %v1077_v48 = vadd.f32 %v1076_v34, %v835_v43  ;;  %v667_v34 = vrot.slane %v665_v21, 5 }
 0x100   : > { %v2039_v53 = vpop.f32.mrf.mxu3  ;;  %v1860_v39 = vrot.slane %v1859_v30, 4 }
 0x101   : > { %v3558_v59 = vadd.f32 %v2039_v53, %v1422_v33  ;;  %v663_v33 = vrot.slane %v662_v20, 4  ;;  %v708_v53 = vunpack.c.l.b16 %v658_v41 }
 0x102   : > { %v1865_v55 = vsel %vm3236_vm4, %v1860_v39, %v1864_v23 }
 0x103   : > { %v668_v43 = vsel %vm3236_vm4, %v663_v33, %v667_v34  ;;  %v1915_v1 = vunpack.c.l.b16 %v1865_v55 }
 0x104   : > { %v709_v54 = vunpack.c.l.b16 %v668_v43 }
 0x105   : > { %v1359_v4 = vpop.f32.mrf.mxu2  ;;  %v1932_v42 = vpack.c.b16 %v1916_v2, %v1915_v1 }
 0x106   : > { %v1423_v6 = vadd.f32 %v1359_v4, %v1077_v48  ;;  %v1079_v7 = vpop.f32.mrf.mxu1  ;;  %v838_v19 = vpop.f32.mrf.mxu0  ;;  %v725_v0 = vpack.c.b16 %v709_v54, %v708_v53 }
 0x107   : > { %v1080_v26 = vadd.f32 %v1079_v7, %v838_v19 }
 0x108   : > { %v2041_v27 = vpop.f32.mrf.mxu3 }
 0x109   : > { %2746 = vmatmul.msk.bf16.gmra.mxu1 %vm750_vm3, %v2990_v3  ;;  %v3566_v28 = vadd.f32 %v2041_v27, %v1423_v6  ;;  %2650 = vmatmul.msk.bf16.gmra.mxu0 %vm750_vm3, %v724_v8 }
 0x10a   : > { %2882 = vmatmul.msk.bf16.gmra.mxu2 %vm750_vm3, %v3014_v9 }
 0x10d   : > { %v1362_v36 = vpop.f32.mrf.mxu2  ;;  %2970 = vmatmul.msk.bf16.gmra.mxu3 %vm750_vm3, %v1931_v29 }
 0x10e   : > { %v1424_v37 = vadd.f32 %v1362_v36, %v1080_v26  ;;  %v1081_v38 = vpop.f32.mrf.mxu1  ;;  %v840_v40 = vpop.f32.mrf.mxu0 }
 0x10f   : > { %v1082_v48 = vadd.f32 %v1081_v38, %v840_v40 }
 0x110   : > { %v2044_v50 = vpop.f32.mrf.mxu3 }
 0x111   : > { %v3574_v52 = vadd.f32 %v2044_v50, %v1424_v37 }
 0x115   : > { %v1364_v58 = vpop.f32.mrf.mxu2 }
 0x116   : > { %v1425_v61 = vadd.f32 %v1364_v58, %v1082_v48  ;;  %v1084_v62 = vpop.f32.mrf.mxu1  ;;  %v843_v4 = vpop.f32.mrf.mxu0 }
 0x117   : > { %v1085_v3 = vadd.f32 %v1084_v62, %v843_v4 }
 0x118   : > { %v2046_v5 = vpop.f32.mrf.mxu3 }
 0x119   : > { %2747 = vmatmul.msk.bf16.gmra.mxu1 %vm750_vm3, %v2991_v60  ;;  %v3584_v6 = vadd.f32 %v2046_v5, %v1425_v61  ;;  %2651 = vmatmul.msk.bf16.gmra.mxu0 %vm750_vm3, %v725_v0 }
 0x11a   : > { %2883 = vmatmul.msk.bf16.gmra.mxu2 %vm750_vm3, %v3015_v63 }
 0x11d   : > { %v1367_v7 = vpop.f32.mrf.mxu2  ;;  %2971 = vmatmul.msk.bf16.gmra.mxu3 %vm750_vm3, %v1932_v42 }
 0x11e   : > { %v1426_v8 = vadd.f32 %v1367_v7, %v1085_v3  ;;  %v1086_v9 = vpop.f32.mrf.mxu1  ;;  %v845_v10 = vpop.f32.mrf.mxu0 }
 0x11f   : > { %v1087_v11 = vadd.f32 %v1086_v9, %v845_v10 }
 0x120   : > { %v2049_v12 = vpop.f32.mrf.mxu3 }
 0x121   : > { %v3588_v13 = vadd.f32 %v2049_v12, %v1426_v8 }
 0x125   : > { %v1369_v15 = vpop.f32.mrf.mxu2 }
 0x126   : > { %v1427_v19 = vadd.f32 %v1369_v15, %v1087_v11  ;;  %v1089_v20 = vpop.f32.mrf.mxu1  ;;  %v848_v21 = vpop.f32.mrf.mxu0 }
 0x127   : > { %v1090_v22 = vadd.f32 %v1089_v20, %v848_v21 }
 0x128   : > { %v2051_v23 = vpop.f32.mrf.mxu3 }
 0x129   : > { %v3590_v24 = vadd.f32 %v2051_v23, %v1427_v19 }
 0x12d   : > { %v1372_v26 = vpop.f32.mrf.mxu2 }
 0x12e   : > { %v1428_v27 = vadd.f32 %v1372_v26, %v1090_v22  ;;  %v1091_v29 = vpop.f32.mrf.mxu1  ;;  %v850_v30 = vpop.f32.mrf.mxu0 }
 0x12f   : > { %v1092_v31 = vadd.f32 %v1091_v29, %v850_v30 }
 0x130   : > { %v2054_v32 = vpop.f32.mrf.mxu3 }
 0x131   : > { %v3592_v33 = vadd.f32 %v2054_v32, %v1428_v27 }
 0x135   : > { %v1374_v34 = vpop.f32.mrf.mxu2 }
 0x136   : > { %v1429_v35 = vadd.f32 %v1374_v34, %v1092_v31  ;;  %v1094_v36 = vpop.f32.mrf.mxu1  ;;  %v853_v37 = vpop.f32.mrf.mxu0 }
 0x137   : > { %v1095_v38 = vadd.f32 %v1094_v36, %v853_v37 }
 0x138   : > { %v2056_v39 = vpop.f32.mrf.mxu3 }
 0x139   : > { %v3594_v40 = vadd.f32 %v2056_v39, %v1429_v35 }
 0x13d   : > { %v1377_v41 = vpop.f32.mrf.mxu2 }
 0x13e   : > { %v1430_v43 = vadd.f32 %v1377_v41, %v1095_v38  ;;  %v1096_v44 = vpop.f32.mrf.mxu1  ;;  %v855_v45 = vpop.f32.mrf.mxu0 }
 0x13f   : > { %v1097_v48 = vadd.f32 %v1096_v44, %v855_v45 }
 0x140   : > { %v2059_v50 = vpop.f32.mrf.mxu3 }
 0x141   : > { %v3596_v53 = vadd.f32 %v2059_v50, %v1430_v43 }
 0x145   : > { %v1379_v54 = vpop.f32.mrf.mxu2 }
 0x146   : > { %v1431_v55 = vadd.f32 %v1379_v54, %v1097_v48  ;;  %v1099_v57 = vpop.f32.mrf.mxu1  ;;  %v858_v58 = vpop.f32.mrf.mxu0 }
 0x147   : > { %v1100_v60 = vadd.f32 %v1099_v57, %v858_v58 }
 0x148   : > { %v2061_v61 = vpop.f32.mrf.mxu3 }
 0x149   : > { %v3598_v62 = vadd.f32 %v2061_v61, %v1431_v55 }
 0x14d   : > { %v1382_v63 = vpop.f32.mrf.mxu2 }
 0x14e   : > { %v1432_v0 = vadd.f32 %v1382_v63, %v1100_v60  ;;  %v1101_v1 = vpop.f32.mrf.mxu1  ;;  %v860_v2 = vpop.f32.mrf.mxu0 }
 0x14f   : > { %v1102_v4 = vadd.f32 %v1101_v1, %v860_v2 }
 0x150   : > { %v2064_v3 = vpop.f32.mrf.mxu3 }
 0x151   : > { %v3600_v5 = vadd.f32 %v2064_v3, %v1432_v0 }
 0x155   : > { %v1384_v42 = vpop.f32.mrf.mxu2 }
 0x156   : > { %v1433_v7 = vadd.f32 %v1384_v42, %v1102_v4  ;;  %v1104_v8 = vpop.f32.mrf.mxu1  ;;  %v863_v9 = vpop.f32.mrf.mxu0 }
 0x157   : > { %v1105_v10 = vadd.f32 %v1104_v8, %v863_v9 }
 0x158   : > { %v2066_v11 = vpop.f32.mrf.mxu3 }
 0x159   : > { %v3602_v12 = vadd.f32 %v2066_v11, %v1433_v7 }
 0x15d   : > { %v1387_v15 = vpop.f32.mrf.mxu2 }
 0x15e   : > { %v1434_v19 = vadd.f32 %v1387_v15, %v1105_v10  ;;  %v1106_v20 = vpop.f32.mrf.mxu1  ;;  %v865_v21 = vpop.f32.mrf.mxu0 }
 0x15f   : > { %v1107_v22 = vadd.f32 %v1106_v20, %v865_v21 }
 0x160   : > { %v2069_v23 = vpop.f32.mrf.mxu3 }
 0x161   : > { %v3604_v26 = vadd.f32 %v2069_v23, %v1434_v19 }
 0x165   : > { %v1389_v27 = vpop.f32.mrf.mxu2 }
 0x166   : > { %v1435_v29 = vadd.f32 %v1389_v27, %v1107_v22  ;;  %v1109_v30 = vpop.f32.mrf.mxu1  ;;  %v868_v31 = vpop.f32.mrf.mxu0 }
 0x167   : > { %v1110_v35 = vadd.f32 %v1109_v30, %v868_v31 }
 0x168   : > { %v2071_v32 = vpop.f32.mrf.mxu3 }
 0x169   : > { %v3606_v34 = vadd.f32 %v2071_v32, %v1435_v29 }
 0x16d   : > { %v1392_v36 = vpop.f32.mrf.mxu2 }
 0x16e   : > { %v1111_v37 = vpop.f32.mrf.mxu1  ;;  %v1436_v38 = vadd.f32 %v1392_v36, %v1110_v35  ;;  %v870_v39 = vpop.f32.mrf.mxu0 }
 0x16f   : > { %v1112_v44 = vadd.f32 %v1111_v37, %v870_v39 }
 0x170   : > { %v2074_v41 = vpop.f32.mrf.mxu3 }
 0x171   : > { %v3608_v43 = vadd.f32 %v2074_v41, %v1436_v38 }
 0x175   : > { %v1394_v45 = vpop.f32.mrf.mxu2 }
 0x176   : > { %v1114_v48 = vpop.f32.mrf.mxu1  ;;  %v1437_v50 = vadd.f32 %v1394_v45, %v1112_v44  ;;  %v873_v54 = vpop.f32.mrf.mxu0 }
 0x177   : > { %v1115_v58 = vadd.f32 %v1114_v48, %v873_v54 }
 0x178   : > { %v2076_v55 = vpop.f32.mrf.mxu3 }
 0x179   : > { %v3610_v57 = vadd.f32 %v2076_v55, %v1437_v50 }
 0x17d   : > { %v1397_v60 = vpop.f32.mrf.mxu2 }
 0x17e   : > { %v1116_v61 = vpop.f32.mrf.mxu1  ;;  %v1438_v63 = vadd.f32 %v1397_v60, %v1115_v58  ;;  %v875_v0 = vpop.f32.mrf.mxu0 }
 0x17f   : > { %v1117_v4 = vadd.f32 %v1116_v61, %v875_v0 }
 0x180   : > { %v2079_v1 = vpop.f32.mrf.mxu3 }
 0x181   : > { %v3612_v2 = vadd.f32 %v2079_v1, %v1438_v63 }
 0x185   : > { %v1399_v3 = vpop.f32.mrf.mxu2 }
 0x186   : > { %v1119_v42 = vpop.f32.mrf.mxu1  ;;  %v1439_v7 = vadd.f32 %v1399_v3, %v1117_v4  ;;  %v878_v8 = vpop.f32.mrf.mxu0 }
 0x187   : > { %v1120_v11 = vadd.f32 %v1119_v42, %v878_v8 }
 0x188   : > { %v2081_v9 = vpop.f32.mrf.mxu3 }
 0x189   : > { %v3614_v10 = vadd.f32 %v2081_v9, %v1439_v7 }
 0x18d   : > { %v1402_v15 = vpop.f32.mrf.mxu2 }
 0x18e   : > { %v1121_v19 = vpop.f32.mrf.mxu1  ;;  %v1440_v20 = vadd.f32 %v1402_v15, %v1120_v11  ;;  %v880_v21 = vpop.f32.mrf.mxu0 }
 0x18f   : > { %v1122_v27 = vadd.f32 %v1121_v19, %v880_v21 }
 0x190   : > { %v2084_v22 = vpop.f32.mrf.mxu3 }
 0x191   : > { %v3616_v23 = vadd.f32 %v2084_v22, %v1440_v20 }
 0x195   : > { %v1404_v29 = vpop.f32.mrf.mxu2 }
 0x196   : > { %v1441_v30 = vadd.f32 %v1404_v29, %v1122_v27  ;;  %v1124_v31 = vpop.f32.mrf.mxu1  ;;  %v883_v32 = vpop.f32.mrf.mxu0 }
 0x197   : > { %v1125_v37 = vadd.f32 %v1124_v31, %v883_v32 }
 0x198   : > { %v2086_v35 = vpop.f32.mrf.mxu3 }
 0x199   : > { %v3618_v36 = vadd.f32 %v2086_v35, %v1441_v30 }
 0x19d   : > { %v1407_v38 = vpop.f32.mrf.mxu2 }
 0x19e   : > { %v1442_v39 = vadd.f32 %v1407_v38, %v1125_v37  ;;  %v1126_v41 = vpop.f32.mrf.mxu1  ;;  %v885_v45 = vpop.f32.mrf.mxu0 }
 0x19f   : > { %v1127_v50 = vadd.f32 %v1126_v41, %v885_v45 }
 0x1a0   : > { %v2089_v44 = vpop.f32.mrf.mxu3 }
 0x1a1   : > { %v3620_v48 = vadd.f32 %v2089_v44, %v1442_v39 }
 0x1a5   : > { %v1409_v54 = vpop.f32.mrf.mxu2  ;;  %2128 = sbr.rel (%p2972_p10) target bundleno = 508 (0x1fc), region = 44 }
 0x1a6   : > { %v1443_v55 = vadd.f32 %v1409_v54, %v1127_v50 }
 0x1a8   : > { %v2091_v58 = vpop.f32.mrf.mxu3 }
 0x1a9   : > { %v3622_v60 = vadd.f32 %v2091_v58, %v1443_v55 }
 0x1aa   : > { %vm2130_vm5 = vcmask 261120   ;;  %v2204_v15 = vmul.f32 %v3430_v51, %v3430_v51  ;;  %v2205_v19 = vmul.f32 %v3445_v18, %v3445_v18  ;;  %v2206_v21 = vmul.f32 %v3457_v49, %v3457_v49 }
 0x1ab   : > { %v2131_v61 = vsel %vm2130_vm5, %v3430_v51, 0.0  ;;  %v2132_v63 = vsel %vm2130_vm5, %v3445_v18, 0.0  ;;  %v2134_v0 = vsel %vm2130_vm5, %v3457_v49, 0.0  ;;  %v2136_v4 = vsel %vm2130_vm5, %v3470_v17, 0.0 }
 0x1ac   : > { %v2133_v1 = vadd.f32 %v2132_v63, %v2131_v61  ;;  %v2138_v42 = vsel %vm2130_vm5, %v3486_v47, 0.0  ;;  %v2140_v8 = vsel %vm2130_vm5, %v3495_v14, 0.0  ;;  %v2142_v11 = vsel %vm2130_vm5, %v3506_v46, 0.0 }
 0x1ad   : > { %v2144_v22 = vsel %vm2130_vm5, %v3518_v16, 0.0  ;;  %v2207_v27 = vmul.f32 %v3470_v17, %v3470_v17  ;;  %v2146_v30 = vsel %vm2130_vm5, %v3532_v56, 0.0  ;;  %v2208_v31 = vmul.f32 %v3486_v47, %v3486_v47 }
 0x1ae   : > { %v2135_v3 = vadd.f32 %v2134_v0, %v2133_v1  ;;  %v2236_v32 = vsel %vm2130_vm5, %v2204_v15, 0.0  ;;  %v2237_v35 = vsel %vm2130_vm5, %v2205_v19, 0.0  ;;  %v2239_v39 = vsel %vm2130_vm5, %v2206_v21, 0.0 }
 0x1af   : > { %v2238_v38 = vadd.f32 %v2237_v35, %v2236_v32  ;;  %v2148_v41 = vsel %vm2130_vm5, %v3542_v25, 0.0  ;;  %v2209_v44 = vmul.f32 %v3495_v14, %v3495_v14  ;;  %v2241_v45 = vsel %vm2130_vm5, %v2207_v27, 0.0 }
 0x1b0   : > { %v2137_v7 = vadd.f32 %v2136_v4, %v2135_v3  ;;  %v2150_v55 = vsel %vm2130_vm5, %v3558_v59, 0.0  ;;  %v2210_v58 = vmul.f32 %v3506_v46, %v3506_v46  ;;  %v2243_v61 = vsel %vm2130_vm5, %v2208_v31, 0.0 }
 0x1b1   : > { %v2240_v54 = vadd.f32 %v2239_v39, %v2238_v38  ;;  %v2152_v1 = vsel %vm2130_vm5, %v3566_v28, 0.0  ;;  %v2211_v4 = vmul.f32 %v3518_v16, %v3518_v16  ;;  %v2245_v3 = vsel %vm2130_vm5, %v2209_v44, 0.0 }
 0x1b2   : > { %v2139_v9 = vadd.f32 %v2138_v42, %v2137_v7  ;;  %v2213_v21 = vmul.f32 %v3542_v25, %v3542_v25  ;;  %v2214_v31 = vmul.f32 %v3558_v59, %v3558_v59  ;;  %v2160_v38 = vsel %vm2130_vm5, %v3590_v24, 0.0 }
 0x1b3   : > { %v2242_v0 = vadd.f32 %v2241_v45, %v2240_v54  ;;  %v2215_v39 = vmul.f32 %v3566_v28, %v3566_v28  ;;  %v2216_v54 = vmul.f32 %v3574_v52, %v3574_v52  ;;  %vm2201_vm6 = vcmask 253952  }
 0x1b4   : > { %v2141_v20 = vadd.f32 %v2140_v8, %v2139_v9  ;;  %v2154_v8 = vsel %vm2130_vm5, %v3574_v52, 0.0  ;;  %v2212_v9 = vmul.f32 %v3532_v56, %v3532_v56 }
 0x1b5   : > { %v2244_v7 = vadd.f32 %v2243_v61, %v2242_v0  ;;  %v2217_v0 = vmul.f32 %v3584_v6, %v3584_v6 }
 0x1b6   : > { %v2143_v29 = vadd.f32 %v2142_v11, %v2141_v20  ;;  %v2247_v11 = vsel %vm2130_vm5, %v2210_v58, 0.0  ;;  %v2156_v20 = vsel %vm2130_vm5, %v3584_v6, 0.0  ;;  %v2251_v32 = vsel %vm2130_vm5, %v2212_v9, 0.0 }
 0x1b7   : > { %v2246_v19 = vadd.f32 %v2245_v3, %v2244_v7  ;;  %v2218_v7 = vmul.f32 %v3588_v13, %v3588_v13 }
 0x1b8   : > { %v2145_v37 = vadd.f32 %v2144_v22, %v2143_v29  ;;  %v2249_v22 = vsel %vm2130_vm5, %v2211_v4, 0.0 }
 0x1b9   : > { %v2248_v29 = vadd.f32 %v2247_v11, %v2246_v19  ;;  %v2219_v19 = vmul.f32 %v3590_v24, %v3590_v24 }
 0x1ba   : > { %v2147_v50 = vadd.f32 %v2146_v30, %v2145_v37  ;;  %v2158_v30 = vsel %vm2130_vm5, %v3588_v13, 0.0 }
 0x1bb   : > { %v2250_v37 = vadd.f32 %v2249_v22, %v2248_v29  ;;  %v2220_v29 = vmul.f32 %v3592_v33, %v3592_v33 }
 0x1bc   : > { %v2149_v63 = vadd.f32 %v2148_v41, %v2147_v50  ;;  %v2253_v41 = vsel %vm2130_vm5, %v2213_v21, 0.0  ;;  %v2162_v50 = vsel %vm2130_vm5, %v3592_v33, 0.0 }
 0x1bd   : > { %v2252_v45 = vadd.f32 %v2251_v32, %v2250_v37  ;;  %v2221_v37 = vmul.f32 %v3594_v40, %v3594_v40 }
 0x1be   : > { %v2151_v42 = vadd.f32 %v2150_v55, %v2149_v63  ;;  %v2255_v55 = vsel %vm2130_vm5, %v2214_v31, 0.0  ;;  %v2164_v63 = vsel %vm2130_vm5, %v3594_v40, 0.0 }
 0x1bf   : > { %v2254_v61 = vadd.f32 %v2253_v41, %v2252_v45  ;;  %v2222_v45 = vmul.f32 %v3596_v53, %v3596_v53 }
 0x1c0   : > { %v2153_v15 = vadd.f32 %v2152_v1, %v2151_v42  ;;  %v2257_v1 = vsel %vm2130_vm5, %v2215_v39, 0.0  ;;  %v2166_v42 = vsel %vm2130_vm5, %v3596_v53, 0.0 }
 0x1c1   : > { %v2256_v3 = vadd.f32 %v2255_v55, %v2254_v61  ;;  %v2223_v61 = vmul.f32 %v3598_v62, %v3598_v62 }
 0x1c2   : > { %v2155_v27 = vadd.f32 %v2154_v8, %v2153_v15  ;;  %v2259_v8 = vsel %vm2130_vm5, %v2216_v54, 0.0  ;;  %v2168_v15 = vsel %vm2130_vm5, %v3598_v62, 0.0 }
 0x1c3   : > { %v2258_v11 = vadd.f32 %v2257_v1, %v2256_v3  ;;  %v2224_v3 = vmul.f32 %v3600_v5, %v3600_v5 }
 0x1c4   : > { %v2157_v35 = vadd.f32 %v2156_v20, %v2155_v27  ;;  %v2261_v20 = vsel %vm2130_vm5, %v2217_v0, 0.0  ;;  %v2170_v27 = vsel %vm2130_vm5, %v3600_v5, 0.0 }
 0x1c5   : > { %v2260_v22 = vadd.f32 %v2259_v8, %v2258_v11  ;;  %v2225_v11 = vmul.f32 %v3602_v12, %v3602_v12 }
 0x1c6   : > { %v2159_v44 = vadd.f32 %v2158_v30, %v2157_v35  ;;  %v2263_v30 = vsel %vm2130_vm5, %v2218_v7, 0.0  ;;  %v2172_v35 = vsel %vm2130_vm5, %v3602_v12, 0.0 }
 0x1c7   : > { %v2262_v32 = vadd.f32 %v2261_v20, %v2260_v22  ;;  %v2226_v22 = vmul.f32 %v3604_v26, %v3604_v26 }
 0x1c8   : > { %v2161_v58 = vadd.f32 %v2160_v38, %v2159_v44  ;;  %v2265_v38 = vsel %vm2130_vm5, %v2219_v19, 0.0  ;;  %v2174_v44 = vsel %vm2130_vm5, %v3604_v26, 0.0 }
 0x1c9   : > { %v2264_v41 = vadd.f32 %v2263_v30, %v2262_v32  ;;  %v2227_v32 = vmul.f32 %v3606_v34, %v3606_v34 }
 0x1ca   : > { %v2163_v4 = vadd.f32 %v2162_v50, %v2161_v58  ;;  %v2267_v50 = vsel %vm2130_vm5, %v2220_v29, 0.0  ;;  %v2176_v58 = vsel %vm2130_vm5, %v3606_v34, 0.0 }
 0x1cb   : > { %v2266_v55 = vadd.f32 %v2265_v38, %v2264_v41  ;;  %v2228_v41 = vmul.f32 %v3608_v43, %v3608_v43 }
 0x1cc   : > { %v2165_v9 = vadd.f32 %v2164_v63, %v2163_v4  ;;  %v2269_v63 = vsel %vm2130_vm5, %v2221_v37, 0.0  ;;  %v2178_v4 = vsel %vm2130_vm5, %v3608_v43, 0.0 }
 0x1cd   : > { %v2268_v1 = vadd.f32 %v2267_v50, %v2266_v55  ;;  %v2229_v55 = vmul.f32 %v3610_v57, %v3610_v57 }
 0x1ce   : > { %v2167_v21 = vadd.f32 %v2166_v42, %v2165_v9  ;;  %v2271_v42 = vsel %vm2130_vm5, %v2222_v45, 0.0  ;;  %v2180_v9 = vsel %vm2130_vm5, %v3610_v57, 0.0 }
 0x1cf   : > { %v2270_v8 = vadd.f32 %v2269_v63, %v2268_v1  ;;  %v2230_v1 = vmul.f32 %v3612_v2, %v3612_v2 }
 0x1d0   : > { %v2169_v31 = vadd.f32 %v2168_v15, %v2167_v21  ;;  %v2273_v15 = vsel %vm2130_vm5, %v2223_v61, 0.0  ;;  %v2182_v21 = vsel %vm2130_vm5, %v3612_v2, 0.0 }
 0x1d1   : > { %v2272_v20 = vadd.f32 %v2271_v42, %v2270_v8  ;;  %v2231_v8 = vmul.f32 %v3614_v10, %v3614_v10 }
 0x1d2   : > { %v2171_v39 = vadd.f32 %v2170_v27, %v2169_v31  ;;  %v2275_v27 = vsel %vm2130_vm5, %v2224_v3, 0.0  ;;  %v2184_v31 = vsel %vm2130_vm5, %v3614_v10, 0.0 }
 0x1d3   : > { %v2274_v30 = vadd.f32 %v2273_v15, %v2272_v20  ;;  %v2287_v20 = vsel %vm2130_vm5, %v2230_v1, 0.0 }
 0x1d4   : > { %v2173_v54 = vadd.f32 %v2172_v35, %v2171_v39  ;;  %v2277_v35 = vsel %vm2130_vm5, %v2225_v11, 0.0  ;;  %v2186_v39 = vsel %vm2130_vm5, %v3616_v23, 0.0 }
 0x1d5   : > { %v2276_v38 = vadd.f32 %v2275_v27, %v2274_v30  ;;  %v2233_v27 = vmul.f32 %v3618_v36, %v3618_v36 }
 0x1d6   : > { %v2175_v0 = vadd.f32 %v2174_v44, %v2173_v54  ;;  %v2279_v44 = vsel %vm2130_vm5, %v2226_v22, 0.0  ;;  %v2188_v54 = vsel %vm2130_vm5, %v3618_v36, 0.0 }
 0x1d7   : > { %v2278_v50 = vadd.f32 %v2277_v35, %v2276_v38 }
 0x1d8   : > { %v2177_v7 = vadd.f32 %v2176_v58, %v2175_v0  ;;  %v2281_v58 = vsel %vm2130_vm5, %v2227_v32, 0.0  ;;  %v2190_v0 = vsel %vm2130_vm5, %v3620_v48, 0.0  ;;  %v2234_v32 = vmul.f32 %v3620_v48, %v3620_v48 }
 0x1d9   : > { %v2280_v63 = vadd.f32 %v2279_v44, %v2278_v50 }
 0x1da   : > { %v2179_v19 = vadd.f32 %v2178_v4, %v2177_v7  ;;  %v2283_v4 = vsel %vm2130_vm5, %v2228_v41, 0.0  ;;  %v2192_v7 = vsel %vm2130_vm5, %v3622_v60, 0.0  ;;  %v2293_v41 = vsel %vm2130_vm5, %v2233_v27, 0.0 }
 0x1db   : > { %v2282_v42 = vadd.f32 %v2281_v58, %v2280_v63  ;;  %v2295_v50 = vsel %vm2130_vm5, %v2234_v32, 0.0 }
 0x1dc   : > { %v2181_v29 = vadd.f32 %v2180_v9, %v2179_v19  ;;  %v2285_v9 = vsel %vm2130_vm5, %v2229_v55, 0.0  ;;  %v2232_v19 = vmul.f32 %v3616_v23, %v3616_v23 }
 0x1dd   : > { %v2284_v15 = vadd.f32 %v2283_v4, %v2282_v42 }
 0x1de   : > { %v2183_v37 = vadd.f32 %v2182_v21, %v2181_v29  ;;  %v2289_v29 = vsel %vm2130_vm5, %v2231_v8, 0.0  ;;  %v2291_v35 = vsel %vm2130_vm5, %v2232_v19, 0.0 }
 0x1df   : > { %v2286_v22 = vadd.f32 %v2285_v9, %v2284_v15  ;;  %v2203_v15 = vld [vmem:[#allocation3] sm:$0x1] }
 0x1e0   : > { %v2185_v45 = vadd.f32 %v2184_v31, %v2183_v37 }
 0x1e1   : > { %v2288_v31 = vadd.f32 %v2287_v20, %v2286_v22 }
 0x1e2   : > { %v2187_v61 = vadd.f32 %v2186_v39, %v2185_v45  ;;  %v2235_v39 = vmul.f32 %v3622_v60, %v3622_v60 }
 0x1e3   : > { %v2290_v38 = vadd.f32 %v2289_v29, %v2288_v31 }
 0x1e4   : > { %v2189_v3 = vadd.f32 %v2188_v54, %v2187_v61  ;;  %v2297_v58 = vsel %vm2130_vm5, %v2235_v39, 0.0 }
 0x1e5   : > { %v2292_v45 = vadd.f32 %v2291_v35, %v2290_v38 }
 0x1e6   : > { %v2191_v11 = vadd.f32 %v2190_v0, %v2189_v3  ;;  %v2129_v0 = vld [vmem:[#allocation2] sm:$0x1] }
 0x1e7   : > { %v2294_v55 = vadd.f32 %v2293_v41, %v2292_v45 }
 0x1e8   : > { %v2193_v21 = vadd.f32 %v2192_v7, %v2191_v11 }
 0x1e9   : > { %v2296_v63 = vadd.f32 %v2295_v50, %v2294_v55 }
 0x1ea   : > { %v2194_v30 = vrot.slane %v2193_v21, 4 }
 0x1eb   : > { %v2298_v4 = vadd.f32 %v2297_v58, %v2296_v63 }
 0x1ec   : > { %v2195_v37 = vadd.f32 %v2194_v30, %v2193_v21 }
 0x1ed   : > { %v2299_v42 = vrot.slane %v2298_v4, 4 }
 0x1ee   : > { %v2196_v44 = vrot.slane %v2195_v37, 2 }
 0x1ef   : > { %v2300_v7 = vadd.f32 %v2299_v42, %v2298_v4 }
 0x1f0   : > { %v2197_v54 = vadd.f32 %v2196_v44, %v2195_v37 }
 0x1f1   : > { %v2301_v8 = vrot.slane %v2300_v7, 2 }
 0x1f2   : > { %v2198_v61 = vrot.slane %v2197_v54, 1 }
 0x1f3   : > { %v2302_v9 = vadd.f32 %v2301_v8, %v2300_v7 }
 0x1f4   : > { %v2199_v1 = vadd.f32 %v2198_v61, %v2197_v54 }
 0x1f5   : > { %v2303_v11 = vrot.slane %v2302_v9, 1 }
 0x1f6   : > { %v2200_v3 = vadd.f32 %v2199_v1, %v2129_v0 }
 0x1f7   : > { %v2304_v19 = vadd.f32 %v2303_v11, %v2302_v9 }
 0x1f8   : > { %2202 = vst.msk [vmem:[#allocation2] sm:$0x1] %vm2201_vm6, %v2200_v3 }
 0x1f9   : > { %v2305_v20 = vadd.f32 %v2304_v19, %v2203_v15 }
 0x1fb   : > { %2306 = vst.msk [vmem:[#allocation3] sm:$0x1] %vm2201_vm6, %v2305_v20 }
 0x1fc PF: > { %p2973_p11 = scmp.ne.s32.totalorder %s3094_s16, 1 }
 0x1fe   : > { %2310 = sbr.rel (%p2973_p11) target bundleno = 595 (0x253), region = 48 }
 0x203   : > { %v2311_v21 = vld [vmem:[#allocation2] sm:$0x1]  ;;  %v2312_v22 = vld [vmem:[#allocation3] sm:$0x1]  ;;  %vm2500_vm10 = vcmask 257024  }
 0x204   : > { %v2315_v27 = vmul.f32 0.001953125, %v2311_v21  ;;  %v2316_v29 = vmul.f32 0.001953125, %v2312_v22  ;;  %v2313_v45 = vld [vmem:[%s3973_s2] sm:$0x1] }
 0x205   : > { %v2314_v58 = vld [vmem:[%s3974_s3] sm:$0x1] }
 0x206   : > { %v2317_v30 = vmul.f32 %v2315_v27, %v2315_v27 }
 0x208   : > { %v2318_v31 = vsub.f32 %v2316_v29, %v2317_v30 }
 0x20a   : > { %v2319_v32 = vmax.f32 %v2318_v31, 0.0 }
 0x20c   : > { %v2320_v35 = vadd.f32 1e-05, %v2319_v32 }
 0x20e   : > { %3066 = vrsqrt.f32 %v2320_v35  ;;  %vm2327_vm7 = vweird.f32 %v2320_v35 }
 0x214   : > { %v3067_v37 = vpop.eup %3066 }
 0x215   : > { %v2322_v38 = vmul.f32 %v3067_v37, %v2320_v35  ;;  %vm2328_vm8 = vweird.f32 %v3067_v37 }
 0x216   : > { %vm2329_vm9 = vmor %vm2327_vm7, %vm2328_vm8 }
 0x217   : > { %v2323_v39 = vmul.f32 %v3067_v37, %v2322_v38 }
 0x219   : > { %v2324_v41 = vmul.f32 0.5, %v2323_v39 }
 0x21b   : > { %v2325_v44 = vsub.f32 1.5, %v2324_v41 }
 0x21d   : > { %v2326_v50 = vmul.f32 %v3067_v37, %v2325_v44 }
 0x21f   : > { %v2330_v54 = vsel %vm2329_vm9, %v3067_v37, %v2326_v50 }
 0x220   : > { %v2331_v55 = vmul.f32 %v2330_v54, %v2313_v45 }
 0x222   : > { %v2332_v61 = vmul.f32 %v2331_v55, %v2315_v27  ;;  %v3792_v63 = vperm.slane %v2331_v55, 0 }
 0x224   : > { %v2333_v0 = vsub.f32 %v2314_v58, %v2332_v61  ;;  %v2337_v1 = vmul.f32 %v3792_v63, %v3430_v51  ;;  %v2338_v4 = vmul.f32 %v3792_v63, %v3445_v18  ;;  %v2339_v3 = vmul.f32 %v3792_v63, %v3457_v49 }
 0x225   : > { %v2340_v42 = vmul.f32 %v3792_v63, %v3470_v17  ;;  %v2341_v7 = vmul.f32 %v3792_v63, %v3486_v47  ;;  %v2342_v8 = vmul.f32 %v3792_v63, %v3495_v14  ;;  %v2343_v9 = vmul.f32 %v3792_v63, %v3506_v46 }
 0x226   : > { %v3808_v51 = vperm.slane %v2333_v0, 0  ;;  %v2344_v18 = vmul.f32 %v3792_v63, %v3518_v16  ;;  %v2345_v49 = vmul.f32 %v3792_v63, %v3532_v56  ;;  %v2346_v17 = vmul.f32 %v3792_v63, %v3542_v25 }
 0x227   : > { %v2347_v47 = vmul.f32 %v3792_v63, %v3558_v59  ;;  %v2348_v14 = vmul.f32 %v3792_v63, %v3566_v28  ;;  %v2349_v46 = vmul.f32 %v3792_v63, %v3574_v52  ;;  %v2350_v11 = vmul.f32 %v3792_v63, %v3584_v6 }
 0x228   : > { %v2372_v16 = vadd.f32 %v3808_v51, %v2337_v1  ;;  %v2373_v15 = vadd.f32 %v3808_v51, %v2338_v4  ;;  %v2374_v56 = vadd.f32 %v3808_v51, %v2339_v3  ;;  %v2375_v25 = vadd.f32 %v3808_v51, %v2340_v42 }
 0x229   : > { %v2376_v19 = vadd.f32 %v3808_v51, %v2341_v7  ;;  %v2377_v59 = vadd.f32 %v3808_v51, %v2342_v8  ;;  %v2378_v28 = vadd.f32 %v3808_v51, %v2343_v9  ;;  %v2379_v20 = vadd.f32 %v3808_v51, %v2344_v18 }
 0x22a   : > { %v2404_v52 = vmul.f32 0.1, %v2372_v16  ;;  %v2405_v21 = vmul.f32 0.1, %v2373_v15  ;;  %v2406_v22 = vmul.f32 0.1, %v2374_v56  ;;  %v2380_v6 = vadd.f32 %v3808_v51, %v2345_v49 }
 0x22b   : > { %v2407_v27 = vmul.f32 0.1, %v2375_v25  ;;  %v2408_v29 = vmul.f32 0.1, %v2376_v19  ;;  %v2409_v30 = vmul.f32 0.1, %v2377_v59  ;;  %v2381_v31 = vadd.f32 %v3808_v51, %v2346_v17 }
 0x22c   : > { %v2436_v32 = vmax.f32 %v2372_v16, %v2404_v52  ;;  %v2437_v35 = vmax.f32 %v2373_v15, %v2405_v21  ;;  %v2438_v37 = vmax.f32 %v2374_v56, %v2406_v22  ;;  %v2410_v38 = vmul.f32 0.1, %v2378_v28 }
 0x22d   : > { %v2439_v39 = vmax.f32 %v2375_v25, %v2407_v27  ;;  %v2440_v41 = vmax.f32 %v2376_v19, %v2408_v29  ;;  %v2441_v44 = vmax.f32 %v2377_v59, %v2409_v30  ;;  %v2411_v45 = vmul.f32 0.1, %v2379_v20 }
 0x22e   : > { %v2468_v50 = vpack.c.bf16 %v2436_v32, %v2436_v32  ;;  %v2469_v54 = vpack.c.bf16 %v2437_v35, %v2437_v35  ;;  %v2470_v55 = vpack.c.bf16 %v2438_v37, %v2438_v37  ;;  %v2442_v58 = vmax.f32 %v2378_v28, %v2410_v38 }
 0x22f   : > { %v2471_v61 = vpack.c.bf16 %v2439_v39, %v2439_v39  ;;  %v2472_v0 = vpack.c.bf16 %v2440_v41, %v2440_v41  ;;  %v2473_v1 = vpack.c.bf16 %v2441_v44, %v2441_v44  ;;  %v2443_v4 = vmax.f32 %v2379_v20, %v2411_v45 }
 0x230   : > { %2501 = vst.msk [vmem:[%s3176_s5] sm:$0xf] %vm2500_vm10, %v2468_v50  ;;  %v2474_v3 = vpack.c.bf16 %v2442_v58, %v2442_v58  ;;  %v2412_v42 = vmul.f32 0.1, %v2380_v6  ;;  %v2413_v7 = vmul.f32 0.1, %v2381_v31  ;;  %v2382_v8 = vadd.f32 %v3808_v51, %v2347_v47 }
 0x231   : > { %2502 = vst.msk [vmem:[%s3176_s5 + $0x4] sm:$0xf] %vm2500_vm10, %v2469_v54  ;;  %v2475_v9 = vpack.c.bf16 %v2443_v4, %v2443_v4  ;;  %v2383_v18 = vadd.f32 %v3808_v51, %v2348_v14  ;;  %v2384_v49 = vadd.f32 %v3808_v51, %v2349_v46  ;;  %v2385_v17 = vadd.f32 %v3808_v51, %v2350_v11 }
 0x232   : > { %2503 = vst.msk [vmem:[%s3176_s5 + $0x8] sm:$0xf] %vm2500_vm10, %v2470_v55  ;;  %v2444_v16 = vmax.f32 %v2380_v6, %v2412_v42  ;;  %v2445_v15 = vmax.f32 %v2381_v31, %v2413_v7  ;;  %v2414_v56 = vmul.f32 0.1, %v2382_v8  ;;  %v2351_v25 = vmul.f32 %v3792_v63, %v3588_v13 }
 0x233   : > { %2504 = vst.msk [vmem:[%s3176_s5 + $0xc] sm:$0xf] %vm2500_vm10, %v2471_v61  ;;  %v2415_v47 = vmul.f32 0.1, %v2383_v18  ;;  %v2416_v19 = vmul.f32 0.1, %v2384_v49  ;;  %v2352_v14 = vmul.f32 %v3792_v63, %v3590_v24  ;;  %v2353_v46 = vmul.f32 %v3792_v63, %v3592_v33 }
 0x234   : > { %2505 = vst.msk [vmem:[%s3176_s5 + $0x10] sm:$0xf] %vm2500_vm10, %v2472_v0  ;;  %v2476_v11 = vpack.c.bf16 %v2444_v16, %v2444_v16  ;;  %v2477_v59 = vpack.c.bf16 %v2445_v15, %v2445_v15  ;;  %v2446_v28 = vmax.f32 %v2382_v8, %v2414_v56  ;;  %v2417_v20 = vmul.f32 0.1, %v2385_v17 }
 0x235   : > { %2506 = vst.msk [vmem:[%s3176_s5 + $0x14] sm:$0xf] %vm2500_vm10, %v2473_v1  ;;  %v2447_v13 = vmax.f32 %v2383_v18, %v2415_v47  ;;  %v2448_v52 = vmax.f32 %v2384_v49, %v2416_v19  ;;  %v2386_v21 = vadd.f32 %v3808_v51, %v2351_v25  ;;  %v2387_v22 = vadd.f32 %v3808_v51, %v2352_v14 }
 0x236   : > { %2507 = vst.msk [vmem:[%s3176_s5 + $0x18] sm:$0xf] %vm2500_vm10, %v2474_v3  ;;  %v2478_v24 = vpack.c.bf16 %v2446_v28, %v2446_v28  ;;  %v2449_v33 = vmax.f32 %v2385_v17, %v2417_v20  ;;  %v2388_v6 = vadd.f32 %v3808_v51, %v2353_v46  ;;  %v2354_v27 = vmul.f32 %v3792_v63, %v3594_v40 }
 0x237   : > { %2508 = vst.msk [vmem:[%s3176_s5 + $0x1c] sm:$0xf] %vm2500_vm10, %v2475_v9  ;;  %v2479_v29 = vpack.c.bf16 %v2447_v13, %v2447_v13  ;;  %v2480_v30 = vpack.c.bf16 %v2448_v52, %v2448_v52  ;;  %v2418_v31 = vmul.f32 0.1, %v2386_v21  ;;  %v2419_v32 = vmul.f32 0.1, %v2387_v22 }
 0x238   : > { %2509 = vst.msk [vmem:[%s3176_s5 + $0x20] sm:$0xf] %vm2500_vm10, %v2476_v11  ;;  %v2481_v35 = vpack.c.bf16 %v2449_v33, %v2449_v33  ;;  %v2420_v37 = vmul.f32 0.1, %v2388_v6  ;;  %v2389_v38 = vadd.f32 %v3808_v51, %v2354_v27  ;;  %v2355_v39 = vmul.f32 %v3792_v63, %v3596_v53 }
 0x239   : > { %2510 = vst.msk [vmem:[%s3176_s5 + $0x24] sm:$0xf] %vm2500_vm10, %v2477_v59  ;;  %v2450_v40 = vmax.f32 %v2386_v21, %v2418_v31  ;;  %v2451_v41 = vmax.f32 %v2387_v22, %v2419_v32  ;;  %v2356_v44 = vmul.f32 %v3792_v63, %v3598_v62  ;;  %v2357_v45 = vmul.f32 %v3792_v63, %v3600_v5 }
 0x23a   : > { %2511 = vst.msk [vmem:[%s3176_s5 + $0x28] sm:$0xf] %vm2500_vm10, %v2478_v24  ;;  %v2452_v50 = vmax.f32 %v2388_v6, %v2420_v37  ;;  %v2421_v54 = vmul.f32 0.1, %v2389_v38  ;;  %v2390_v55 = vadd.f32 %v3808_v51, %v2355_v39  ;;  %v2358_v53 = vmul.f32 %v3792_v63, %v3602_v12 }
 0x23b   : > { %2512 = vst.msk [vmem:[%s3176_s5 + $0x2c] sm:$0xf] %vm2500_vm10, %v2479_v29  ;;  %v2482_v58 = vpack.c.bf16 %v2450_v40, %v2450_v40  ;;  %v2483_v61 = vpack.c.bf16 %v2451_v41, %v2451_v41  ;;  %v2391_v62 = vadd.f32 %v3808_v51, %v2356_v44  ;;  %v2392_v0 = vadd.f32 %v3808_v51, %v2357_v45 }
 0x23c   : > { %2513 = vst.msk [vmem:[%s3176_s5 + $0x30] sm:$0xf] %vm2500_vm10, %v2480_v30  ;;  %v2484_v5 = vpack.c.bf16 %v2452_v50, %v2452_v50  ;;  %v2453_v1 = vmax.f32 %v2389_v38, %v2421_v54  ;;  %v2422_v4 = vmul.f32 0.1, %v2390_v55  ;;  %v2393_v3 = vadd.f32 %v3808_v51, %v2358_v53 }
 0x23d   : > { %2514 = vst.msk [vmem:[%s3176_s5 + $0x34] sm:$0xf] %vm2500_vm10, %v2481_v35  ;;  %v2423_v12 = vmul.f32 0.1, %v2391_v62  ;;  %v2424_v42 = vmul.f32 0.1, %v2392_v0  ;;  %v2359_v7 = vmul.f32 %v3792_v63, %v3604_v26  ;;  %v2360_v8 = vmul.f32 %v3792_v63, %v3606_v34 }
 0x23e   : > { %2515 = vst.msk [vmem:[%s3176_s5 + $0x38] sm:$0xf] %vm2500_vm10, %v2482_v58  ;;  %v2485_v9 = vpack.c.bf16 %v2453_v1, %v2453_v1  ;;  %v2454_v18 = vmax.f32 %v2390_v55, %v2422_v4  ;;  %v2425_v49 = vmul.f32 0.1, %v2393_v3  ;;  %v2361_v17 = vmul.f32 %v3792_v63, %v3608_v43 }
 0x23f   : > { %2516 = vst.msk [vmem:[%s3176_s5 + $0x3c] sm:$0xf] %vm2500_vm10, %v2483_v61  ;;  %v2455_v16 = vmax.f32 %v2391_v62, %v2423_v12  ;;  %v2456_v15 = vmax.f32 %v2392_v0, %v2424_v42  ;;  %v2394_v56 = vadd.f32 %v3808_v51, %v2359_v7  ;;  %v2395_v26 = vadd.f32 %v3808_v51, %v2360_v8 }
 0x240   : > { %2517 = vst.msk [vmem:[%s3176_s5 + $0x40] sm:$0xf] %vm2500_vm10, %v2484_v5  ;;  %v2486_v34 = vpack.c.bf16 %v2454_v18, %v2454_v18  ;;  %v2457_v25 = vmax.f32 %v2393_v3, %v2425_v49  ;;  %v2396_v47 = vadd.f32 %v3808_v51, %v2361_v17  ;;  %v2362_v19 = vmul.f32 %v3792_v63, %v3610_v57 }
 0x241   : > { %2518 = vst.msk [vmem:[%s3176_s5 + $0x44] sm:$0xf] %vm2500_vm10, %v2485_v9  ;;  %v2487_v43 = vpack.c.bf16 %v2455_v16, %v2455_v16  ;;  %v2488_v14 = vpack.c.bf16 %v2456_v15, %v2456_v15  ;;  %v2426_v46 = vmul.f32 0.1, %v2394_v56  ;;  %v2427_v11 = vmul.f32 0.1, %v2395_v26 }
 0x242   : > { %2519 = vst.msk [vmem:[%s3176_s5 + $0x48] sm:$0xf] %vm2500_vm10, %v2486_v34  ;;  %v2489_v59 = vpack.c.bf16 %v2457_v25, %v2457_v25  ;;  %v2428_v28 = vmul.f32 0.1, %v2396_v47  ;;  %v2397_v20 = vadd.f32 %v3808_v51, %v2362_v19  ;;  %v2363_v13 = vmul.f32 %v3792_v63, %v3612_v2 }
 0x243   : > { %2520 = vst.msk [vmem:[%s3176_s5 + $0x4c] sm:$0xf] %vm2500_vm10, %v2487_v43  ;;  %v2458_v57 = vmax.f32 %v2394_v56, %v2426_v46  ;;  %v2459_v52 = vmax.f32 %v2395_v26, %v2427_v11  ;;  %v2364_v21 = vmul.f32 %v3792_v63, %v3614_v10  ;;  %v2365_v22 = vmul.f32 %v3792_v63, %v3616_v23 }
 0x244   : > { %2521 = vst.msk [vmem:[%s3176_s5 + $0x50] sm:$0xf] %vm2500_vm10, %v2488_v14  ;;  %v2460_v24 = vmax.f32 %v2396_v47, %v2428_v28  ;;  %v2429_v33 = vmul.f32 0.1, %v2397_v20  ;;  %v2398_v6 = vadd.f32 %v3808_v51, %v2363_v13  ;;  %v2366_v2 = vmul.f32 %v3792_v63, %v3618_v36 }
 0x245   : > { %2522 = vst.msk [vmem:[%s3176_s5 + $0x54] sm:$0xf] %vm2500_vm10, %v2489_v59  ;;  %v2490_v27 = vpack.c.bf16 %v2458_v57, %v2458_v57  ;;  %v2491_v29 = vpack.c.bf16 %v2459_v52, %v2459_v52  ;;  %v2399_v10 = vadd.f32 %v3808_v51, %v2364_v21  ;;  %v2400_v30 = vadd.f32 %v3808_v51, %v2365_v22 }
 0x246   : > { %v2492_v23 = vpack.c.bf16 %v2460_v24, %v2460_v24  ;;  %v2461_v31 = vmax.f32 %v2397_v20, %v2429_v33  ;;  %v2430_v32 = vmul.f32 0.1, %v2398_v6  ;;  %v2401_v35 = vadd.f32 %v3808_v51, %v2366_v2 }
 0x247   : > { %2523 = vst.msk [vmem:[%s3176_s5 + $0x58] sm:$0xf] %vm2500_vm10, %v2490_v27  ;;  %v2431_v37 = vmul.f32 0.1, %v2399_v10  ;;  %v2432_v38 = vmul.f32 0.1, %v2400_v30  ;;  %v2367_v36 = vmul.f32 %v3792_v63, %v3620_v48  ;;  %v2368_v39 = vmul.f32 %v3792_v63, %v3622_v60 }
 0x248   : > { %2524 = vst.msk [vmem:[%s3176_s5 + $0x5c] sm:$0xf] %vm2500_vm10, %v2491_v29  ;;  %v2493_v40 = vpack.c.bf16 %v2461_v31, %v2461_v31  ;;  %v2462_v41 = vmax.f32 %v2398_v6, %v2430_v32  ;;  %v2433_v44 = vmul.f32 0.1, %v2401_v35 }
 0x249   : > { %2525 = vst.msk [vmem:[%s3176_s5 + $0x60] sm:$0xf] %vm2500_vm10, %v2492_v23  ;;  %v2463_v45 = vmax.f32 %v2399_v10, %v2431_v37  ;;  %v2464_v50 = vmax.f32 %v2400_v30, %v2432_v38  ;;  %v2402_v54 = vadd.f32 %v3808_v51, %v2367_v36  ;;  %v2403_v48 = vadd.f32 %v3808_v51, %v2368_v39 }
 0x24a   : > { %2526 = vst.msk [vmem:[%s3176_s5 + $0x64] sm:$0xf] %vm2500_vm10, %v2493_v40  ;;  %v2494_v60 = vpack.c.bf16 %v2462_v41, %v2462_v41  ;;  %v2465_v63 = vmax.f32 %v2401_v35, %v2433_v44 }
 0x24b   : > { %v2495_v55 = vpack.c.bf16 %v2463_v45, %v2463_v45  ;;  %v2496_v53 = vpack.c.bf16 %v2464_v50, %v2464_v50  ;;  %v2434_v58 = vmul.f32 0.1, %v2402_v54  ;;  %v2435_v61 = vmul.f32 0.1, %v2403_v48 }
 0x24c   : > { %2527 = vst.msk [vmem:[%s3176_s5 + $0x68] sm:$0xf] %vm2500_vm10, %v2494_v60  ;;  %v2497_v62 = vpack.c.bf16 %v2465_v63, %v2465_v63 }
 0x24d   : > { %2528 = vst.msk [vmem:[%s3176_s5 + $0x6c] sm:$0xf] %vm2500_vm10, %v2495_v55  ;;  %v2466_v0 = vmax.f32 %v2402_v54, %v2434_v58  ;;  %v2467_v5 = vmax.f32 %v2403_v48, %v2435_v61 }
 0x24e   : > { %2529 = vst.msk [vmem:[%s3176_s5 + $0x70] sm:$0xf] %vm2500_vm10, %v2496_v53 }
 0x24f   : > { %2530 = vst.msk [vmem:[%s3176_s5 + $0x74] sm:$0xf] %vm2500_vm10, %v2497_v62  ;;  %v2498_v51 = vpack.c.bf16 %v2466_v0, %v2466_v0  ;;  %v2499_v1 = vpack.c.bf16 %v2467_v5, %v2467_v5 }
 0x251   : > { %2531 = vst.msk [vmem:[%s3176_s5 + $0x78] sm:$0xf] %vm2500_vm10, %v2498_v51 }
 0x252   : > { %2532 = vst.msk [vmem:[%s3176_s5 + $0x7c] sm:$0xf] %vm2500_vm10, %v2499_v1 }
 0x253 PF: > { %s14_s19 = sadd.s32 1, %s3106_s19   ;;  %s3978_s15 = smov %s3098_s17 }
 0x254   : > { %p11_p12 = scmp.ge.s32.totalorder %s14_s19, 6   ;;  %s3979_s16 = smov %s3102_s18 }
 0x255   : > { %s3980_s17 = smov %s3983_s20  ;;  %s3981_s18 = smov %s3987_s21 }
 0x256   :  { %13 = sbr.rel (!%p11_p12) target bundleno = 3 (0x3), region = 82 }

// kernel: netd_dcgan_forward.4
= control target key start
LH: loop header
LB: loop body
LE: loop exit
PB: predicated region body
PF: predicated region fallthrough
CT: control target
= control target key end

     0   :  { %s8865_s12 = smov 0   ;;  %s11728_s0 = inlined_call_operand.vmem [shape: bf16[2,33,33,32], index: 0, kind: input, shape index: {}]   ;;  %s11729_s1 = inlined_call_operand.vmem [shape: bf16[4,32,16], index: 1, kind: input, shape index: {}]   ;;  %s11730_s2 = inlined_call_operand.vmem [shape: f32[1,16], index: 2, kind: input, shape index: {}]   ;;  %s11731_s3 = inlined_call_operand.vmem [shape: bf16[2048,16], index: 3, kind: output, shape index: {}]  }
   0x1 LB: > { %s8871_s13 = sadd.s32 4294967295, %s8843_s12   ;;  %p7578_p0 = scmp.ge.s32.totalorder %s8843_s12, 1  ;;  %s8843_s12 = sphi %s8865_s12, %s13_s12  }
   0x2   : > { %p137_p1 = scmp.lt.s32.totalorder %s8843_s12, 3 }
   0x4   : > { %p138_p2 = pnand %p7578_p0, %p137_p1 }
   0x5   : > { %p161_p3 = scmp.lt.s32.totalorder (!%p138_p2), %s8871_s13, 1  ;;  %s7580_s8 = sshll.u32 (!%p138_p2), %s8871_s13, 7 }
   0x6   : > { %141 = sbr.rel (%p138_p2) target bundleno = 1193 (0x4a9), region = 32  ;;  %p9101_p4 = scmp.lt.s32.totalorder (!%p138_p2), %s7580_s8, 255 }
   0xb   : > { %v8817_v0 = vld [vmem:[%s11729_s1 + $0x28] sm:$0xff]  ;;  %v8751_v2 = vld [vmem:[%s11729_s1 + $0x18] sm:$0xff]  ;;  %v8816_v4 = vld [vmem:[%s11729_s1 + $0x20] sm:$0xff]  ;;  %s162_s24 = scalar_select %p161_p3, %s8871_s13, 1  ;;  %vm1957_vm0 = vcmask 261120   ;;  %vm7389_vm4 = vcmask 125952  }
   0xc   : > { %v8749_v1 = vld [vmem:[%s11729_s1 + $0x8] sm:$0xff]  ;;  %v8819_v3 = vld [vmem:[%s11729_s1 + $0x38] sm:$0xff]  ;;  %3996 = vmatpush.bf16.msra.mxu2 %v8817_v0  ;;  %v8748_v5 = vld [vmem:[%s11729_s1] sm:$0xff]  ;;  %2156 = vmatpush.bf16.msra.mxu0 %v8751_v2  ;;  %vm337_vm1 = vsmask.f32 3328  ;;  %s11736_s8 = smov (!%p9101_p4, %s7580_s8), 255 }
   0xd   : > { %3009 = vmatpush.bf16.msra.mxu1 %v8749_v1  ;;  %6422 = vmatpush.bf16.msra.mxu3 %v8819_v3  ;;  %v8750_v6 = vld [vmem:[%s11729_s1 + $0x10] sm:$0xff]  ;;  %s8820_s4 = smul.u32 660, %s162_s24  ;;  %vm338_vm2 = vsmask.f32 7440  ;;  %s7581_s13 = sshll.u32 %s11736_s8, 2 }
   0xe   : > { %v8818_v7 = vld [vmem:[%s11729_s1 + $0x30] sm:$0xff]  ;;  %vm8919_vm3 = vmor %vm337_vm1, %vm338_vm2  ;;  %s9151_s16 = scalar_lea.vmem %s11731_s3, %s7581_s13 }
   0xf   : > { %s8904_s7 = scalar_lea.vmem %s11728_s0, %s8820_s4 }
  0x10   : > { %3997 = vmatpush.bf16.msra.mxu2 %v8816_v4  ;;  %v8752_v8 = vld [vmem:[%s8904_s7 + $0x14] sm:$0xff]  ;;  %v8684_v9 = vld [vmem:[%s8904_s7] sm:$0xff]  ;;  %2157 = vmatpush.bf16.msra.mxu0 %v8750_v6  ;;  %v175_v12 = vld [vmem:[%s8904_s7 + $0x8] sm:$0xf] }
  0x11   : > { %3010 = vmatpush.bf16.msra.mxu1 %v8748_v5  ;;  %6423 = vmatpush.bf16.msra.mxu3 %v8818_v7  ;;  %v173_v10 = vld [vmem:[%s8904_s7] sm:$0xf]  ;;  %v174_v11 = vld [vmem:[%s8904_s7 + $0x4] sm:$0xf]  ;;  %v360_v17 = vshll.u32 %v175_v12, 16  ;;  %v364_v18 = vshrl.u32 %v175_v12, 16 }
  0x12   : > { %v341_v13 = vshrl.u32 %v173_v10, 16  ;;  %v344_v14 = vshll.u32 %v173_v10, 16  ;;  %v350_v15 = vshll.u32 %v174_v11, 16  ;;  %v354_v16 = vshrl.u32 %v174_v11, 16  ;;  %v8446_v19 = vld [vmem:[%s8904_s7 + $0x14] sm:$0xf] }
  0x13   : > { %8382 = vmatmul.msk.bf16.vlgmr.msra.gmra.mxu2 %vm1957_vm0, %v8752_v8  ;;  %v8447_v22 = vld [vmem:[%s8904_s7 + $0x18] sm:$0xf]  ;;  %v8448_v23 = vld [vmem:[%s8904_s7 + $0x1c] sm:$0xf]  ;;  %v362_v26 = vrot.slane %v360_v17, 5  ;;  %v4608_v27 = vshrl.u32 %v8446_v19, 16 }
  0x14   : > { %7922 = vmatmul.msk.bf16.vlgmr.msra.gmra.mxu1 %vm1957_vm0, %v8684_v9  ;;  %v343_v20 = vrot.slane %v341_v13, 4  ;;  %v346_v21 = vrot.slane %v344_v14, 5  ;;  %v352_v24 = vrot.slane %v350_v15, 5  ;;  %v356_v25 = vrot.slane %v354_v16, 4  ;;  %v176_v32 = vld [vmem:[%s8904_s7 + $0xc] sm:$0xf] }
  0x15   : > { %v4611_v29 = vshll.u32 %v8446_v19, 16  ;;  %v4617_v30 = vshll.u32 %v8447_v22, 16  ;;  %v4621_v31 = vshrl.u32 %v8447_v22, 16  ;;  %v4610_v35 = vrot.slane %v4608_v27, 4  ;;  %v305_v49 = vld [vmem:[%s8904_s7 + $0x10] sm:$0x1] }
  0x16   : > { %v347_v28 = vor.u32 %v346_v21, %v343_v20  ;;  %v357_v34 = vor.u32 %v356_v25, %v352_v24  ;;  %v4627_v36 = vshll.u32 %v8448_v23, 16  ;;  %v4631_v37 = vshrl.u32 %v8448_v23, 16  ;;  %v8449_v51 = vld [vmem:[%s8904_s7 + $0x20] sm:$0xf]  ;;  %v8450_v4 = vld [vmem:[%s8904_s7 + $0x24] sm:$0x1] }
  0x17   : > { %v4613_v39 = vrot.slane %v4611_v29, 5  ;;  %v4619_v40 = vrot.slane %v4617_v30, 5  ;;  %v4623_v41 = vrot.slane %v4621_v31, 4  ;;  %v366_v44 = vrot.slane %v364_v18, 4  ;;  %v8753_v7 = vld [vmem:[%s8904_s7 + $0x1c] sm:$0xff]  ;;  %v8685_v10 = vld [vmem:[%s8904_s7 + $0x8] sm:$0xff] }
  0x18   : > { %v348_v38 = vrot.slane %v347_v28, 4  ;;  %v358_v42 = vrot.slane %v357_v34, 4  ;;  %v4629_v43 = vrot.slane %v4627_v36, 5  ;;  %v370_v45 = vshll.u32 %v176_v32, 16  ;;  %v177_v9 = vld [vmem:[%s8904_s7 + $0x14] sm:$0xf] }
  0x19   : > { %v4614_v47 = vor.u32 %v4613_v39, %v4610_v35  ;;  %v4624_v48 = vor.u32 %v4623_v41, %v4619_v40  ;;  %v374_v50 = vshrl.u32 %v176_v32, 16  ;;  %v367_v54 = vor.u32 %v366_v44, %v362_v26  ;;  %v178_v13 = vld [vmem:[%s8904_s7 + $0x18] sm:$0xf]  ;;  %v8451_v28 = vld [vmem:[%s8904_s7 + $0x28] sm:$0xf] }
  0x1a   : > { %v353_v46 = vsel %vm8919_vm3, %v348_v38, %v352_v24  ;;  %v363_v52 = vsel %vm8919_vm3, %v358_v42, %v362_v26  ;;  %v372_v55 = vrot.slane %v370_v45, 5  ;;  %v380_v61 = vshll.u32 %v305_v49, 16  ;;  %v8452_v29 = vld [vmem:[%s8904_s7 + $0x2c] sm:$0xf]  ;;  %v179_v39 = vld [vmem:[%s8904_s7 + $0x1c] sm:$0xf] }
  0x1b   : > { %v1753_v53 = vunpack.c.l.b16 %v353_v46  ;;  %v1754_v56 = vunpack.c.l.b16 %v363_v52  ;;  %v4615_v57 = vrot.slane %v4614_v47, 4  ;;  %v4625_v58 = vrot.slane %v4624_v48, 4 }
  0x1c   : > { %v376_v59 = vrot.slane %v374_v50, 4  ;;  %v368_v60 = vrot.slane %v367_v54, 4  ;;  %v4633_v62 = vrot.slane %v4631_v37, 4  ;;  %v4637_v63 = vshll.u32 %v8449_v51, 16 }
  0x1d   : > { %v1881_v0 = vpack.c.b16 %v1754_v56, %v1753_v53  ;;  %v4620_v1 = vsel %vm8919_vm3, %v4615_v57, %v4619_v40  ;;  %v4630_v2 = vsel %vm8919_vm3, %v4625_v58, %v4629_v43  ;;  %v382_v8 = vrot.slane %v380_v61, 5  ;;  %v8754_v57 = vld [vmem:[%s8904_s7 + $0x28] sm:$0xff] }
  0x1e   : > { %v377_v3 = vor.u32 %v376_v59, %v372_v55  ;;  %v6020_v5 = vunpack.c.l.b16 %v4620_v1  ;;  %v6021_v6 = vunpack.c.l.b16 %v4630_v2  ;;  %v4634_v12 = vor.u32 %v4633_v62, %v4629_v43  ;;  %v180_v1 = vld [vmem:[%s8904_s7 + $0x20] sm:$0xf] }
  0x1f   : > { %7594 = vmatmul.msk.bf16.vlgmr.msra.gmra.mxu0 %vm1957_vm0, %v1881_v0  ;;  %v4639_v15 = vrot.slane %v4637_v63, 5  ;;  %v4641_v16 = vshrl.u32 %v8449_v51, 16  ;;  %v4647_v17 = vshll.u32 %v8450_v4, 16  ;;  %v373_v18 = vsel %vm8919_vm3, %v368_v60, %v372_v55  ;;  %v8453_v55 = vld [vmem:[%s8904_s7 + $0x30] sm:$0xf]  ;;  %v8686_v60 = vld [vmem:[%s8904_s7 + $0x14] sm:$0xff] }
  0x20   : > { %v378_v11 = vrot.slane %v377_v3, 4  ;;  %v6148_v14 = vpack.c.b16 %v6021_v6, %v6020_v5  ;;  %v4635_v19 = vrot.slane %v4634_v12, 4  ;;  %v385_v20 = vshrl.u32 %v177_v9, 16 }
  0x21   : > { %v4643_v22 = vrot.slane %v4641_v16, 4  ;;  %v388_v23 = vshll.u32 %v177_v9, 16  ;;  %v394_v24 = vshll.u32 %v178_v13, 16  ;;  %v398_v25 = vshrl.u32 %v178_v13, 16 }
  0x22   : > { %8618 = vmatmul.msk.bf16.vlgmr.msra.gmra.mxu3 %vm1957_vm0, %v6148_v14  ;;  %v383_v21 = vsel %vm8919_vm3, %v378_v11, %v382_v8  ;;  %v4649_v27 = vrot.slane %v4647_v17, 5  ;;  %v1755_v30 = vunpack.c.l.b16 %v373_v18  ;;  %v4640_v32 = vsel %vm8919_vm3, %v4635_v19, %v4639_v15 }
  0x23   : > { %8383 = vmatmul.msk.bf16.gmra.mxu2 %vm1957_vm0, %v8753_v7  ;;  %v4644_v26 = vor.u32 %v4643_v22, %v4639_v15  ;;  %v1756_v31 = vunpack.c.l.b16 %v383_v21  ;;  %v387_v34 = vrot.slane %v385_v20, 4  ;;  %v390_v36 = vrot.slane %v388_v23, 5  ;;  %v306_v21 = vld [vmem:[%s8904_s7 + $0x24] sm:$0x1] }
  0x24   : > { %7923 = vmatmul.msk.bf16.gmra.mxu1 %vm1957_vm0, %v8685_v10  ;;  %v396_v37 = vrot.slane %v394_v24, 5  ;;  %v400_v38 = vrot.slane %v398_v25, 4  ;;  %v4652_v40 = vshrl.u32 %v8451_v28, 16  ;;  %v4655_v41 = vshll.u32 %v8451_v28, 16  ;;  %v8454_v10 = vld [vmem:[%s8904_s7 + $0x34] sm:$0xf] }
  0x25   : > { %v4645_v35 = vrot.slane %v4644_v26, 4  ;;  %v4661_v42 = vshll.u32 %v8452_v29, 16  ;;  %v4665_v43 = vshrl.u32 %v8452_v29, 16  ;;  %v1882_v45 = vpack.c.b16 %v1756_v31, %v1755_v30  ;;  %v8455_v31 = vld [vmem:[%s8904_s7 + $0x38] sm:$0x1] }
  0x26   : > { %v6022_v46 = vunpack.c.l.b16 %v4640_v32  ;;  %v391_v48 = vor.u32 %v390_v36, %v387_v34  ;;  %v401_v49 = vor.u32 %v400_v38, %v396_v37  ;;  %v404_v50 = vshll.u32 %v179_v39, 16  ;;  %v8687_v38 = vld [vmem:[%s8904_s7 + $0x1c] sm:$0xff] }
  0x27   : > { %v4650_v44 = vsel %vm8919_vm3, %v4645_v35, %v4649_v27  ;;  %v4654_v51 = vrot.slane %v4652_v40, 4  ;;  %v4657_v52 = vrot.slane %v4655_v41, 5  ;;  %v4663_v53 = vrot.slane %v4661_v42, 5  ;;  %v8755_v35 = vld [vmem:[%s8904_s7 + $0x30] sm:$0xff]  ;;  %v182_v41 = vld [vmem:[%s8904_s7 + $0x2c] sm:$0xf] }
  0x28   : > { %v6023_v47 = vunpack.c.l.b16 %v4650_v44  ;;  %v4667_v54 = vrot.slane %v4665_v43, 4  ;;  %v392_v58 = vrot.slane %v391_v48, 4  ;;  %v406_v59 = vrot.slane %v404_v50, 5 }
  0x29   : > { %v402_v61 = vrot.slane %v401_v49, 4  ;;  %v4658_v62 = vor.u32 %v4657_v52, %v4654_v51  ;;  %v4671_v0 = vshll.u32 %v8453_v55, 16  ;;  %v408_v3 = vshrl.u32 %v179_v39, 16  ;;  %v8456_v52 = vld [vmem:[%s8904_s7 + $0x3c] sm:$0xf] }
  0x2a   : > { %v6149_v56 = vpack.c.b16 %v6023_v47, %v6022_v46  ;;  %v4668_v63 = vor.u32 %v4667_v54, %v4663_v53  ;;  %v397_v2 = vsel %vm8919_vm3, %v392_v58, %v396_v37  ;;  %v414_v8 = vshll.u32 %v180_v1, 16  ;;  %v181_v37 = vld [vmem:[%s8904_s7 + $0x28] sm:$0xf]  ;;  %v8457_v54 = vld [vmem:[%s8904_s7 + $0x40] sm:$0xf] }
  0x2b   : > { %v407_v4 = vsel %vm8919_vm3, %v402_v61, %v406_v59  ;;  %v4659_v5 = vrot.slane %v4658_v62, 4  ;;  %v4673_v7 = vrot.slane %v4671_v0, 5  ;;  %v418_v9 = vshrl.u32 %v180_v1, 16 }
  0x2c   : > { %v4669_v6 = vrot.slane %v4668_v63, 4  ;;  %v4675_v11 = vshrl.u32 %v8453_v55, 16  ;;  %v1757_v12 = vunpack.c.l.b16 %v397_v2  ;;  %v1758_v13 = vunpack.c.l.b16 %v407_v4 }
  0x2d   : > { %v410_v14 = vrot.slane %v408_v3, 4  ;;  %v4664_v15 = vsel %vm8919_vm3, %v4659_v5, %v4663_v53  ;;  %v4681_v17 = vshll.u32 %v8454_v10, 16  ;;  %v4685_v18 = vshrl.u32 %v8454_v10, 16 }
  0x2e   : > { %v4674_v16 = vsel %vm8919_vm3, %v4669_v6, %v4673_v7  ;;  %v416_v19 = vrot.slane %v414_v8, 5  ;;  %v420_v20 = vrot.slane %v418_v9, 4  ;;  %v4677_v22 = vrot.slane %v4675_v11, 4 }
  0x2f   : > { %7595 = vmatmul.msk.bf16.gmra.mxu0 %vm1957_vm0, %v1882_v45  ;;  %v6024_v23 = vunpack.c.l.b16 %v4664_v15  ;;  %v6025_v24 = vunpack.c.l.b16 %v4674_v16  ;;  %v411_v25 = vor.u32 %v410_v14, %v406_v59  ;;  %v1883_v26 = vpack.c.b16 %v1758_v13, %v1757_v12  ;;  %v183_v59 = vld [vmem:[%s8904_s7 + $0x30] sm:$0xf]  ;;  %v8458_v14 = vld [vmem:[%s8904_s7 + $0x44] sm:$0xf] }
  0x30   : > { %v4683_v27 = vrot.slane %v4681_v17, 5  ;;  %v4687_v28 = vrot.slane %v4685_v18, 4  ;;  %v421_v29 = vor.u32 %v420_v20, %v416_v19  ;;  %v424_v30 = vshll.u32 %v306_v21, 16  ;;  %v8756_v17 = vld [vmem:[%s8904_s7 + $0x3c] sm:$0xff]  ;;  %v8688_v21 = vld [vmem:[%s8904_s7 + $0x28] sm:$0xff] }
  0x31   : > { %v4678_v32 = vor.u32 %v4677_v22, %v4673_v7  ;;  %v6150_v34 = vpack.c.b16 %v6025_v24, %v6024_v23  ;;  %v412_v36 = vrot.slane %v411_v25, 4  ;;  %v4691_v40 = vshll.u32 %v8455_v31, 16  ;;  %v184_v24 = vld [vmem:[%s8904_s7 + $0x34] sm:$0xf] }
  0x32   : > { %8619 = vmatmul.msk.bf16.gmra.mxu3 %vm1957_vm0, %v6149_v56  ;;  %v4688_v39 = vor.u32 %v4687_v28, %v4683_v27  ;;  %v422_v42 = vrot.slane %v421_v29, 4  ;;  %v426_v43 = vrot.slane %v424_v30, 5  ;;  %v429_v45 = vshrl.u32 %v181_v37, 16 }
  0x33   : > { %8384 = vmatmul.msk.bf16.gmra.mxu2 %vm1957_vm0, %v8754_v57  ;;  %v4679_v44 = vrot.slane %v4678_v32, 4  ;;  %v432_v46 = vshll.u32 %v181_v37, 16  ;;  %v417_v47 = vsel %vm8919_vm3, %v412_v36, %v416_v19  ;;  %v438_v48 = vshll.u32 %v182_v41, 16 }
  0x34   : > { %7924 = vmatmul.msk.bf16.gmra.mxu1 %vm1957_vm0, %v8686_v60  ;;  %v442_v49 = vshrl.u32 %v182_v41, 16  ;;  %v4689_v50 = vrot.slane %v4688_v39, 4  ;;  %v4693_v51 = vrot.slane %v4691_v40, 5  ;;  %v427_v53 = vsel %vm8919_vm3, %v422_v42, %v426_v43 }
  0x35   : > { %v1759_v55 = vunpack.c.l.b16 %v417_v47  ;;  %v4684_v56 = vsel %vm8919_vm3, %v4679_v44, %v4683_v27  ;;  %v431_v57 = vrot.slane %v429_v45, 4  ;;  %v434_v58 = vrot.slane %v432_v46, 5  ;;  %v307_v45 = vld [vmem:[%s8904_s7 + $0x38] sm:$0x1] }
  0x36   : > { %v440_v60 = vrot.slane %v438_v48, 5  ;;  %v444_v61 = vrot.slane %v442_v49, 4  ;;  %v4696_v62 = vshrl.u32 %v8456_v52, 16  ;;  %v4699_v63 = vshll.u32 %v8456_v52, 16 }
  0x37   : > { %v1760_v0 = vunpack.c.l.b16 %v427_v53  ;;  %v4694_v1 = vsel %vm8919_vm3, %v4689_v50, %v4693_v51  ;;  %v4705_v2 = vshll.u32 %v8457_v54, 16  ;;  %v4709_v3 = vshrl.u32 %v8457_v54, 16 }
  0x38   : > { %v6026_v4 = vunpack.c.l.b16 %v4684_v56  ;;  %v435_v5 = vor.u32 %v434_v58, %v431_v57  ;;  %v448_v6 = vshll.u32 %v183_v59, 16  ;;  %v6027_v7 = vunpack.c.l.b16 %v4694_v1  ;;  %v8757_v57 = vld [vmem:[%s8904_s7 + $0x44] sm:$0xff]  ;;  %v185_v1 = vld [vmem:[%s8904_s7 + $0x3c] sm:$0xf] }
  0x39   : > { %v445_v8 = vor.u32 %v444_v61, %v440_v60  ;;  %v4698_v9 = vrot.slane %v4696_v62, 4  ;;  %v4701_v10 = vrot.slane %v4699_v63, 5  ;;  %v1884_v11 = vpack.c.b16 %v1760_v0, %v1759_v55  ;;  %v8460_v55 = vld [vmem:[%s8904_s7 + $0x4c] sm:$0x1]  ;;  %v8689_v61 = vld [vmem:[%s8904_s7 + $0x30] sm:$0xff] }
  0x3a   : > { %v4707_v12 = vrot.slane %v4705_v2, 5  ;;  %v4711_v13 = vrot.slane %v4709_v3, 4  ;;  %v450_v15 = vrot.slane %v448_v6, 5  ;;  %v6151_v16 = vpack.c.b16 %v6027_v7, %v6026_v4  ;;  %v186_v2 = vld [vmem:[%s8904_s7 + $0x40] sm:$0xf] }
  0x3b   : > { %v436_v18 = vrot.slane %v435_v5, 4  ;;  %v446_v19 = vrot.slane %v445_v8, 4  ;;  %v4702_v20 = vor.u32 %v4701_v10, %v4698_v9  ;;  %v4715_v23 = vshll.u32 %v8458_v14, 16 }
  0x3c   : > { %v4712_v22 = vor.u32 %v4711_v13, %v4707_v12  ;;  %v452_v27 = vshrl.u32 %v183_v59, 16  ;;  %v458_v31 = vshll.u32 %v184_v24, 16  ;;  %v462_v32 = vshrl.u32 %v184_v24, 16  ;;  %v8462_v13 = vld [vmem:[%s8904_s7 + $0x54] sm:$0xf] }
  0x3d   : > { %v441_v25 = vsel %vm8919_vm3, %v436_v18, %v440_v60  ;;  %v4703_v28 = vrot.slane %v4702_v20, 4  ;;  %v4717_v30 = vrot.slane %v4715_v23, 5  ;;  %v468_v54 = vshll.u32 %v307_v45, 16 }
  0x3e   : > { %v4713_v29 = vrot.slane %v4712_v22, 4  ;;  %v454_v42 = vrot.slane %v452_v27, 4  ;;  %v460_v43 = vrot.slane %v458_v31, 5  ;;  %v464_v44 = vrot.slane %v462_v32, 4 }
  0x3f   : > { %7596 = vmatmul.msk.bf16.gmra.mxu0 %vm1957_vm0, %v1883_v26  ;;  %v451_v26 = vsel %vm8919_vm3, %v446_v19, %v450_v15  ;;  %v4708_v37 = vsel %vm8919_vm3, %v4703_v28, %v4707_v12  ;;  %v4735_v60 = vshll.u32 %v8460_v55, 16  ;;  %v470_v0 = vrot.slane %v468_v54, 5  ;;  %v8461_v12 = vld [vmem:[%s8904_s7 + $0x50] sm:$0xf] }
  0x40   : > { %v1762_v36 = vunpack.c.l.b16 %v451_v26  ;;  %v4718_v41 = vsel %vm8919_vm3, %v4713_v29, %v4717_v30  ;;  %v6028_v46 = vunpack.c.l.b16 %v4708_v37  ;;  %v455_v52 = vor.u32 %v454_v42, %v450_v15  ;;  %v187_v26 = vld [vmem:[%s8904_s7 + $0x44] sm:$0xf] }
  0x41   : > { %v6029_v47 = vunpack.c.l.b16 %v4718_v41  ;;  %v465_v53 = vor.u32 %v464_v44, %v460_v43  ;;  %v4737_v5 = vrot.slane %v4735_v60, 5  ;;  %v473_v8 = vshrl.u32 %v185_v1, 16  ;;  %v8690_v41 = vld [vmem:[%s8904_s7 + $0x3c] sm:$0xff] }
  0x42   : > { %8620 = vmatmul.msk.bf16.gmra.mxu3 %vm1957_vm0, %v6150_v34  ;;  %v8459_v34 = vld [vmem:[%s8904_s7 + $0x48] sm:$0xf]  ;;  %v456_v62 = vrot.slane %v455_v52, 4  ;;  %v476_v9 = vshll.u32 %v185_v1, 16  ;;  %v482_v10 = vshll.u32 %v186_v2, 16  ;;  %v4740_v18 = vshrl.u32 %v8461_v12, 16 }
  0x43   : > { %8385 = vmatmul.msk.bf16.gmra.mxu2 %vm1957_vm0, %v8755_v35  ;;  %v1761_v35 = vunpack.c.l.b16 %v441_v25  ;;  %v4725_v39 = vshll.u32 %v8459_v34, 16  ;;  %v4729_v40 = vshrl.u32 %v8459_v34, 16  ;;  %v6152_v56 = vpack.c.b16 %v6029_v47, %v6028_v46 }
  0x44   : > { %7925 = vmatmul.msk.bf16.gmra.mxu1 %vm1957_vm0, %v8687_v38  ;;  %v4719_v38 = vshrl.u32 %v8458_v14, 16  ;;  %v466_v63 = vrot.slane %v465_v53, 4  ;;  %v461_v6 = vsel %vm8919_vm3, %v456_v62, %v460_v43  ;;  %v4743_v19 = vshll.u32 %v8461_v12, 16 }
  0x45   : > { %v4727_v49 = vrot.slane %v4725_v39, 5  ;;  %v4731_v50 = vrot.slane %v4729_v40, 4  ;;  %v1885_v51 = vpack.c.b16 %v1762_v36, %v1761_v35  ;;  %v1763_v14 = vunpack.c.l.b16 %v461_v6  ;;  %v8758_v40 = vld [vmem:[%s8904_s7 + $0x50] sm:$0xff] }
  0x46   : > { %v4721_v48 = vrot.slane %v4719_v38, 4  ;;  %v471_v7 = vsel %vm8919_vm3, %v466_v63, %v470_v0  ;;  %v4749_v20 = vshll.u32 %v8462_v13, 16  ;;  %v475_v22 = vrot.slane %v473_v8, 4  ;;  %v8463_v38 = vld [vmem:[%s8904_s7 + $0x58] sm:$0xf] }
  0x47   : > { %v4732_v59 = vor.u32 %v4731_v50, %v4727_v49  ;;  %v1764_v15 = vunpack.c.l.b16 %v471_v7  ;;  %v478_v23 = vrot.slane %v476_v9, 5  ;;  %v484_v24 = vrot.slane %v482_v10, 5  ;;  %v8465_v10 = vld [vmem:[%s8904_s7 + $0x60] sm:$0x1] }
  0x48   : > { %v4722_v58 = vor.u32 %v4721_v48, %v4717_v30  ;;  %v4742_v30 = vrot.slane %v4740_v18, 4  ;;  %v4745_v31 = vrot.slane %v4743_v19, 5  ;;  %v4751_v32 = vrot.slane %v4749_v20, 5  ;;  %v188_v48 = vld [vmem:[%s8904_s7 + $0x48] sm:$0xf]  ;;  %v8759_v19 = vld [vmem:[%s8904_s7 + $0x58] sm:$0xff] }
  0x49   : > { %v4733_v4 = vrot.slane %v4732_v59, 4  ;;  %v1886_v27 = vpack.c.b16 %v1764_v15, %v1763_v14  ;;  %v479_v35 = vor.u32 %v478_v23, %v475_v22  ;;  %v492_v37 = vshll.u32 %v187_v26, 16  ;;  %v8691_v20 = vld [vmem:[%s8904_s7 + $0x44] sm:$0xff]  ;;  %v190_v22 = vld [vmem:[%s8904_s7 + $0x54] sm:$0xf] }
  0x4a   : > { %v4723_v3 = vrot.slane %v4722_v58, 4  ;;  %v4746_v42 = vor.u32 %v4745_v31, %v4742_v30  ;;  %v4759_v44 = vshll.u32 %v8463_v38, 16  ;;  %v496_v50 = vshrl.u32 %v187_v26, 16 }
  0x4b   : > { %v480_v45 = vrot.slane %v479_v35, 4  ;;  %v494_v47 = vrot.slane %v492_v37, 5  ;;  %v4763_v58 = vshrl.u32 %v8463_v38, 16  ;;  %v526_v31 = vshll.u32 %v190_v22, 16  ;;  %v8467_v37 = vld [vmem:[%s8904_s7 + $0x68] sm:$0xf] }
  0x4c   : > { %v4761_v53 = vrot.slane %v4759_v44, 5  ;;  %v498_v1 = vrot.slane %v496_v50, 4  ;;  %v4797_v50 = vshrl.u32 %v8467_v37, 16 }
  0x4d   : > { %v485_v54 = vsel %vm8919_vm3, %v480_v45, %v484_v24  ;;  %v528_v44 = vrot.slane %v526_v31, 5 }
  0x4e   : > { %v499_v12 = vor.u32 %v498_v1, %v494_v47 }
  0x4f   : > { %7597 = vmatmul.msk.bf16.gmra.mxu0 %vm1957_vm0, %v1884_v11  ;;  %v486_v11 = vshrl.u32 %v186_v2, 16 }
  0x50   : > { %v500_v23 = vrot.slane %v499_v12, 4 }
  0x51   : > { %v488_v25 = vrot.slane %v486_v11, 4 }
  0x52   : > { %8621 = vmatmul.msk.bf16.gmra.mxu3 %vm1957_vm0, %v6151_v16  ;;  %v4728_v16 = vsel %vm8919_vm3, %v4723_v3, %v4727_v49  ;;  %v8464_v49 = vld [vmem:[%s8904_s7 + $0x5c] sm:$0xf] }
  0x53   : > { %8386 = vmatmul.msk.bf16.gmra.mxu2 %vm1957_vm0, %v8756_v17  ;;  %v4738_v17 = vsel %vm8919_vm3, %v4733_v4, %v4737_v5  ;;  %v6030_v28 = vunpack.c.l.b16 %v4728_v16  ;;  %v489_v36 = vor.u32 %v488_v25, %v484_v24  ;;  %v4769_v59 = vshll.u32 %v8464_v49, 16  ;;  %v308_v4 = vld [vmem:[%s8904_s7 + $0x4c] sm:$0x1] }
  0x54   : > { %7926 = vmatmul.msk.bf16.gmra.mxu1 %vm1957_vm0, %v8688_v21  ;;  %v4753_v21 = vshrl.u32 %v8462_v13, 16  ;;  %v6031_v29 = vunpack.c.l.b16 %v4738_v17  ;;  %v4773_v60 = vshrl.u32 %v8464_v49, 16  ;;  %v4765_v5 = vrot.slane %v4763_v58, 4 }
  0x55   : > { %v490_v46 = vrot.slane %v489_v36, 4  ;;  %v4771_v6 = vrot.slane %v4769_v59, 5  ;;  %v512_v14 = vshll.u32 %v308_v4, 16  ;;  %v4779_v17 = vshll.u32 %v8465_v10, 16  ;;  %v8468_v59 = vld [vmem:[%s8904_s7 + $0x6c] sm:$0xf] }
  0x56   : > { %v4755_v34 = vrot.slane %v4753_v21, 4  ;;  %v6153_v39 = vpack.c.b16 %v6031_v29, %v6030_v28  ;;  %v4775_v7 = vrot.slane %v4773_v60, 4  ;;  %v4766_v15 = vor.u32 %v4765_v5, %v4761_v53  ;;  %v189_v21 = vld [vmem:[%s8904_s7 + $0x50] sm:$0xf] }
  0x57   : > { %v495_v55 = vsel %vm8919_vm3, %v490_v46, %v494_v47  ;;  %v514_v25 = vrot.slane %v512_v14, 5  ;;  %v4781_v28 = vrot.slane %v4779_v17, 5  ;;  %v517_v29 = vshrl.u32 %v189_v21, 16 }
  0x58   : > { %v4756_v43 = vor.u32 %v4755_v34, %v4751_v32  ;;  %v1766_v62 = vunpack.c.l.b16 %v495_v55  ;;  %v4776_v16 = vor.u32 %v4775_v7, %v4771_v6  ;;  %v4767_v26 = vrot.slane %v4766_v15, 4  ;;  %v8466_v34 = vld [vmem:[%s8904_s7 + $0x64] sm:$0xf] }
  0x59   : > { %v520_v30 = vshll.u32 %v189_v21, 16  ;;  %v4793_v49 = vshll.u32 %v8467_v37, 16  ;;  %v4803_v4 = vshll.u32 %v8468_v59, 16 }
  0x5a   : > { %v4757_v52 = vrot.slane %v4756_v43, 4  ;;  %v4772_v38 = vsel %vm8919_vm3, %v4767_v26, %v4771_v6  ;;  %v8692_v6 = vld [vmem:[%s8904_s7 + $0x50] sm:$0xff] }
  0x5b   : > { %v522_v43 = vrot.slane %v520_v30, 5  ;;  %v4795_v60 = vrot.slane %v4793_v49, 5  ;;  %v309_v30 = vld [vmem:[%s8904_s7 + $0x60] sm:$0x1]  ;;  %v8761_v49 = vld [vmem:[%s8904_s7 + $0x6c] sm:$0xff] }
  0x5c   : > { %v4762_v0 = vsel %vm8919_vm3, %v4757_v52, %v4761_v53 }
  0x5d   : > { %v6033_v9 = vunpack.c.l.b16 %v4762_v0  ;;  %v8760_v0 = vld [vmem:[%s8904_s7 + $0x64] sm:$0xff] }
  0x5f   : > { %7598 = vmatmul.msk.bf16.gmra.mxu0 %vm1957_vm0, %v1885_v51  ;;  %v4747_v51 = vrot.slane %v4746_v42, 4  ;;  %v519_v42 = vrot.slane %v517_v29, 4 }
  0x61   : > { %v4752_v63 = vsel %vm8919_vm3, %v4747_v51, %v4751_v32  ;;  %v530_v32 = vshrl.u32 %v190_v22, 16  ;;  %v6034_v51 = vunpack.c.l.b16 %v4772_v38  ;;  %v523_v55 = vor.u32 %v522_v43, %v519_v42 }
  0x62   : > { %8622 = vmatmul.msk.bf16.gmra.mxu3 %vm1957_vm0, %v6152_v56  ;;  %v502_v56 = vshll.u32 %v188_v48, 16  ;;  %v6032_v8 = vunpack.c.l.b16 %v4752_v63 }
  0x63   : > { %8387 = vmatmul.msk.bf16.gmra.mxu2 %vm1957_vm0, %v8757_v57  ;;  %v506_v57 = vshrl.u32 %v188_v48, 16  ;;  %v532_v45 = vrot.slane %v530_v32, 4  ;;  %v191_v48 = vld [vmem:[%s8904_s7 + $0x58] sm:$0xf]  ;;  %v524_v1 = vrot.slane %v523_v55, 4 }
  0x64   : > { %7927 = vmatmul.msk.bf16.gmra.mxu1 %vm1957_vm0, %v8689_v61  ;;  %v1765_v61 = vunpack.c.l.b16 %v485_v54  ;;  %v504_v2 = vrot.slane %v502_v56, 5  ;;  %v6154_v18 = vpack.c.b16 %v6033_v9, %v6032_v8  ;;  %v192_v8 = vld [vmem:[%s8904_s7 + $0x5c] sm:$0xf]  ;;  %v8469_v9 = vld [vmem:[%s8904_s7 + $0x70] sm:$0xf]  ;;  %v540_v14 = vshrl.u32 %v191_v48, 16 }
  0x65   : > { %v508_v3 = vrot.slane %v506_v57, 4  ;;  %v533_v56 = vor.u32 %v532_v45, %v528_v44  ;;  %v536_v57 = vshll.u32 %v191_v48, 16  ;;  %v529_v10 = vsel %vm8919_vm3, %v524_v1, %v528_v44 }
  0x66   : > { %v1887_v11 = vpack.c.b16 %v1766_v62, %v1765_v61  ;;  %v505_v35 = vsel %vm8919_vm3, %v500_v23, %v504_v2  ;;  %v4799_v61 = vrot.slane %v4797_v50, 4  ;;  %v550_v17 = vshrl.u32 %v192_v8, 16  ;;  %v193_v50 = vld [vmem:[%s8904_s7 + $0x64] sm:$0xf] }
  0x67   : > { %v509_v13 = vor.u32 %v508_v3, %v504_v2  ;;  %v1767_v46 = vunpack.c.l.b16 %v505_v35  ;;  %v534_v2 = vrot.slane %v533_v56, 4  ;;  %v538_v3 = vrot.slane %v536_v57, 5  ;;  %v8470_v35 = vld [vmem:[%s8904_s7 + $0x74] sm:$0x1] }
  0x68   : > { %v4800_v7 = vor.u32 %v4799_v61, %v4795_v60  ;;  %v1769_v22 = vunpack.c.l.b16 %v529_v10  ;;  %v552_v29 = vrot.slane %v550_v17, 4  ;;  %v4823_v45 = vshll.u32 %v8470_v35, 16 }
  0x69   : > { %v510_v24 = vrot.slane %v509_v13, 4  ;;  %v4805_v13 = vrot.slane %v4803_v4, 5  ;;  %v564_v61 = vshll.u32 %v193_v50, 16  ;;  %v8472_v4 = vld [vmem:[%s8904_s7 + $0x7c] sm:$0xf] }
  0x6a   : > { %v4801_v15 = vrot.slane %v4800_v7, 4 }
  0x6b   : > { %v515_v36 = vsel %vm8919_vm3, %v510_v24, %v514_v25 }
  0x6c   : > { %v1768_v47 = vunpack.c.l.b16 %v515_v36  ;;  %v4806_v26 = vsel %vm8919_vm3, %v4801_v15, %v4805_v13 }
  0x6d   : > { %v6037_v37 = vunpack.c.l.b16 %v4806_v26 }
  0x6e   : > { %v1888_v58 = vpack.c.b16 %v1768_v47, %v1767_v46 }
  0x6f   : > { %7599 = vmatmul.msk.bf16.gmra.mxu0 %vm1957_vm0, %v1886_v27  ;;  %v4777_v27 = vrot.slane %v4776_v16, 4  ;;  %v546_v16 = vshll.u32 %v192_v8, 16 }
  0x72   : > { %8623 = vmatmul.msk.bf16.gmra.mxu3 %vm1957_vm0, %v6153_v39  ;;  %v4782_v39 = vsel %vm8919_vm3, %v4777_v27, %v4781_v28  ;;  %v542_v27 = vrot.slane %v540_v14, 4  ;;  %v9086_v28 = vrot.slane %v546_v16, 5  ;;  %v566_v14 = vrot.slane %v564_v61, 5 }
  0x73   : > { %8388 = vmatmul.msk.bf16.gmra.mxu2 %vm1957_vm0, %v8758_v40  ;;  %v4784_v40 = vshrl.u32 %v8466_v34, 16  ;;  %v6035_v52 = vunpack.c.l.b16 %v4782_v39 }
  0x74   : > { %7928 = vmatmul.msk.bf16.gmra.mxu1 %vm1957_vm0, %v8690_v41  ;;  %v4787_v41 = vshll.u32 %v8466_v34, 16  ;;  %v543_v39 = vor.u32 %v542_v27, %v538_v3 }
  0x75   : > { %v4786_v53 = vrot.slane %v4784_v40, 4  ;;  %v6155_v62 = vpack.c.b16 %v6035_v52, %v6034_v51  ;;  %v553_v40 = vor.u32 %v552_v29, %v9086_v28  ;;  %v194_v51 = vld [vmem:[%s8904_s7 + $0x68] sm:$0xf]  ;;  %v8693_v52 = vld [vmem:[%s8904_s7 + $0x58] sm:$0xff] }
  0x76   : > { %v4789_v54 = vrot.slane %v4787_v41, 5  ;;  %v556_v41 = vshll.u32 %v309_v30, 16 }
  0x78   : > { %v4790_v63 = vor.u32 %v4789_v54, %v4786_v53  ;;  %v544_v53 = vrot.slane %v543_v39, 4  ;;  %v554_v54 = vrot.slane %v553_v40, 4  ;;  %v558_v55 = vrot.slane %v556_v41, 5 }
  0x7a   : > { %v4791_v12 = vrot.slane %v4790_v63, 4  ;;  %v574_v63 = vshrl.u32 %v194_v51, 16 }
  0x7c   : > { %v4796_v24 = vsel %vm8919_vm3, %v4791_v12, %v4795_v60  ;;  %v561_v60 = vshrl.u32 %v193_v50, 16  ;;  %v576_v16 = vrot.slane %v574_v63, 4 }
  0x7d   : > { %v6036_v36 = vunpack.c.l.b16 %v4796_v24 }
  0x7f   : > { %7600 = vmatmul.msk.bf16.gmra.mxu0 %vm1957_vm0, %v1887_v11  ;;  %v539_v11 = vsel %vm8919_vm3, %v534_v2, %v538_v3  ;;  %v6156_v48 = vpack.c.b16 %v6037_v37, %v6036_v36  ;;  %v549_v2 = vsel %vm8919_vm3, %v544_v53, %v9086_v28  ;;  %v559_v3 = vsel %vm8919_vm3, %v554_v54, %v558_v55  ;;  %v8473_v36 = vld [vmem:[%s8904_s7 + $0x80] sm:$0xf]  ;;  %v8762_v53 = vld [vmem:[%s8904_s7 + $0x78] sm:$0xff]  ;;  %v8694_v55 = vld [vmem:[%s8904_s7 + $0x64] sm:$0xff] }
  0x80   : > { %v1770_v23 = vunpack.c.l.b16 %v539_v11 }
  0x82   : > { %8624 = vmatmul.msk.bf16.gmra.mxu3 %vm1957_vm0, %v6154_v18  ;;  %v4807_v18 = vshrl.u32 %v8468_v59, 16  ;;  %v1889_v38 = vpack.c.b16 %v1770_v23, %v1769_v22  ;;  %v4825_v59 = vrot.slane %v4823_v45, 5  ;;  %v1772_v22 = vunpack.c.l.b16 %v559_v3 }
  0x83   : > { %8389 = vmatmul.msk.bf16.gmra.mxu2 %vm1957_vm0, %v8759_v19  ;;  %v4813_v19 = vshll.u32 %v8469_v9, 16 }
  0x84   : > { %7929 = vmatmul.msk.bf16.gmra.mxu1 %vm1957_vm0, %v8691_v20  ;;  %v4817_v20 = vshrl.u32 %v8469_v9, 16  ;;  %v4809_v31 = vrot.slane %v4807_v18, 4  ;;  %v9135_v18 = vld [vmem:[%s8904_s7 + $0x6c] sm:$0xf] }
  0x85   : > { %v4815_v32 = vrot.slane %v4813_v19, 5  ;;  %v4837_v19 = vshll.u32 %v8472_v4, 16  ;;  %v584_v3 = vshrl.u32 %v9135_v18, 16 }
  0x86   : > { %v4819_v34 = vrot.slane %v4817_v20, 4  ;;  %v4810_v43 = vor.u32 %v4809_v31, %v4805_v13  ;;  %v563_v13 = vrot.slane %v561_v60, 4  ;;  %v4841_v20 = vshrl.u32 %v8472_v4, 16 }
  0x87   : > { %v9145_v37 = vrot.slane %v4837_v19, 5  ;;  %v4851_v4 = vshrl.u32 %v8473_v36, 16 }
  0x88   : > { %v4820_v44 = vor.u32 %v4819_v34, %v4815_v32  ;;  %v4811_v57 = vrot.slane %v4810_v43, 4  ;;  %v567_v31 = vor.u32 %v566_v14, %v563_v13  ;;  %v580_v34 = vshll.u32 %v9135_v18, 16 }
  0x8a   : > { %v4816_v7 = vsel %vm8919_vm3, %v4811_v57, %v4815_v32 }
  0x8b   : > { %v6038_v23 = vunpack.c.l.b16 %v4816_v7 }
  0x8f   : > { %7601 = vmatmul.msk.bf16.gmra.mxu0 %vm1957_vm0, %v1888_v58  ;;  %v4821_v58 = vrot.slane %v4820_v44, 4 }
  0x91   : > { %v3012_v5 = vpop.f32.mrf.mxu1  ;;  %v4826_v8 = vsel %vm8919_vm3, %v4821_v58, %v4825_v59  ;;  %v196_v59 = vld [vmem:[%s8904_s7 + $0x70] sm:$0xf] }
  0x92   : > { %8625 = vmatmul.msk.bf16.gmra.mxu3 %vm1957_vm0, %v6155_v62  ;;  %v570_v62 = vshll.u32 %v194_v51, 16  ;;  %v6039_v24 = vunpack.c.l.b16 %v4826_v8  ;;  %v594_v7 = vshrl.u32 %v196_v59, 16 }
  0x93   : > { %8390 = vmatmul.msk.bf16.gmra.mxu2 %vm1957_vm0, %v8760_v0  ;;  %v8471_v0 = vld [vmem:[%s8904_s7 + $0x78] sm:$0xf] }
  0x94   : > { %7930 = vmatmul.msk.bf16.gmra.mxu1 %vm1957_vm0, %v8692_v6  ;;  %v4828_v9 = vshrl.u32 %v8471_v0, 16  ;;  %v4831_v10 = vshll.u32 %v8471_v0, 16  ;;  %v9132_v15 = vrot.slane %v570_v62, 5 }
  0x96   : > { %v3999_v21 = vpop.f32.mrf.mxu2  ;;  %v4830_v29 = vrot.slane %v4828_v9, 4  ;;  %v4833_v30 = vrot.slane %v4831_v10, 5  ;;  %v577_v32 = vor.u32 %v576_v16, %v9132_v15 }
  0x98   : > { %v4834_v43 = vor.u32 %v4833_v30, %v4830_v29  ;;  %v310_v29 = vld [vmem:[%s8904_s7 + $0x74] sm:$0x1] }
  0x99   : > { %v9082_v25 = vpop.f32.mrf.mxu1 }
  0x9a   : > { %v4835_v61 = vrot.slane %v4834_v43, 4 }
  0x9c   : > { %v2159_v42 = vpop.f32.mrf.mxu0  ;;  %v4840_v18 = vsel %vm8919_vm3, %v4835_v61, %v9145_v37 }
  0x9d   : > { %v3013_v47 = vadd.f32 %v3012_v5, %v2159_v42  ;;  %v9120_v5 = vld [vmem:[%s11730_s2] ss:$0 sm:$0xff]  ;;  %v6157_v42 = vpack.c.b16 %v6039_v24, %v6038_v23  ;;  %v4853_v23 = vrot.slane %v4851_v4, 4 }
  0x9e   : > { %v9091_v46 = vpop.f32.mrf.mxu2 }
  0x9f   : > { %7602 = vmatmul.msk.bf16.gmra.mxu0 %vm1957_vm0, %v1889_v38  ;;  %v4319_v1 = vadd.f32 %v3999_v21, %v3013_v47  ;;  %v1771_v21 = vunpack.c.l.b16 %v549_v2  ;;  %v4843_v38 = vrot.slane %v4841_v20, 4  ;;  %v568_v47 = vrot.slane %v567_v31, 4 }
  0xa0   : > { %v586_v20 = vrot.slane %v584_v3, 4  ;;  %v8476_v3 = vld [vmem:[%s8904_s7 + $0x8c] sm:$0xf] }
  0xa1   : > { %v9105_v56 = vpop.f32.mrf.mxu1  ;;  %v1890_v39 = vpack.c.b16 %v1772_v22, %v1771_v21  ;;  %v4844_v54 = vor.u32 %v4843_v38, %v9145_v37  ;;  %v573_v60 = vsel %vm8919_vm3, %v568_v47, %v9132_v15  ;;  %v596_v22 = vrot.slane %v594_v7, 4 }
  0xa2   : > { %8626 = vmatmul.msk.bf16.gmra.mxu3 %vm1957_vm0, %v6156_v48  ;;  %v578_v48 = vrot.slane %v577_v32, 4  ;;  %v1773_v14 = vunpack.c.l.b16 %v573_v60  ;;  %v8475_v32 = vld [vmem:[%s8904_s7 + $0x88] sm:$0x1] }
  0xa3   : > { %8391 = vmatmul.msk.bf16.gmra.mxu2 %vm1957_vm0, %v8761_v49  ;;  %v9155_v49 = vrot.slane %v580_v34, 5  ;;  %v4845_v2 = vrot.slane %v4844_v54, 4  ;;  %v198_v54 = vld [vmem:[%s8904_s7 + $0x7c] sm:$0xf] }
  0xa4   : > { %7931 = vmatmul.msk.bf16.gmra.mxu1 %vm1957_vm0, %v8693_v52  ;;  %v2161_v6 = vpop.f32.mrf.mxu0 }
  0xa5   : > { %v6425_v11 = vpop.f32.mrf.mxu3  ;;  %v3015_v27 = vadd.f32 %v9082_v25, %v2161_v6  ;;  %v590_v6 = vshll.u32 %v196_v59, 16  ;;  %v587_v38 = vor.u32 %v586_v20, %v9155_v49 }
  0xa6   : > { %v4004_v12 = vpop.f32.mrf.mxu2  ;;  %v6745_v17 = vadd.f32 %v6425_v11, %v4319_v1  ;;  %v583_v1 = vsel %vm8919_vm3, %v578_v48, %v9155_v49  ;;  %v197_v49 = vld [vmem:[%s8904_s7 + $0x78] sm:$0xf] }
  0xa7   : > { %v4320_v25 = vadd.f32 %v9091_v46, %v3015_v27  ;;  %v4847_v46 = vshll.u32 %v8473_v36, 16  ;;  %v1774_v15 = vunpack.c.l.b16 %v583_v1  ;;  %v9185_v21 = vrot.slane %v590_v6, 5 }
  0xa8   : > { %v6877_v26 = vadd.f32 %v9120_v5, %v6745_v17  ;;  %v6040_v36 = vunpack.c.l.b16 %v4840_v18  ;;  %v614_v1 = vshll.u32 %v198_v54, 16 }
  0xa9   : > { %v9139_v28 = vpop.f32.mrf.mxu1  ;;  %v9169_v62 = vrot.slane %v4847_v46, 5 }
  0xaa   : > { %v7005_v35 = vmul.f32 0.1, %v6877_v26 }
  0xab   : > { %v4850_v19 = vsel %vm8919_vm3, %v4845_v2, %v9169_v62  ;;  %v618_v2 = vshrl.u32 %v198_v54, 16 }
  0xac   : > { %v7133_v40 = vmax.f32 %v6877_v26, %v7005_v35  ;;  %v2164_v41 = vpop.f32.mrf.mxu0  ;;  %v1891_v35 = vpack.c.b16 %v1774_v15, %v1773_v14  ;;  %v6041_v37 = vunpack.c.l.b16 %v4850_v19  ;;  %v4872_v15 = vshrl.u32 %v8476_v3, 16 }
  0xad   : > { %v6427_v44 = vpop.f32.mrf.mxu3  ;;  %v3018_v52 = vadd.f32 %v9105_v56, %v2164_v41  ;;  %v8474_v56 = vld [vmem:[%s8904_s7 + $0x84] sm:$0xf]  ;;  %v9229_v19 = vrot.slane %v614_v1, 5  ;;  %v620_v20 = vrot.slane %v618_v2, 4 }
  0xae   : > { %v9153_v45 = vpop.f32.mrf.mxu2  ;;  %v7261_v50 = vpack.c.bf16 %v7133_v40, %v7133_v40  ;;  %v6746_v51 = vadd.f32 %v6427_v44, %v4320_v25  ;;  %v4857_v10 = vshll.u32 %v8474_v56, 16  ;;  %v4861_v11 = vshrl.u32 %v8474_v56, 16  ;;  %v200_v1 = vld [vmem:[%s8904_s7 + $0x84] sm:$0xf] }
  0xaf   : > { %7603 = vmatmul.msk.bf16.gmra.mxu0 %vm1957_vm0, %v1890_v39  ;;  %v4321_v0 = vadd.f32 %v4004_v12, %v3018_v52  ;;  %v597_v39 = vor.u32 %v596_v22, %v9185_v21  ;;  %v600_v40 = vshll.u32 %v310_v29, 16  ;;  %v4867_v44 = vshll.u32 %v8475_v32, 16 }
  0xb0   : > { %7390 = vst.msk [vmem:[%s9151_s16] sm:$0xf] %vm7389_vm4, %v7261_v50  ;;  %v6878_v57 = vadd.f32 %v9120_v5, %v6746_v51  ;;  %v9194_v30 = vrot.slane %v4857_v10, 5  ;;  %v4863_v31 = vrot.slane %v4861_v11, 4  ;;  %v6158_v52 = vpack.c.b16 %v6041_v37, %v6040_v36  ;;  %v8477_v10 = vld [vmem:[%s8904_s7 + $0x90] sm:$0xf] }
  0xb1   : > { %v3022_v58 = vpop.f32.mrf.mxu1  ;;  %v602_v59 = vrot.slane %v600_v40, 5  ;;  %v4885_v29 = vshrl.u32 %v8477_v10, 16  ;;  %v621_v40 = vor.u32 %v620_v20, %v9229_v19 }
  0xb2   : > { %v7006_v63 = vmul.f32 0.1, %v6878_v57  ;;  %8627 = vmatmul.msk.bf16.gmra.mxu3 %vm1957_vm0, %v6157_v42  ;;  %v4864_v43 = vor.u32 %v4863_v31, %v9194_v30 }
  0xb3   : > { %8392 = vmatmul.msk.bf16.gmra.mxu2 %vm1957_vm0, %v8762_v53  ;;  %v8763_v53 = vld [vmem:[%s8904_s7 + $0x80] sm:$0xff] }
  0xb4   : > { %7932 = vmatmul.msk.bf16.gmra.mxu1 %vm1957_vm0, %v8694_v55  ;;  %v7134_v8 = vmax.f32 %v6878_v57, %v7006_v63  ;;  %v2166_v9 = vpop.f32.mrf.mxu0  ;;  %v8695_v55 = vld [vmem:[%s8904_s7 + $0x6c] sm:$0xff]  ;;  %v598_v57 = vrot.slane %v597_v39, 4  ;;  %v4865_v56 = vrot.slane %v4864_v43, 4  ;;  %v605_v63 = vshrl.u32 %v197_v49, 16 }
  0xb5   : > { %v6430_v12 = vpop.f32.mrf.mxu3  ;;  %v3020_v26 = vadd.f32 %v9139_v28, %v2166_v9  ;;  %v4854_v28 = vor.u32 %v4853_v23, %v9169_v62 }
  0xb6   : > { %v4009_v13 = vpop.f32.mrf.mxu2  ;;  %v7262_v16 = vpack.c.bf16 %v7134_v8, %v7134_v8  ;;  %v6747_v17 = vadd.f32 %v6430_v12, %v4321_v0  ;;  %v608_v0 = vshll.u32 %v197_v49, 16  ;;  %v603_v8 = vsel %vm8919_vm3, %v598_v57, %v602_v59 }
  0xb7   : > { %v4322_v41 = vadd.f32 %v9153_v45, %v3020_v26  ;;  %v588_v45 = vrot.slane %v587_v38, 4  ;;  %v4855_v60 = vrot.slane %v4854_v28, 4  ;;  %v607_v14 = vrot.slane %v605_v63, 4 }
  0xb8   : > { %7391 = vst.msk [vmem:[%s9151_s16 + $0x4] sm:$0xf] %vm7389_vm4, %v7262_v16  ;;  %v6879_v24 = vadd.f32 %v9120_v5, %v6747_v17  ;;  %v610_v18 = vrot.slane %v608_v0, 5  ;;  %v4881_v26 = vshll.u32 %v8477_v10, 16  ;;  %v1776_v31 = vunpack.c.l.b16 %v603_v8 }
  0xb9   : > { %v9191_v27 = vpop.f32.mrf.mxu1  ;;  %v593_v7 = vsel %vm8919_vm3, %v588_v45, %v9185_v21  ;;  %v4860_v9 = vsel %vm8919_vm3, %v4855_v60, %v9194_v30  ;;  %v4875_v21 = vshll.u32 %v8476_v3, 16  ;;  %v4874_v38 = vrot.slane %v4872_v15, 4 }
  0xba   : > { %v7007_v34 = vmul.f32 0.1, %v6879_v24  ;;  %v1775_v30 = vunpack.c.l.b16 %v593_v7  ;;  %v6042_v32 = vunpack.c.l.b16 %v4860_v9  ;;  %v611_v39 = vor.u32 %v610_v18, %v607_v14 }
  0xbb   : > { %v9243_v43 = vrot.slane %v4881_v26, 5 }
  0xbc   : > { %v7135_v25 = vmax.f32 %v6879_v24, %v7007_v34  ;;  %v2169_v42 = vpop.f32.mrf.mxu0  ;;  %v9232_v24 = vld [vmem:[%s8904_s7 + $0x80] sm:$0xf]  ;;  %v612_v54 = vrot.slane %v611_v39, 4 }
  0xbd   : > { %v6432_v47 = vpop.f32.mrf.mxu3  ;;  %v3023_v51 = vadd.f32 %v3022_v58, %v2169_v42  ;;  %v4869_v58 = vrot.slane %v4867_v44, 5  ;;  %v624_v28 = vshll.u32 %v9232_v24, 16  ;;  %v4887_v44 = vrot.slane %v4885_v29, 4 }
  0xbe   : > { %v9202_v48 = vpop.f32.mrf.mxu2  ;;  %v7263_v46 = vpack.c.bf16 %v7135_v25, %v7135_v25  ;;  %v6748_v50 = vadd.f32 %v6432_v47, %v4322_v41  ;;  %v8478_v25 = vld [vmem:[%s8904_s7 + $0x94] sm:$0xf]  ;;  %v4877_v41 = vrot.slane %v4875_v21, 5  ;;  %v1892_v47 = vpack.c.b16 %v1776_v31, %v1775_v30 }
  0xbf   : > { %7604 = vmatmul.msk.bf16.gmra.mxu0 %vm1957_vm0, %v1891_v35  ;;  %v4323_v6 = vadd.f32 %v4009_v13, %v3023_v51  ;;  %v4870_v13 = vsel %vm8919_vm3, %v4865_v56, %v4869_v58  ;;  %v4891_v51 = vshll.u32 %v8478_v25, 16  ;;  %v9248_v45 = vrot.slane %v624_v28, 5  ;;  %v8696_v58 = vld [vmem:[%s8904_s7 + $0x78] sm:$0xff] }
  0xc0   : > { %7392 = vst.msk [vmem:[%s9151_s16 + $0x8] sm:$0xf] %vm7389_vm4, %v7263_v46  ;;  %v6880_v61 = vadd.f32 %v9120_v5, %v6748_v50  ;;  %v6043_v37 = vunpack.c.l.b16 %v4870_v13  ;;  %v4878_v57 = vor.u32 %v4877_v41, %v4874_v38  ;;  %v4888_v56 = vor.u32 %v4887_v44, %v9243_v43  ;;  %v311_v38 = vld [vmem:[%s8904_s7 + $0x88] sm:$0x1]  ;;  %v8480_v28 = vld [vmem:[%s8904_s7 + $0x9c] sm:$0x1] }
  0xc1   : > { %v9212_v62 = vpop.f32.mrf.mxu1  ;;  %v617_v2 = vsel %vm8919_vm3, %v612_v54, %v9229_v19  ;;  %v9265_v3 = vrot.slane %v4891_v51, 5  ;;  %v628_v10 = vshrl.u32 %v9232_v24, 16  ;;  %v638_v13 = vshrl.u32 %v200_v1, 16 }
  0xc2   : > { %v7008_v4 = vmul.f32 0.1, %v6880_v61  ;;  %8628 = vmatmul.msk.bf16.gmra.mxu3 %vm1957_vm0, %v6158_v52  ;;  %v6159_v50 = vpack.c.b16 %v6043_v37, %v6042_v32  ;;  %v4879_v8 = vrot.slane %v4878_v57, 4  ;;  %v4889_v9 = vrot.slane %v4888_v56, 4  ;;  %v202_v56 = vld [vmem:[%s8904_s7 + $0x90] sm:$0xf] }
  0xc3   : > { %8393 = vmatmul.msk.bf16.gmra.mxu2 %vm1957_vm0, %v8763_v53  ;;  %v630_v29 = vrot.slane %v628_v10, 4  ;;  %v640_v31 = vrot.slane %v638_v13, 4  ;;  %v8481_v10 = vld [vmem:[%s8904_s7 + $0xa0] sm:$0xf] }
  0xc4   : > { %7933 = vmatmul.msk.bf16.gmra.mxu1 %vm1957_vm0, %v8695_v55  ;;  %v7136_v11 = vmax.f32 %v6880_v61, %v7008_v4  ;;  %v2171_v12 = vpop.f32.mrf.mxu0  ;;  %v622_v55 = vrot.slane %v621_v40, 4  ;;  %v8479_v4 = vld [vmem:[%s8904_s7 + $0x98] sm:$0xf]  ;;  %v4884_v24 = vsel %vm8919_vm3, %v4879_v8, %v9243_v43  ;;  %v4894_v26 = vsel %vm8919_vm3, %v4889_v9, %v9265_v3 }
  0xc5   : > { %v6435_v16 = vpop.f32.mrf.mxu3  ;;  %v3025_v35 = vadd.f32 %v9191_v27, %v2171_v12  ;;  %v634_v12 = vshll.u32 %v200_v1, 16  ;;  %v4905_v18 = vshrl.u32 %v8479_v4, 16  ;;  %v6045_v43 = vunpack.c.l.b16 %v4894_v26 }
  0xc6   : > { %v4014_v17 = vpop.f32.mrf.mxu2  ;;  %v7264_v22 = vpack.c.bf16 %v7136_v11, %v7136_v11  ;;  %v6749_v23 = vadd.f32 %v6435_v16, %v4323_v6  ;;  %v4895_v11 = vshrl.u32 %v8478_v25, 16  ;;  %v4901_v16 = vshll.u32 %v8479_v4, 16 }
  0xc7   : > { %v4324_v27 = vadd.f32 %v9202_v48, %v3025_v35  ;;  %v8764_v48 = vld [vmem:[%s8904_s7 + $0x8c] sm:$0xff]  ;;  %v9278_v30 = vrot.slane %v634_v12, 5  ;;  %v4907_v40 = vrot.slane %v4905_v18, 4  ;;  %v631_v44 = vor.u32 %v630_v29, %v9248_v45 }
  0xc8   : > { %7393 = vst.msk [vmem:[%s9151_s16 + $0xc] sm:$0xf] %vm7389_vm4, %v7264_v22  ;;  %v6881_v34 = vadd.f32 %v9120_v5, %v6749_v23  ;;  %v4897_v32 = vrot.slane %v4895_v11, 4  ;;  %v9287_v39 = vrot.slane %v4901_v16, 5  ;;  %v658_v8 = vshll.u32 %v202_v56, 16 }
  0xc9   : > { %v9238_v36 = vpop.f32.mrf.mxu1  ;;  %v662_v9 = vshrl.u32 %v202_v56, 16  ;;  %v8482_v16 = vld [vmem:[%s8904_s7 + $0xa4] sm:$0xf] }
  0xca   : > { %v7009_v42 = vmul.f32 0.1, %v6881_v34  ;;  %v4908_v51 = vor.u32 %v4907_v40, %v9287_v39  ;;  %v9322_v26 = vrot.slane %v658_v8, 5  ;;  %v204_v8 = vld [vmem:[%s8904_s7 + $0x98] sm:$0xf] }
  0xcb   : > { %v664_v29 = vrot.slane %v662_v9, 4 }
  0xcc   : > { %v7137_v49 = vmax.f32 %v6881_v34, %v7009_v42  ;;  %v2174_v46 = vpop.f32.mrf.mxu0  ;;  %v6044_v42 = vunpack.c.l.b16 %v4884_v24  ;;  %v4909_v4 = vrot.slane %v4908_v51, 4 }
  0xcd   : > { %v6437_v52 = vpop.f32.mrf.mxu3  ;;  %v3028_v61 = vadd.f32 %v9212_v62, %v2174_v46  ;;  %v627_v62 = vsel %vm8919_vm3, %v622_v55, %v9248_v45  ;;  %v201_v45 = vld [vmem:[%s8904_s7 + $0x8c] sm:$0xf] }
  0xce   : > { %v9246_v53 = vpop.f32.mrf.mxu2  ;;  %v7265_v59 = vpack.c.bf16 %v7137_v49, %v7137_v49  ;;  %v6750_v60 = vadd.f32 %v6437_v52, %v4324_v27  ;;  %v1778_v21 = vunpack.c.l.b16 %v627_v62  ;;  %v644_v49 = vshll.u32 %v311_v38, 16 }
  0xcf   : > { %7605 = vmatmul.msk.bf16.gmra.mxu0 %vm1957_vm0, %v1892_v47  ;;  %v4325_v7 = vadd.f32 %v4014_v17, %v3028_v61  ;;  %v1777_v17 = vunpack.c.l.b16 %v617_v2  ;;  %v641_v47 = vor.u32 %v640_v31, %v9278_v30  ;;  %v4911_v52 = vshll.u32 %v8480_v28, 16 }
  0xd0   : > { %7394 = vst.msk [vmem:[%s9151_s16 + $0x10] sm:$0xf] %vm7389_vm4, %v7265_v59  ;;  %v6882_v63 = vadd.f32 %v9120_v5, %v6750_v60  ;;  %v6160_v61 = vpack.c.b16 %v6045_v43, %v6044_v42  ;;  %v646_v1 = vrot.slane %v644_v49, 5  ;;  %v4929_v38 = vshrl.u32 %v8482_v16, 16 }
  0xd1   : > { %v3032_v0 = vpop.f32.mrf.mxu1  ;;  %v1893_v41 = vpack.c.b16 %v1778_v21, %v1777_v17  ;;  %v4916_v21 = vshrl.u32 %v8481_v10, 16  ;;  %v665_v49 = vor.u32 %v664_v29, %v9322_v26 }
  0xd2   : > { %v7010_v6 = vmul.f32 0.1, %v6882_v63  ;;  %8629 = vmatmul.msk.bf16.gmra.mxu3 %vm1957_vm0, %v6159_v50 }
  0xd3   : > { %8394 = vmatmul.msk.bf16.gmra.mxu2 %vm1957_vm0, %v8764_v48  ;;  %v8765_v48 = vld [vmem:[%s8904_s7 + $0x94] sm:$0xff] }
  0xd4   : > { %7934 = vmatmul.msk.bf16.gmra.mxu1 %vm1957_vm0, %v8696_v58  ;;  %v7138_v14 = vmax.f32 %v6882_v63, %v7010_v6  ;;  %v2176_v15 = vpop.f32.mrf.mxu0  ;;  %v8697_v58 = vld [vmem:[%s8904_s7 + $0x80] sm:$0xff]  ;;  %v642_v63 = vrot.slane %v641_v47, 4  ;;  %v649_v6 = vshrl.u32 %v201_v45, 16 }
  0xd5   : > { %v6440_v19 = vpop.f32.mrf.mxu3  ;;  %v3030_v35 = vadd.f32 %v9238_v36, %v2176_v15  ;;  %v4898_v36 = vor.u32 %v4897_v32, %v9265_v3 }
  0xd6   : > { %v4019_v20 = vpop.f32.mrf.mxu2  ;;  %v7266_v22 = vpack.c.bf16 %v7138_v14, %v7138_v14  ;;  %v6751_v23 = vadd.f32 %v6440_v19, %v4325_v7  ;;  %v652_v7 = vshll.u32 %v201_v45, 16  ;;  %v647_v14 = vsel %vm8919_vm3, %v642_v63, %v646_v1 }
  0xd7   : > { %v4326_v46 = vadd.f32 %v9246_v53, %v3030_v35  ;;  %v632_v53 = vrot.slane %v631_v44, 4  ;;  %v4899_v2 = vrot.slane %v4898_v36, 4  ;;  %v651_v17 = vrot.slane %v649_v6, 4 }
  0xd8   : > { %7395 = vst.msk [vmem:[%s9151_s16 + $0x14] sm:$0xf] %vm7389_vm4, %v7266_v22  ;;  %v6883_v34 = vadd.f32 %v9120_v5, %v6751_v23  ;;  %v654_v24 = vrot.slane %v652_v7, 5  ;;  %v4925_v35 = vshll.u32 %v8482_v16, 16  ;;  %v1780_v40 = vunpack.c.l.b16 %v647_v14 }
  0xd9   : > { %v9284_v37 = vpop.f32.mrf.mxu1  ;;  %v637_v13 = vsel %vm8919_vm3, %v632_v53, %v9278_v30  ;;  %v4904_v15 = vsel %vm8919_vm3, %v4899_v2, %v9287_v39  ;;  %v4919_v30 = vshll.u32 %v8481_v10, 16  ;;  %v4918_v44 = vrot.slane %v4916_v21, 4 }
  0xda   : > { %v7011_v25 = vmul.f32 0.1, %v6883_v34  ;;  %v1779_v39 = vunpack.c.l.b16 %v637_v13  ;;  %v6046_v28 = vunpack.c.l.b16 %v4904_v15  ;;  %v655_v47 = vor.u32 %v654_v24, %v651_v17 }
  0xdb   : > { %v9336_v51 = vrot.slane %v4925_v35, 5 }
  0xdc   : > { %v7139_v27 = vmax.f32 %v6883_v34, %v7011_v25  ;;  %v2179_v50 = vpop.f32.mrf.mxu0  ;;  %v9325_v34 = vld [vmem:[%s8904_s7 + $0x94] sm:$0xf]  ;;  %v656_v56 = vrot.slane %v655_v47, 4 }
  0xdd   : > { %v6442_v54 = vpop.f32.mrf.mxu3  ;;  %v3033_v60 = vadd.f32 %v3032_v0, %v2179_v50  ;;  %v4913_v0 = vrot.slane %v4911_v52, 5  ;;  %v668_v36 = vshll.u32 %v9325_v34, 16  ;;  %v4931_v52 = vrot.slane %v4929_v38, 4 }
  0xde   : > { %v9295_v55 = vpop.f32.mrf.mxu2  ;;  %v7267_v57 = vpack.c.bf16 %v7139_v27, %v7139_v27  ;;  %v6752_v59 = vadd.f32 %v6442_v54, %v4326_v46  ;;  %v8483_v27 = vld [vmem:[%s8904_s7 + $0xa8] sm:$0xf]  ;;  %v4921_v46 = vrot.slane %v4919_v30, 5  ;;  %v1894_v54 = vpack.c.b16 %v1780_v40, %v1779_v39 }
  0xdf   : > { %7606 = vmatmul.msk.bf16.gmra.mxu0 %vm1957_vm0, %v1893_v41  ;;  %v4327_v12 = vadd.f32 %v4019_v20, %v3033_v60  ;;  %v4914_v20 = vsel %vm8919_vm3, %v4909_v4, %v4913_v0  ;;  %v4935_v60 = vshll.u32 %v8483_v27, 16  ;;  %v9341_v53 = vrot.slane %v668_v36, 5  ;;  %v8698_v0 = vld [vmem:[%s8904_s7 + $0x8c] sm:$0xff] }
  0xe0   : > { %7396 = vst.msk [vmem:[%s9151_s16 + $0x18] sm:$0xf] %vm7389_vm4, %v7267_v57  ;;  %v6884_v62 = vadd.f32 %v9120_v5, %v6752_v59  ;;  %v6047_v43 = vunpack.c.l.b16 %v4914_v20  ;;  %v4922_v63 = vor.u32 %v4921_v46, %v4918_v44  ;;  %v4932_v4 = vor.u32 %v4931_v52, %v9336_v51  ;;  %v312_v44 = vld [vmem:[%s8904_s7 + $0x9c] sm:$0x1]  ;;  %v8485_v36 = vld [vmem:[%s8904_s7 + $0xb0] sm:$0x1] }
  0xe1   : > { %v9305_v3 = vpop.f32.mrf.mxu1  ;;  %v661_v9 = vsel %vm8919_vm3, %v656_v56, %v9322_v26  ;;  %v9358_v10 = vrot.slane %v4935_v60, 5  ;;  %v672_v16 = vshrl.u32 %v9325_v34, 16  ;;  %v682_v20 = vshrl.u32 %v204_v8, 16 }
  0xe2   : > { %v7012_v11 = vmul.f32 0.1, %v6884_v62  ;;  %8630 = vmatmul.msk.bf16.gmra.mxu3 %vm1957_vm0, %v6160_v61  ;;  %v6161_v59 = vpack.c.b16 %v6047_v43, %v6046_v28  ;;  %v4923_v14 = vrot.slane %v4922_v63, 4  ;;  %v4933_v15 = vrot.slane %v4932_v4, 4  ;;  %v206_v4 = vld [vmem:[%s8904_s7 + $0xa4] sm:$0xf] }
  0xe3   : > { %8395 = vmatmul.msk.bf16.gmra.mxu2 %vm1957_vm0, %v8765_v48  ;;  %v674_v38 = vrot.slane %v672_v16, 4  ;;  %v684_v40 = vrot.slane %v682_v20, 4  ;;  %v8486_v16 = vld [vmem:[%s8904_s7 + $0xb4] sm:$0xf] }
  0xe4   : > { %7935 = vmatmul.msk.bf16.gmra.mxu1 %vm1957_vm0, %v8697_v58  ;;  %v7140_v18 = vmax.f32 %v6884_v62, %v7012_v11  ;;  %v2181_v19 = vpop.f32.mrf.mxu0  ;;  %v666_v58 = vrot.slane %v665_v49, 4  ;;  %v8484_v11 = vld [vmem:[%s8904_s7 + $0xac] sm:$0xf]  ;;  %v4928_v34 = vsel %vm8919_vm3, %v4923_v14, %v9336_v51  ;;  %v4938_v35 = vsel %vm8919_vm3, %v4933_v15, %v9358_v10 }
  0xe5   : > { %v6445_v22 = vpop.f32.mrf.mxu3  ;;  %v3035_v41 = vadd.f32 %v9284_v37, %v2181_v19  ;;  %v678_v19 = vshll.u32 %v204_v8, 16  ;;  %v4949_v24 = vshrl.u32 %v8484_v11, 16  ;;  %v6049_v51 = vunpack.c.l.b16 %v4938_v35 }
  0xe6   : > { %v4024_v23 = vpop.f32.mrf.mxu2  ;;  %v7268_v31 = vpack.c.bf16 %v7140_v18, %v7140_v18  ;;  %v6753_v32 = vadd.f32 %v6445_v22, %v4327_v12  ;;  %v4939_v18 = vshrl.u32 %v8483_v27, 16  ;;  %v4945_v22 = vshll.u32 %v8484_v11, 16 }
  0xe7   : > { %v4328_v37 = vadd.f32 %v9295_v55, %v3035_v41  ;;  %v8766_v55 = vld [vmem:[%s8904_s7 + $0xa0] sm:$0xff]  ;;  %v9371_v39 = vrot.slane %v678_v19, 5  ;;  %v4951_v49 = vrot.slane %v4949_v24, 4  ;;  %v675_v52 = vor.u32 %v674_v38, %v9341_v53 }
  0xe8   : > { %7397 = vst.msk [vmem:[%s9151_s16 + $0x1c] sm:$0xf] %vm7389_vm4, %v7268_v31  ;;  %v6885_v25 = vadd.f32 %v9120_v5, %v6753_v32  ;;  %v4941_v28 = vrot.slane %v4939_v18, 4  ;;  %v9380_v47 = vrot.slane %v4945_v22, 5  ;;  %v702_v14 = vshll.u32 %v206_v4, 16 }
  0xe9   : > { %v9331_v42 = vpop.f32.mrf.mxu1  ;;  %v706_v15 = vshrl.u32 %v206_v4, 16  ;;  %v8487_v22 = vld [vmem:[%s8904_s7 + $0xb8] sm:$0xf] }
  0xea   : > { %v7013_v50 = vmul.f32 0.1, %v6885_v25  ;;  %v4952_v60 = vor.u32 %v4951_v49, %v9380_v47  ;;  %v9415_v35 = vrot.slane %v702_v14, 5  ;;  %v208_v14 = vld [vmem:[%s8904_s7 + $0xac] sm:$0xf] }
  0xeb   : > { %v708_v38 = vrot.slane %v706_v15, 4 }
  0xec   : > { %v7141_v45 = vmax.f32 %v6885_v25, %v7013_v50  ;;  %v2184_v57 = vpop.f32.mrf.mxu0  ;;  %v6048_v50 = vunpack.c.l.b16 %v4928_v34  ;;  %v4953_v11 = vrot.slane %v4952_v60, 4 }
  0xed   : > { %v6447_v61 = vpop.f32.mrf.mxu3  ;;  %v3038_v62 = vadd.f32 %v9305_v3, %v2184_v57  ;;  %v671_v3 = vsel %vm8919_vm3, %v666_v58, %v9341_v53  ;;  %v205_v53 = vld [vmem:[%s8904_s7 + $0xa0] sm:$0xf] }
  0xee   : > { %v9339_v48 = vpop.f32.mrf.mxu2  ;;  %v7269_v1 = vpack.c.bf16 %v7141_v45, %v7141_v45  ;;  %v6754_v2 = vadd.f32 %v6447_v61, %v4328_v37  ;;  %v1782_v30 = vunpack.c.l.b16 %v671_v3  ;;  %v688_v45 = vshll.u32 %v312_v44, 16 }
  0xef   : > { %7607 = vmatmul.msk.bf16.gmra.mxu0 %vm1957_vm0, %v1894_v54  ;;  %v4329_v13 = vadd.f32 %v4024_v23, %v3038_v62  ;;  %v1781_v23 = vunpack.c.l.b16 %v661_v9  ;;  %v685_v54 = vor.u32 %v684_v40, %v9371_v39  ;;  %v4955_v61 = vshll.u32 %v8485_v36, 16 }
  0xf0   : > { %7398 = vst.msk [vmem:[%s9151_s16 + $0x20] sm:$0xf] %vm7389_vm4, %v7269_v1  ;;  %v6886_v6 = vadd.f32 %v9120_v5, %v6754_v2  ;;  %v6162_v62 = vpack.c.b16 %v6049_v51, %v6048_v50  ;;  %v690_v8 = vrot.slane %v688_v45, 5  ;;  %v4973_v44 = vshrl.u32 %v8487_v22, 16 }
  0xf1   : > { %v3042_v7 = vpop.f32.mrf.mxu1  ;;  %v1895_v46 = vpack.c.b16 %v1782_v30, %v1781_v23  ;;  %v4960_v30 = vshrl.u32 %v8486_v16, 16  ;;  %v709_v45 = vor.u32 %v708_v38, %v9415_v35 }
  0xf2   : > { %v7014_v12 = vmul.f32 0.1, %v6886_v6  ;;  %8631 = vmatmul.msk.bf16.gmra.mxu3 %vm1957_vm0, %v6161_v59 }
  0xf3   : > { %8396 = vmatmul.msk.bf16.gmra.mxu2 %vm1957_vm0, %v8766_v55  ;;  %v8767_v55 = vld [vmem:[%s8904_s7 + $0xa8] sm:$0xff] }
  0xf4   : > { %7936 = vmatmul.msk.bf16.gmra.mxu1 %vm1957_vm0, %v8698_v0  ;;  %v7142_v17 = vmax.f32 %v6886_v6, %v7014_v12  ;;  %v2186_v21 = vpop.f32.mrf.mxu0  ;;  %v8699_v0 = vld [vmem:[%s8904_s7 + $0x94] sm:$0xff]  ;;  %v686_v6 = vrot.slane %v685_v54, 4  ;;  %v693_v12 = vshrl.u32 %v205_v53, 16 }
  0xf5   : > { %v6450_v26 = vpop.f32.mrf.mxu3  ;;  %v3040_v41 = vadd.f32 %v9331_v42, %v2186_v21  ;;  %v4942_v42 = vor.u32 %v4941_v28, %v9358_v10 }
  0xf6   : > { %v4029_v29 = vpop.f32.mrf.mxu2  ;;  %v7270_v31 = vpack.c.bf16 %v7142_v17, %v7142_v17  ;;  %v6755_v32 = vadd.f32 %v6450_v26, %v4329_v13  ;;  %v696_v13 = vshll.u32 %v205_v53, 16  ;;  %v691_v17 = vsel %vm8919_vm3, %v686_v6, %v690_v8 }
  0xf7   : > { %v4330_v57 = vadd.f32 %v9339_v48, %v3040_v41  ;;  %v676_v48 = vrot.slane %v675_v52, 4  ;;  %v4943_v9 = vrot.slane %v4942_v42, 4  ;;  %v695_v23 = vrot.slane %v693_v12, 4 }
  0xf8   : > { %7399 = vst.msk [vmem:[%s9151_s16 + $0x24] sm:$0xf] %vm7389_vm4, %v7270_v31  ;;  %v6887_v25 = vadd.f32 %v9120_v5, %v6755_v32  ;;  %v698_v34 = vrot.slane %v696_v13, 5  ;;  %v4969_v41 = vshll.u32 %v8487_v22, 16  ;;  %v1784_v49 = vunpack.c.l.b16 %v691_v17 }
  0xf9   : > { %v9377_v43 = vpop.f32.mrf.mxu1  ;;  %v681_v20 = vsel %vm8919_vm3, %v676_v48, %v9371_v39  ;;  %v4948_v21 = vsel %vm8919_vm3, %v4943_v9, %v9380_v47  ;;  %v4963_v39 = vshll.u32 %v8486_v16, 16  ;;  %v4962_v52 = vrot.slane %v4960_v30, 4 }
  0xfa   : > { %v7015_v27 = vmul.f32 0.1, %v6887_v25  ;;  %v1783_v47 = vunpack.c.l.b16 %v681_v20  ;;  %v6050_v36 = vunpack.c.l.b16 %v4948_v21  ;;  %v699_v54 = vor.u32 %v698_v34, %v695_v23 }
  0xfb   : > { %v9429_v60 = vrot.slane %v4969_v41, 5 }
  0xfc   : > { %v7143_v37 = vmax.f32 %v6887_v25, %v7015_v27  ;;  %v2189_v59 = vpop.f32.mrf.mxu0  ;;  %v9418_v25 = vld [vmem:[%s8904_s7 + $0xa8] sm:$0xf]  ;;  %v700_v4 = vrot.slane %v699_v54, 4 }
  0xfd   : > { %v6452_v56 = vpop.f32.mrf.mxu3  ;;  %v3043_v2 = vadd.f32 %v3042_v7, %v2189_v59  ;;  %v4957_v7 = vrot.slane %v4955_v61, 5  ;;  %v712_v42 = vshll.u32 %v9418_v25, 16  ;;  %v4975_v61 = vrot.slane %v4973_v44, 4 }
  0xfe   : > { %v9388_v58 = vpop.f32.mrf.mxu2  ;;  %v7271_v63 = vpack.c.bf16 %v7143_v37, %v7143_v37  ;;  %v6756_v1 = vadd.f32 %v6452_v56, %v4330_v57  ;;  %v8488_v37 = vld [vmem:[%s8904_s7 + $0xbc] sm:$0xf]  ;;  %v4965_v57 = vrot.slane %v4963_v39, 5  ;;  %v1896_v56 = vpack.c.b16 %v1784_v49, %v1783_v47 }
  0xff   : > { %7608 = vmatmul.msk.bf16.gmra.mxu0 %vm1957_vm0, %v1895_v46  ;;  %v4331_v19 = vadd.f32 %v4029_v29, %v3043_v2  ;;  %v4958_v29 = vsel %vm8919_vm3, %v4953_v11, %v4957_v7  ;;  %v4979_v2 = vshll.u32 %v8488_v37, 16  ;;  %v9434_v48 = vrot.slane %v712_v42, 5  ;;  %v8700_v7 = vld [vmem:[%s8904_s7 + $0xa0] sm:$0xff] }
 0x100   : > { %7400 = vst.msk [vmem:[%s9151_s16 + $0x28] sm:$0xf] %vm7389_vm4, %v7271_v63  ;;  %v6888_v3 = vadd.f32 %v9120_v5, %v6756_v1  ;;  %v6051_v51 = vunpack.c.l.b16 %v4958_v29  ;;  %v4966_v6 = vor.u32 %v4965_v57, %v4962_v52  ;;  %v4976_v11 = vor.u32 %v4975_v61, %v9429_v60  ;;  %v313_v52 = vld [vmem:[%s8904_s7 + $0xb0] sm:$0x1]  ;;  %v8490_v42 = vld [vmem:[%s8904_s7 + $0xc4] sm:$0x1] }
 0x101   : > { %v9398_v10 = vpop.f32.mrf.mxu1  ;;  %v705_v15 = vsel %vm8919_vm3, %v700_v4, %v9415_v35  ;;  %v9451_v16 = vrot.slane %v4979_v2, 5  ;;  %v716_v21 = vshrl.u32 %v9418_v25, 16  ;;  %v4983_v22 = vshrl.u32 %v8488_v37, 16 }
 0x102   : > { %v7016_v18 = vmul.f32 0.1, %v6888_v3  ;;  %8632 = vmatmul.msk.bf16.gmra.mxu3 %vm1957_vm0, %v6162_v62  ;;  %v6163_v1 = vpack.c.b16 %v6051_v51, %v6050_v36  ;;  %v4977_v17 = vrot.slane %v4976_v11, 4  ;;  %v9471_v36 = vld [vmem:[%s11730_s2] ss:$0 sm:$0xff] }
 0x103   : > { %8397 = vmatmul.msk.bf16.gmra.mxu2 %vm1957_vm0, %v8767_v55  ;;  %v718_v41 = vrot.slane %v716_v21, 4  ;;  %v4985_v49 = vrot.slane %v4983_v22, 4  ;;  %v210_v11 = vld [vmem:[%s8904_s7 + $0xb8] sm:$0xf]  ;;  %v8491_v21 = vld [vmem:[%s8904_s7 + $0xc8] sm:$0xf] }
 0x104   : > { %7937 = vmatmul.msk.bf16.gmra.mxu1 %vm1957_vm0, %v8699_v0  ;;  %v7144_v24 = vmax.f32 %v6888_v3, %v7016_v18  ;;  %v2191_v26 = vpop.f32.mrf.mxu0  ;;  %v710_v0 = vrot.slane %v709_v45, 4  ;;  %v8489_v18 = vld [vmem:[%s8904_s7 + $0xc0] sm:$0xf]  ;;  %v4982_v25 = vsel %vm8919_vm3, %v4977_v17, %v9451_v16  ;;  %v750_v17 = vshrl.u32 %v210_v11, 16 }
 0x105   : > { %v6455_v31 = vpop.f32.mrf.mxu3  ;;  %v3045_v46 = vadd.f32 %v9377_v43, %v2191_v26  ;;  %v726_v26 = vshrl.u32 %v208_v14, 16  ;;  %v4989_v30 = vshll.u32 %v8489_v18, 16  ;;  %v719_v61 = vor.u32 %v718_v41, %v9434_v48 }
 0x106   : > { %v4034_v32 = vpop.f32.mrf.mxu2  ;;  %v7272_v40 = vpack.c.bf16 %v7144_v24, %v7144_v24  ;;  %v6757_v28 = vadd.f32 %v6455_v31, %v4331_v19  ;;  %v722_v24 = vshll.u32 %v208_v14, 16  ;;  %v4993_v31 = vshrl.u32 %v8489_v18, 16 }
 0x107   : > { %v4332_v43 = vadd.f32 %v9388_v58, %v3045_v46  ;;  %v8768_v58 = vld [vmem:[%s8904_s7 + $0xb4] sm:$0xff]  ;;  %v728_v47 = vrot.slane %v726_v26, 4  ;;  %v9478_v54 = vrot.slane %v4989_v30, 5  ;;  %v8492_v30 = vld [vmem:[%s8904_s7 + $0xcc] sm:$0xf]  ;;  %v752_v41 = vrot.slane %v750_v17, 4 }
 0x108   : > { %7401 = vst.msk [vmem:[%s9151_s16 + $0x2c] sm:$0xf] %vm7389_vm4, %v7272_v40  ;;  %v6889_v27 = vadd.f32 %v9120_v5, %v6757_v28  ;;  %v9464_v44 = vrot.slane %v722_v24, 5  ;;  %v4995_v45 = vrot.slane %v4993_v31, 4 }
 0x109   : > { %v9424_v50 = vpop.f32.mrf.mxu1 }
 0x10a   : > { %v7017_v59 = vmul.f32 0.1, %v6889_v27  ;;  %v4996_v2 = vor.u32 %v4995_v45, %v9478_v54 }
 0x10c   : > { %v7145_v53 = vmax.f32 %v6889_v27, %v7017_v59  ;;  %v2194_v63 = vpop.f32.mrf.mxu0  ;;  %v4997_v18 = vrot.slane %v4996_v2, 4 }
 0x10d   : > { %v6457_v62 = vpop.f32.mrf.mxu3  ;;  %v3048_v3 = vadd.f32 %v9398_v10, %v2194_v63  ;;  %v715_v10 = vsel %vm8919_vm3, %v710_v0, %v9434_v48  ;;  %v209_v48 = vld [vmem:[%s8904_s7 + $0xb4] sm:$0xf] }
 0x10e   : > { %v9432_v55 = vpop.f32.mrf.mxu2  ;;  %v7273_v8 = vpack.c.bf16 %v7145_v53, %v7145_v53  ;;  %v6758_v9 = vadd.f32 %v6457_v62, %v4332_v43  ;;  %v1786_v38 = vunpack.c.l.b16 %v715_v10  ;;  %v732_v53 = vshll.u32 %v313_v52, 16 }
 0x10f   : > { %7609 = vmatmul.msk.bf16.gmra.mxu0 %vm1957_vm0, %v1896_v56  ;;  %v4333_v20 = vadd.f32 %v4034_v32, %v3048_v3  ;;  %v1785_v32 = vunpack.c.l.b16 %v705_v15  ;;  %v729_v56 = vor.u32 %v728_v47, %v9464_v44  ;;  %v4999_v62 = vshll.u32 %v8490_v42, 16 }
 0x110   : > { %7402 = vst.msk [vmem:[%s9151_s16 + $0x30] sm:$0xf] %vm7389_vm4, %v7273_v8  ;;  %v6890_v12 = vadd.f32 %v9120_v5, %v6758_v9  ;;  %v4967_v5 = vrot.slane %v4966_v6, 4  ;;  %v734_v14 = vrot.slane %v732_v53, 5  ;;  %v5017_v52 = vshrl.u32 %v8492_v30, 16 }
 0x111   : > { %v3052_v13 = vpop.f32.mrf.mxu1  ;;  %v1897_v57 = vpack.c.b16 %v1786_v38, %v1785_v32  ;;  %v5004_v38 = vshrl.u32 %v8491_v21, 16 }
 0x112   : > { %v7018_v19 = vmul.f32 0.1, %v6890_v12  ;;  %8633 = vmatmul.msk.bf16.gmra.mxu3 %vm1957_vm0, %v6163_v1  ;;  %v4972_v28 = vsel %vm8919_vm3, %v4967_v5, %v9429_v60  ;;  %v6053_v60 = vunpack.c.l.b16 %v4982_v25  ;;  %v746_v5 = vshll.u32 %v210_v11, 16 }
 0x113   : > { %8398 = vmatmul.msk.bf16.gmra.mxu2 %vm1957_vm0, %v8768_v58  ;;  %v6052_v59 = vunpack.c.l.b16 %v4972_v28  ;;  %v8769_v58 = vld [vmem:[%s8904_s7 + $0xbc] sm:$0xff] }
 0x114   : > { %7938 = vmatmul.msk.bf16.gmra.mxu1 %vm1957_vm0, %v8700_v7  ;;  %v7146_v29 = vmax.f32 %v6890_v12, %v7018_v19  ;;  %v2196_v23 = vpop.f32.mrf.mxu0  ;;  %v8701_v7 = vld [vmem:[%s8904_s7 + $0xa8] sm:$0xff]  ;;  %v730_v12 = vrot.slane %v729_v56, 4  ;;  %v737_v19 = vshrl.u32 %v209_v48, 16  ;;  %v9513_v25 = vrot.slane %v746_v5, 5  ;;  %v212_v5 = vld [vmem:[%s8904_s7 + $0xc0] sm:$0xf] }
 0x115   : > { %v6460_v34 = vpop.f32.mrf.mxu3  ;;  %v3050_v46 = vadd.f32 %v9424_v50, %v2196_v23  ;;  %v4986_v50 = vor.u32 %v4985_v49, %v9451_v16  ;;  %v6164_v3 = vpack.c.b16 %v6053_v60, %v6052_v59 }
 0x116   : > { %v4039_v35 = vpop.f32.mrf.mxu2  ;;  %v7274_v39 = vpack.c.bf16 %v7146_v29, %v7146_v29  ;;  %v6759_v40 = vadd.f32 %v6460_v34, %v4333_v20  ;;  %v740_v20 = vshll.u32 %v209_v48, 16  ;;  %v735_v29 = vsel %vm8919_vm3, %v730_v12, %v734_v14 }
 0x117   : > { %v4334_v63 = vadd.f32 %v9432_v55, %v3050_v46  ;;  %v720_v55 = vrot.slane %v719_v61, 4  ;;  %v4987_v15 = vrot.slane %v4986_v50, 4  ;;  %v739_v32 = vrot.slane %v737_v19, 4 }
 0x118   : > { %7403 = vst.msk [vmem:[%s9151_s16 + $0x34] sm:$0xf] %vm7389_vm4, %v7274_v39  ;;  %v6891_v27 = vadd.f32 %v9471_v36, %v6759_v40  ;;  %v742_v28 = vrot.slane %v740_v20, 5  ;;  %v5013_v46 = vshll.u32 %v8492_v30, 16  ;;  %v1788_v45 = vunpack.c.l.b16 %v735_v29 }
 0x119   : > { %v9475_v51 = vpop.f32.mrf.mxu1  ;;  %v725_v26 = vsel %vm8919_vm3, %v720_v55, %v9464_v44  ;;  %v4992_v23 = vsel %vm8919_vm3, %v4987_v15, %v9478_v54  ;;  %v5007_v44 = vshll.u32 %v8491_v21, 16  ;;  %v5006_v61 = vrot.slane %v5004_v38, 4 }
 0x11a   : > { %v7019_v37 = vmul.f32 0.1, %v6891_v27  ;;  %v1787_v54 = vunpack.c.l.b16 %v725_v26  ;;  %v6054_v42 = vunpack.c.l.b16 %v4992_v23  ;;  %v743_v56 = vor.u32 %v742_v28, %v739_v32 }
 0x11b   : > { %v753_v53 = vor.u32 %v752_v41, %v9513_v25  ;;  %v9527_v2 = vrot.slane %v5013_v46, 5 }
 0x11c   : > { %v7147_v43 = vmax.f32 %v6891_v27, %v7019_v37  ;;  %v2199_v1 = vpop.f32.mrf.mxu0  ;;  %v9516_v27 = vld [vmem:[%s8904_s7 + $0xbc] sm:$0xf]  ;;  %v744_v11 = vrot.slane %v743_v56, 4 }
 0x11d   : > { %v6462_v4 = vpop.f32.mrf.mxu3  ;;  %v3053_v9 = vadd.f32 %v3052_v13, %v2199_v1  ;;  %v5001_v13 = vrot.slane %v4999_v62, 5  ;;  %v756_v50 = vshll.u32 %v9516_v27, 16  ;;  %v5019_v62 = vrot.slane %v5017_v52, 4 }
 0x11e   : > { %v9486_v0 = vpop.f32.mrf.mxu2  ;;  %v7275_v6 = vpack.c.bf16 %v7147_v43, %v7147_v43  ;;  %v6760_v8 = vadd.f32 %v6462_v4, %v4334_v63  ;;  %v8493_v43 = vld [vmem:[%s8904_s7 + $0xd0] sm:$0xf]  ;;  %v5009_v63 = vrot.slane %v5007_v44, 5  ;;  %v1898_v4 = vpack.c.b16 %v1788_v45, %v1787_v54 }
 0x11f   : > { %7610 = vmatmul.msk.bf16.gmra.mxu0 %vm1957_vm0, %v1897_v57  ;;  %v4335_v24 = vadd.f32 %v4039_v35, %v3053_v9  ;;  %v5002_v35 = vsel %vm8919_vm3, %v4997_v18, %v5001_v13  ;;  %v5023_v9 = vshll.u32 %v8493_v43, 16  ;;  %v9532_v55 = vrot.slane %v756_v50, 5  ;;  %v8702_v13 = vld [vmem:[%s8904_s7 + $0xb4] sm:$0xff] }
 0x120   : > { %7404 = vst.msk [vmem:[%s9151_s16 + $0x38] sm:$0xf] %vm7389_vm4, %v7275_v6  ;;  %v6892_v10 = vadd.f32 %v9471_v36, %v6760_v8  ;;  %v6055_v60 = vunpack.c.l.b16 %v5002_v35  ;;  %v5010_v12 = vor.u32 %v5009_v63, %v5006_v61  ;;  %v5020_v18 = vor.u32 %v5019_v62, %v9527_v2  ;;  %v314_v61 = vld [vmem:[%s8904_s7 + $0xc4] sm:$0x1]  ;;  %v8495_v50 = vld [vmem:[%s8904_s7 + $0xd8] sm:$0x1] }
 0x121   : > { %v9496_v16 = vpop.f32.mrf.mxu1  ;;  %v749_v17 = vsel %vm8919_vm3, %v744_v11, %v9513_v25  ;;  %v9549_v21 = vrot.slane %v5023_v9, 5  ;;  %v760_v30 = vshrl.u32 %v9516_v27, 16  ;;  %v770_v35 = vshrl.u32 %v212_v5, 16 }
 0x122   : > { %v7020_v22 = vmul.f32 0.1, %v6892_v10  ;;  %8634 = vmatmul.msk.bf16.gmra.mxu3 %vm1957_vm0, %v6164_v3  ;;  %v6165_v8 = vpack.c.b16 %v6055_v60, %v6054_v42  ;;  %v5011_v29 = vrot.slane %v5010_v12, 4  ;;  %v5021_v23 = vrot.slane %v5020_v18, 4  ;;  %v214_v18 = vld [vmem:[%s8904_s7 + $0xcc] sm:$0xf] }
 0x123   : > { %8399 = vmatmul.msk.bf16.gmra.mxu2 %vm1957_vm0, %v8769_v58  ;;  %v762_v52 = vrot.slane %v760_v30, 4  ;;  %v772_v45 = vrot.slane %v770_v35, 4  ;;  %v8496_v30 = vld [vmem:[%s8904_s7 + $0xdc] sm:$0xf] }
 0x124   : > { %7939 = vmatmul.msk.bf16.gmra.mxu1 %vm1957_vm0, %v8701_v7  ;;  %v7148_v31 = vmax.f32 %v6892_v10, %v7020_v22  ;;  %v2201_v34 = vpop.f32.mrf.mxu0  ;;  %v754_v7 = vrot.slane %v753_v53, 4  ;;  %v8494_v22 = vld [vmem:[%s8904_s7 + $0xd4] sm:$0xf]  ;;  %v5016_v27 = vsel %vm8919_vm3, %v5011_v29, %v9527_v2  ;;  %v5026_v46 = vsel %vm8919_vm3, %v5021_v23, %v9549_v21 }
 0x125   : > { %v6465_v39 = vpop.f32.mrf.mxu3  ;;  %v3055_v57 = vadd.f32 %v9475_v51, %v2201_v34  ;;  %v766_v34 = vshll.u32 %v212_v5, 16  ;;  %v5037_v28 = vshrl.u32 %v8494_v22, 16  ;;  %v6057_v2 = vunpack.c.l.b16 %v5026_v46 }
 0x126   : > { %v4044_v40 = vpop.f32.mrf.mxu2  ;;  %v7276_v47 = vpack.c.bf16 %v7148_v31, %v7148_v31  ;;  %v6761_v49 = vadd.f32 %v6465_v39, %v4335_v24  ;;  %v5027_v31 = vshrl.u32 %v8493_v43, 16  ;;  %v5033_v39 = vshll.u32 %v8494_v22, 16 }
 0x127   : > { %v4336_v51 = vadd.f32 %v9486_v0, %v3055_v57  ;;  %v8770_v0 = vld [vmem:[%s8904_s7 + $0xc8] sm:$0xff]  ;;  %v9562_v54 = vrot.slane %v766_v34, 5  ;;  %v5039_v53 = vrot.slane %v5037_v28, 4  ;;  %v763_v62 = vor.u32 %v762_v52, %v9532_v55 }
 0x128   : > { %7405 = vst.msk [vmem:[%s9151_s16 + $0x3c] sm:$0xf] %vm7389_vm4, %v7276_v47  ;;  %v6893_v37 = vadd.f32 %v9471_v36, %v6761_v49  ;;  %v5029_v42 = vrot.slane %v5027_v31, 4  ;;  %v9571_v56 = vrot.slane %v5033_v39, 5  ;;  %v790_v29 = vshll.u32 %v214_v18, 16 }
 0x129   : > { %v9522_v59 = vpop.f32.mrf.mxu1  ;;  %v794_v23 = vshrl.u32 %v214_v18, 16  ;;  %v8497_v39 = vld [vmem:[%s8904_s7 + $0xe0] sm:$0xf] }
 0x12a   : > { %v7021_v1 = vmul.f32 0.1, %v6893_v37  ;;  %v5040_v9 = vor.u32 %v5039_v53, %v9571_v56  ;;  %v9606_v46 = vrot.slane %v790_v29, 5  ;;  %v216_v29 = vld [vmem:[%s8904_s7 + $0xd4] sm:$0xf] }
 0x12b   : > { %v796_v52 = vrot.slane %v794_v23, 4 }
 0x12c   : > { %v7149_v48 = vmax.f32 %v6893_v37, %v7021_v1  ;;  %v2204_v6 = vpop.f32.mrf.mxu0  ;;  %v6056_v1 = vunpack.c.l.b16 %v5016_v27  ;;  %v5041_v22 = vrot.slane %v5040_v9, 4 }
 0x12d   : > { %v6467_v3 = vpop.f32.mrf.mxu3  ;;  %v3058_v10 = vadd.f32 %v9496_v16, %v2204_v6  ;;  %v759_v16 = vsel %vm8919_vm3, %v754_v7, %v9532_v55  ;;  %v213_v55 = vld [vmem:[%s8904_s7 + $0xc8] sm:$0xf] }
 0x12e   : > { %v9530_v58 = vpop.f32.mrf.mxu2  ;;  %v7277_v14 = vpack.c.bf16 %v7149_v48, %v7149_v48  ;;  %v6762_v15 = vadd.f32 %v6467_v3, %v4336_v51  ;;  %v1790_v44 = vunpack.c.l.b16 %v759_v16  ;;  %v776_v48 = vshll.u32 %v314_v61, 16 }
 0x12f   : > { %7611 = vmatmul.msk.bf16.gmra.mxu0 %vm1957_vm0, %v1898_v4  ;;  %v4337_v26 = vadd.f32 %v4044_v40, %v3058_v10  ;;  %v1789_v40 = vunpack.c.l.b16 %v749_v17  ;;  %v773_v4 = vor.u32 %v772_v45, %v9562_v54  ;;  %v5043_v3 = vshll.u32 %v8495_v50, 16 }
 0x130   : > { %7406 = vst.msk [vmem:[%s9151_s16 + $0x40] sm:$0xf] %vm7389_vm4, %v7277_v14  ;;  %v6894_v19 = vadd.f32 %v9471_v36, %v6762_v15  ;;  %v6166_v10 = vpack.c.b16 %v6057_v2, %v6056_v1  ;;  %v778_v5 = vrot.slane %v776_v48, 5  ;;  %v5061_v61 = vshrl.u32 %v8497_v39, 16 }
 0x131   : > { %v3062_v20 = vpop.f32.mrf.mxu1  ;;  %v1899_v63 = vpack.c.b16 %v1790_v44, %v1789_v40  ;;  %v5048_v44 = vshrl.u32 %v8496_v30, 16  ;;  %v797_v48 = vor.u32 %v796_v52, %v9606_v46 }
 0x132   : > { %v7022_v24 = vmul.f32 0.1, %v6894_v19  ;;  %8635 = vmatmul.msk.bf16.gmra.mxu3 %vm1957_vm0, %v6165_v8 }
 0x133   : > { %8400 = vmatmul.msk.bf16.gmra.mxu2 %vm1957_vm0, %v8770_v0  ;;  %v8771_v0 = vld [vmem:[%s8904_s7 + $0xd0] sm:$0xff] }
 0x134   : > { %7940 = vmatmul.msk.bf16.gmra.mxu1 %vm1957_vm0, %v8702_v13  ;;  %v7150_v32 = vmax.f32 %v6894_v19, %v7022_v24  ;;  %v2206_v38 = vpop.f32.mrf.mxu0  ;;  %v8703_v13 = vld [vmem:[%s8904_s7 + $0xbc] sm:$0xff]  ;;  %v774_v19 = vrot.slane %v773_v4, 4  ;;  %v781_v24 = vshrl.u32 %v213_v55, 16 }
 0x135   : > { %v6470_v25 = vpop.f32.mrf.mxu3  ;;  %v3060_v57 = vadd.f32 %v9522_v59, %v2206_v38  ;;  %v5030_v59 = vor.u32 %v5029_v42, %v9549_v21 }
 0x136   : > { %v4049_v41 = vpop.f32.mrf.mxu2  ;;  %v7278_v47 = vpack.c.bf16 %v7150_v32, %v7150_v32  ;;  %v6763_v49 = vadd.f32 %v6470_v25, %v4337_v26  ;;  %v784_v26 = vshll.u32 %v213_v55, 16  ;;  %v779_v32 = vsel %vm8919_vm3, %v774_v19, %v778_v5 }
 0x137   : > { %v4338_v6 = vadd.f32 %v9530_v58, %v3060_v57  ;;  %v764_v58 = vrot.slane %v763_v62, 4  ;;  %v5031_v17 = vrot.slane %v5030_v59, 4  ;;  %v783_v40 = vrot.slane %v781_v24, 4 }
 0x138   : > { %7407 = vst.msk [vmem:[%s9151_s16 + $0x44] sm:$0xf] %vm7389_vm4, %v7278_v47  ;;  %v6895_v37 = vadd.f32 %v9471_v36, %v6763_v49  ;;  %v786_v27 = vrot.slane %v784_v26, 5  ;;  %v5057_v57 = vshll.u32 %v8497_v39, 16  ;;  %v1792_v53 = vunpack.c.l.b16 %v779_v32 }
 0x139   : > { %v9568_v60 = vpop.f32.mrf.mxu1  ;;  %v769_v35 = vsel %vm8919_vm3, %v764_v58, %v9562_v54  ;;  %v5036_v38 = vsel %vm8919_vm3, %v5031_v17, %v9571_v56  ;;  %v5051_v54 = vshll.u32 %v8496_v30, 16  ;;  %v5050_v62 = vrot.slane %v5048_v44, 4 }
 0x13a   : > { %v7023_v43 = vmul.f32 0.1, %v6895_v37  ;;  %v1791_v56 = vunpack.c.l.b16 %v769_v35  ;;  %v6058_v50 = vunpack.c.l.b16 %v5036_v38  ;;  %v787_v4 = vor.u32 %v786_v27, %v783_v40 }
 0x13b   : > { %v9620_v9 = vrot.slane %v5057_v57, 5 }
 0x13c   : > { %v7151_v51 = vmax.f32 %v6895_v37, %v7023_v43  ;;  %v2209_v8 = vpop.f32.mrf.mxu0  ;;  %v9609_v37 = vld [vmem:[%s8904_s7 + $0xd0] sm:$0xf]  ;;  %v788_v18 = vrot.slane %v787_v4, 4 }
 0x13d   : > { %v6472_v11 = vpop.f32.mrf.mxu3  ;;  %v3063_v15 = vadd.f32 %v3062_v20, %v2209_v8  ;;  %v5045_v20 = vrot.slane %v5043_v3, 5  ;;  %v800_v59 = vshll.u32 %v9609_v37, 16  ;;  %v5063_v3 = vrot.slane %v5061_v61, 4 }
 0x13e   : > { %v9579_v7 = vpop.f32.mrf.mxu2  ;;  %v7279_v12 = vpack.c.bf16 %v7151_v51, %v7151_v51  ;;  %v6764_v14 = vadd.f32 %v6472_v11, %v4338_v6  ;;  %v8498_v51 = vld [vmem:[%s8904_s7 + $0xe4] sm:$0xf]  ;;  %v5053_v6 = vrot.slane %v5051_v54, 5  ;;  %v1900_v11 = vpack.c.b16 %v1792_v53, %v1791_v56 }
 0x13f   : > { %7612 = vmatmul.msk.bf16.gmra.mxu0 %vm1957_vm0, %v1899_v63  ;;  %v4339_v34 = vadd.f32 %v4049_v41, %v3063_v15  ;;  %v5046_v41 = vsel %vm8919_vm3, %v5041_v22, %v5045_v20  ;;  %v5067_v15 = vshll.u32 %v8498_v51, 16  ;;  %v9625_v58 = vrot.slane %v800_v59, 5  ;;  %v8704_v20 = vld [vmem:[%s8904_s7 + $0xc8] sm:$0xff] }
 0x140   : > { %7408 = vst.msk [vmem:[%s9151_s16 + $0x48] sm:$0xf] %vm7389_vm4, %v7279_v12  ;;  %v6896_v16 = vadd.f32 %v9471_v36, %v6764_v14  ;;  %v6059_v2 = vunpack.c.l.b16 %v5046_v41  ;;  %v5054_v19 = vor.u32 %v5053_v6, %v5050_v62  ;;  %v5064_v22 = vor.u32 %v5063_v3, %v9620_v9  ;;  %v315_v62 = vld [vmem:[%s8904_s7 + $0xd8] sm:$0x1]  ;;  %v8500_v59 = vld [vmem:[%s8904_s7 + $0xec] sm:$0x1] }
 0x141   : > { %v9589_v21 = vpop.f32.mrf.mxu1  ;;  %v793_v23 = vsel %vm8919_vm3, %v788_v18, %v9606_v46  ;;  %v9642_v30 = vrot.slane %v5067_v15, 5  ;;  %v804_v39 = vshrl.u32 %v9609_v37, 16  ;;  %v814_v41 = vshrl.u32 %v216_v29, 16 }
 0x142   : > { %v7024_v31 = vmul.f32 0.1, %v6896_v16  ;;  %8636 = vmatmul.msk.bf16.gmra.mxu3 %vm1957_vm0, %v6166_v10  ;;  %v6167_v14 = vpack.c.b16 %v6059_v2, %v6058_v50  ;;  %v5055_v32 = vrot.slane %v5054_v19, 4  ;;  %v5065_v38 = vrot.slane %v5064_v22, 4  ;;  %v218_v22 = vld [vmem:[%s8904_s7 + $0xe0] sm:$0xf] }
 0x143   : > { %8401 = vmatmul.msk.bf16.gmra.mxu2 %vm1957_vm0, %v8771_v0  ;;  %v806_v61 = vrot.slane %v804_v39, 4  ;;  %v816_v53 = vrot.slane %v814_v41, 4  ;;  %v8501_v39 = vld [vmem:[%s8904_s7 + $0xf0] sm:$0xf] }
 0x144   : > { %7941 = vmatmul.msk.bf16.gmra.mxu1 %vm1957_vm0, %v8703_v13  ;;  %v7152_v28 = vmax.f32 %v6896_v16, %v7024_v31  ;;  %v2211_v25 = vpop.f32.mrf.mxu0  ;;  %v798_v13 = vrot.slane %v797_v48, 4  ;;  %v8499_v31 = vld [vmem:[%s8904_s7 + $0xe8] sm:$0xf]  ;;  %v5060_v37 = vsel %vm8919_vm3, %v5055_v32, %v9620_v9  ;;  %v5070_v57 = vsel %vm8919_vm3, %v5065_v38, %v9642_v30 }
 0x145   : > { %v6475_v47 = vpop.f32.mrf.mxu3  ;;  %v3065_v63 = vadd.f32 %v9568_v60, %v2211_v25  ;;  %v810_v25 = vshll.u32 %v216_v29, 16  ;;  %v5081_v27 = vshrl.u32 %v8499_v31, 16  ;;  %v6061_v9 = vunpack.c.l.b16 %v5070_v57 }
 0x146   : > { %v4054_v49 = vpop.f32.mrf.mxu2  ;;  %v7280_v45 = vpack.c.bf16 %v7152_v28, %v7152_v28  ;;  %v6765_v42 = vadd.f32 %v6475_v47, %v4339_v34  ;;  %v5071_v28 = vshrl.u32 %v8498_v51, 16  ;;  %v5077_v47 = vshll.u32 %v8499_v31, 16 }
 0x147   : > { %v4340_v60 = vadd.f32 %v9579_v7, %v3065_v63  ;;  %v8772_v7 = vld [vmem:[%s8904_s7 + $0xdc] sm:$0xff]  ;;  %v9655_v56 = vrot.slane %v810_v25, 5  ;;  %v5083_v48 = vrot.slane %v5081_v27, 4  ;;  %v807_v3 = vor.u32 %v806_v61, %v9625_v58 }
 0x148   : > { %7409 = vst.msk [vmem:[%s9151_s16 + $0x4c] sm:$0xf] %vm7389_vm4, %v7280_v45  ;;  %v6897_v43 = vadd.f32 %v9471_v36, %v6765_v42  ;;  %v5073_v50 = vrot.slane %v5071_v28, 4  ;;  %v9664_v4 = vrot.slane %v5077_v47, 5  ;;  %v834_v32 = vshll.u32 %v218_v22, 16 }
 0x149   : > { %v9615_v1 = vpop.f32.mrf.mxu1  ;;  %v838_v38 = vshrl.u32 %v218_v22, 16  ;;  %v8502_v47 = vld [vmem:[%s8904_s7 + $0xf4] sm:$0xf] }
 0x14a   : > { %v7025_v8 = vmul.f32 0.1, %v6897_v43  ;;  %v5084_v15 = vor.u32 %v5083_v48, %v9664_v4  ;;  %v9699_v57 = vrot.slane %v834_v32, 5  ;;  %v220_v32 = vld [vmem:[%s8904_s7 + $0xe8] sm:$0xf] }
 0x14b   : > { %v840_v61 = vrot.slane %v838_v38, 4 }
 0x14c   : > { %v7153_v55 = vmax.f32 %v6897_v43, %v7025_v8  ;;  %v2214_v12 = vpop.f32.mrf.mxu0  ;;  %v6060_v8 = vunpack.c.l.b16 %v5060_v37  ;;  %v5085_v31 = vrot.slane %v5084_v15, 4 }
 0x14d   : > { %v6477_v10 = vpop.f32.mrf.mxu3  ;;  %v3068_v16 = vadd.f32 %v9589_v21, %v2214_v12  ;;  %v803_v21 = vsel %vm8919_vm3, %v798_v13, %v9625_v58  ;;  %v217_v58 = vld [vmem:[%s8904_s7 + $0xdc] sm:$0xf] }
 0x14e   : > { %v9623_v0 = vpop.f32.mrf.mxu2  ;;  %v7281_v5 = vpack.c.bf16 %v7153_v55, %v7153_v55  ;;  %v6766_v17 = vadd.f32 %v6477_v10, %v4340_v60  ;;  %v1794_v54 = vunpack.c.l.b16 %v803_v21  ;;  %v820_v55 = vshll.u32 %v315_v62, 16 }
 0x14f   : > { %7613 = vmatmul.msk.bf16.gmra.mxu0 %vm1957_vm0, %v1900_v11  ;;  %v4341_v35 = vadd.f32 %v4054_v49, %v3068_v16  ;;  %v1793_v49 = vunpack.c.l.b16 %v793_v23  ;;  %v817_v11 = vor.u32 %v816_v53, %v9655_v56  ;;  %v5087_v10 = vshll.u32 %v8500_v59, 16 }
 0x150   : > { %7410 = vst.msk [vmem:[%s9151_s16 + $0x50] sm:$0xf] %vm7389_vm4, %v7281_v5  ;;  %v6898_v24 = vadd.f32 %v9471_v36, %v6766_v17  ;;  %v6168_v16 = vpack.c.b16 %v6061_v9, %v6060_v8  ;;  %v822_v29 = vrot.slane %v820_v55, 5  ;;  %v5105_v62 = vshrl.u32 %v8502_v47, 16 }
 0x151   : > { %v3072_v26 = vpop.f32.mrf.mxu1  ;;  %v1901_v6 = vpack.c.b16 %v1794_v54, %v1793_v49  ;;  %v5092_v54 = vshrl.u32 %v8501_v39, 16  ;;  %v841_v55 = vor.u32 %v840_v61, %v9699_v57 }
 0x152   : > { %v7026_v34 = vmul.f32 0.1, %v6898_v24  ;;  %8637 = vmatmul.msk.bf16.gmra.mxu3 %vm1957_vm0, %v6167_v14 }
 0x153   : > { %8402 = vmatmul.msk.bf16.gmra.mxu2 %vm1957_vm0, %v8772_v7  ;;  %v8773_v7 = vld [vmem:[%s8904_s7 + $0xe4] sm:$0xff] }
 0x154   : > { %7942 = vmatmul.msk.bf16.gmra.mxu1 %vm1957_vm0, %v8704_v20  ;;  %v7154_v40 = vmax.f32 %v6898_v24, %v7026_v34  ;;  %v2216_v44 = vpop.f32.mrf.mxu0  ;;  %v8705_v20 = vld [vmem:[%s8904_s7 + $0xd0] sm:$0xff]  ;;  %v818_v24 = vrot.slane %v817_v11, 4  ;;  %v825_v34 = vshrl.u32 %v217_v58, 16 }
 0x155   : > { %v6480_v46 = vpop.f32.mrf.mxu3  ;;  %v3070_v63 = vadd.f32 %v9615_v1, %v2216_v44  ;;  %v5074_v1 = vor.u32 %v5073_v50, %v9642_v30 }
 0x156   : > { %v4059_v52 = vpop.f32.mrf.mxu2  ;;  %v7282_v45 = vpack.c.bf16 %v7154_v40, %v7154_v40  ;;  %v6767_v42 = vadd.f32 %v6480_v46, %v4341_v35  ;;  %v828_v35 = vshll.u32 %v217_v58, 16  ;;  %v823_v40 = vsel %vm8919_vm3, %v818_v24, %v822_v29 }
 0x157   : > { %v4342_v12 = vadd.f32 %v9623_v0, %v3070_v63  ;;  %v808_v0 = vrot.slane %v807_v3, 4  ;;  %v5075_v23 = vrot.slane %v5074_v1, 4  ;;  %v827_v49 = vrot.slane %v825_v34, 4 }
 0x158   : > { %7411 = vst.msk [vmem:[%s9151_s16 + $0x54] sm:$0xf] %vm7389_vm4, %v7282_v45  ;;  %v6899_v43 = vadd.f32 %v9471_v36, %v6767_v42  ;;  %v830_v37 = vrot.slane %v828_v35, 5  ;;  %v5101_v63 = vshll.u32 %v8502_v47, 16  ;;  %v1796_v48 = vunpack.c.l.b16 %v823_v40 }
 0x159   : > { %v9661_v2 = vpop.f32.mrf.mxu1  ;;  %v813_v41 = vsel %vm8919_vm3, %v808_v0, %v9655_v56  ;;  %v5080_v44 = vsel %vm8919_vm3, %v5075_v23, %v9664_v4  ;;  %v5095_v56 = vshll.u32 %v8501_v39, 16  ;;  %v5094_v3 = vrot.slane %v5092_v54, 4 }
 0x15a   : > { %v7027_v51 = vmul.f32 0.1, %v6899_v43  ;;  %v1795_v4 = vunpack.c.l.b16 %v813_v41  ;;  %v6062_v59 = vunpack.c.l.b16 %v5080_v44  ;;  %v831_v11 = vor.u32 %v830_v37, %v827_v49 }
 0x15b   : > { %v9713_v15 = vrot.slane %v5101_v63, 5 }
 0x15c   : > { %v7155_v60 = vmax.f32 %v6899_v43, %v7027_v51  ;;  %v2219_v14 = vpop.f32.mrf.mxu0  ;;  %v9702_v43 = vld [vmem:[%s8904_s7 + $0xe4] sm:$0xf]  ;;  %v832_v22 = vrot.slane %v831_v11, 4 }
 0x15d   : > { %v6482_v18 = vpop.f32.mrf.mxu3  ;;  %v3073_v17 = vadd.f32 %v3072_v26, %v2219_v14  ;;  %v5089_v26 = vrot.slane %v5087_v10, 5  ;;  %v844_v1 = vshll.u32 %v9702_v43, 16  ;;  %v5107_v10 = vrot.slane %v5105_v62, 4 }
 0x15e   : > { %v9672_v13 = vpop.f32.mrf.mxu2  ;;  %v7283_v19 = vpack.c.bf16 %v7155_v60, %v7155_v60  ;;  %v6768_v5 = vadd.f32 %v6482_v18, %v4342_v12  ;;  %v8503_v60 = vld [vmem:[%s8904_s7 + $0xf8] sm:$0xf]  ;;  %v5097_v12 = vrot.slane %v5095_v56, 5  ;;  %v1902_v18 = vpack.c.b16 %v1796_v48, %v1795_v4 }
 0x15f   : > { %7614 = vmatmul.msk.bf16.gmra.mxu0 %vm1957_vm0, %v1901_v6  ;;  %v4343_v25 = vadd.f32 %v4059_v52, %v3073_v17  ;;  %v5090_v52 = vsel %vm8919_vm3, %v5085_v31, %v5089_v26  ;;  %v5111_v17 = vshll.u32 %v8503_v60, 16  ;;  %v9718_v0 = vrot.slane %v844_v1, 5  ;;  %v8706_v26 = vld [vmem:[%s8904_s7 + $0xdc] sm:$0xff] }
 0x160   : > { %7412 = vst.msk [vmem:[%s9151_s16 + $0x58] sm:$0xf] %vm7389_vm4, %v7283_v19  ;;  %v6900_v21 = vadd.f32 %v9471_v36, %v6768_v5  ;;  %v6063_v9 = vunpack.c.l.b16 %v5090_v52  ;;  %v5098_v24 = vor.u32 %v5097_v12, %v5094_v3  ;;  %v5108_v31 = vor.u32 %v5107_v10, %v9713_v15  ;;  %v316_v3 = vld [vmem:[%s8904_s7 + $0xec] sm:$0x1]  ;;  %v8505_v1 = vld [vmem:[%s8904_s7 + $0x100] sm:$0x1] }
 0x161   : > { %v9682_v30 = vpop.f32.mrf.mxu1  ;;  %v837_v38 = vsel %vm8919_vm3, %v832_v22, %v9699_v57  ;;  %v9735_v39 = vrot.slane %v5111_v17, 5  ;;  %v848_v47 = vshrl.u32 %v9702_v43, 16  ;;  %v858_v52 = vshrl.u32 %v220_v32, 16 }
 0x162   : > { %v7028_v28 = vmul.f32 0.1, %v6900_v21  ;;  %8638 = vmatmul.msk.bf16.gmra.mxu3 %vm1957_vm0, %v6168_v16  ;;  %v6169_v5 = vpack.c.b16 %v6063_v9, %v6062_v59  ;;  %v5099_v40 = vrot.slane %v5098_v24, 4  ;;  %v5109_v44 = vrot.slane %v5108_v31, 4  ;;  %v222_v31 = vld [vmem:[%s8904_s7 + $0xf4] sm:$0xf] }
 0x163   : > { %8403 = vmatmul.msk.bf16.gmra.mxu2 %vm1957_vm0, %v8773_v7  ;;  %v850_v62 = vrot.slane %v848_v47, 4  ;;  %v860_v48 = vrot.slane %v858_v52, 4  ;;  %v8506_v47 = vld [vmem:[%s8904_s7 + $0x104] sm:$0xf] }
 0x164   : > { %7943 = vmatmul.msk.bf16.gmra.mxu1 %vm1957_vm0, %v8705_v20  ;;  %v7156_v27 = vmax.f32 %v6900_v21, %v7028_v28  ;;  %v2221_v46 = vpop.f32.mrf.mxu0  ;;  %v842_v20 = vrot.slane %v841_v55, 4  ;;  %v8504_v28 = vld [vmem:[%s8904_s7 + $0xfc] sm:$0xf]  ;;  %v5104_v43 = vsel %vm8919_vm3, %v5099_v40, %v9713_v15  ;;  %v5114_v63 = vsel %vm8919_vm3, %v5109_v44, %v9735_v39 }
 0x165   : > { %v6485_v45 = vpop.f32.mrf.mxu3  ;;  %v3075_v6 = vadd.f32 %v9661_v2, %v2221_v46  ;;  %v854_v46 = vshll.u32 %v220_v32, 16  ;;  %v5125_v37 = vshrl.u32 %v8504_v28, 16  ;;  %v6065_v15 = vunpack.c.l.b16 %v5114_v63 }
 0x166   : > { %v4064_v42 = vpop.f32.mrf.mxu2  ;;  %v7284_v53 = vpack.c.bf16 %v7156_v27, %v7156_v27  ;;  %v6769_v50 = vadd.f32 %v6485_v45, %v4343_v25  ;;  %v5115_v27 = vshrl.u32 %v8503_v60, 16  ;;  %v5121_v45 = vshll.u32 %v8504_v28, 16 }
 0x167   : > { %v4344_v2 = vadd.f32 %v9672_v13, %v3075_v6  ;;  %v8774_v13 = vld [vmem:[%s8904_s7 + $0xf0] sm:$0xff]  ;;  %v9748_v4 = vrot.slane %v854_v46, 5  ;;  %v5127_v55 = vrot.slane %v5125_v37, 4  ;;  %v851_v10 = vor.u32 %v850_v62, %v9718_v0 }
 0x168   : > { %7413 = vst.msk [vmem:[%s9151_s16 + $0x5c] sm:$0xf] %vm7389_vm4, %v7284_v53  ;;  %v6901_v51 = vadd.f32 %v9471_v36, %v6769_v50  ;;  %v5117_v59 = vrot.slane %v5115_v27, 4  ;;  %v9757_v11 = vrot.slane %v5121_v45, 5  ;;  %v878_v40 = vshll.u32 %v222_v31, 16 }
 0x169   : > { %v9708_v8 = vpop.f32.mrf.mxu1  ;;  %v882_v44 = vshrl.u32 %v222_v31, 16  ;;  %v8507_v45 = vld [vmem:[%s8904_s7 + $0x108] sm:$0xf] }
 0x16a   : > { %v7029_v14 = vmul.f32 0.1, %v6901_v51  ;;  %v5128_v17 = vor.u32 %v5127_v55, %v9757_v11  ;;  %v9792_v63 = vrot.slane %v878_v40, 5  ;;  %v224_v40 = vld [vmem:[%s8904_s7 + $0xfc] sm:$0xf] }
 0x16b   : > { %v884_v62 = vrot.slane %v882_v44, 4 }
 0x16c   : > { %v7157_v58 = vmax.f32 %v6901_v51, %v7029_v14  ;;  %v2224_v19 = vpop.f32.mrf.mxu0  ;;  %v6064_v14 = vunpack.c.l.b16 %v5104_v43  ;;  %v5129_v28 = vrot.slane %v5128_v17, 4 }
 0x16d   : > { %v6487_v16 = vpop.f32.mrf.mxu3  ;;  %v3078_v21 = vadd.f32 %v9682_v30, %v2224_v19  ;;  %v847_v30 = vsel %vm8919_vm3, %v842_v20, %v9718_v0  ;;  %v221_v0 = vld [vmem:[%s8904_s7 + $0xf0] sm:$0xf] }
 0x16e   : > { %v9716_v7 = vpop.f32.mrf.mxu2  ;;  %v7285_v29 = vpack.c.bf16 %v7157_v58, %v7157_v58  ;;  %v6770_v23 = vadd.f32 %v6487_v16, %v4344_v2  ;;  %v1798_v56 = vunpack.c.l.b16 %v847_v30  ;;  %v864_v58 = vshll.u32 %v316_v3, 16 }
 0x16f   : > { %7615 = vmatmul.msk.bf16.gmra.mxu0 %vm1957_vm0, %v1902_v18  ;;  %v4345_v41 = vadd.f32 %v4064_v42, %v3078_v21  ;;  %v1797_v42 = vunpack.c.l.b16 %v837_v38  ;;  %v861_v18 = vor.u32 %v860_v48, %v9748_v4  ;;  %v5131_v16 = vshll.u32 %v8505_v1, 16 }
 0x170   : > { %7414 = vst.msk [vmem:[%s9151_s16 + $0x60] sm:$0xf] %vm7389_vm4, %v7285_v29  ;;  %v6902_v34 = vadd.f32 %v9471_v36, %v6770_v23  ;;  %v6170_v21 = vpack.c.b16 %v6065_v15, %v6064_v14  ;;  %v866_v32 = vrot.slane %v864_v58, 5  ;;  %v5149_v3 = vshrl.u32 %v8507_v45, 16 }
 0x171   : > { %v3082_v35 = vpop.f32.mrf.mxu1  ;;  %v1903_v12 = vpack.c.b16 %v1798_v56, %v1797_v42  ;;  %v5136_v56 = vshrl.u32 %v8506_v47, 16  ;;  %v885_v58 = vor.u32 %v884_v62, %v9792_v63 }
 0x172   : > { %v7030_v25 = vmul.f32 0.1, %v6902_v34  ;;  %8639 = vmatmul.msk.bf16.gmra.mxu3 %vm1957_vm0, %v6169_v5 }
 0x173   : > { %8404 = vmatmul.msk.bf16.gmra.mxu2 %vm1957_vm0, %v8774_v13  ;;  %v8775_v13 = vld [vmem:[%s8904_s7 + $0xf8] sm:$0xff]  ;;  %v886_v31 = vrot.slane %v885_v58, 4 }
 0x174   : > { %7944 = vmatmul.msk.bf16.gmra.mxu1 %vm1957_vm0, %v8706_v26  ;;  %v7158_v49 = vmax.f32 %v6902_v34, %v7030_v25  ;;  %v2226_v54 = vpop.f32.mrf.mxu0  ;;  %v8707_v26 = vld [vmem:[%s8904_s7 + $0xe4] sm:$0xff]  ;;  %v862_v34 = vrot.slane %v861_v18, 4  ;;  %v869_v25 = vshrl.u32 %v221_v0, 16 }
 0x175   : > { %v6490_v57 = vpop.f32.mrf.mxu3  ;;  %v3080_v6 = vadd.f32 %v9708_v8, %v2226_v54  ;;  %v5118_v8 = vor.u32 %v5117_v59, %v9735_v39 }
 0x176   : > { %v4069_v61 = vpop.f32.mrf.mxu2  ;;  %v7286_v53 = vpack.c.bf16 %v7158_v49, %v7158_v49  ;;  %v6771_v50 = vadd.f32 %v6490_v57, %v4345_v41  ;;  %v872_v41 = vshll.u32 %v221_v0, 16  ;;  %v867_v49 = vsel %vm8919_vm3, %v862_v34, %v866_v32 }
 0x177   : > { %v4346_v19 = vadd.f32 %v9716_v7, %v3080_v6  ;;  %v852_v7 = vrot.slane %v851_v10, 4  ;;  %v5119_v38 = vrot.slane %v5118_v8, 4  ;;  %v871_v42 = vrot.slane %v869_v25, 4 }
 0x178   : > { %7415 = vst.msk [vmem:[%s9151_s16 + $0x64] sm:$0xf] %vm7389_vm4, %v7286_v53  ;;  %v6903_v51 = vadd.f32 %v9471_v36, %v6771_v50  ;;  %v874_v43 = vrot.slane %v872_v41, 5  ;;  %v5145_v6 = vshll.u32 %v8507_v45, 16  ;;  %v1800_v55 = vunpack.c.l.b16 %v867_v49 }
 0x179   : > { %v9754_v9 = vpop.f32.mrf.mxu1  ;;  %v857_v52 = vsel %vm8919_vm3, %v852_v7, %v9748_v4  ;;  %v5124_v54 = vsel %vm8919_vm3, %v5119_v38, %v9757_v11  ;;  %v5139_v4 = vshll.u32 %v8506_v47, 16  ;;  %v5138_v10 = vrot.slane %v5136_v56, 4 }
 0x17a   : > { %v7031_v60 = vmul.f32 0.1, %v6903_v51  ;;  %v1799_v11 = vunpack.c.l.b16 %v857_v52  ;;  %v6066_v1 = vunpack.c.l.b16 %v5124_v54  ;;  %v875_v18 = vor.u32 %v874_v43, %v871_v42 }
 0x17b   : > { %v9806_v17 = vrot.slane %v5145_v6, 5 }
 0x17c   : > { %v7159_v2 = vmax.f32 %v6903_v51, %v7031_v60  ;;  %v2229_v5 = vpop.f32.mrf.mxu0  ;;  %v9795_v51 = vld [vmem:[%s8904_s7 + $0xf8] sm:$0xf] }
 0x17d   : > { %v6492_v22 = vpop.f32.mrf.mxu3  ;;  %v3083_v23 = vadd.f32 %v3082_v35, %v2229_v5  ;;  %v5133_v35 = vrot.slane %v5131_v16, 5  ;;  %v888_v8 = vshll.u32 %v9795_v51, 16  ;;  %v5151_v16 = vrot.slane %v5149_v3, 4 }
 0x17e   : > { %v9765_v20 = vpop.f32.mrf.mxu2  ;;  %v7287_v24 = vpack.c.bf16 %v7159_v2, %v7159_v2  ;;  %v6772_v29 = vadd.f32 %v6492_v22, %v4346_v19  ;;  %v8508_v2 = vld [vmem:[%s8904_s7 + $0x10c] sm:$0xf]  ;;  %v5141_v19 = vrot.slane %v5139_v4, 5  ;;  %v1904_v22 = vpack.c.b16 %v1800_v55, %v1799_v11 }
 0x17f   : > { %7616 = vmatmul.msk.bf16.gmra.mxu0 %vm1957_vm0, %v1903_v12  ;;  %v4347_v46 = vadd.f32 %v4069_v61, %v3083_v23  ;;  %v5134_v61 = vsel %vm8919_vm3, %v5129_v28, %v5133_v35  ;;  %v8708_v28 = vld [vmem:[%s8904_s7 + $0xf0] sm:$0xff]  ;;  %v9823_v35 = vld [vmem:[%s11730_s2] ss:$0 sm:$0xff]  ;;  %v892_v45 = vshrl.u32 %v9795_v51, 16 }
 0x180   : > { %7416 = vst.msk [vmem:[%s9151_s16 + $0x68] sm:$0xf] %vm7389_vm4, %v7287_v24  ;;  %v6904_v30 = vadd.f32 %v9471_v36, %v6772_v29  ;;  %v6067_v15 = vunpack.c.l.b16 %v5134_v61  ;;  %v5155_v29 = vshll.u32 %v8508_v2, 16  ;;  %v5142_v7 = vor.u32 %v5141_v19, %v5138_v10  ;;  %v317_v10 = vld [vmem:[%s8904_s7 + $0x100] sm:$0x1] }
 0x181   : > { %v9775_v39 = vpop.f32.mrf.mxu1  ;;  %v902_v61 = vshrl.u32 %v224_v40, 16  ;;  %v894_v3 = vrot.slane %v892_v45, 4  ;;  %v8511_v45 = vld [vmem:[%s8904_s7 + $0x118] sm:$0xf] }
 0x182   : > { %v7032_v27 = vmul.f32 0.1, %v6904_v30  ;;  %8640 = vmatmul.msk.bf16.gmra.mxu3 %vm1957_vm0, %v6170_v21  ;;  %v6171_v24 = vpack.c.b16 %v6067_v15, %v6066_v1  ;;  %v9833_v47 = vrot.slane %v5155_v29, 5  ;;  %v5143_v49 = vrot.slane %v5142_v7, 4 }
 0x183   : > { %8405 = vmatmul.msk.bf16.gmra.mxu2 %vm1957_vm0, %v8775_v13  ;;  %v876_v13 = vrot.slane %v875_v18, 4  ;;  %v904_v55 = vrot.slane %v902_v61, 4 }
 0x184   : > { %7945 = vmatmul.msk.bf16.gmra.mxu1 %vm1957_vm0, %v8707_v26  ;;  %v7160_v37 = vmax.f32 %v6904_v30, %v7032_v27  ;;  %v2231_v57 = vpop.f32.mrf.mxu0  ;;  %v9811_v26 = vrot.slane %v888_v8, 5  ;;  %v5152_v30 = vor.u32 %v5151_v16, %v9806_v17  ;;  %v8509_v27 = vld [vmem:[%s8904_s7 + $0x110] sm:$0xf]  ;;  %v5148_v51 = vsel %vm8919_vm3, %v5143_v49, %v9806_v17  ;;  %v8510_v8 = vld [vmem:[%s8904_s7 + $0x114] sm:$0x1] }
 0x185   : > { %v6495_v53 = vpop.f32.mrf.mxu3  ;;  %v3085_v12 = vadd.f32 %v9754_v9, %v2231_v57  ;;  %v898_v57 = vshll.u32 %v224_v40, 16  ;;  %v5169_v43 = vshrl.u32 %v8509_v27, 16 }
 0x186   : > { %v4074_v50 = vpop.f32.mrf.mxu2  ;;  %v7288_v48 = vpack.c.bf16 %v7160_v37, %v7160_v37  ;;  %v6773_v59 = vadd.f32 %v6495_v53, %v4347_v46  ;;  %v891_v44 = vsel %vm8919_vm3, %v886_v31, %v9811_v26  ;;  %v5153_v54 = vrot.slane %v5152_v30, 4  ;;  %v226_v30 = vld [vmem:[%s8904_s7 + $0x108] sm:$0xf] }
 0x187   : > { %v4348_v9 = vadd.f32 %v9765_v20, %v3085_v12  ;;  %v8776_v20 = vld [vmem:[%s8904_s7 + $0x104] sm:$0xff]  ;;  %v5159_v37 = vshrl.u32 %v8508_v2, 16  ;;  %v5165_v53 = vshll.u32 %v8509_v27, 16  ;;  %v1802_v4 = vunpack.c.l.b16 %v891_v44 }
 0x188   : > { %7417 = vst.msk [vmem:[%s9151_s16 + $0x6c] sm:$0xf] %vm7389_vm4, %v7288_v48  ;;  %v6905_v60 = vadd.f32 %v9471_v36, %v6773_v59  ;;  %v5158_v6 = vsel %vm8919_vm3, %v5153_v54, %v9833_v47  ;;  %v9846_v11 = vrot.slane %v898_v57, 5  ;;  %v5171_v58 = vrot.slane %v5169_v43, 4 }
 0x189   : > { %v9801_v14 = vpop.f32.mrf.mxu1  ;;  %v5161_v1 = vrot.slane %v5159_v37, 4  ;;  %v9855_v18 = vrot.slane %v5165_v53, 5  ;;  %v6069_v17 = vunpack.c.l.b16 %v5158_v6  ;;  %v895_v16 = vor.u32 %v894_v3, %v9811_v26  ;;  %v225_v26 = vld [vmem:[%s8904_s7 + $0x104] sm:$0xf]  ;;  %v8512_v53 = vld [vmem:[%s8904_s7 + $0x11c] sm:$0xf] }
 0x18a   : > { %v7033_v5 = vmul.f32 0.1, %v6905_v60  ;;  %v922_v49 = vshll.u32 %v226_v30, 16  ;;  %v926_v54 = vshrl.u32 %v226_v30, 16 }
 0x18b   : > { %v5172_v29 = vor.u32 %v5171_v58, %v9855_v18 }
 0x18c   : > { %v7161_v36 = vmax.f32 %v6905_v60, %v7033_v5  ;;  %v2234_v0 = vpop.f32.mrf.mxu0  ;;  %v6068_v5 = vunpack.c.l.b16 %v5148_v51  ;;  %v9890_v6 = vrot.slane %v922_v49, 5  ;;  %v928_v3 = vrot.slane %v926_v54, 4  ;;  %v228_v49 = vld [vmem:[%s8904_s7 + $0x110] sm:$0xf] }
 0x18d   : > { %v6497_v23 = vpop.f32.mrf.mxu3  ;;  %v3088_v38 = vadd.f32 %v9775_v39, %v2234_v0  ;;  %v881_v39 = vsel %vm8919_vm3, %v876_v13, %v9792_v63  ;;  %v5173_v27 = vrot.slane %v5172_v29, 4 }
 0x18e   : > { %v9809_v21 = vpop.f32.mrf.mxu2  ;;  %v7289_v34 = vpack.c.bf16 %v7161_v36, %v7161_v36  ;;  %v6774_v32 = vadd.f32 %v6497_v23, %v4348_v9  ;;  %v908_v36 = vshll.u32 %v317_v10, 16  ;;  %v5175_v23 = vshll.u32 %v8510_v8, 16 }
 0x18f   : > { %7617 = vmatmul.msk.bf16.gmra.mxu0 %vm1957_vm0, %v1904_v22  ;;  %v4349_v52 = vadd.f32 %v4074_v50, %v3088_v38  ;;  %v1801_v50 = vunpack.c.l.b16 %v881_v39  ;;  %v905_v22 = vor.u32 %v904_v55, %v9846_v11  ;;  %v6172_v38 = vpack.c.b16 %v6069_v17, %v6068_v5 }
 0x190   : > { %7418 = vst.msk [vmem:[%s9151_s16 + $0x70] sm:$0xf] %vm7389_vm4, %v7289_v34  ;;  %v6906_v25 = vadd.f32 %v9823_v35, %v6774_v32  ;;  %v910_v40 = vrot.slane %v908_v36, 5  ;;  %v5193_v10 = vshrl.u32 %v8512_v53, 16  ;;  %v929_v36 = vor.u32 %v928_v3, %v9890_v6 }
 0x191   : > { %v3092_v41 = vpop.f32.mrf.mxu1  ;;  %v1905_v19 = vpack.c.b16 %v1802_v4, %v1801_v50  ;;  %v5180_v4 = vshrl.u32 %v8511_v45, 16 }
 0x192   : > { %v7034_v46 = vmul.f32 0.1, %v6906_v25  ;;  %8641 = vmatmul.msk.bf16.gmra.mxu3 %vm1957_vm0, %v6171_v24 }
 0x193   : > { %8406 = vmatmul.msk.bf16.gmra.mxu2 %vm1957_vm0, %v8776_v20  ;;  %v8777_v20 = vld [vmem:[%s8904_s7 + $0x10c] sm:$0xff] }
 0x194   : > { %7946 = vmatmul.msk.bf16.gmra.mxu1 %vm1957_vm0, %v8708_v28  ;;  %v7162_v42 = vmax.f32 %v6906_v25, %v7034_v46  ;;  %v2236_v56 = vpop.f32.mrf.mxu0  ;;  %v8709_v28 = vld [vmem:[%s8904_s7 + $0xf8] sm:$0xff]  ;;  %v906_v25 = vrot.slane %v905_v22, 4  ;;  %v913_v46 = vshrl.u32 %v225_v26, 16 }
 0x195   : > { %v6500_v63 = vpop.f32.mrf.mxu3  ;;  %v3090_v12 = vadd.f32 %v9801_v14, %v2236_v56  ;;  %v5162_v14 = vor.u32 %v5161_v1, %v9833_v47 }
 0x196   : > { %v4079_v62 = vpop.f32.mrf.mxu2  ;;  %v7290_v48 = vpack.c.bf16 %v7162_v42, %v7162_v42  ;;  %v6775_v59 = vadd.f32 %v6500_v63, %v4349_v52  ;;  %v916_v52 = vshll.u32 %v225_v26, 16  ;;  %v911_v42 = vsel %vm8919_vm3, %v906_v25, %v910_v40 }
 0x197   : > { %v4350_v0 = vadd.f32 %v9809_v21, %v3090_v12  ;;  %v896_v21 = vrot.slane %v895_v16, 4  ;;  %v5163_v39 = vrot.slane %v5162_v14, 4  ;;  %v915_v50 = vrot.slane %v913_v46, 4 }
 0x198   : > { %7419 = vst.msk [vmem:[%s9151_s16 + $0x74] sm:$0xf] %vm7389_vm4, %v7290_v48  ;;  %v6907_v60 = vadd.f32 %v9823_v35, %v6775_v59  ;;  %v918_v51 = vrot.slane %v916_v52, 5  ;;  %v5189_v12 = vshll.u32 %v8512_v53, 16  ;;  %v1804_v58 = vunpack.c.l.b16 %v911_v42 }
 0x199   : > { %v9852_v15 = vpop.f32.mrf.mxu1  ;;  %v901_v61 = vsel %vm8919_vm3, %v896_v21, %v9846_v11  ;;  %v5168_v56 = vsel %vm8919_vm3, %v5163_v39, %v9855_v18  ;;  %v5183_v11 = vshll.u32 %v8511_v45, 16  ;;  %v5182_v16 = vrot.slane %v5180_v4, 4 }
 0x19a   : > { %v7035_v2 = vmul.f32 0.1, %v6907_v60  ;;  %v1803_v18 = vunpack.c.l.b16 %v901_v61  ;;  %v6070_v8 = vunpack.c.l.b16 %v5168_v56  ;;  %v919_v22 = vor.u32 %v918_v51, %v915_v50 }
 0x19b   : > { %v9904_v29 = vrot.slane %v5189_v12, 5 }
 0x19c   : > { %v7163_v9 = vmax.f32 %v6907_v60, %v7035_v2  ;;  %v2239_v24 = vpop.f32.mrf.mxu0  ;;  %v9893_v60 = vld [vmem:[%s8904_s7 + $0x10c] sm:$0xf]  ;;  %v920_v30 = vrot.slane %v919_v22, 4 }
 0x19d   : > { %v6502_v13 = vpop.f32.mrf.mxu3  ;;  %v3093_v32 = vadd.f32 %v3092_v41, %v2239_v24  ;;  %v5177_v41 = vrot.slane %v5175_v23, 5  ;;  %v932_v14 = vshll.u32 %v9893_v60, 16  ;;  %v5195_v23 = vrot.slane %v5193_v10, 4 }
 0x19e   : > { %v9863_v31 = vpop.f32.mrf.mxu2  ;;  %v7291_v7 = vpack.c.bf16 %v7163_v9, %v7163_v9  ;;  %v6776_v34 = vadd.f32 %v6502_v13, %v4350_v0  ;;  %v8513_v9 = vld [vmem:[%s8904_s7 + $0x120] sm:$0xf]  ;;  %v5185_v0 = vrot.slane %v5183_v11, 5  ;;  %v1906_v13 = vpack.c.b16 %v1804_v58, %v1803_v18 }
 0x19f   : > { %7618 = vmatmul.msk.bf16.gmra.mxu0 %vm1957_vm0, %v1905_v19  ;;  %v4351_v57 = vadd.f32 %v4079_v62, %v3093_v32  ;;  %v5178_v62 = vsel %vm8919_vm3, %v5173_v27, %v5177_v41  ;;  %v5199_v32 = vshll.u32 %v8513_v9, 16  ;;  %v9909_v21 = vrot.slane %v932_v14, 5  ;;  %v8710_v41 = vld [vmem:[%s8904_s7 + $0x104] sm:$0xff] }
 0x1a0   : > { %7420 = vst.msk [vmem:[%s9151_s16 + $0x78] sm:$0xf] %vm7389_vm4, %v7291_v7  ;;  %v6908_v44 = vadd.f32 %v9823_v35, %v6776_v34  ;;  %v6071_v17 = vunpack.c.l.b16 %v5178_v62  ;;  %v5186_v25 = vor.u32 %v5185_v0, %v5182_v16  ;;  %v5196_v27 = vor.u32 %v5195_v23, %v9904_v29  ;;  %v318_v16 = vld [vmem:[%s8904_s7 + $0x114] sm:$0x1]  ;;  %v8515_v14 = vld [vmem:[%s8904_s7 + $0x128] sm:$0x1] }
 0x1a1   : > { %v9873_v47 = vpop.f32.mrf.mxu1  ;;  %v925_v54 = vsel %vm8919_vm3, %v920_v30, %v9890_v6  ;;  %v9926_v45 = vrot.slane %v5199_v32, 5  ;;  %v936_v53 = vshrl.u32 %v9893_v60, 16  ;;  %v946_v62 = vshrl.u32 %v228_v49, 16 }
 0x1a2   : > { %v7036_v37 = vmul.f32 0.1, %v6908_v44  ;;  %8642 = vmatmul.msk.bf16.gmra.mxu3 %vm1957_vm0, %v6172_v38  ;;  %v6173_v34 = vpack.c.b16 %v6071_v17, %v6070_v8  ;;  %v5187_v42 = vrot.slane %v5186_v25, 4  ;;  %v5197_v56 = vrot.slane %v5196_v27, 4  ;;  %v230_v27 = vld [vmem:[%s8904_s7 + $0x11c] sm:$0xf] }
 0x1a3   : > { %8407 = vmatmul.msk.bf16.gmra.mxu2 %vm1957_vm0, %v8777_v20  ;;  %v938_v10 = vrot.slane %v936_v53, 4  ;;  %v948_v58 = vrot.slane %v946_v62, 4  ;;  %v8516_v53 = vld [vmem:[%s8904_s7 + $0x12c] sm:$0xf] }
 0x1a4   : > { %7947 = vmatmul.msk.bf16.gmra.mxu1 %vm1957_vm0, %v8709_v28  ;;  %v7164_v43 = vmax.f32 %v6908_v44, %v7036_v37  ;;  %v2241_v63 = vpop.f32.mrf.mxu0  ;;  %v930_v28 = vrot.slane %v929_v36, 4  ;;  %v8514_v37 = vld [vmem:[%s8904_s7 + $0x124] sm:$0xf]  ;;  %v5192_v60 = vsel %vm8919_vm3, %v5187_v42, %v9904_v29  ;;  %v5202_v12 = vsel %vm8919_vm3, %v5197_v56, %v9926_v45 }
 0x1a5   : > { %v6505_v48 = vpop.f32.mrf.mxu3  ;;  %v3095_v19 = vadd.f32 %v9852_v15, %v2241_v63  ;;  %v942_v63 = vshll.u32 %v228_v49, 16  ;;  %v5213_v51 = vshrl.u32 %v8514_v37, 16  ;;  %v6073_v29 = vunpack.c.l.b16 %v5202_v12 }
 0x1a6   : > { %v4084_v59 = vpop.f32.mrf.mxu2  ;;  %v7292_v55 = vpack.c.bf16 %v7164_v43, %v7164_v43  ;;  %v6777_v1 = vadd.f32 %v6505_v48, %v4351_v57  ;;  %v5203_v43 = vshrl.u32 %v8513_v9, 16  ;;  %v5209_v48 = vshll.u32 %v8514_v37, 16 }
 0x1a7   : > { %v4352_v15 = vadd.f32 %v9863_v31, %v3095_v19  ;;  %v8778_v31 = vld [vmem:[%s8904_s7 + $0x118] sm:$0xff]  ;;  %v9939_v18 = vrot.slane %v942_v63, 5  ;;  %v5215_v36 = vrot.slane %v5213_v51, 4  ;;  %v939_v23 = vor.u32 %v938_v10, %v9909_v21 }
 0x1a8   : > { %7421 = vst.msk [vmem:[%s9151_s16 + $0x7c] sm:$0xf] %vm7389_vm4, %v7292_v55  ;;  %v6909_v2 = vadd.f32 %v9823_v35, %v6777_v1  ;;  %v5205_v8 = vrot.slane %v5203_v43, 4  ;;  %v9948_v22 = vrot.slane %v5209_v48, 5  ;;  %v966_v42 = vshll.u32 %v230_v27, 16 }
 0x1a9   : > { %v9899_v5 = vpop.f32.mrf.mxu1  ;;  %v970_v56 = vshrl.u32 %v230_v27, 16  ;;  %v8517_v48 = vld [vmem:[%s8904_s7 + $0x130] sm:$0xf] }
 0x1aa   : > { %v7037_v24 = vmul.f32 0.1, %v6909_v2  ;;  %v5216_v32 = vor.u32 %v5215_v36, %v9948_v22  ;;  %v9983_v12 = vrot.slane %v966_v42, 5  ;;  %v232_v42 = vld [vmem:[%s8904_s7 + $0x124] sm:$0xf] }
 0x1ab   : > { %v972_v10 = vrot.slane %v970_v56, 4 }
 0x1ac   : > { %v7165_v26 = vmax.f32 %v6909_v2, %v7037_v24  ;;  %v2244_v7 = vpop.f32.mrf.mxu0  ;;  %v6072_v24 = vunpack.c.l.b16 %v5192_v60  ;;  %v5217_v37 = vrot.slane %v5216_v32, 4 }
 0x1ad   : > { %v6507_v38 = vpop.f32.mrf.mxu3  ;;  %v3098_v44 = vadd.f32 %v9873_v47, %v2244_v7  ;;  %v935_v47 = vsel %vm8919_vm3, %v930_v28, %v9909_v21  ;;  %v229_v21 = vld [vmem:[%s8904_s7 + $0x118] sm:$0xf] }
 0x1ae   : > { %v9907_v20 = vpop.f32.mrf.mxu2  ;;  %v7293_v40 = vpack.c.bf16 %v7165_v26, %v7165_v26  ;;  %v6778_v39 = vadd.f32 %v6507_v38, %v4352_v15  ;;  %v1806_v11 = vunpack.c.l.b16 %v935_v47  ;;  %v952_v26 = vshll.u32 %v318_v16, 16 }
 0x1af   : > { %7619 = vmatmul.msk.bf16.gmra.mxu0 %vm1957_vm0, %v1906_v13  ;;  %v4353_v61 = vadd.f32 %v4084_v59, %v3098_v44  ;;  %v1805_v59 = vunpack.c.l.b16 %v925_v54  ;;  %v949_v13 = vor.u32 %v948_v58, %v9939_v18  ;;  %v5219_v38 = vshll.u32 %v8515_v14, 16 }
 0x1b0   : > { %7422 = vst.msk [vmem:[%s9151_s16 + $0x80] sm:$0xf] %vm7389_vm4, %v7293_v40  ;;  %v6910_v46 = vadd.f32 %v9823_v35, %v6778_v39  ;;  %v6174_v44 = vpack.c.b16 %v6073_v29, %v6072_v24  ;;  %v954_v49 = vrot.slane %v952_v26, 5  ;;  %v5237_v16 = vshrl.u32 %v8517_v48, 16 }
 0x1b1   : > { %v3102_v52 = vpop.f32.mrf.mxu1  ;;  %v1907_v0 = vpack.c.b16 %v1806_v11, %v1805_v59  ;;  %v5224_v11 = vshrl.u32 %v8516_v53, 16  ;;  %v973_v26 = vor.u32 %v972_v10, %v9983_v12 }
 0x1b2   : > { %v7038_v57 = vmul.f32 0.1, %v6910_v46  ;;  %8643 = vmatmul.msk.bf16.gmra.mxu3 %vm1957_vm0, %v6173_v34 }
 0x1b3   : > { %8408 = vmatmul.msk.bf16.gmra.mxu2 %vm1957_vm0, %v8778_v31  ;;  %v8779_v31 = vld [vmem:[%s8904_s7 + $0x120] sm:$0xff] }
 0x1b4   : > { %7948 = vmatmul.msk.bf16.gmra.mxu1 %vm1957_vm0, %v8710_v41  ;;  %v7166_v50 = vmax.f32 %v6910_v46, %v7038_v57  ;;  %v2246_v4 = vpop.f32.mrf.mxu0  ;;  %v8711_v41 = vld [vmem:[%s8904_s7 + $0x10c] sm:$0xff]  ;;  %v950_v46 = vrot.slane %v949_v13, 4  ;;  %v957_v57 = vshrl.u32 %v229_v21, 16 }
 0x1b5   : > { %v6510_v6 = vpop.f32.mrf.mxu3  ;;  %v3100_v19 = vadd.f32 %v9899_v5, %v2246_v4  ;;  %v5206_v5 = vor.u32 %v5205_v8, %v9926_v45 }
 0x1b6   : > { %v4089_v3 = vpop.f32.mrf.mxu2  ;;  %v7294_v55 = vpack.c.bf16 %v7166_v50, %v7166_v50  ;;  %v6779_v1 = vadd.f32 %v6510_v6, %v4353_v61  ;;  %v960_v61 = vshll.u32 %v229_v21, 16  ;;  %v955_v50 = vsel %vm8919_vm3, %v950_v46, %v954_v49 }
 0x1b7   : > { %v4354_v7 = vadd.f32 %v9907_v20, %v3100_v19  ;;  %v940_v20 = vrot.slane %v939_v23, 4  ;;  %v5207_v54 = vrot.slane %v5206_v5, 4  ;;  %v959_v59 = vrot.slane %v957_v57, 4 }
 0x1b8   : > { %7423 = vst.msk [vmem:[%s9151_s16 + $0x84] sm:$0xf] %vm7389_vm4, %v7294_v55  ;;  %v6911_v2 = vadd.f32 %v9823_v35, %v6779_v1  ;;  %v962_v60 = vrot.slane %v960_v61, 5  ;;  %v5233_v19 = vshll.u32 %v8517_v48, 16  ;;  %v1808_v36 = vunpack.c.l.b16 %v955_v50 }
 0x1b9   : > { %v9945_v17 = vpop.f32.mrf.mxu1  ;;  %v945_v62 = vsel %vm8919_vm3, %v940_v20, %v9939_v18  ;;  %v5212_v4 = vsel %vm8919_vm3, %v5207_v54, %v9948_v22  ;;  %v5227_v18 = vshll.u32 %v8516_v53, 16  ;;  %v5226_v23 = vrot.slane %v5224_v11, 4 }
 0x1ba   : > { %v7039_v9 = vmul.f32 0.1, %v6911_v2  ;;  %v1807_v22 = vunpack.c.l.b16 %v945_v62  ;;  %v6074_v14 = vunpack.c.l.b16 %v5212_v4  ;;  %v963_v13 = vor.u32 %v962_v60, %v959_v59 }
 0x1bb   : > { %v9997_v32 = vrot.slane %v5233_v19, 5 }
 0x1bc   : > { %v7167_v15 = vmax.f32 %v6911_v2, %v7039_v9  ;;  %v2249_v34 = vpop.f32.mrf.mxu0  ;;  %v9986_v2 = vld [vmem:[%s8904_s7 + $0x120] sm:$0xf]  ;;  %v964_v27 = vrot.slane %v963_v13, 4 }
 0x1bd   : > { %v6512_v30 = vpop.f32.mrf.mxu3  ;;  %v3103_v39 = vadd.f32 %v3102_v52, %v2249_v34  ;;  %v5221_v52 = vrot.slane %v5219_v38, 5  ;;  %v976_v5 = vshll.u32 %v9986_v2, 16  ;;  %v5239_v38 = vrot.slane %v5237_v16, 4 }
 0x1be   : > { %v9956_v28 = vpop.f32.mrf.mxu2  ;;  %v7295_v25 = vpack.c.bf16 %v7167_v15, %v7167_v15  ;;  %v6780_v40 = vadd.f32 %v6512_v30, %v4354_v7  ;;  %v8518_v15 = vld [vmem:[%s8904_s7 + $0x134] sm:$0xf]  ;;  %v5229_v7 = vrot.slane %v5227_v18, 5  ;;  %v1908_v30 = vpack.c.b16 %v1808_v36, %v1807_v22 }
 0x1bf   : > { %7620 = vmatmul.msk.bf16.gmra.mxu0 %vm1957_vm0, %v1907_v0  ;;  %v4355_v63 = vadd.f32 %v4089_v3, %v3103_v39  ;;  %v5222_v3 = vsel %vm8919_vm3, %v5217_v37, %v5221_v52  ;;  %v5243_v39 = vshll.u32 %v8518_v15, 16  ;;  %v10002_v20 = vrot.slane %v976_v5, 5  ;;  %v8712_v52 = vld [vmem:[%s8904_s7 + $0x118] sm:$0xff] }
 0x1c0   : > { %7424 = vst.msk [vmem:[%s9151_s16 + $0x88] sm:$0xf] %vm7389_vm4, %v7295_v25  ;;  %v6912_v47 = vadd.f32 %v9823_v35, %v6780_v40  ;;  %v6075_v29 = vunpack.c.l.b16 %v5222_v3  ;;  %v5230_v46 = vor.u32 %v5229_v7, %v5226_v23  ;;  %v5240_v37 = vor.u32 %v5239_v38, %v9997_v32  ;;  %v319_v23 = vld [vmem:[%s8904_s7 + $0x128] sm:$0x1]  ;;  %v8520_v5 = vld [vmem:[%s8904_s7 + $0x13c] sm:$0x1] }
 0x1c1   : > { %v9966_v45 = vpop.f32.mrf.mxu1  ;;  %v969_v56 = vsel %vm8919_vm3, %v964_v27, %v9983_v12  ;;  %v10019_v53 = vrot.slane %v5243_v39, 5  ;;  %v980_v48 = vshrl.u32 %v9986_v2, 16  ;;  %v990_v3 = vshrl.u32 %v232_v42, 16 }
 0x1c2   : > { %v7040_v43 = vmul.f32 0.1, %v6912_v47  ;;  %8644 = vmatmul.msk.bf16.gmra.mxu3 %vm1957_vm0, %v6174_v44  ;;  %v6175_v40 = vpack.c.b16 %v6075_v29, %v6074_v14  ;;  %v5231_v50 = vrot.slane %v5230_v46, 4  ;;  %v5241_v4 = vrot.slane %v5240_v37, 4  ;;  %v234_v37 = vld [vmem:[%s8904_s7 + $0x130] sm:$0xf] }
 0x1c3   : > { %8409 = vmatmul.msk.bf16.gmra.mxu2 %vm1957_vm0, %v8779_v31  ;;  %v982_v16 = vrot.slane %v980_v48, 4  ;;  %v992_v36 = vrot.slane %v990_v3, 4  ;;  %v8521_v48 = vld [vmem:[%s8904_s7 + $0x140] sm:$0xf] }
 0x1c4   : > { %7949 = vmatmul.msk.bf16.gmra.mxu1 %vm1957_vm0, %v8711_v41  ;;  %v7168_v51 = vmax.f32 %v6912_v47, %v7040_v43  ;;  %v2251_v6 = vpop.f32.mrf.mxu0  ;;  %v974_v41 = vrot.slane %v973_v26, 4  ;;  %v8519_v43 = vld [vmem:[%s8904_s7 + $0x138] sm:$0xf]  ;;  %v5236_v2 = vsel %vm8919_vm3, %v5231_v50, %v9997_v32  ;;  %v5246_v19 = vsel %vm8919_vm3, %v5241_v4, %v10019_v53 }
 0x1c5   : > { %v6515_v55 = vpop.f32.mrf.mxu3  ;;  %v3105_v0 = vadd.f32 %v9945_v17, %v2251_v6  ;;  %v986_v6 = vshll.u32 %v232_v42, 16  ;;  %v5257_v60 = vshrl.u32 %v8519_v43, 16  ;;  %v6077_v32 = vunpack.c.l.b16 %v5246_v19 }
 0x1c6   : > { %v4094_v1 = vpop.f32.mrf.mxu2  ;;  %v7296_v58 = vpack.c.bf16 %v7168_v51, %v7168_v51  ;;  %v6781_v8 = vadd.f32 %v6515_v55, %v4355_v63  ;;  %v5247_v51 = vshrl.u32 %v8518_v15, 16  ;;  %v5253_v55 = vshll.u32 %v8519_v43, 16 }
 0x1c7   : > { %v4356_v17 = vadd.f32 %v9956_v28, %v3105_v0  ;;  %v8780_v28 = vld [vmem:[%s8904_s7 + $0x12c] sm:$0xff]  ;;  %v10032_v22 = vrot.slane %v986_v6, 5  ;;  %v5259_v26 = vrot.slane %v5257_v60, 4  ;;  %v983_v38 = vor.u32 %v982_v16, %v10002_v20 }
 0x1c8   : > { %7425 = vst.msk [vmem:[%s9151_s16 + $0x8c] sm:$0xf] %vm7389_vm4, %v7296_v58  ;;  %v6913_v9 = vadd.f32 %v9823_v35, %v6781_v8  ;;  %v5249_v14 = vrot.slane %v5247_v51, 4  ;;  %v10041_v13 = vrot.slane %v5253_v55, 5  ;;  %v1010_v50 = vshll.u32 %v234_v37, 16 }
 0x1c9   : > { %v9992_v24 = vpop.f32.mrf.mxu1  ;;  %v1014_v4 = vshrl.u32 %v234_v37, 16  ;;  %v8522_v55 = vld [vmem:[%s8904_s7 + $0x144] sm:$0xf] }
 0x1ca   : > { %v7041_v34 = vmul.f32 0.1, %v6913_v9  ;;  %v5260_v39 = vor.u32 %v5259_v26, %v10041_v13  ;;  %v10076_v19 = vrot.slane %v1010_v50, 5  ;;  %v236_v50 = vld [vmem:[%s8904_s7 + $0x138] sm:$0xf] }
 0x1cb   : > { %v1016_v16 = vrot.slane %v1014_v4, 4 }
 0x1cc   : > { %v7169_v21 = vmax.f32 %v6913_v9, %v7041_v34  ;;  %v2254_v25 = vpop.f32.mrf.mxu0  ;;  %v6076_v34 = vunpack.c.l.b16 %v5236_v2  ;;  %v5261_v43 = vrot.slane %v5260_v39, 4 }
 0x1cd   : > { %v6517_v44 = vpop.f32.mrf.mxu3  ;;  %v3108_v47 = vadd.f32 %v9966_v45, %v2254_v25  ;;  %v979_v45 = vsel %vm8919_vm3, %v974_v41, %v10002_v20  ;;  %v233_v20 = vld [vmem:[%s8904_s7 + $0x12c] sm:$0xf] }
 0x1ce   : > { %v10000_v31 = vpop.f32.mrf.mxu2  ;;  %v7297_v49 = vpack.c.bf16 %v7169_v21, %v7169_v21  ;;  %v6782_v54 = vadd.f32 %v6517_v44, %v4356_v17  ;;  %v1810_v18 = vunpack.c.l.b16 %v979_v45  ;;  %v996_v21 = vshll.u32 %v319_v23, 16 }
 0x1cf   : > { %7621 = vmatmul.msk.bf16.gmra.mxu0 %vm1957_vm0, %v1908_v30  ;;  %v4357_v62 = vadd.f32 %v4094_v1, %v3108_v47  ;;  %v1809_v1 = vunpack.c.l.b16 %v969_v56  ;;  %v993_v30 = vor.u32 %v992_v36, %v10032_v22  ;;  %v5263_v44 = vshll.u32 %v8520_v5, 16 }
 0x1d0   : > { %7426 = vst.msk [vmem:[%s9151_s16 + $0x90] sm:$0xf] %vm7389_vm4, %v7297_v49  ;;  %v6914_v57 = vadd.f32 %v9823_v35, %v6782_v54  ;;  %v6176_v47 = vpack.c.b16 %v6077_v32, %v6076_v34  ;;  %v998_v42 = vrot.slane %v996_v21, 5  ;;  %v5281_v23 = vshrl.u32 %v8522_v55, 16 }
 0x1d1   : > { %v3112_v61 = vpop.f32.mrf.mxu1  ;;  %v1909_v7 = vpack.c.b16 %v1810_v18, %v1809_v1  ;;  %v5268_v18 = vshrl.u32 %v8521_v48, 16  ;;  %v1017_v21 = vor.u32 %v1016_v16, %v10076_v19 }
 0x1d2   : > { %v7042_v63 = vmul.f32 0.1, %v6914_v57  ;;  %8645 = vmatmul.msk.bf16.gmra.mxu3 %vm1957_vm0, %v6175_v40 }
 0x1d3   : > { %8410 = vmatmul.msk.bf16.gmra.mxu2 %vm1957_vm0, %v8780_v28  ;;  %v8781_v28 = vld [vmem:[%s8904_s7 + $0x134] sm:$0xff] }
 0x1d4   : > { %7950 = vmatmul.msk.bf16.gmra.mxu1 %vm1957_vm0, %v8712_v52  ;;  %v7170_v59 = vmax.f32 %v6914_v57, %v7042_v63  ;;  %v2256_v11 = vpop.f32.mrf.mxu0  ;;  %v8713_v52 = vld [vmem:[%s8904_s7 + $0x120] sm:$0xff]  ;;  %v994_v57 = vrot.slane %v993_v30, 4  ;;  %v1001_v63 = vshrl.u32 %v233_v20, 16 }
 0x1d5   : > { %v6520_v12 = vpop.f32.mrf.mxu3  ;;  %v3110_v0 = vadd.f32 %v9992_v24, %v2256_v11  ;;  %v5250_v24 = vor.u32 %v5249_v14, %v10019_v53 }
 0x1d6   : > { %v4099_v10 = vpop.f32.mrf.mxu2  ;;  %v7298_v58 = vpack.c.bf16 %v7170_v59, %v7170_v59  ;;  %v6783_v8 = vadd.f32 %v6520_v12, %v4357_v62  ;;  %v1004_v62 = vshll.u32 %v233_v20, 16  ;;  %v999_v59 = vsel %vm8919_vm3, %v994_v57, %v998_v42 }
 0x1d7   : > { %v4358_v25 = vadd.f32 %v10000_v31, %v3110_v0  ;;  %v984_v31 = vrot.slane %v983_v38, 4  ;;  %v5251_v56 = vrot.slane %v5250_v24, 4  ;;  %v1003_v1 = vrot.slane %v1001_v63, 4 }
 0x1d8   : > { %7427 = vst.msk [vmem:[%s9151_s16 + $0x94] sm:$0xf] %vm7389_vm4, %v7298_v58  ;;  %v6915_v9 = vadd.f32 %v9823_v35, %v6783_v8  ;;  %v1006_v2 = vrot.slane %v1004_v62, 5  ;;  %v5277_v0 = vshll.u32 %v8522_v55, 16  ;;  %v1812_v26 = vunpack.c.l.b16 %v999_v59 }
 0x1d9   : > { %v10038_v29 = vpop.f32.mrf.mxu1  ;;  %v989_v3 = vsel %vm8919_vm3, %v984_v31, %v10032_v22  ;;  %v5256_v11 = vsel %vm8919_vm3, %v5251_v56, %v10041_v13  ;;  %v5271_v22 = vshll.u32 %v8521_v48, 16  ;;  %v5270_v38 = vrot.slane %v5268_v18, 4 }
 0x1da   : > { %v7043_v15 = vmul.f32 0.1, %v6915_v9  ;;  %v1811_v13 = vunpack.c.l.b16 %v989_v3  ;;  %v6078_v5 = vunpack.c.l.b16 %v5256_v11  ;;  %v1007_v30 = vor.u32 %v1006_v2, %v1003_v1 }
 0x1db   : > { %v10090_v39 = vrot.slane %v5277_v0, 5 }
 0x1dc   : > { %v7171_v17 = vmax.f32 %v6915_v9, %v7043_v15  ;;  %v2259_v40 = vpop.f32.mrf.mxu0  ;;  %v10079_v9 = vld [vmem:[%s8904_s7 + $0x134] sm:$0xf]  ;;  %v1008_v37 = vrot.slane %v1007_v30, 4 }
 0x1dd   : > { %v6522_v27 = vpop.f32.mrf.mxu3  ;;  %v3113_v54 = vadd.f32 %v3112_v61, %v2259_v40  ;;  %v5265_v61 = vrot.slane %v5263_v44, 5  ;;  %v1020_v24 = vshll.u32 %v10079_v9, 16  ;;  %v5283_v44 = vrot.slane %v5281_v23, 4 }
 0x1de   : > { %v10049_v41 = vpop.f32.mrf.mxu2  ;;  %v7299_v46 = vpack.c.bf16 %v7171_v17, %v7171_v17  ;;  %v6784_v49 = vadd.f32 %v6522_v27, %v4358_v25  ;;  %v8523_v17 = vld [vmem:[%s8904_s7 + $0x148] sm:$0xf]  ;;  %v5273_v25 = vrot.slane %v5271_v22, 5  ;;  %v1910_v27 = vpack.c.b16 %v1812_v26, %v1811_v13 }
 0x1df   : > { %7622 = vmatmul.msk.bf16.gmra.mxu0 %vm1957_vm0, %v1909_v7  ;;  %v4359_v6 = vadd.f32 %v4099_v10, %v3113_v54  ;;  %v5266_v10 = vsel %vm8919_vm3, %v5261_v43, %v5265_v61  ;;  %v5287_v54 = vshll.u32 %v8523_v17, 16  ;;  %v10095_v31 = vrot.slane %v1020_v24, 5  ;;  %v8714_v61 = vld [vmem:[%s8904_s7 + $0x12c] sm:$0xff] }
 0x1e0   : > { %7428 = vst.msk [vmem:[%s9151_s16 + $0x98] sm:$0xf] %vm7389_vm4, %v7299_v46  ;;  %v6916_v45 = vadd.f32 %v9823_v35, %v6784_v49  ;;  %v6079_v32 = vunpack.c.l.b16 %v5266_v10  ;;  %v5274_v57 = vor.u32 %v5273_v25, %v5270_v38  ;;  %v5284_v43 = vor.u32 %v5283_v44, %v10090_v39  ;;  %v320_v38 = vld [vmem:[%s8904_s7 + $0x13c] sm:$0x1]  ;;  %v8525_v24 = vld [vmem:[%s8904_s7 + $0x150] sm:$0x1] }
 0x1e1   : > { %v10059_v53 = vpop.f32.mrf.mxu1  ;;  %v1013_v4 = vsel %vm8919_vm3, %v1008_v37, %v10076_v19  ;;  %v10112_v48 = vrot.slane %v5287_v54, 5  ;;  %v1024_v55 = vshrl.u32 %v10079_v9, 16  ;;  %v1034_v10 = vshrl.u32 %v236_v50, 16 }
 0x1e2   : > { %v7044_v51 = vmul.f32 0.1, %v6916_v45  ;;  %8646 = vmatmul.msk.bf16.gmra.mxu3 %vm1957_vm0, %v6176_v47  ;;  %v6177_v49 = vpack.c.b16 %v6079_v32, %v6078_v5  ;;  %v5275_v59 = vrot.slane %v5274_v57, 4  ;;  %v5285_v11 = vrot.slane %v5284_v43, 4  ;;  %v238_v43 = vld [vmem:[%s8904_s7 + $0x144] sm:$0xf] }
 0x1e3   : > { %8411 = vmatmul.msk.bf16.gmra.mxu2 %vm1957_vm0, %v8781_v28  ;;  %v1026_v23 = vrot.slane %v1024_v55, 4  ;;  %v1036_v26 = vrot.slane %v1034_v10, 4  ;;  %v8526_v55 = vld [vmem:[%s8904_s7 + $0x154] sm:$0xf] }
 0x1e4   : > { %7951 = vmatmul.msk.bf16.gmra.mxu1 %vm1957_vm0, %v8713_v52  ;;  %v7172_v60 = vmax.f32 %v6916_v45, %v7044_v51  ;;  %v2261_v12 = vpop.f32.mrf.mxu0  ;;  %v1018_v52 = vrot.slane %v1017_v21, 4  ;;  %v8524_v51 = vld [vmem:[%s8904_s7 + $0x14c] sm:$0xf]  ;;  %v5280_v9 = vsel %vm8919_vm3, %v5275_v59, %v10090_v39  ;;  %v5290_v0 = vsel %vm8919_vm3, %v5285_v11, %v10112_v48 }
 0x1e5   : > { %v6525_v58 = vpop.f32.mrf.mxu3  ;;  %v3115_v7 = vadd.f32 %v10038_v29, %v2261_v12  ;;  %v1030_v12 = vshll.u32 %v236_v50, 16  ;;  %v5301_v2 = vshrl.u32 %v8524_v51, 16  ;;  %v6081_v39 = vunpack.c.l.b16 %v5290_v0 }
 0x1e6   : > { %v4104_v8 = vpop.f32.mrf.mxu2  ;;  %v7300_v36 = vpack.c.bf16 %v7172_v60, %v7172_v60  ;;  %v6785_v14 = vadd.f32 %v6525_v58, %v4359_v6  ;;  %v5291_v60 = vshrl.u32 %v8523_v17, 16  ;;  %v5297_v58 = vshll.u32 %v8524_v51, 16 }
 0x1e7   : > { %v4360_v29 = vadd.f32 %v10049_v41, %v3115_v7  ;;  %v8782_v41 = vld [vmem:[%s8904_s7 + $0x140] sm:$0xff]  ;;  %v10125_v13 = vrot.slane %v1030_v12, 5  ;;  %v5303_v21 = vrot.slane %v5301_v2, 4  ;;  %v1027_v44 = vor.u32 %v1026_v23, %v10095_v31 }
 0x1e8   : > { %7429 = vst.msk [vmem:[%s9151_s16 + $0x9c] sm:$0xf] %vm7389_vm4, %v7300_v36  ;;  %v6917_v15 = vadd.f32 %v9823_v35, %v6785_v14  ;;  %v5293_v5 = vrot.slane %v5291_v60, 4  ;;  %v10134_v30 = vrot.slane %v5297_v58, 5  ;;  %v1054_v59 = vshll.u32 %v238_v43, 16 }
 0x1e9   : > { %v10085_v34 = vpop.f32.mrf.mxu1  ;;  %v1058_v11 = vshrl.u32 %v238_v43, 16  ;;  %v5315_v23 = vshll.u32 %v8526_v55, 16 }
 0x1ea   : > { %v7045_v40 = vmul.f32 0.1, %v6917_v15  ;;  %v5304_v54 = vor.u32 %v5303_v21, %v10134_v30 }
 0x1eb   : > { %v1060_v0 = vrot.slane %v1058_v11, 4 }
 0x1ec   : > { %v7173_v20 = vmax.f32 %v6917_v15, %v7045_v40  ;;  %v2264_v46 = vpop.f32.mrf.mxu0  ;;  %v6080_v40 = vunpack.c.l.b16 %v5280_v9  ;;  %v5305_v51 = vrot.slane %v5304_v54, 4  ;;  %v10169_v9 = vrot.slane %v1054_v59, 5  ;;  %v240_v59 = vld [vmem:[%s8904_s7 + $0x14c] sm:$0xf] }
 0x1ed   : > { %v6527_v47 = vpop.f32.mrf.mxu3  ;;  %v3118_v45 = vadd.f32 %v10059_v53, %v2264_v46  ;;  %v1023_v53 = vsel %vm8919_vm3, %v1018_v52, %v10095_v31  ;;  %v237_v31 = vld [vmem:[%s8904_s7 + $0x140] sm:$0xf] }
 0x1ee   : > { %v10093_v28 = vpop.f32.mrf.mxu2  ;;  %v7301_v42 = vpack.c.bf16 %v7173_v20, %v7173_v20  ;;  %v6786_v56 = vadd.f32 %v6527_v47, %v4360_v29  ;;  %v1814_v22 = vunpack.c.l.b16 %v1023_v53  ;;  %v1040_v20 = vshll.u32 %v320_v38, 16 }
 0x1ef   : > { %7623 = vmatmul.msk.bf16.gmra.mxu0 %vm1957_vm0, %v1910_v27  ;;  %v4361_v3 = vadd.f32 %v4104_v8, %v3118_v45  ;;  %v1813_v8 = vunpack.c.l.b16 %v1013_v4  ;;  %v1037_v27 = vor.u32 %v1036_v26, %v10125_v13  ;;  %v5307_v47 = vshll.u32 %v8525_v24, 16  ;;  %v10179_v24 = vld [vmem:[%s11730_s2] ss:$0 sm:$0xff] }
 0x1f0   : > { %7430 = vst.msk [vmem:[%s9151_s16 + $0xa0] sm:$0xf] %vm7389_vm4, %v7301_v42  ;;  %v6918_v63 = vadd.f32 %v9823_v35, %v6786_v56  ;;  %v6178_v45 = vpack.c.b16 %v6081_v39, %v6080_v40  ;;  %v1042_v50 = vrot.slane %v1040_v20, 5  ;;  %v1061_v20 = vor.u32 %v1060_v0, %v10169_v9 }
 0x1f1   : > { %v3122_v62 = vpop.f32.mrf.mxu1  ;;  %v1911_v25 = vpack.c.b16 %v1814_v22, %v1813_v8  ;;  %v5312_v8 = vshrl.u32 %v8526_v55, 16 }
 0x1f2   : > { %v7046_v6 = vmul.f32 0.1, %v6918_v63  ;;  %8647 = vmatmul.msk.bf16.gmra.mxu3 %vm1957_vm0, %v6177_v49 }
 0x1f3   : > { %8412 = vmatmul.msk.bf16.gmra.mxu2 %vm1957_vm0, %v8782_v41  ;;  %v8783_v41 = vld [vmem:[%s8904_s7 + $0x148] sm:$0xff] }
 0x1f4   : > { %7952 = vmatmul.msk.bf16.gmra.mxu1 %vm1957_vm0, %v8714_v61  ;;  %v7174_v1 = vmax.f32 %v6918_v63, %v7046_v6  ;;  %v2266_v18 = vpop.f32.mrf.mxu0  ;;  %v8715_v61 = vld [vmem:[%s8904_s7 + $0x134] sm:$0xff]  ;;  %v1038_v63 = vrot.slane %v1037_v27, 4  ;;  %v1045_v6 = vshrl.u32 %v237_v31, 16 }
 0x1f5   : > { %v6530_v19 = vpop.f32.mrf.mxu3  ;;  %v3120_v7 = vadd.f32 %v10085_v34, %v2266_v18  ;;  %v5294_v34 = vor.u32 %v5293_v5, %v10112_v48  ;;  %v8527_v18 = vld [vmem:[%s8904_s7 + $0x158] sm:$0xf]  ;;  %v10172_v5 = vld [vmem:[%s8904_s7 + $0x148] sm:$0xf] }
 0x1f6   : > { %v4109_v16 = vpop.f32.mrf.mxu2  ;;  %v7302_v36 = vpack.c.bf16 %v7174_v1, %v7174_v1  ;;  %v6787_v14 = vadd.f32 %v6530_v19, %v4361_v3  ;;  %v1048_v3 = vshll.u32 %v237_v31, 16  ;;  %v1043_v10 = vsel %vm8919_vm3, %v1038_v63, %v1042_v50 }
 0x1f7   : > { %v4362_v46 = vadd.f32 %v10093_v28, %v3120_v7  ;;  %v1028_v28 = vrot.slane %v1027_v44, 4  ;;  %v5295_v4 = vrot.slane %v5294_v34, 4  ;;  %v5325_v7 = vshrl.u32 %v8527_v18, 16 }
 0x1f8   : > { %7431 = vst.msk [vmem:[%s9151_s16 + $0xa4] sm:$0xf] %vm7389_vm4, %v7302_v36  ;;  %v6919_v15 = vadd.f32 %v9823_v35, %v6787_v14  ;;  %v1050_v14 = vrot.slane %v1048_v3, 5  ;;  %v5314_v44 = vrot.slane %v5312_v8, 4  ;;  %v1064_v34 = vshll.u32 %v10172_v5, 16 }
 0x1f9   : > { %v10131_v32 = vpop.f32.mrf.mxu1  ;;  %v5300_v1 = vsel %vm8919_vm3, %v5295_v4, %v10134_v30  ;;  %v1816_v30 = vunpack.c.l.b16 %v1043_v10 }
 0x1fa   : > { %v7047_v17 = vmul.f32 0.1, %v6919_v15  ;;  %v6082_v21 = vunpack.c.l.b16 %v5300_v1 }
 0x1fc   : > { %v7175_v29 = vmax.f32 %v6919_v15, %v7047_v17  ;;  %v2269_v49 = vpop.f32.mrf.mxu0  ;;  %v5321_v15 = vshll.u32 %v8527_v18, 16  ;;  %v1068_v18 = vshrl.u32 %v10172_v5, 16 }
 0x1fd   : > { %v6532_v37 = vpop.f32.mrf.mxu3  ;;  %v3123_v56 = vadd.f32 %v3122_v62, %v2269_v49  ;;  %v5309_v62 = vrot.slane %v5307_v47, 5  ;;  %v5327_v47 = vrot.slane %v5325_v7, 4 }
 0x1fe   : > { %v10142_v52 = vpop.f32.mrf.mxu2  ;;  %v7303_v57 = vpack.c.bf16 %v7175_v29, %v7175_v29  ;;  %v6788_v42 = vadd.f32 %v6532_v37, %v4362_v46  ;;  %v8528_v29 = vld [vmem:[%s8904_s7 + $0x15c] sm:$0xf]  ;;  %v5317_v46 = vrot.slane %v5315_v23, 5  ;;  %v10188_v54 = vrot.slane %v5321_v15, 5 }
 0x1ff   : > { %7624 = vmatmul.msk.bf16.gmra.mxu0 %vm1957_vm0, %v1911_v25  ;;  %v4363_v12 = vadd.f32 %v4109_v16, %v3123_v56  ;;  %v5310_v19 = vsel %vm8919_vm3, %v5305_v51, %v5309_v62  ;;  %v1047_v16 = vrot.slane %v1045_v6, 4  ;;  %v5331_v56 = vshll.u32 %v8528_v29, 16  ;;  %v8716_v62 = vld [vmem:[%s8904_s7 + $0x140] sm:$0xff] }
 0x200   : > { %7432 = vst.msk [vmem:[%s9151_s16 + $0xa8] sm:$0xf] %vm7389_vm4, %v7303_v57  ;;  %v6920_v53 = vadd.f32 %v9823_v35, %v6788_v42  ;;  %v1033_v35 = vsel %vm8919_vm3, %v1028_v28, %v10125_v13  ;;  %v6083_v39 = vunpack.c.l.b16 %v5310_v19  ;;  %v10193_v28 = vrot.slane %v1064_v34, 5  ;;  %v8530_v34 = vld [vmem:[%s8904_s7 + $0x164] sm:$0x1] }
 0x201   : > { %v10152_v48 = vpop.f32.mrf.mxu1  ;;  %v1815_v38 = vunpack.c.l.b16 %v1033_v35  ;;  %v1051_v27 = vor.u32 %v1050_v14, %v1047_v16  ;;  %v5318_v63 = vor.u32 %v5317_v46, %v5314_v44  ;;  %v5328_v51 = vor.u32 %v5327_v47, %v10188_v54  ;;  %v321_v44 = vld [vmem:[%s8904_s7 + $0x150] sm:$0x1] }
 0x202   : > { %v7048_v60 = vmul.f32 0.1, %v6920_v53  ;;  %8648 = vmatmul.msk.bf16.gmra.mxu3 %vm1957_vm0, %v6178_v45  ;;  %v6179_v42 = vpack.c.b16 %v6083_v39, %v6082_v21  ;;  %v10210_v55 = vrot.slane %v5331_v56, 5  ;;  %v1078_v19 = vshrl.u32 %v240_v59, 16 }
 0x203   : > { %8413 = vmatmul.msk.bf16.gmra.mxu2 %vm1957_vm0, %v8783_v41  ;;  %v1912_v37 = vpack.c.b16 %v1816_v30, %v1815_v38  ;;  %v1052_v43 = vrot.slane %v1051_v27, 4  ;;  %v5319_v10 = vrot.slane %v5318_v63, 4  ;;  %v5329_v1 = vrot.slane %v5328_v51, 4  ;;  %v242_v51 = vld [vmem:[%s8904_s7 + $0x158] sm:$0xf] }
 0x204   : > { %7953 = vmatmul.msk.bf16.gmra.mxu1 %vm1957_vm0, %v8715_v61  ;;  %v7176_v58 = vmax.f32 %v6920_v53, %v7048_v60  ;;  %v2271_v2 = vpop.f32.mrf.mxu0  ;;  %v1062_v61 = vrot.slane %v1061_v20, 4  ;;  %v8529_v60 = vld [vmem:[%s8904_s7 + $0x160] sm:$0xf]  ;;  %v1070_v7 = vrot.slane %v1068_v18, 4  ;;  %v1080_v30 = vrot.slane %v1078_v19, 4 }
 0x205   : > { %v6535_v22 = vpop.f32.mrf.mxu3  ;;  %v3125_v25 = vadd.f32 %v10131_v32, %v2271_v2  ;;  %v1057_v11 = vsel %vm8919_vm3, %v1052_v43, %v10169_v9  ;;  %v1074_v2 = vshll.u32 %v240_v59, 16  ;;  %v5345_v14 = vshrl.u32 %v8529_v60, 16  ;;  %v8531_v18 = vld [vmem:[%s8904_s7 + $0x168] sm:$0xf] }
 0x206   : > { %v4114_v36 = vpop.f32.mrf.mxu2  ;;  %v7304_v13 = vpack.c.bf16 %v7176_v58, %v7176_v58  ;;  %v6789_v26 = vadd.f32 %v6535_v22, %v4363_v12  ;;  %v5335_v58 = vshrl.u32 %v8528_v29, 16  ;;  %v5341_v22 = vshll.u32 %v8529_v60, 16 }
 0x207   : > { %v4364_v32 = vadd.f32 %v10142_v52, %v3125_v25  ;;  %v8784_v52 = vld [vmem:[%s8904_s7 + $0x154] sm:$0xff]  ;;  %v5324_v5 = vsel %vm8919_vm3, %v5319_v10, %v10188_v54  ;;  %v5334_v15 = vsel %vm8919_vm3, %v5329_v1, %v10210_v55  ;;  %v10223_v38 = vrot.slane %v1074_v2, 5 }
 0x208   : > { %7433 = vst.msk [vmem:[%s9151_s16 + $0xac] sm:$0xf] %vm7389_vm4, %v7304_v13  ;;  %v6921_v17 = vadd.f32 %v10179_v24, %v6789_v26  ;;  %v5337_v21 = vrot.slane %v5335_v58, 4  ;;  %v10232_v27 = vrot.slane %v5341_v22, 5  ;;  %v5347_v20 = vrot.slane %v5345_v14, 4 }
 0x209   : > { %v10183_v40 = vpop.f32.mrf.mxu1  ;;  %v6085_v54 = vunpack.c.l.b16 %v5334_v15  ;;  %v1071_v47 = vor.u32 %v1070_v7, %v10193_v28  ;;  %v1098_v10 = vshll.u32 %v242_v51, 16  ;;  %v1102_v1 = vshrl.u32 %v242_v51, 16  ;;  %v8532_v22 = vld [vmem:[%s8904_s7 + $0x16c] sm:$0xf] }
 0x20a   : > { %v7049_v49 = vmul.f32 0.1, %v6921_v17  ;;  %v5348_v56 = vor.u32 %v5347_v20, %v10232_v27 }
 0x20b   : > { %v10267_v15 = vrot.slane %v1098_v10, 5  ;;  %v1104_v7 = vrot.slane %v1102_v1, 4  ;;  %v244_v10 = vld [vmem:[%s8904_s7 + $0x160] sm:$0xf] }
 0x20c   : > { %v7177_v31 = vmax.f32 %v6921_v17, %v7049_v49  ;;  %v2274_v57 = vpop.f32.mrf.mxu0  ;;  %v6084_v49 = vunpack.c.l.b16 %v5324_v5  ;;  %v5349_v60 = vrot.slane %v5348_v56, 4 }
 0x20d   : > { %v6537_v45 = vpop.f32.mrf.mxu3  ;;  %v3128_v53 = vadd.f32 %v10152_v48, %v2274_v57  ;;  %v1067_v48 = vsel %vm8919_vm3, %v1062_v61, %v10193_v28  ;;  %v241_v28 = vld [vmem:[%s8904_s7 + $0x154] sm:$0xf] }
 0x20e   : > { %v10191_v41 = vpop.f32.mrf.mxu2  ;;  %v7305_v50 = vpack.c.bf16 %v7177_v31, %v7177_v31  ;;  %v6790_v4 = vadd.f32 %v6537_v45, %v4364_v32  ;;  %v1818_v23 = vunpack.c.l.b16 %v1067_v48  ;;  %v1084_v31 = vshll.u32 %v321_v44, 16 }
 0x20f   : > { %7625 = vmatmul.msk.bf16.gmra.mxu0 %vm1957_vm0, %v1912_v37  ;;  %v4365_v35 = vadd.f32 %v4114_v36, %v3128_v53  ;;  %v1817_v36 = vunpack.c.l.b16 %v1057_v11  ;;  %v1081_v37 = vor.u32 %v1080_v30, %v10223_v38  ;;  %v5351_v45 = vshll.u32 %v8530_v34, 16 }
 0x210   : > { %7434 = vst.msk [vmem:[%s9151_s16 + $0xb0] sm:$0xf] %vm7389_vm4, %v7305_v50  ;;  %v6922_v6 = vadd.f32 %v10179_v24, %v6790_v4  ;;  %v6180_v53 = vpack.c.b16 %v6085_v54, %v6084_v49  ;;  %v1086_v59 = vrot.slane %v1084_v31, 5  ;;  %v5369_v44 = vshrl.u32 %v8532_v22, 16 }
 0x211   : > { %v3132_v3 = vpop.f32.mrf.mxu1  ;;  %v1913_v46 = vpack.c.b16 %v1818_v23, %v1817_v36  ;;  %v5356_v23 = vshrl.u32 %v8531_v18, 16  ;;  %v1105_v31 = vor.u32 %v1104_v7, %v10267_v15 }
 0x212   : > { %v7050_v12 = vmul.f32 0.1, %v6922_v6  ;;  %8649 = vmatmul.msk.bf16.gmra.mxu3 %vm1957_vm0, %v6179_v42 }
 0x213   : > { %8414 = vmatmul.msk.bf16.gmra.mxu2 %vm1957_vm0, %v8784_v52  ;;  %v8785_v52 = vld [vmem:[%s8904_s7 + $0x15c] sm:$0xff] }
 0x214   : > { %7954 = vmatmul.msk.bf16.gmra.mxu1 %vm1957_vm0, %v8716_v62  ;;  %v7178_v16 = vmax.f32 %v6922_v6, %v7050_v12  ;;  %v2276_v8 = vpop.f32.mrf.mxu0  ;;  %v8717_v62 = vld [vmem:[%s8904_s7 + $0x148] sm:$0xff]  ;;  %v1082_v6 = vrot.slane %v1081_v37, 4  ;;  %v1089_v12 = vshrl.u32 %v241_v28, 16 }
 0x215   : > { %v6540_v9 = vpop.f32.mrf.mxu3  ;;  %v3130_v25 = vadd.f32 %v10183_v40, %v2276_v8  ;;  %v5338_v40 = vor.u32 %v5337_v21, %v10210_v55 }
 0x216   : > { %v4119_v0 = vpop.f32.mrf.mxu2  ;;  %v7306_v13 = vpack.c.bf16 %v7178_v16, %v7178_v16  ;;  %v6791_v26 = vadd.f32 %v6540_v9, %v4365_v35  ;;  %v1092_v35 = vshll.u32 %v241_v28, 16  ;;  %v1087_v16 = vsel %vm8919_vm3, %v1082_v6, %v1086_v59 }
 0x217   : > { %v4366_v57 = vadd.f32 %v10191_v41, %v3130_v25  ;;  %v1072_v41 = vrot.slane %v1071_v47, 4  ;;  %v5339_v11 = vrot.slane %v5338_v40, 4  ;;  %v1091_v36 = vrot.slane %v1089_v12, 4 }
 0x218   : > { %7435 = vst.msk [vmem:[%s9151_s16 + $0xb4] sm:$0xf] %vm7389_vm4, %v7306_v13  ;;  %v6923_v17 = vadd.f32 %v10179_v24, %v6791_v26  ;;  %v1094_v5 = vrot.slane %v1092_v35, 5  ;;  %v5365_v25 = vshll.u32 %v8532_v22, 16  ;;  %v1820_v20 = vunpack.c.l.b16 %v1087_v16 }
 0x219   : > { %v10229_v39 = vpop.f32.mrf.mxu1  ;;  %v1077_v19 = vsel %vm8919_vm3, %v1072_v41, %v10223_v38  ;;  %v5344_v8 = vsel %vm8919_vm3, %v5339_v11, %v10232_v27  ;;  %v5359_v38 = vshll.u32 %v8531_v18, 16  ;;  %v5358_v47 = vrot.slane %v5356_v23, 4 }
 0x21a   : > { %v7051_v29 = vmul.f32 0.1, %v6923_v17  ;;  %v1819_v27 = vunpack.c.l.b16 %v1077_v19  ;;  %v6086_v34 = vunpack.c.l.b16 %v5344_v8  ;;  %v1095_v37 = vor.u32 %v1094_v5, %v1091_v36 }
 0x21b   : > { %v10281_v56 = vrot.slane %v5365_v25, 5 }
 0x21c   : > { %v7179_v32 = vmax.f32 %v6923_v17, %v7051_v29  ;;  %v2279_v42 = vpop.f32.mrf.mxu0  ;;  %v10270_v17 = vld [vmem:[%s8904_s7 + $0x15c] sm:$0xf]  ;;  %v1096_v51 = vrot.slane %v1095_v37, 4 }
 0x21d   : > { %v6542_v43 = vpop.f32.mrf.mxu3  ;;  %v3133_v4 = vadd.f32 %v3132_v3, %v2279_v42  ;;  %v5353_v3 = vrot.slane %v5351_v45, 5  ;;  %v1108_v40 = vshll.u32 %v10270_v17, 16  ;;  %v5371_v45 = vrot.slane %v5369_v44, 4 }
 0x21e   : > { %v10240_v61 = vpop.f32.mrf.mxu2  ;;  %v7307_v63 = vpack.c.bf16 %v7179_v32, %v7179_v32  ;;  %v6792_v50 = vadd.f32 %v6542_v43, %v4366_v57  ;;  %v8533_v32 = vld [vmem:[%s8904_s7 + $0x170] sm:$0xf]  ;;  %v5361_v57 = vrot.slane %v5359_v38, 5  ;;  %v1914_v43 = vpack.c.b16 %v1820_v20, %v1819_v27 }
 0x21f   : > { %7626 = vmatmul.msk.bf16.gmra.mxu0 %vm1957_vm0, %v1913_v46  ;;  %v4367_v2 = vadd.f32 %v4119_v0, %v3133_v4  ;;  %v5354_v0 = vsel %vm8919_vm3, %v5349_v60, %v5353_v3  ;;  %v5375_v4 = vshll.u32 %v8533_v32, 16  ;;  %v10286_v41 = vrot.slane %v1108_v40, 5  ;;  %v8718_v3 = vld [vmem:[%s8904_s7 + $0x154] sm:$0xff] }
 0x220   : > { %7436 = vst.msk [vmem:[%s9151_s16 + $0xb8] sm:$0xf] %vm7389_vm4, %v7307_v63  ;;  %v6924_v48 = vadd.f32 %v10179_v24, %v6792_v50  ;;  %v6087_v54 = vunpack.c.l.b16 %v5354_v0  ;;  %v5362_v6 = vor.u32 %v5361_v57, %v5358_v47  ;;  %v5372_v60 = vor.u32 %v5371_v45, %v10281_v56  ;;  %v322_v47 = vld [vmem:[%s8904_s7 + $0x164] sm:$0x1]  ;;  %v8535_v40 = vld [vmem:[%s8904_s7 + $0x178] sm:$0x1] }
 0x221   : > { %v10250_v55 = vpop.f32.mrf.mxu1  ;;  %v1101_v1 = vsel %vm8919_vm3, %v1096_v51, %v10267_v15  ;;  %v10303_v18 = vrot.slane %v5375_v4, 5  ;;  %v1112_v22 = vshrl.u32 %v10270_v17, 16  ;;  %v1122_v0 = vshrl.u32 %v244_v10, 16 }
 0x222   : > { %v7052_v58 = vmul.f32 0.1, %v6924_v48  ;;  %8650 = vmatmul.msk.bf16.gmra.mxu3 %vm1957_vm0, %v6180_v53  ;;  %v6181_v50 = vpack.c.b16 %v6087_v54, %v6086_v34  ;;  %v5363_v16 = vrot.slane %v5362_v6, 4  ;;  %v5373_v8 = vrot.slane %v5372_v60, 4  ;;  %v246_v60 = vld [vmem:[%s8904_s7 + $0x16c] sm:$0xf] }
 0x223   : > { %8415 = vmatmul.msk.bf16.gmra.mxu2 %vm1957_vm0, %v8785_v52  ;;  %v1114_v44 = vrot.slane %v1112_v22, 4  ;;  %v1124_v20 = vrot.slane %v1122_v0, 4  ;;  %v8536_v22 = vld [vmem:[%s8904_s7 + $0x17c] sm:$0xf] }
 0x224   : > { %7955 = vmatmul.msk.bf16.gmra.mxu1 %vm1957_vm0, %v8717_v62  ;;  %v7180_v14 = vmax.f32 %v6924_v48, %v7052_v58  ;;  %v2281_v9 = vpop.f32.mrf.mxu0  ;;  %v1106_v62 = vrot.slane %v1105_v31, 4  ;;  %v8534_v58 = vld [vmem:[%s8904_s7 + $0x174] sm:$0xf]  ;;  %v5368_v17 = vsel %vm8919_vm3, %v5363_v16, %v10281_v56  ;;  %v5378_v25 = vsel %vm8919_vm3, %v5373_v8, %v10303_v18 }
 0x225   : > { %v6545_v13 = vpop.f32.mrf.mxu3  ;;  %v3135_v46 = vadd.f32 %v10229_v39, %v2281_v9  ;;  %v1118_v9 = vshll.u32 %v244_v10, 16  ;;  %v5389_v5 = vshrl.u32 %v8534_v58, 16  ;;  %v6089_v56 = vunpack.c.l.b16 %v5378_v25 }
 0x226   : > { %v4124_v26 = vpop.f32.mrf.mxu2  ;;  %v7308_v30 = vpack.c.bf16 %v7180_v14, %v7180_v14  ;;  %v6793_v21 = vadd.f32 %v6545_v13, %v4367_v2  ;;  %v5379_v14 = vshrl.u32 %v8533_v32, 16  ;;  %v5385_v13 = vshll.u32 %v8534_v58, 16 }
 0x227   : > { %v4368_v39 = vadd.f32 %v10240_v61, %v3135_v46  ;;  %v8786_v61 = vld [vmem:[%s8904_s7 + $0x168] sm:$0xff]  ;;  %v10316_v27 = vrot.slane %v1118_v9, 5  ;;  %v5391_v31 = vrot.slane %v5389_v5, 4  ;;  %v1115_v45 = vor.u32 %v1114_v44, %v10286_v41 }
 0x228   : > { %7437 = vst.msk [vmem:[%s9151_s16 + $0xbc] sm:$0xf] %vm7389_vm4, %v7308_v30  ;;  %v6925_v29 = vadd.f32 %v10179_v24, %v6793_v21  ;;  %v5381_v34 = vrot.slane %v5379_v14, 4  ;;  %v10325_v37 = vrot.slane %v5385_v13, 5  ;;  %v1142_v16 = vshll.u32 %v246_v60, 16 }
 0x229   : > { %v10276_v49 = vpop.f32.mrf.mxu1  ;;  %v1146_v8 = vshrl.u32 %v246_v60, 16  ;;  %v8537_v13 = vld [vmem:[%s8904_s7 + $0x180] sm:$0xf] }
 0x22a   : > { %v7053_v42 = vmul.f32 0.1, %v6925_v29  ;;  %v5392_v4 = vor.u32 %v5391_v31, %v10325_v37  ;;  %v10360_v25 = vrot.slane %v1142_v16, 5  ;;  %v248_v16 = vld [vmem:[%s8904_s7 + $0x174] sm:$0xf] }
 0x22b   : > { %v1148_v44 = vrot.slane %v1146_v8, 4 }
 0x22c   : > { %v7181_v28 = vmax.f32 %v6925_v29, %v7053_v42  ;;  %v2284_v63 = vpop.f32.mrf.mxu0  ;;  %v6088_v42 = vunpack.c.l.b16 %v5368_v17  ;;  %v5393_v58 = vrot.slane %v5392_v4, 4 }
 0x22d   : > { %v6547_v53 = vpop.f32.mrf.mxu3  ;;  %v3138_v48 = vadd.f32 %v10250_v55, %v2284_v63  ;;  %v1111_v55 = vsel %vm8919_vm3, %v1106_v62, %v10286_v41  ;;  %v245_v41 = vld [vmem:[%s8904_s7 + $0x168] sm:$0xf] }
 0x22e   : > { %v10284_v52 = vpop.f32.mrf.mxu2  ;;  %v7309_v59 = vpack.c.bf16 %v7181_v28, %v7181_v28  ;;  %v6794_v11 = vadd.f32 %v6547_v53, %v4368_v39  ;;  %v1822_v38 = vunpack.c.l.b16 %v1111_v55  ;;  %v1128_v28 = vshll.u32 %v322_v47, 16 }
 0x22f   : > { %7627 = vmatmul.msk.bf16.gmra.mxu0 %vm1957_vm0, %v1914_v43  ;;  %v4369_v19 = vadd.f32 %v4124_v26, %v3138_v48  ;;  %v1821_v26 = vunpack.c.l.b16 %v1101_v1  ;;  %v1125_v43 = vor.u32 %v1124_v20, %v10316_v27  ;;  %v5395_v53 = vshll.u32 %v8535_v40, 16 }
 0x230   : > { %7438 = vst.msk [vmem:[%s9151_s16 + $0xc0] sm:$0xf] %vm7389_vm4, %v7309_v59  ;;  %v6926_v12 = vadd.f32 %v10179_v24, %v6794_v11  ;;  %v6182_v48 = vpack.c.b16 %v6089_v56, %v6088_v42  ;;  %v1130_v10 = vrot.slane %v1128_v28, 5  ;;  %v5413_v47 = vshrl.u32 %v8537_v13, 16 }
 0x231   : > { %v3142_v35 = vpop.f32.mrf.mxu1  ;;  %v1915_v57 = vpack.c.b16 %v1822_v38, %v1821_v26  ;;  %v5400_v38 = vshrl.u32 %v8536_v22, 16  ;;  %v1149_v28 = vor.u32 %v1148_v44, %v10360_v25 }
 0x232   : > { %v7054_v2 = vmul.f32 0.1, %v6926_v12  ;;  %8651 = vmatmul.msk.bf16.gmra.mxu3 %vm1957_vm0, %v6181_v50 }
 0x233   : > { %8416 = vmatmul.msk.bf16.gmra.mxu2 %vm1957_vm0, %v8786_v61  ;;  %v8787_v61 = vld [vmem:[%s8904_s7 + $0x170] sm:$0xff] }
 0x234   : > { %7956 = vmatmul.msk.bf16.gmra.mxu1 %vm1957_vm0, %v8718_v3  ;;  %v7182_v36 = vmax.f32 %v6926_v12, %v7054_v2  ;;  %v2286_v23 = vpop.f32.mrf.mxu0  ;;  %v8719_v3 = vld [vmem:[%s8904_s7 + $0x15c] sm:$0xff]  ;;  %v1126_v12 = vrot.slane %v1125_v43, 4  ;;  %v1133_v2 = vshrl.u32 %v245_v41, 16 }
 0x235   : > { %v6550_v15 = vpop.f32.mrf.mxu3  ;;  %v3140_v46 = vadd.f32 %v10276_v49, %v2286_v23  ;;  %v5382_v49 = vor.u32 %v5381_v34, %v10303_v18 }
 0x236   : > { %v4129_v7 = vpop.f32.mrf.mxu2  ;;  %v7310_v30 = vpack.c.bf16 %v7182_v36, %v7182_v36  ;;  %v6795_v21 = vadd.f32 %v6550_v15, %v4369_v19  ;;  %v1136_v19 = vshll.u32 %v245_v41, 16  ;;  %v1131_v36 = vsel %vm8919_vm3, %v1126_v12, %v1130_v10 }
 0x237   : > { %v4370_v63 = vadd.f32 %v10284_v52, %v3140_v46  ;;  %v1116_v52 = vrot.slane %v1115_v45, 4  ;;  %v5383_v1 = vrot.slane %v5382_v49, 4  ;;  %v1135_v26 = vrot.slane %v1133_v2, 4 }
 0x238   : > { %7439 = vst.msk [vmem:[%s9151_s16 + $0xc4] sm:$0xf] %vm7389_vm4, %v7310_v30  ;;  %v6927_v29 = vadd.f32 %v10179_v24, %v6795_v21  ;;  %v1138_v17 = vrot.slane %v1136_v19, 5  ;;  %v5409_v46 = vshll.u32 %v8537_v13, 16  ;;  %v1824_v31 = vunpack.c.l.b16 %v1131_v36 }
 0x239   : > { %v10322_v54 = vpop.f32.mrf.mxu1  ;;  %v1121_v0 = vsel %vm8919_vm3, %v1116_v52, %v10316_v27  ;;  %v5388_v23 = vsel %vm8919_vm3, %v5383_v1, %v10325_v37  ;;  %v5403_v27 = vshll.u32 %v8536_v22, 16  ;;  %v5402_v45 = vrot.slane %v5400_v38, 4 }
 0x23a   : > { %v7055_v32 = vmul.f32 0.1, %v6927_v29  ;;  %v1823_v37 = vunpack.c.l.b16 %v1121_v0  ;;  %v6090_v40 = vunpack.c.l.b16 %v5388_v23  ;;  %v1139_v43 = vor.u32 %v1138_v17, %v1135_v26 }
 0x23b   : > { %v10374_v4 = vrot.slane %v5409_v46, 5 }
 0x23c   : > { %v7183_v39 = vmax.f32 %v6927_v29, %v7055_v32  ;;  %v2289_v50 = vpop.f32.mrf.mxu0  ;;  %v10363_v29 = vld [vmem:[%s8904_s7 + $0x170] sm:$0xf]  ;;  %v1140_v60 = vrot.slane %v1139_v43, 4 }
 0x23d   : > { %v6552_v51 = vpop.f32.mrf.mxu3  ;;  %v3143_v11 = vadd.f32 %v3142_v35, %v2289_v50  ;;  %v5397_v35 = vrot.slane %v5395_v53, 5  ;;  %v1152_v49 = vshll.u32 %v10363_v29, 16  ;;  %v5415_v53 = vrot.slane %v5413_v47, 4 }
 0x23e   : > { %v10333_v62 = vpop.f32.mrf.mxu2  ;;  %v7311_v6 = vpack.c.bf16 %v7183_v39, %v7183_v39  ;;  %v6796_v59 = vadd.f32 %v6552_v51, %v4370_v63  ;;  %v8538_v39 = vld [vmem:[%s8904_s7 + $0x184] sm:$0xf]  ;;  %v5405_v63 = vrot.slane %v5403_v27, 5  ;;  %v1916_v51 = vpack.c.b16 %v1824_v31, %v1823_v37 }
 0x23f   : > { %7628 = vmatmul.msk.bf16.gmra.mxu0 %vm1957_vm0, %v1915_v57  ;;  %v4371_v9 = vadd.f32 %v4129_v7, %v3143_v11  ;;  %v5398_v7 = vsel %vm8919_vm3, %v5393_v58, %v5397_v35  ;;  %v5419_v11 = vshll.u32 %v8538_v39, 16  ;;  %v10379_v52 = vrot.slane %v1152_v49, 5  ;;  %v8720_v35 = vld [vmem:[%s8904_s7 + $0x168] sm:$0xff] }
 0x240   : > { %7440 = vst.msk [vmem:[%s9151_s16 + $0xc8] sm:$0xf] %vm7389_vm4, %v7311_v6  ;;  %v6928_v55 = vadd.f32 %v10179_v24, %v6796_v59  ;;  %v6091_v56 = vunpack.c.l.b16 %v5398_v7  ;;  %v5406_v12 = vor.u32 %v5405_v63, %v5402_v45  ;;  %v5416_v58 = vor.u32 %v5415_v53, %v10374_v4  ;;  %v323_v45 = vld [vmem:[%s8904_s7 + $0x178] sm:$0x1]  ;;  %v8540_v49 = vld [vmem:[%s8904_s7 + $0x18c] sm:$0x1] }
 0x241   : > { %v10343_v18 = vpop.f32.mrf.mxu1  ;;  %v1145_v8 = vsel %vm8919_vm3, %v1140_v60, %v10360_v25  ;;  %v10396_v22 = vrot.slane %v5419_v11, 5  ;;  %v1156_v13 = vshrl.u32 %v10363_v29, 16  ;;  %v1166_v7 = vshrl.u32 %v248_v16, 16 }
 0x242   : > { %v7056_v14 = vmul.f32 0.1, %v6928_v55  ;;  %8652 = vmatmul.msk.bf16.gmra.mxu3 %vm1957_vm0, %v6182_v48  ;;  %v6183_v59 = vpack.c.b16 %v6091_v56, %v6090_v40  ;;  %v5407_v36 = vrot.slane %v5406_v12, 4  ;;  %v5417_v23 = vrot.slane %v5416_v58, 4  ;;  %v250_v58 = vld [vmem:[%s8904_s7 + $0x180] sm:$0xf] }
 0x243   : > { %8417 = vmatmul.msk.bf16.gmra.mxu2 %vm1957_vm0, %v8787_v61  ;;  %v1158_v47 = vrot.slane %v1156_v13, 4  ;;  %v1168_v31 = vrot.slane %v1166_v7, 4  ;;  %v8541_v13 = vld [vmem:[%s8904_s7 + $0x190] sm:$0xf] }
 0x244   : > { %7957 = vmatmul.msk.bf16.gmra.mxu1 %vm1957_vm0, %v8719_v3  ;;  %v7184_v5 = vmax.f32 %v6928_v55, %v7056_v14  ;;  %v2291_v15 = vpop.f32.mrf.mxu0  ;;  %v1150_v3 = vrot.slane %v1149_v28, 4  ;;  %v8539_v14 = vld [vmem:[%s8904_s7 + $0x188] sm:$0xf]  ;;  %v5412_v29 = vsel %vm8919_vm3, %v5407_v36, %v10374_v4  ;;  %v5422_v46 = vsel %vm8919_vm3, %v5417_v23, %v10396_v22 }
 0x245   : > { %v6555_v30 = vpop.f32.mrf.mxu3  ;;  %v3145_v57 = vadd.f32 %v10322_v54, %v2291_v15  ;;  %v1162_v15 = vshll.u32 %v248_v16, 16  ;;  %v5433_v17 = vshrl.u32 %v8539_v14, 16  ;;  %v6093_v4 = vunpack.c.l.b16 %v5422_v46 }
 0x246   : > { %v4134_v21 = vpop.f32.mrf.mxu2  ;;  %v7312_v20 = vpack.c.bf16 %v7184_v5, %v7184_v5  ;;  %v6797_v34 = vadd.f32 %v6555_v30, %v4371_v9  ;;  %v5423_v5 = vshrl.u32 %v8538_v39, 16  ;;  %v5429_v30 = vshll.u32 %v8539_v14, 16 }
 0x247   : > { %v4372_v54 = vadd.f32 %v10333_v62, %v3145_v57  ;;  %v8788_v62 = vld [vmem:[%s8904_s7 + $0x17c] sm:$0xff]  ;;  %v10409_v37 = vrot.slane %v1162_v15, 5  ;;  %v5435_v28 = vrot.slane %v5433_v17, 4  ;;  %v1159_v53 = vor.u32 %v1158_v47, %v10379_v52 }
 0x248   : > { %7441 = vst.msk [vmem:[%s9151_s16 + $0xcc] sm:$0xf] %vm7389_vm4, %v7312_v20  ;;  %v6929_v32 = vadd.f32 %v10179_v24, %v6797_v34  ;;  %v5425_v40 = vrot.slane %v5423_v5, 4  ;;  %v10418_v43 = vrot.slane %v5429_v30, 5  ;;  %v1186_v36 = vshll.u32 %v250_v58, 16 }
 0x249   : > { %v10369_v42 = vpop.f32.mrf.mxu1  ;;  %v1190_v23 = vshrl.u32 %v250_v58, 16  ;;  %v8542_v30 = vld [vmem:[%s8904_s7 + $0x194] sm:$0xf] }
 0x24a   : > { %v7057_v50 = vmul.f32 0.1, %v6929_v32  ;;  %v5436_v11 = vor.u32 %v5435_v28, %v10418_v43  ;;  %v10453_v46 = vrot.slane %v1186_v36, 5  ;;  %v252_v36 = vld [vmem:[%s8904_s7 + $0x188] sm:$0xf] }
 0x24b   : > { %v1192_v47 = vrot.slane %v1190_v23, 4 }
 0x24c   : > { %v7185_v41 = vmax.f32 %v6929_v32, %v7057_v50  ;;  %v2294_v6 = vpop.f32.mrf.mxu0  ;;  %v6092_v50 = vunpack.c.l.b16 %v5412_v29  ;;  %v5437_v14 = vrot.slane %v5436_v11, 4 }
 0x24d   : > { %v6557_v48 = vpop.f32.mrf.mxu3  ;;  %v3148_v55 = vadd.f32 %v10343_v18, %v2294_v6  ;;  %v1155_v18 = vsel %vm8919_vm3, %v1150_v3, %v10379_v52  ;;  %v249_v52 = vld [vmem:[%s8904_s7 + $0x17c] sm:$0xf] }
 0x24e   : > { %v10377_v61 = vpop.f32.mrf.mxu2  ;;  %v7313_v10 = vpack.c.bf16 %v7185_v41, %v7185_v41  ;;  %v6798_v1 = vadd.f32 %v6557_v48, %v4372_v54  ;;  %v1826_v27 = vunpack.c.l.b16 %v1155_v18  ;;  %v1172_v41 = vshll.u32 %v323_v45, 16 }
 0x24f   : > { %7629 = vmatmul.msk.bf16.gmra.mxu0 %vm1957_vm0, %v1916_v51  ;;  %v4373_v0 = vadd.f32 %v4134_v21, %v3148_v55  ;;  %v1825_v21 = vunpack.c.l.b16 %v1145_v8  ;;  %v1169_v51 = vor.u32 %v1168_v31, %v10409_v37  ;;  %v5439_v48 = vshll.u32 %v8540_v49, 16 }
 0x250   : > { %7442 = vst.msk [vmem:[%s9151_s16 + $0xd0] sm:$0xf] %vm7389_vm4, %v7313_v10  ;;  %v6930_v2 = vadd.f32 %v10179_v24, %v6798_v1  ;;  %v6184_v55 = vpack.c.b16 %v6093_v4, %v6092_v50  ;;  %v1174_v16 = vrot.slane %v1172_v41, 5  ;;  %v5457_v45 = vshrl.u32 %v8542_v30, 16 }
 0x251   : > { %v3152_v19 = vpop.f32.mrf.mxu1  ;;  %v1917_v63 = vpack.c.b16 %v1826_v27, %v1825_v21  ;;  %v5444_v27 = vshrl.u32 %v8541_v13, 16  ;;  %v1193_v41 = vor.u32 %v1192_v47, %v10453_v46 }
 0x252   : > { %v7058_v9 = vmul.f32 0.1, %v6930_v2  ;;  %8653 = vmatmul.msk.bf16.gmra.mxu3 %vm1957_vm0, %v6183_v59 }
 0x253   : > { %8418 = vmatmul.msk.bf16.gmra.mxu2 %vm1957_vm0, %v8788_v62  ;;  %v8789_v62 = vld [vmem:[%s8904_s7 + $0x184] sm:$0xff] }
 0x254   : > { %7958 = vmatmul.msk.bf16.gmra.mxu1 %vm1957_vm0, %v8720_v35  ;;  %v7186_v26 = vmax.f32 %v6930_v2, %v7058_v9  ;;  %v2296_v38 = vpop.f32.mrf.mxu0  ;;  %v8721_v35 = vld [vmem:[%s8904_s7 + $0x170] sm:$0xff]  ;;  %v1170_v2 = vrot.slane %v1169_v51, 4  ;;  %v1177_v9 = vshrl.u32 %v249_v52, 16 }
 0x255   : > { %v6560_v25 = vpop.f32.mrf.mxu3  ;;  %v3150_v57 = vadd.f32 %v10369_v42, %v2296_v38  ;;  %v5426_v42 = vor.u32 %v5425_v40, %v10396_v22 }
 0x256   : > { %v4139_v44 = vpop.f32.mrf.mxu2  ;;  %v7314_v20 = vpack.c.bf16 %v7186_v26, %v7186_v26  ;;  %v6799_v34 = vadd.f32 %v6560_v25, %v4373_v0  ;;  %v1180_v0 = vshll.u32 %v249_v52, 16  ;;  %v1175_v26 = vsel %vm8919_vm3, %v1170_v2, %v1174_v16 }
 0x257   : > { %v4374_v6 = vadd.f32 %v10377_v61, %v3150_v57  ;;  %v1160_v61 = vrot.slane %v1159_v53, 4  ;;  %v5427_v8 = vrot.slane %v5426_v42, 4  ;;  %v1179_v21 = vrot.slane %v1177_v9, 4 }
 0x258   : > { %7443 = vst.msk [vmem:[%s9151_s16 + $0xd4] sm:$0xf] %vm7389_vm4, %v7314_v20  ;;  %v6931_v32 = vadd.f32 %v10179_v24, %v6799_v34  ;;  %v1182_v29 = vrot.slane %v1180_v0, 5  ;;  %v5453_v57 = vshll.u32 %v8542_v30, 16  ;;  %v1828_v28 = vunpack.c.l.b16 %v1175_v26 }
 0x259   : > { %v10415_v56 = vpop.f32.mrf.mxu1  ;;  %v1165_v7 = vsel %vm8919_vm3, %v1160_v61, %v10409_v37  ;;  %v5432_v38 = vsel %vm8919_vm3, %v5427_v8, %v10418_v43  ;;  %v5447_v37 = vshll.u32 %v8541_v13, 16  ;;  %v5446_v53 = vrot.slane %v5444_v27, 4 }
 0x25a   : > { %v7059_v39 = vmul.f32 0.1, %v6931_v32  ;;  %v1827_v43 = vunpack.c.l.b16 %v1165_v7  ;;  %v6094_v49 = vunpack.c.l.b16 %v5432_v38  ;;  %v1183_v51 = vor.u32 %v1182_v29, %v1179_v21 }
 0x25b   : > { %v10467_v11 = vrot.slane %v5453_v57, 5 }
 0x25c   : > { %v7187_v54 = vmax.f32 %v6931_v32, %v7059_v39  ;;  %v2299_v59 = vpop.f32.mrf.mxu0  ;;  %v10456_v32 = vld [vmem:[%s8904_s7 + $0x184] sm:$0xf]  ;;  %v1184_v58 = vrot.slane %v1183_v51, 4 }
 0x25d   : > { %v6562_v60 = vpop.f32.mrf.mxu3  ;;  %v3153_v1 = vadd.f32 %v3152_v19, %v2299_v59  ;;  %v5441_v19 = vrot.slane %v5439_v48, 5  ;;  %v1196_v42 = vshll.u32 %v10456_v32, 16  ;;  %v5459_v48 = vrot.slane %v5457_v45, 4 }
 0x25e   : > { %v10426_v3 = vpop.f32.mrf.mxu2  ;;  %v7315_v12 = vpack.c.bf16 %v7187_v54, %v7187_v54  ;;  %v6800_v10 = vadd.f32 %v6562_v60, %v4374_v6  ;;  %v8543_v54 = vld [vmem:[%s8904_s7 + $0x198] sm:$0xf]  ;;  %v5449_v6 = vrot.slane %v5447_v37, 5  ;;  %v1918_v60 = vpack.c.b16 %v1828_v28, %v1827_v43 }
 0x25f   : > { %7630 = vmatmul.msk.bf16.gmra.mxu0 %vm1957_vm0, %v1917_v63  ;;  %v4375_v15 = vadd.f32 %v4139_v44, %v3153_v1  ;;  %v5442_v44 = vsel %vm8919_vm3, %v5437_v14, %v5441_v19  ;;  %v5463_v1 = vshll.u32 %v8543_v54, 16  ;;  %v10472_v61 = vrot.slane %v1196_v42, 5  ;;  %v8722_v19 = vld [vmem:[%s8904_s7 + $0x17c] sm:$0xff] }
 0x260   : > { %7444 = vst.msk [vmem:[%s9151_s16 + $0xd8] sm:$0xf] %vm7389_vm4, %v7315_v12  ;;  %v6932_v18 = vadd.f32 %v10179_v24, %v6800_v10  ;;  %v6095_v4 = vunpack.c.l.b16 %v5442_v44  ;;  %v5450_v2 = vor.u32 %v5449_v6, %v5446_v53  ;;  %v5460_v14 = vor.u32 %v5459_v48, %v10467_v11  ;;  %v324_v53 = vld [vmem:[%s8904_s7 + $0x18c] sm:$0x1]  ;;  %v8545_v42 = vld [vmem:[%s8904_s7 + $0x1a0] sm:$0x1] }
 0x261   : > { %v10436_v22 = vpop.f32.mrf.mxu1  ;;  %v1189_v23 = vsel %vm8919_vm3, %v1184_v58, %v10453_v46  ;;  %v10489_v13 = vrot.slane %v5463_v1, 5  ;;  %v1200_v30 = vshrl.u32 %v10456_v32, 16  ;;  %v1210_v44 = vshrl.u32 %v252_v36, 16 }
 0x262   : > { %v7060_v5 = vmul.f32 0.1, %v6932_v18  ;;  %8654 = vmatmul.msk.bf16.gmra.mxu3 %vm1957_vm0, %v6184_v55  ;;  %v6185_v10 = vpack.c.b16 %v6095_v4, %v6094_v49  ;;  %v5451_v26 = vrot.slane %v5450_v2, 4  ;;  %v5461_v38 = vrot.slane %v5460_v14, 4  ;;  %v8723_v14 = vld [vmem:[%s8904_s7 + $0x184] sm:$0xff] }
 0x263   : > { %8419 = vmatmul.msk.bf16.gmra.mxu2 %vm1957_vm0, %v8789_v62  ;;  %v1202_v45 = vrot.slane %v1200_v30, 4  ;;  %v1212_v28 = vrot.slane %v1210_v44, 4  ;;  %v5483_v1 = vshll.u32 %v8545_v42, 16  ;;  %v8546_v30 = vld [vmem:[%s8904_s7 + $0x1a4] sm:$0xf] }
 0x264   : > { %7959 = vmatmul.msk.bf16.gmra.mxu1 %vm1957_vm0, %v8721_v35  ;;  %v7188_v17 = vmax.f32 %v6932_v18, %v7060_v5  ;;  %v2301_v25 = vpop.f32.mrf.mxu0  ;;  %v1194_v35 = vrot.slane %v1193_v41, 4  ;;  %v8544_v5 = vld [vmem:[%s8904_s7 + $0x19c] sm:$0xf]  ;;  %v5456_v32 = vsel %vm8919_vm3, %v5451_v26, %v10467_v11  ;;  %v5466_v57 = vsel %vm8919_vm3, %v5461_v38, %v10489_v13 }
 0x265   : > { %v6565_v20 = vpop.f32.mrf.mxu3  ;;  %v3155_v63 = vadd.f32 %v10415_v56, %v2301_v25  ;;  %v1206_v25 = vshll.u32 %v252_v36, 16  ;;  %v5477_v29 = vshrl.u32 %v8544_v5, 16  ;;  %v6097_v11 = vunpack.c.l.b16 %v5466_v57 }
 0x266   : > { %v4144_v34 = vpop.f32.mrf.mxu2  ;;  %v7316_v31 = vpack.c.bf16 %v7188_v17, %v7188_v17  ;;  %v6801_v40 = vadd.f32 %v6565_v20, %v4375_v15  ;;  %v5467_v17 = vshrl.u32 %v8543_v54, 16  ;;  %v5473_v20 = vshll.u32 %v8544_v5, 16 }
 0x267   : > { %v4376_v56 = vadd.f32 %v10426_v3, %v3155_v63  ;;  %v8790_v3 = vld [vmem:[%s8904_s7 + $0x190] sm:$0xff]  ;;  %v10502_v43 = vrot.slane %v1206_v25, 5  ;;  %v5479_v41 = vrot.slane %v5477_v29, 4  ;;  %v1203_v48 = vor.u32 %v1202_v45, %v10472_v61 }
 0x268   : > { %7445 = vst.msk [vmem:[%s9151_s16 + $0xdc] sm:$0xf] %vm7389_vm4, %v7316_v31  ;;  %v6933_v39 = vadd.f32 %v10179_v24, %v6801_v40  ;;  %v5469_v49 = vrot.slane %v5467_v17, 4  ;;  %v10511_v51 = vrot.slane %v5473_v20, 5  ;;  %v5485_v5 = vrot.slane %v5483_v1, 5 }
 0x269   : > { %v10462_v50 = vpop.f32.mrf.mxu1  ;;  %v8547_v20 = vld [vmem:[%s8904_s7 + $0x1a8] sm:$0xf] }
 0x26a   : > { %v7061_v59 = vmul.f32 0.1, %v6933_v39 }
 0x26c   : > { %v7189_v52 = vmax.f32 %v6933_v39, %v7061_v59  ;;  %v2304_v12 = vpop.f32.mrf.mxu0  ;;  %v6096_v59 = vunpack.c.l.b16 %v5456_v32 }
 0x26d   : > { %v6567_v55 = vpop.f32.mrf.mxu3  ;;  %v3158_v18 = vadd.f32 %v10436_v22, %v2304_v12  ;;  %v1199_v22 = vsel %vm8919_vm3, %v1194_v35, %v10472_v61  ;;  %v253_v35 = vld [vmem:[%s8904_s7 + $0x190] sm:$0xf] }
 0x26e   : > { %v10470_v62 = vpop.f32.mrf.mxu2  ;;  %v7317_v16 = vpack.c.bf16 %v7189_v52, %v7189_v52  ;;  %v6802_v8 = vadd.f32 %v6567_v55, %v4376_v56  ;;  %v1830_v37 = vunpack.c.l.b16 %v1199_v22 }
 0x26f   : > { %7631 = vmatmul.msk.bf16.gmra.mxu0 %vm1957_vm0, %v1918_v60  ;;  %v4377_v7 = vadd.f32 %v4144_v34, %v3158_v18  ;;  %v1829_v34 = vunpack.c.l.b16 %v1189_v23  ;;  %v1213_v60 = vor.u32 %v1212_v28, %v10502_v43  ;;  %v8791_v18 = vld [vmem:[%s8904_s7 + $0x198] sm:$0xff]  ;;  %v10531_v23 = vld [vmem:[%s11730_s2] ss:$0 sm:$0xff] }
 0x270   : > { %7446 = vst.msk [vmem:[%s9151_s16 + $0xe0] sm:$0xf] %vm7389_vm4, %v7317_v16  ;;  %v6934_v9 = vadd.f32 %v10179_v24, %v6802_v8  ;;  %v6186_v8 = vpack.c.b16 %v6097_v11, %v6096_v59 }
 0x271   : > { %v3162_v0 = vpop.f32.mrf.mxu1  ;;  %v1919_v6 = vpack.c.b16 %v1830_v37, %v1829_v34  ;;  %v5488_v37 = vshrl.u32 %v8546_v30, 16 }
 0x272   : > { %v7062_v15 = vmul.f32 0.1, %v6934_v9  ;;  %8655 = vmatmul.msk.bf16.gmra.mxu3 %vm1957_vm0, %v6185_v10  ;;  %v5480_v10 = vor.u32 %v5479_v41, %v10511_v51 }
 0x273   : > { %8420 = vmatmul.msk.bf16.gmra.mxu2 %vm1957_vm0, %v8790_v3  ;;  %v254_v3 = vld [vmem:[%s8904_s7 + $0x194] sm:$0xf] }
 0x274   : > { %7960 = vmatmul.msk.bf16.gmra.mxu1 %vm1957_vm0, %v8722_v19  ;;  %v7190_v21 = vmax.f32 %v6934_v9, %v7062_v15  ;;  %v2306_v27 = vpop.f32.mrf.mxu0  ;;  %v1214_v19 = vrot.slane %v1213_v60, 4  ;;  %v1221_v15 = vshrl.u32 %v253_v35, 16  ;;  %v1230_v26 = vshll.u32 %v254_v3, 16 }
 0x275   : > { %v6570_v46 = vpop.f32.mrf.mxu3  ;;  %v3160_v63 = vadd.f32 %v10462_v50, %v2306_v27  ;;  %v5470_v50 = vor.u32 %v5469_v49, %v10489_v13  ;;  %v5481_v13 = vrot.slane %v5480_v10, 4  ;;  %v1234_v38 = vshrl.u32 %v254_v3, 16 }
 0x276   : > { %v4149_v47 = vpop.f32.mrf.mxu2  ;;  %v7318_v31 = vpack.c.bf16 %v7190_v21, %v7190_v21  ;;  %v6803_v40 = vadd.f32 %v6570_v46, %v4377_v7  ;;  %v1224_v7 = vshll.u32 %v253_v35, 16  ;;  %v1223_v34 = vrot.slane %v1221_v15, 4 }
 0x277   : > { %v4378_v56 = vadd.f32 %v10470_v62, %v3160_v63  ;;  %v1204_v62 = vrot.slane %v1203_v48, 4  ;;  %v5471_v36 = vrot.slane %v5470_v50, 4  ;;  %v10551_v57 = vrot.slane %v1230_v26, 5  ;;  %v256_v26 = vld [vmem:[%s8904_s7 + $0x19c] sm:$0xf] }
 0x278   : > { %7447 = vst.msk [vmem:[%s9151_s16 + $0xe4] sm:$0xf] %vm7389_vm4, %v7318_v31  ;;  %v6935_v39 = vadd.f32 %v10179_v24, %v6803_v40  ;;  %v1216_v24 = vshll.u32 %v324_v53, 16  ;;  %v1226_v32 = vrot.slane %v1224_v7, 5  ;;  %v1236_v45 = vrot.slane %v1234_v38, 4 }
 0x279   : > { %v10508_v4 = vpop.f32.mrf.mxu1  ;;  %v1209_v44 = vsel %vm8919_vm3, %v1204_v62, %v10502_v43  ;;  %v5476_v27 = vsel %vm8919_vm3, %v5471_v36, %v10511_v51  ;;  %v5491_v43 = vshll.u32 %v8546_v30, 16  ;;  %v5497_v63 = vshll.u32 %v8547_v20, 16 }
 0x27a   : > { %v7063_v54 = vmul.f32 0.1, %v6935_v39  ;;  %v1218_v9 = vrot.slane %v1216_v24, 5  ;;  %v5501_v53 = vshrl.u32 %v8547_v20, 16  ;;  %v1831_v51 = vunpack.c.l.b16 %v1209_v44 }
 0x27b   : > { %v6098_v42 = vunpack.c.l.b16 %v5476_v27  ;;  %v5490_v48 = vrot.slane %v5488_v37, 4  ;;  %v1227_v60 = vor.u32 %v1226_v32, %v1223_v34  ;;  %v1237_v24 = vor.u32 %v1236_v45, %v10551_v57 }
 0x27c   : > { %v7191_v52 = vmax.f32 %v6935_v39, %v7063_v54  ;;  %v2309_v12 = vpop.f32.mrf.mxu0  ;;  %v1219_v21 = vsel %vm8919_vm3, %v1214_v19, %v1218_v9  ;;  %v10554_v39 = vld [vmem:[%s8904_s7 + $0x198] sm:$0xf]  ;;  %v10565_v10 = vrot.slane %v5497_v63, 5  ;;  %v5503_v1 = vrot.slane %v5501_v53, 4 }
 0x27d   : > { %v6572_v55 = vpop.f32.mrf.mxu3  ;;  %v3163_v16 = vadd.f32 %v3162_v0, %v2309_v12  ;;  %v1832_v41 = vunpack.c.l.b16 %v1219_v21  ;;  %v1240_v50 = vshll.u32 %v10554_v39, 16  ;;  %v1228_v3 = vrot.slane %v1227_v60, 4 }
 0x27e   : > { %v10519_v58 = vpop.f32.mrf.mxu2  ;;  %v7319_v61 = vpack.c.bf16 %v7191_v52, %v7191_v52  ;;  %v6804_v2 = vadd.f32 %v6572_v55, %v4378_v56  ;;  %v8548_v52 = vld [vmem:[%s8904_s7 + $0x1ac] sm:$0xf]  ;;  %v5493_v56 = vrot.slane %v5491_v43, 5  ;;  %v1244_v20 = vshrl.u32 %v10554_v39, 16 }
 0x27f   : > { %7632 = vmatmul.msk.bf16.gmra.mxu0 %vm1957_vm0, %v1919_v6  ;;  %v4379_v25 = vadd.f32 %v4149_v47, %v3163_v16  ;;  %v5486_v47 = vsel %vm8919_vm3, %v5481_v13, %v5485_v5  ;;  %v1920_v55 = vpack.c.b16 %v1832_v41, %v1831_v51  ;;  %v5507_v16 = vshll.u32 %v8548_v52, 16  ;;  %v8724_v5 = vld [vmem:[%s8904_s7 + $0x190] sm:$0xff] }
 0x280   : > { %7448 = vst.msk [vmem:[%s9151_s16 + $0xe8] sm:$0xf] %vm7389_vm4, %v7319_v61  ;;  %v6936_v0 = vadd.f32 %v10531_v23, %v6804_v2  ;;  %v6099_v11 = vunpack.c.l.b16 %v5486_v47  ;;  %v10570_v62 = vrot.slane %v1240_v50, 5  ;;  %v5494_v19 = vor.u32 %v5493_v56, %v5490_v48  ;;  %v325_v48 = vld [vmem:[%s8904_s7 + $0x1a0] sm:$0x1] }
 0x281   : > { %v10534_v22 = vpop.f32.mrf.mxu1  ;;  %v5504_v13 = vor.u32 %v5503_v1, %v10565_v10  ;;  %v1233_v38 = vsel %vm8919_vm3, %v1228_v3, %v10551_v57  ;;  %v10587_v30 = vrot.slane %v5507_v16, 5  ;;  %v1254_v47 = vshrl.u32 %v256_v26, 16  ;;  %v8550_v50 = vld [vmem:[%s8904_s7 + $0x1b4] sm:$0x1] }
 0x282   : > { %v7064_v17 = vmul.f32 0.1, %v6936_v0  ;;  %8656 = vmatmul.msk.bf16.gmra.mxu3 %vm1957_vm0, %v6186_v8  ;;  %v6187_v2 = vpack.c.b16 %v6099_v11, %v6098_v42  ;;  %v5495_v21 = vrot.slane %v5494_v19, 4  ;;  %v1246_v53 = vrot.slane %v1244_v20, 4  ;;  %v8551_v20 = vld [vmem:[%s8904_s7 + $0x1b8] sm:$0xf] }
 0x283   : > { %8421 = vmatmul.msk.bf16.gmra.mxu2 %vm1957_vm0, %v8791_v18  ;;  %v5505_v27 = vrot.slane %v5504_v13, 4  ;;  %v1256_v41 = vrot.slane %v1254_v47, 4  ;;  %v258_v13 = vld [vmem:[%s8904_s7 + $0x1a8] sm:$0xf] }
 0x284   : > { %7961 = vmatmul.msk.bf16.gmra.mxu1 %vm1957_vm0, %v8723_v14  ;;  %v7192_v29 = vmax.f32 %v6936_v0, %v7064_v17  ;;  %v2311_v46 = vpop.f32.mrf.mxu0  ;;  %v1238_v14 = vrot.slane %v1237_v24, 4  ;;  %v8549_v17 = vld [vmem:[%s8904_s7 + $0x1b0] sm:$0xf]  ;;  %v5500_v39 = vsel %vm8919_vm3, %v5495_v21, %v10565_v10  ;;  %v1247_v1 = vor.u32 %v1246_v53, %v10570_v62 }
 0x285   : > { %v6575_v31 = vpop.f32.mrf.mxu3  ;;  %v3165_v6 = vadd.f32 %v10508_v4, %v2311_v46  ;;  %v1250_v46 = vshll.u32 %v256_v26, 16  ;;  %v5521_v32 = vshrl.u32 %v8549_v17, 16  ;;  %v5510_v63 = vsel %vm8919_vm3, %v5505_v27, %v10587_v30 }
 0x286   : > { %v4154_v40 = vpop.f32.mrf.mxu2  ;;  %v7320_v28 = vpack.c.bf16 %v7192_v29, %v7192_v29  ;;  %v6805_v49 = vadd.f32 %v6575_v31, %v4379_v25  ;;  %v5511_v29 = vshrl.u32 %v8548_v52, 16  ;;  %v5517_v31 = vshll.u32 %v8549_v17, 16 }
 0x287   : > { %v4380_v4 = vadd.f32 %v10519_v58, %v3165_v6  ;;  %v8792_v58 = vld [vmem:[%s8904_s7 + $0x1a4] sm:$0xff]  ;;  %v10600_v51 = vrot.slane %v1250_v46, 5  ;;  %v5523_v24 = vrot.slane %v5521_v32, 4  ;;  %v6101_v10 = vunpack.c.l.b16 %v5510_v63 }
 0x288   : > { %7449 = vst.msk [vmem:[%s9151_s16 + $0xec] sm:$0xf] %vm7389_vm4, %v7320_v28  ;;  %v6937_v54 = vadd.f32 %v10531_v23, %v6805_v49  ;;  %v5513_v42 = vrot.slane %v5511_v29, 4  ;;  %v10609_v60 = vrot.slane %v5517_v31, 5  ;;  %v1274_v21 = vshll.u32 %v258_v13, 16 }
 0x289   : > { %v10560_v59 = vpop.f32.mrf.mxu1  ;;  %v1278_v27 = vshrl.u32 %v258_v13, 16  ;;  %v8552_v31 = vld [vmem:[%s8904_s7 + $0x1bc] sm:$0xf] }
 0x28a   : > { %v7065_v12 = vmul.f32 0.1, %v6937_v54  ;;  %v5524_v16 = vor.u32 %v5523_v24, %v10609_v60  ;;  %v10644_v63 = vrot.slane %v1274_v21, 5  ;;  %v260_v21 = vld [vmem:[%s8904_s7 + $0x1b0] sm:$0xf] }
 0x28b   : > { %v1280_v53 = vrot.slane %v1278_v27, 4 }
 0x28c   : > { %v7193_v35 = vmax.f32 %v6937_v54, %v7065_v12  ;;  %v2314_v61 = vpop.f32.mrf.mxu0  ;;  %v6100_v12 = vunpack.c.l.b16 %v5500_v39  ;;  %v5525_v17 = vrot.slane %v5524_v16, 4 }
 0x28d   : > { %v6577_v8 = vpop.f32.mrf.mxu3  ;;  %v3168_v0 = vadd.f32 %v10534_v22, %v2314_v61  ;;  %v1243_v22 = vsel %vm8919_vm3, %v1238_v14, %v10570_v62  ;;  %v257_v62 = vld [vmem:[%s8904_s7 + $0x1a4] sm:$0xf] }
 0x28e   : > { %v10568_v18 = vpop.f32.mrf.mxu2  ;;  %v7321_v9 = vpack.c.bf16 %v7193_v35, %v7193_v35  ;;  %v6806_v36 = vadd.f32 %v6577_v8, %v4380_v4  ;;  %v1834_v43 = vunpack.c.l.b16 %v1243_v22  ;;  %v1260_v35 = vshll.u32 %v325_v48, 16 }
 0x28f   : > { %7633 = vmatmul.msk.bf16.gmra.mxu0 %vm1957_vm0, %v1920_v55  ;;  %v4381_v44 = vadd.f32 %v4154_v40, %v3168_v0  ;;  %v1833_v40 = vunpack.c.l.b16 %v1233_v38  ;;  %v1257_v55 = vor.u32 %v1256_v41, %v10600_v51  ;;  %v5527_v8 = vshll.u32 %v8550_v50, 16 }
 0x290   : > { %7450 = vst.msk [vmem:[%s9151_s16 + $0xf0] sm:$0xf] %vm7389_vm4, %v7321_v9  ;;  %v6938_v15 = vadd.f32 %v10531_v23, %v6806_v36  ;;  %v6188_v0 = vpack.c.b16 %v6101_v10, %v6100_v12  ;;  %v1262_v26 = vrot.slane %v1260_v35, 5  ;;  %v5545_v48 = vshrl.u32 %v8552_v31, 16 }
 0x291   : > { %v3172_v7 = vpop.f32.mrf.mxu1  ;;  %v1921_v56 = vpack.c.b16 %v1834_v43, %v1833_v40  ;;  %v5532_v43 = vshrl.u32 %v8551_v20, 16  ;;  %v1281_v35 = vor.u32 %v1280_v53, %v10644_v63 }
 0x292   : > { %v7066_v25 = vmul.f32 0.1, %v6938_v15  ;;  %8657 = vmatmul.msk.bf16.gmra.mxu3 %vm1957_vm0, %v6187_v2 }
 0x293   : > { %8422 = vmatmul.msk.bf16.gmra.mxu2 %vm1957_vm0, %v8792_v58  ;;  %v8793_v58 = vld [vmem:[%s8904_s7 + $0x1ac] sm:$0xff] }
 0x294   : > { %7962 = vmatmul.msk.bf16.gmra.mxu1 %vm1957_vm0, %v8724_v5  ;;  %v7194_v34 = vmax.f32 %v6938_v15, %v7066_v25  ;;  %v2316_v37 = vpop.f32.mrf.mxu0  ;;  %v8725_v5 = vld [vmem:[%s8904_s7 + $0x198] sm:$0xff]  ;;  %v1258_v15 = vrot.slane %v1257_v55, 4  ;;  %v1265_v25 = vshrl.u32 %v257_v62, 16 }
 0x295   : > { %v6580_v57 = vpop.f32.mrf.mxu3  ;;  %v3170_v6 = vadd.f32 %v10560_v59, %v2316_v37  ;;  %v5514_v59 = vor.u32 %v5513_v42, %v10587_v30 }
 0x296   : > { %v4159_v45 = vpop.f32.mrf.mxu2  ;;  %v7322_v28 = vpack.c.bf16 %v7194_v34, %v7194_v34  ;;  %v6807_v49 = vadd.f32 %v6580_v57, %v4381_v44  ;;  %v1268_v44 = vshll.u32 %v257_v62, 16  ;;  %v1263_v34 = vsel %vm8919_vm3, %v1258_v15, %v1262_v26 }
 0x297   : > { %v4382_v61 = vadd.f32 %v10568_v18, %v3170_v6  ;;  %v1248_v18 = vrot.slane %v1247_v1, 4  ;;  %v5515_v38 = vrot.slane %v5514_v59, 4  ;;  %v1267_v40 = vrot.slane %v1265_v25, 4 }
 0x298   : > { %7451 = vst.msk [vmem:[%s9151_s16 + $0xf4] sm:$0xf] %vm7389_vm4, %v7322_v28  ;;  %v6939_v54 = vadd.f32 %v10531_v23, %v6807_v49  ;;  %v1270_v39 = vrot.slane %v1268_v44, 5  ;;  %v5541_v6 = vshll.u32 %v8552_v31, 16  ;;  %v1836_v24 = vunpack.c.l.b16 %v1263_v34 }
 0x299   : > { %v10606_v11 = vpop.f32.mrf.mxu1  ;;  %v1253_v47 = vsel %vm8919_vm3, %v1248_v18, %v10600_v51  ;;  %v5520_v37 = vsel %vm8919_vm3, %v5515_v38, %v10609_v60  ;;  %v5535_v51 = vshll.u32 %v8551_v20, 16  ;;  %v5534_v1 = vrot.slane %v5532_v43, 4 }
 0x29a   : > { %v7067_v52 = vmul.f32 0.1, %v6939_v54  ;;  %v1835_v60 = vunpack.c.l.b16 %v1253_v47  ;;  %v6102_v50 = vunpack.c.l.b16 %v5520_v37  ;;  %v1271_v55 = vor.u32 %v1270_v39, %v1267_v40 }
 0x29b   : > { %v10658_v16 = vrot.slane %v5541_v6, 5 }
 0x29c   : > { %v7195_v4 = vmax.f32 %v6939_v54, %v7067_v52  ;;  %v2319_v2 = vpop.f32.mrf.mxu0  ;;  %v10647_v54 = vld [vmem:[%s8904_s7 + $0x1ac] sm:$0xf]  ;;  %v1272_v13 = vrot.slane %v1271_v55, 4 }
 0x29d   : > { %v6582_v3 = vpop.f32.mrf.mxu3  ;;  %v3173_v36 = vadd.f32 %v3172_v7, %v2319_v2  ;;  %v5529_v7 = vrot.slane %v5527_v8, 5  ;;  %v1284_v59 = vshll.u32 %v10647_v54, 16  ;;  %v5547_v8 = vrot.slane %v5545_v48, 4 }
 0x29e   : > { %v10617_v14 = vpop.f32.mrf.mxu2  ;;  %v7323_v19 = vpack.c.bf16 %v7195_v4, %v7195_v4  ;;  %v6808_v9 = vadd.f32 %v6582_v3, %v4382_v61  ;;  %v8553_v4 = vld [vmem:[%s8904_s7 + $0x1c0] sm:$0xf]  ;;  %v5537_v61 = vrot.slane %v5535_v51, 5  ;;  %v1922_v3 = vpack.c.b16 %v1836_v24, %v1835_v60 }
 0x29f   : > { %7634 = vmatmul.msk.bf16.gmra.mxu0 %vm1957_vm0, %v1921_v56  ;;  %v4383_v46 = vadd.f32 %v4159_v45, %v3173_v36  ;;  %v5530_v45 = vsel %vm8919_vm3, %v5525_v17, %v5529_v7  ;;  %v5551_v36 = vshll.u32 %v8553_v4, 16  ;;  %v10663_v18 = vrot.slane %v1284_v59, 5  ;;  %v8726_v7 = vld [vmem:[%s8904_s7 + $0x1a4] sm:$0xff] }
 0x2a0   : > { %7452 = vst.msk [vmem:[%s9151_s16 + $0xf8] sm:$0xf] %vm7389_vm4, %v7323_v19  ;;  %v6940_v22 = vadd.f32 %v10531_v23, %v6808_v9  ;;  %v6103_v10 = vunpack.c.l.b16 %v5530_v45  ;;  %v5538_v15 = vor.u32 %v5537_v61, %v5534_v1  ;;  %v5548_v17 = vor.u32 %v5547_v8, %v10658_v16  ;;  %v326_v1 = vld [vmem:[%s8904_s7 + $0x1b4] sm:$0x1]  ;;  %v8555_v59 = vld [vmem:[%s8904_s7 + $0x1c8] sm:$0x1] }
 0x2a1   : > { %v10627_v30 = vpop.f32.mrf.mxu1  ;;  %v1277_v27 = vsel %vm8919_vm3, %v1272_v13, %v10644_v63  ;;  %v10680_v20 = vrot.slane %v5551_v36, 5  ;;  %v1288_v31 = vshrl.u32 %v10647_v54, 16  ;;  %v1298_v45 = vshrl.u32 %v260_v21, 16 }
 0x2a2   : > { %v7068_v29 = vmul.f32 0.1, %v6940_v22  ;;  %8658 = vmatmul.msk.bf16.gmra.mxu3 %vm1957_vm0, %v6188_v0  ;;  %v6189_v9 = vpack.c.b16 %v6103_v10, %v6102_v50  ;;  %v5539_v34 = vrot.slane %v5538_v15, 4  ;;  %v5549_v37 = vrot.slane %v5548_v17, 4  ;;  %v262_v17 = vld [vmem:[%s8904_s7 + $0x1bc] sm:$0xf] }
 0x2a3   : > { %8423 = vmatmul.msk.bf16.gmra.mxu2 %vm1957_vm0, %v8793_v58  ;;  %v1290_v48 = vrot.slane %v1288_v31, 4  ;;  %v1300_v24 = vrot.slane %v1298_v45, 4  ;;  %v8556_v31 = vld [vmem:[%s8904_s7 + $0x1cc] sm:$0xf] }
 0x2a4   : > { %7963 = vmatmul.msk.bf16.gmra.mxu1 %vm1957_vm0, %v8725_v5  ;;  %v7196_v32 = vmax.f32 %v6940_v22, %v7068_v29  ;;  %v2321_v57 = vpop.f32.mrf.mxu0  ;;  %v1282_v5 = vrot.slane %v1281_v35, 4  ;;  %v8554_v29 = vld [vmem:[%s8904_s7 + $0x1c4] sm:$0xf]  ;;  %v5544_v54 = vsel %vm8919_vm3, %v5539_v34, %v10658_v16  ;;  %v5554_v6 = vsel %vm8919_vm3, %v5549_v37, %v10680_v20 }
 0x2a5   : > { %v6585_v28 = vpop.f32.mrf.mxu3  ;;  %v3175_v56 = vadd.f32 %v10606_v11, %v2321_v57  ;;  %v1294_v57 = vshll.u32 %v260_v21, 16  ;;  %v5565_v39 = vshrl.u32 %v8554_v29, 16  ;;  %v6105_v16 = vunpack.c.l.b16 %v5554_v6 }
 0x2a6   : > { %v4164_v49 = vpop.f32.mrf.mxu2  ;;  %v7324_v41 = vpack.c.bf16 %v7196_v32, %v7196_v32  ;;  %v6809_v42 = vadd.f32 %v6585_v28, %v4383_v46  ;;  %v5555_v32 = vshrl.u32 %v8553_v4, 16  ;;  %v5561_v28 = vshll.u32 %v8554_v29, 16 }
 0x2a7   : > { %v4384_v11 = vadd.f32 %v10617_v14, %v3175_v56  ;;  %v8794_v14 = vld [vmem:[%s8904_s7 + $0x1b8] sm:$0xff]  ;;  %v10693_v60 = vrot.slane %v1294_v57, 5  ;;  %v5567_v35 = vrot.slane %v5565_v39, 4  ;;  %v1291_v8 = vor.u32 %v1290_v48, %v10663_v18 }
 0x2a8   : > { %7453 = vst.msk [vmem:[%s9151_s16 + $0xfc] sm:$0xf] %vm7389_vm4, %v7324_v41  ;;  %v6941_v52 = vadd.f32 %v10531_v23, %v6809_v42  ;;  %v5557_v50 = vrot.slane %v5555_v32, 4  ;;  %v10702_v55 = vrot.slane %v5561_v28, 5  ;;  %v1318_v34 = vshll.u32 %v262_v17, 16 }
 0x2a9   : > { %v10653_v12 = vpop.f32.mrf.mxu1  ;;  %v1322_v37 = vshrl.u32 %v262_v17, 16  ;;  %v8557_v28 = vld [vmem:[%s8904_s7 + $0x1d0] sm:$0xf] }
 0x2aa   : > { %v7069_v2 = vmul.f32 0.1, %v6941_v52  ;;  %v5568_v36 = vor.u32 %v5567_v35, %v10702_v55  ;;  %v10737_v6 = vrot.slane %v1318_v34, 5  ;;  %v264_v34 = vld [vmem:[%s8904_s7 + $0x1c4] sm:$0xf] }
 0x2ab   : > { %v1324_v48 = vrot.slane %v1322_v37, 4 }
 0x2ac   : > { %v7197_v62 = vmax.f32 %v6941_v52, %v7069_v2  ;;  %v2324_v19 = vpop.f32.mrf.mxu0  ;;  %v6104_v2 = vunpack.c.l.b16 %v5544_v54  ;;  %v5569_v29 = vrot.slane %v5568_v36, 4 }
 0x2ad   : > { %v6587_v0 = vpop.f32.mrf.mxu3  ;;  %v3178_v22 = vadd.f32 %v10627_v30, %v2324_v19  ;;  %v1287_v30 = vsel %vm8919_vm3, %v1282_v5, %v10663_v18  ;;  %v261_v18 = vld [vmem:[%s8904_s7 + $0x1b8] sm:$0xf] }
 0x2ae   : > { %v10661_v58 = vpop.f32.mrf.mxu2  ;;  %v7325_v26 = vpack.c.bf16 %v7197_v62, %v7197_v62  ;;  %v6810_v38 = vadd.f32 %v6587_v0, %v4384_v11  ;;  %v1838_v51 = vunpack.c.l.b16 %v1287_v30  ;;  %v1304_v62 = vshll.u32 %v326_v1, 16 }
 0x2af   : > { %7635 = vmatmul.msk.bf16.gmra.mxu0 %vm1957_vm0, %v1922_v3  ;;  %v4385_v47 = vadd.f32 %v4164_v49, %v3178_v22  ;;  %v1837_v49 = vunpack.c.l.b16 %v1277_v27  ;;  %v1301_v3 = vor.u32 %v1300_v24, %v10693_v60  ;;  %v5571_v0 = vshll.u32 %v8555_v59, 16 }
 0x2b0   : > { %7454 = vst.msk [vmem:[%s9151_s16 + $0x100] sm:$0xf] %vm7389_vm4, %v7325_v26  ;;  %v6942_v25 = vadd.f32 %v10531_v23, %v6810_v38  ;;  %v6190_v22 = vpack.c.b16 %v6105_v16, %v6104_v2  ;;  %v1306_v21 = vrot.slane %v1304_v62, 5  ;;  %v5589_v1 = vshrl.u32 %v8557_v28, 16 }
 0x2b1   : > { %v3182_v44 = vpop.f32.mrf.mxu1  ;;  %v1923_v61 = vpack.c.b16 %v1838_v51, %v1837_v49  ;;  %v5576_v51 = vshrl.u32 %v8556_v31, 16  ;;  %v1325_v62 = vor.u32 %v1324_v48, %v10737_v6 }
 0x2b2   : > { %v7070_v46 = vmul.f32 0.1, %v6942_v25  ;;  %8659 = vmatmul.msk.bf16.gmra.mxu3 %vm1957_vm0, %v6189_v9 }
 0x2b3   : > { %8424 = vmatmul.msk.bf16.gmra.mxu2 %vm1957_vm0, %v8794_v14  ;;  %v8795_v14 = vld [vmem:[%s8904_s7 + $0x1c0] sm:$0xff] }
 0x2b4   : > { %7964 = vmatmul.msk.bf16.gmra.mxu1 %vm1957_vm0, %v8726_v7  ;;  %v7198_v40 = vmax.f32 %v6942_v25, %v7070_v46  ;;  %v2326_v43 = vpop.f32.mrf.mxu0  ;;  %v8727_v7 = vld [vmem:[%s8904_s7 + $0x1ac] sm:$0xff]  ;;  %v1302_v25 = vrot.slane %v1301_v3, 4  ;;  %v1309_v46 = vshrl.u32 %v261_v18, 16 }
 0x2b5   : > { %v6590_v63 = vpop.f32.mrf.mxu3  ;;  %v3180_v56 = vadd.f32 %v10653_v12, %v2326_v43  ;;  %v5558_v12 = vor.u32 %v5557_v50, %v10680_v20 }
 0x2b6   : > { %v4169_v53 = vpop.f32.mrf.mxu2  ;;  %v7326_v41 = vpack.c.bf16 %v7198_v40, %v7198_v40  ;;  %v6811_v42 = vadd.f32 %v6590_v63, %v4385_v47  ;;  %v1312_v47 = vshll.u32 %v261_v18, 16  ;;  %v1307_v40 = vsel %vm8919_vm3, %v1302_v25, %v1306_v21 }
 0x2b7   : > { %v4386_v19 = vadd.f32 %v10661_v58, %v3180_v56  ;;  %v1292_v58 = vrot.slane %v1291_v8, 4  ;;  %v5559_v27 = vrot.slane %v5558_v12, 4  ;;  %v1311_v49 = vrot.slane %v1309_v46, 4 }
 0x2b8   : > { %7455 = vst.msk [vmem:[%s9151_s16 + $0x104] sm:$0xf] %vm7389_vm4, %v7326_v41  ;;  %v6943_v52 = vadd.f32 %v10531_v23, %v6811_v42  ;;  %v1314_v54 = vrot.slane %v1312_v47, 5  ;;  %v5585_v56 = vshll.u32 %v8557_v28, 16  ;;  %v1840_v35 = vunpack.c.l.b16 %v1307_v40 }
 0x2b9   : > { %v10699_v10 = vpop.f32.mrf.mxu1  ;;  %v1297_v45 = vsel %vm8919_vm3, %v1292_v58, %v10693_v60  ;;  %v5564_v43 = vsel %vm8919_vm3, %v5559_v27, %v10702_v55  ;;  %v5579_v60 = vshll.u32 %v8556_v31, 16  ;;  %v5578_v8 = vrot.slane %v5576_v51, 4 }
 0x2ba   : > { %v7071_v4 = vmul.f32 0.1, %v6943_v52  ;;  %v1839_v55 = vunpack.c.l.b16 %v1297_v45  ;;  %v6106_v59 = vunpack.c.l.b16 %v5564_v43  ;;  %v1315_v3 = vor.u32 %v1314_v54, %v1311_v49 }
 0x2bb   : > { %v10751_v36 = vrot.slane %v5585_v56, 5 }
 0x2bc   : > { %v7199_v11 = vmax.f32 %v6943_v52, %v7071_v4  ;;  %v2329_v9 = vpop.f32.mrf.mxu0  ;;  %v10740_v52 = vld [vmem:[%s8904_s7 + $0x1c0] sm:$0xf]  ;;  %v1316_v17 = vrot.slane %v1315_v3, 4 }
 0x2bd   : > { %v6592_v13 = vpop.f32.mrf.mxu3  ;;  %v3183_v38 = vadd.f32 %v3182_v44, %v2329_v9  ;;  %v5573_v44 = vrot.slane %v5571_v0, 5  ;;  %v1328_v12 = vshll.u32 %v10740_v52, 16  ;;  %v5591_v0 = vrot.slane %v5589_v1, 4 }
 0x2be   : > { %v10710_v5 = vpop.f32.mrf.mxu2  ;;  %v7327_v15 = vpack.c.bf16 %v7199_v11, %v7199_v11  ;;  %v6812_v26 = vadd.f32 %v6592_v13, %v4386_v19  ;;  %v8558_v11 = vld [vmem:[%s8904_s7 + $0x1d4] sm:$0xf]  ;;  %v5581_v19 = vrot.slane %v5579_v60, 5  ;;  %v1924_v13 = vpack.c.b16 %v1840_v35, %v1839_v55 }
 0x2bf   : > { %7636 = vmatmul.msk.bf16.gmra.mxu0 %vm1957_vm0, %v1923_v61  ;;  %v4387_v57 = vadd.f32 %v4169_v53, %v3183_v38  ;;  %v5574_v53 = vsel %vm8919_vm3, %v5569_v29, %v5573_v44  ;;  %v5595_v38 = vshll.u32 %v8558_v11, 16  ;;  %v10756_v58 = vrot.slane %v1328_v12, 5  ;;  %v8728_v44 = vld [vmem:[%s8904_s7 + $0x1b8] sm:$0xff] }
 0x2c0   : > { %7456 = vst.msk [vmem:[%s9151_s16 + $0x108] sm:$0xf] %vm7389_vm4, %v7327_v15  ;;  %v6944_v30 = vadd.f32 %v10531_v23, %v6812_v26  ;;  %v6107_v16 = vunpack.c.l.b16 %v5574_v53  ;;  %v5582_v25 = vor.u32 %v5581_v19, %v5578_v8  ;;  %v5592_v29 = vor.u32 %v5591_v0, %v10751_v36  ;;  %v327_v8 = vld [vmem:[%s8904_s7 + $0x1c8] sm:$0x1]  ;;  %v8560_v12 = vld [vmem:[%s8904_s7 + $0x1dc] sm:$0x1] }
 0x2c1   : > { %v10720_v20 = vpop.f32.mrf.mxu1  ;;  %v1321_v37 = vsel %vm8919_vm3, %v1316_v17, %v10737_v6  ;;  %v10773_v31 = vrot.slane %v5595_v38, 5  ;;  %v1332_v28 = vshrl.u32 %v10740_v52, 16  ;;  %v1342_v53 = vshrl.u32 %v264_v34, 16 }
 0x2c2   : > { %v7072_v32 = vmul.f32 0.1, %v6944_v30  ;;  %8660 = vmatmul.msk.bf16.gmra.mxu3 %vm1957_vm0, %v6190_v22  ;;  %v6191_v26 = vpack.c.b16 %v6107_v16, %v6106_v59  ;;  %v5583_v40 = vrot.slane %v5582_v25, 4  ;;  %v5593_v43 = vrot.slane %v5592_v29, 4  ;;  %v266_v29 = vld [vmem:[%s8904_s7 + $0x1d0] sm:$0xf] }
 0x2c3   : > { %8425 = vmatmul.msk.bf16.gmra.mxu2 %vm1957_vm0, %v8795_v14  ;;  %v1334_v1 = vrot.slane %v1332_v28, 4  ;;  %v1344_v35 = vrot.slane %v1342_v53, 4  ;;  %v8561_v28 = vld [vmem:[%s8904_s7 + $0x1e0] sm:$0xf] }
 0x2c4   : > { %7965 = vmatmul.msk.bf16.gmra.mxu1 %vm1957_vm0, %v8727_v7  ;;  %v7200_v39 = vmax.f32 %v6944_v30, %v7072_v32  ;;  %v2331_v63 = vpop.f32.mrf.mxu0  ;;  %v1326_v7 = vrot.slane %v1325_v62, 4  ;;  %v8559_v32 = vld [vmem:[%s8904_s7 + $0x1d8] sm:$0xf]  ;;  %v5588_v52 = vsel %vm8919_vm3, %v5583_v40, %v10751_v36  ;;  %v5598_v56 = vsel %vm8919_vm3, %v5593_v43, %v10773_v31 }
 0x2c5   : > { %v6595_v41 = vpop.f32.mrf.mxu3  ;;  %v3185_v61 = vadd.f32 %v10699_v10, %v2331_v63  ;;  %v1338_v63 = vshll.u32 %v264_v34, 16  ;;  %v5609_v54 = vshrl.u32 %v8559_v32, 16  ;;  %v6109_v36 = vunpack.c.l.b16 %v5598_v56 }
 0x2c6   : > { %v4174_v42 = vpop.f32.mrf.mxu2  ;;  %v7328_v24 = vpack.c.bf16 %v7200_v39, %v7200_v39  ;;  %v6813_v50 = vadd.f32 %v6595_v41, %v4387_v57  ;;  %v5599_v39 = vshrl.u32 %v8558_v11, 16  ;;  %v5605_v41 = vshll.u32 %v8559_v32, 16 }
 0x2c7   : > { %v4388_v10 = vadd.f32 %v10710_v5, %v3185_v61  ;;  %v8796_v5 = vld [vmem:[%s8904_s7 + $0x1cc] sm:$0xff]  ;;  %v10786_v55 = vrot.slane %v1338_v63, 5  ;;  %v5611_v62 = vrot.slane %v5609_v54, 4  ;;  %v1335_v0 = vor.u32 %v1334_v1, %v10756_v58 }
 0x2c8   : > { %7457 = vst.msk [vmem:[%s9151_s16 + $0x10c] sm:$0xf] %vm7389_vm4, %v7328_v24  ;;  %v6945_v4 = vadd.f32 %v10531_v23, %v6813_v50  ;;  %v5601_v59 = vrot.slane %v5599_v39, 4  ;;  %v10795_v3 = vrot.slane %v5605_v41, 5  ;;  %v1362_v40 = vshll.u32 %v266_v29, 16 }
 0x2c9   : > { %v10746_v2 = vpop.f32.mrf.mxu1  ;;  %v1366_v43 = vshrl.u32 %v266_v29, 16  ;;  %v8562_v41 = vld [vmem:[%s8904_s7 + $0x1e4] sm:$0xf] }
 0x2ca   : > { %v7073_v9 = vmul.f32 0.1, %v6945_v4  ;;  %v5612_v38 = vor.u32 %v5611_v62, %v10795_v3  ;;  %v10830_v56 = vrot.slane %v1362_v40, 5  ;;  %v268_v40 = vld [vmem:[%s8904_s7 + $0x1d8] sm:$0xf] }
 0x2cb   : > { %v1368_v1 = vrot.slane %v1366_v43, 4 }
 0x2cc   : > { %v7201_v18 = vmax.f32 %v6945_v4, %v7073_v9  ;;  %v2334_v15 = vpop.f32.mrf.mxu0  ;;  %v6108_v9 = vunpack.c.l.b16 %v5588_v52  ;;  %v5613_v32 = vrot.slane %v5612_v38, 4 }
 0x2cd   : > { %v6597_v22 = vpop.f32.mrf.mxu3  ;;  %v3188_v30 = vadd.f32 %v10720_v20, %v2334_v15  ;;  %v1331_v20 = vsel %vm8919_vm3, %v1326_v7, %v10756_v58  ;;  %v265_v58 = vld [vmem:[%s8904_s7 + $0x1cc] sm:$0xf] }
 0x2ce   : > { %v10754_v14 = vpop.f32.mrf.mxu2  ;;  %v7329_v21 = vpack.c.bf16 %v7201_v18, %v7201_v18  ;;  %v6814_v27 = vadd.f32 %v6597_v22, %v4388_v10  ;;  %v1842_v60 = vunpack.c.l.b16 %v1331_v20  ;;  %v1348_v18 = vshll.u32 %v327_v8, 16 }
 0x2cf   : > { %7637 = vmatmul.msk.bf16.gmra.mxu0 %vm1957_vm0, %v1924_v13  ;;  %v4389_v45 = vadd.f32 %v4174_v42, %v3188_v30  ;;  %v1841_v42 = vunpack.c.l.b16 %v1321_v37  ;;  %v1345_v13 = vor.u32 %v1344_v35, %v10786_v55  ;;  %v5615_v22 = vshll.u32 %v8560_v12, 16 }
 0x2d0   : > { %7458 = vst.msk [vmem:[%s9151_s16 + $0x110] sm:$0xf] %vm7389_vm4, %v7329_v21  ;;  %v6946_v46 = vadd.f32 %v10531_v23, %v6814_v27  ;;  %v6192_v30 = vpack.c.b16 %v6109_v36, %v6108_v9  ;;  %v1350_v34 = vrot.slane %v1348_v18, 5  ;;  %v5633_v8 = vshrl.u32 %v8562_v41, 16 }
 0x2d1   : > { %v3192_v47 = vpop.f32.mrf.mxu1  ;;  %v1925_v19 = vpack.c.b16 %v1842_v60, %v1841_v42  ;;  %v5620_v60 = vshrl.u32 %v8561_v28, 16  ;;  %v1369_v18 = vor.u32 %v1368_v1, %v10830_v56 }
 0x2d2   : > { %v7074_v57 = vmul.f32 0.1, %v6946_v46  ;;  %8661 = vmatmul.msk.bf16.gmra.mxu3 %vm1957_vm0, %v6191_v26 }
 0x2d3   : > { %8426 = vmatmul.msk.bf16.gmra.mxu2 %vm1957_vm0, %v8796_v5  ;;  %v8797_v5 = vld [vmem:[%s8904_s7 + $0x1d4] sm:$0xff] }
 0x2d4   : > { %7966 = vmatmul.msk.bf16.gmra.mxu1 %vm1957_vm0, %v8728_v44  ;;  %v7202_v49 = vmax.f32 %v6946_v46, %v7074_v57  ;;  %v2336_v51 = vpop.f32.mrf.mxu0  ;;  %v8729_v44 = vld [vmem:[%s8904_s7 + $0x1c0] sm:$0xff]  ;;  %v1346_v46 = vrot.slane %v1345_v13, 4  ;;  %v1353_v57 = vshrl.u32 %v265_v58, 16 }
 0x2d5   : > { %v6600_v6 = vpop.f32.mrf.mxu3  ;;  %v3190_v61 = vadd.f32 %v10746_v2, %v2336_v51  ;;  %v5602_v2 = vor.u32 %v5601_v59, %v10773_v31 }
 0x2d6   : > { %v4179_v48 = vpop.f32.mrf.mxu2  ;;  %v7330_v24 = vpack.c.bf16 %v7202_v49, %v7202_v49  ;;  %v6815_v50 = vadd.f32 %v6600_v6, %v4389_v45  ;;  %v1356_v45 = vshll.u32 %v265_v58, 16  ;;  %v1351_v49 = vsel %vm8919_vm3, %v1346_v46, %v1350_v34 }
 0x2d7   : > { %v4390_v15 = vadd.f32 %v10754_v14, %v3190_v61  ;;  %v1336_v14 = vrot.slane %v1335_v0, 4  ;;  %v5603_v37 = vrot.slane %v5602_v2, 4  ;;  %v1355_v42 = vrot.slane %v1353_v57, 4 }
 0x2d8   : > { %7459 = vst.msk [vmem:[%s9151_s16 + $0x114] sm:$0xf] %vm7389_vm4, %v7330_v24  ;;  %v6947_v4 = vadd.f32 %v10531_v23, %v6815_v50  ;;  %v1358_v52 = vrot.slane %v1356_v45, 5  ;;  %v5629_v61 = vshll.u32 %v8562_v41, 16  ;;  %v1844_v62 = vunpack.c.l.b16 %v1351_v49 }
 0x2d9   : > { %v10792_v16 = vpop.f32.mrf.mxu1  ;;  %v1341_v53 = vsel %vm8919_vm3, %v1336_v14, %v10786_v55  ;;  %v5608_v51 = vsel %vm8919_vm3, %v5603_v37, %v10795_v3  ;;  %v5623_v55 = vshll.u32 %v8561_v28, 16  ;;  %v5622_v0 = vrot.slane %v5620_v60, 4 }
 0x2da   : > { %v7075_v11 = vmul.f32 0.1, %v6947_v4  ;;  %v1843_v3 = vunpack.c.l.b16 %v1341_v53  ;;  %v6110_v12 = vunpack.c.l.b16 %v5608_v51  ;;  %v1359_v13 = vor.u32 %v1358_v52, %v1355_v42 }
 0x2db   : > { %v10844_v38 = vrot.slane %v5629_v61, 5 }
 0x2dc   : > { %v7203_v10 = vmax.f32 %v6947_v4, %v7075_v11  ;;  %v2339_v26 = vpop.f32.mrf.mxu0  ;;  %v10833_v4 = vld [vmem:[%s8904_s7 + $0x1d4] sm:$0xf]  ;;  %v1360_v29 = vrot.slane %v1359_v13, 4 }
 0x2dd   : > { %v6602_v17 = vpop.f32.mrf.mxu3  ;;  %v3193_v27 = vadd.f32 %v3192_v47, %v2339_v26  ;;  %v5617_v47 = vrot.slane %v5615_v22, 5  ;;  %v1372_v2 = vshll.u32 %v10833_v4, 16  ;;  %v5635_v22 = vrot.slane %v5633_v8, 4 }
 0x2de   : > { %v10803_v7 = vpop.f32.mrf.mxu2  ;;  %v7331_v25 = vpack.c.bf16 %v7203_v10, %v7203_v10  ;;  %v6816_v21 = vadd.f32 %v6602_v17, %v4390_v15  ;;  %v8563_v10 = vld [vmem:[%s8904_s7 + $0x1e8] sm:$0xf]  ;;  %v5625_v15 = vrot.slane %v5623_v55, 5  ;;  %v1926_v17 = vpack.c.b16 %v1844_v62, %v1843_v3 }
 0x2df   : > { %7638 = vmatmul.msk.bf16.gmra.mxu0 %vm1957_vm0, %v1925_v19  ;;  %v4391_v63 = vadd.f32 %v4179_v48, %v3193_v27  ;;  %v5618_v48 = vsel %vm8919_vm3, %v5613_v32, %v5617_v47  ;;  %v5639_v27 = vshll.u32 %v8563_v10, 16  ;;  %v10849_v14 = vrot.slane %v1372_v2, 5  ;;  %v8730_v47 = vld [vmem:[%s8904_s7 + $0x1cc] sm:$0xff] }
 0x2e0   : > { %7460 = vst.msk [vmem:[%s9151_s16 + $0x118] sm:$0xf] %vm7389_vm4, %v7331_v25  ;;  %v6948_v20 = vadd.f32 %v10531_v23, %v6816_v21  ;;  %v6111_v36 = vunpack.c.l.b16 %v5618_v48  ;;  %v5626_v46 = vor.u32 %v5625_v15, %v5622_v0  ;;  %v5636_v32 = vor.u32 %v5635_v22, %v10844_v38  ;;  %v328_v0 = vld [vmem:[%s8904_s7 + $0x1dc] sm:$0x1]  ;;  %v8565_v2 = vld [vmem:[%s8904_s7 + $0x1f0] sm:$0x1] }
 0x2e1   : > { %v10813_v31 = vpop.f32.mrf.mxu1  ;;  %v1365_v43 = vsel %vm8919_vm3, %v1360_v29, %v10830_v56  ;;  %v10866_v28 = vrot.slane %v5639_v27, 5  ;;  %v1376_v51 = vshrl.u32 %v10833_v4, 16  ;;  %v5643_v41 = vshrl.u32 %v8563_v10, 16 }
 0x2e2   : > { %v7076_v39 = vmul.f32 0.1, %v6948_v20  ;;  %8662 = vmatmul.msk.bf16.gmra.mxu3 %vm1957_vm0, %v6192_v30  ;;  %v6193_v21 = vpack.c.b16 %v6111_v36, %v6110_v12  ;;  %v5637_v49 = vrot.slane %v5636_v32, 4  ;;  %v10886_v12 = vld [vmem:[%s11730_s2] ss:$0 sm:$0xff] }
 0x2e3   : > { %8427 = vmatmul.msk.bf16.gmra.mxu2 %vm1957_vm0, %v8797_v5  ;;  %v1378_v61 = vrot.slane %v1376_v51, 4  ;;  %v5645_v62 = vrot.slane %v5643_v41, 4  ;;  %v270_v32 = vld [vmem:[%s8904_s7 + $0x1e4] sm:$0xf]  ;;  %v8566_v51 = vld [vmem:[%s8904_s7 + $0x1f4] sm:$0xf] }
 0x2e4   : > { %7967 = vmatmul.msk.bf16.gmra.mxu1 %vm1957_vm0, %v8729_v44  ;;  %v7204_v54 = vmax.f32 %v6948_v20, %v7076_v39  ;;  %v2341_v6 = vpop.f32.mrf.mxu0  ;;  %v1370_v44 = vrot.slane %v1369_v18, 4  ;;  %v8564_v39 = vld [vmem:[%s8904_s7 + $0x1ec] sm:$0xf]  ;;  %v5642_v4 = vsel %vm8919_vm3, %v5637_v49, %v10866_v28  ;;  %v1410_v49 = vshrl.u32 %v270_v32, 16 }
 0x2e5   : > { %v6605_v24 = vpop.f32.mrf.mxu3  ;;  %v3195_v19 = vadd.f32 %v10792_v16, %v2341_v6  ;;  %v1386_v6 = vshrl.u32 %v268_v40, 16  ;;  %v5649_v60 = vshll.u32 %v8564_v39, 16  ;;  %v1379_v22 = vor.u32 %v1378_v61, %v10849_v14 }
 0x2e6   : > { %v4184_v50 = vpop.f32.mrf.mxu2  ;;  %v7332_v35 = vpack.c.bf16 %v7204_v54, %v7204_v54  ;;  %v6817_v59 = vadd.f32 %v6605_v24, %v4391_v63  ;;  %v1382_v54 = vshll.u32 %v268_v40, 16  ;;  %v5653_v24 = vshrl.u32 %v8564_v39, 16 }
 0x2e7   : > { %v4392_v16 = vadd.f32 %v10803_v7, %v3195_v19  ;;  %v8798_v7 = vld [vmem:[%s8904_s7 + $0x1e0] sm:$0xff]  ;;  %v1388_v3 = vrot.slane %v1386_v6, 4  ;;  %v10893_v13 = vrot.slane %v5649_v60, 5  ;;  %v8567_v60 = vld [vmem:[%s8904_s7 + $0x1f8] sm:$0xf]  ;;  %v1412_v61 = vrot.slane %v1410_v49, 4 }
 0x2e8   : > { %7461 = vst.msk [vmem:[%s9151_s16 + $0x11c] sm:$0xf] %vm7389_vm4, %v7332_v35  ;;  %v6949_v11 = vadd.f32 %v10531_v23, %v6817_v59  ;;  %v10879_v8 = vrot.slane %v1382_v54, 5  ;;  %v5655_v18 = vrot.slane %v5653_v24, 4 }
 0x2e9   : > { %v10839_v9 = vpop.f32.mrf.mxu1 }
 0x2ea   : > { %v7077_v26 = vmul.f32 0.1, %v6949_v11  ;;  %v5656_v27 = vor.u32 %v5655_v18, %v10893_v13 }
 0x2ec   : > { %v7205_v58 = vmax.f32 %v6949_v11, %v7077_v26  ;;  %v2344_v25 = vpop.f32.mrf.mxu0  ;;  %v5657_v39 = vrot.slane %v5656_v27, 4 }
 0x2ed   : > { %v6607_v30 = vpop.f32.mrf.mxu3  ;;  %v3198_v20 = vadd.f32 %v10813_v31, %v2344_v25  ;;  %v1375_v31 = vsel %vm8919_vm3, %v1370_v44, %v10849_v14  ;;  %v269_v14 = vld [vmem:[%s8904_s7 + $0x1e0] sm:$0xf] }
 0x2ee   : > { %v10847_v5 = vpop.f32.mrf.mxu2  ;;  %v7333_v34 = vpack.c.bf16 %v7205_v58, %v7205_v58  ;;  %v6818_v37 = vadd.f32 %v6607_v30, %v4392_v16  ;;  %v1846_v1 = vunpack.c.l.b16 %v1375_v31  ;;  %v1392_v58 = vshll.u32 %v328_v0, 16 }
 0x2ef   : > { %7639 = vmatmul.msk.bf16.gmra.mxu0 %vm1957_vm0, %v1926_v17  ;;  %v4393_v53 = vadd.f32 %v4184_v50, %v3198_v20  ;;  %v1845_v50 = vunpack.c.l.b16 %v1365_v43  ;;  %v1389_v17 = vor.u32 %v1388_v3, %v10879_v8  ;;  %v5659_v30 = vshll.u32 %v8565_v2, 16 }
 0x2f0   : > { %7462 = vst.msk [vmem:[%s9151_s16 + $0x120] sm:$0xf] %vm7389_vm4, %v7333_v34  ;;  %v6950_v57 = vadd.f32 %v10531_v23, %v6818_v37  ;;  %v5627_v23 = vrot.slane %v5626_v46, 4  ;;  %v1394_v40 = vrot.slane %v1392_v58, 5  ;;  %v5677_v0 = vshrl.u32 %v8567_v60, 16 }
 0x2f1   : > { %v3202_v45 = vpop.f32.mrf.mxu1  ;;  %v1927_v15 = vpack.c.b16 %v1846_v1, %v1845_v50  ;;  %v5664_v1 = vshrl.u32 %v8566_v51, 16 }
 0x2f2   : > { %v7078_v63 = vmul.f32 0.1, %v6950_v57  ;;  %8663 = vmatmul.msk.bf16.gmra.mxu3 %vm1957_vm0, %v6193_v21  ;;  %v5632_v59 = vsel %vm8919_vm3, %v5627_v23, %v10844_v38  ;;  %v6113_v38 = vunpack.c.l.b16 %v5642_v4  ;;  %v1406_v23 = vshll.u32 %v270_v32, 16 }
 0x2f3   : > { %8428 = vmatmul.msk.bf16.gmra.mxu2 %vm1957_vm0, %v8798_v7  ;;  %v6112_v26 = vunpack.c.l.b16 %v5632_v59  ;;  %v8799_v7 = vld [vmem:[%s8904_s7 + $0x1e8] sm:$0xff] }
 0x2f4   : > { %7968 = vmatmul.msk.bf16.gmra.mxu1 %vm1957_vm0, %v8730_v47  ;;  %v7206_v48 = vmax.f32 %v6950_v57, %v7078_v63  ;;  %v2346_v42 = vpop.f32.mrf.mxu0  ;;  %v8731_v47 = vld [vmem:[%s8904_s7 + $0x1d4] sm:$0xff]  ;;  %v1390_v57 = vrot.slane %v1389_v17, 4  ;;  %v1397_v63 = vshrl.u32 %v269_v14, 16  ;;  %v10928_v4 = vrot.slane %v1406_v23, 5  ;;  %v272_v23 = vld [vmem:[%s8904_s7 + $0x1ec] sm:$0xf] }
 0x2f5   : > { %v6610_v52 = vpop.f32.mrf.mxu3  ;;  %v3200_v19 = vadd.f32 %v10839_v9, %v2346_v42  ;;  %v5646_v9 = vor.u32 %v5645_v62, %v10866_v28  ;;  %v6194_v20 = vpack.c.b16 %v6113_v38, %v6112_v26 }
 0x2f6   : > { %v4189_v56 = vpop.f32.mrf.mxu2  ;;  %v7334_v55 = vpack.c.bf16 %v7206_v48, %v7206_v48  ;;  %v6819_v35 = vadd.f32 %v6610_v52, %v4393_v53  ;;  %v1400_v53 = vshll.u32 %v269_v14, 16  ;;  %v1395_v48 = vsel %vm8919_vm3, %v1390_v57, %v1394_v40 }
 0x2f7   : > { %v4394_v25 = vadd.f32 %v10847_v5, %v3200_v19  ;;  %v1380_v5 = vrot.slane %v1379_v22, 4  ;;  %v5647_v43 = vrot.slane %v5646_v9, 4  ;;  %v1399_v50 = vrot.slane %v1397_v63, 4 }
 0x2f8   : > { %7463 = vst.msk [vmem:[%s9151_s16 + $0x124] sm:$0xf] %vm7389_vm4, %v7334_v55  ;;  %v6951_v11 = vadd.f32 %v10886_v12, %v6819_v35  ;;  %v1402_v59 = vrot.slane %v1400_v53, 5  ;;  %v5673_v19 = vshll.u32 %v8567_v60, 16  ;;  %v1848_v18 = vunpack.c.l.b16 %v1395_v48 }
 0x2f9   : > { %v10890_v36 = vpop.f32.mrf.mxu1  ;;  %v1385_v6 = vsel %vm8919_vm3, %v1380_v5, %v10879_v8  ;;  %v5652_v42 = vsel %vm8919_vm3, %v5647_v43, %v10893_v13  ;;  %v5667_v8 = vshll.u32 %v8566_v51, 16  ;;  %v5666_v22 = vrot.slane %v5664_v1, 4 }
 0x2fa   : > { %v7079_v10 = vmul.f32 0.1, %v6951_v11  ;;  %v1847_v13 = vunpack.c.l.b16 %v1385_v6  ;;  %v6114_v2 = vunpack.c.l.b16 %v5652_v42  ;;  %v1403_v17 = vor.u32 %v1402_v59, %v1399_v50 }
 0x2fb   : > { %v1413_v58 = vor.u32 %v1412_v61, %v10928_v4  ;;  %v10942_v27 = vrot.slane %v5673_v19, 5 }
 0x2fc   : > { %v7207_v16 = vmax.f32 %v6951_v11, %v7079_v10  ;;  %v2349_v21 = vpop.f32.mrf.mxu0  ;;  %v10931_v11 = vld [vmem:[%s8904_s7 + $0x1e8] sm:$0xf]  ;;  %v1404_v32 = vrot.slane %v1403_v17, 4 }
 0x2fd   : > { %v6612_v29 = vpop.f32.mrf.mxu3  ;;  %v3203_v37 = vadd.f32 %v3202_v45, %v2349_v21  ;;  %v5661_v45 = vrot.slane %v5659_v30, 5  ;;  %v1416_v9 = vshll.u32 %v10931_v11, 16  ;;  %v5679_v30 = vrot.slane %v5677_v0, 4 }
 0x2fe   : > { %v10901_v44 = vpop.f32.mrf.mxu2  ;;  %v7335_v46 = vpack.c.bf16 %v7207_v16, %v7207_v16  ;;  %v6820_v34 = vadd.f32 %v6612_v29, %v4394_v25  ;;  %v8568_v16 = vld [vmem:[%s8904_s7 + $0x1fc] sm:$0xf]  ;;  %v5669_v25 = vrot.slane %v5667_v8, 5  ;;  %v1928_v29 = vpack.c.b16 %v1848_v18, %v1847_v13 }
 0x2ff   : > { %7640 = vmatmul.msk.bf16.gmra.mxu0 %vm1957_vm0, %v1927_v15  ;;  %v4395_v54 = vadd.f32 %v4189_v56, %v3203_v37  ;;  %v5662_v56 = vsel %vm8919_vm3, %v5657_v39, %v5661_v45  ;;  %v5683_v37 = vshll.u32 %v8568_v16, 16  ;;  %v10947_v5 = vrot.slane %v1416_v9, 5  ;;  %v8732_v45 = vld [vmem:[%s8904_s7 + $0x1e0] sm:$0xff] }
 0x300   : > { %7464 = vst.msk [vmem:[%s9151_s16 + $0x128] sm:$0xf] %vm7389_vm4, %v7335_v46  ;;  %v6952_v31 = vadd.f32 %v10886_v12, %v6820_v34  ;;  %v6115_v38 = vunpack.c.l.b16 %v5662_v56  ;;  %v5670_v57 = vor.u32 %v5669_v25, %v5666_v22  ;;  %v5680_v39 = vor.u32 %v5679_v30, %v10942_v27  ;;  %v329_v22 = vld [vmem:[%s8904_s7 + $0x1f0] sm:$0x1]  ;;  %v8570_v9 = vld [vmem:[%s8904_s7 + $0x204] sm:$0x1] }
 0x301   : > { %v10911_v28 = vpop.f32.mrf.mxu1  ;;  %v1409_v49 = vsel %vm8919_vm3, %v1404_v32, %v10928_v4  ;;  %v10964_v51 = vrot.slane %v5683_v37, 5  ;;  %v1420_v60 = vshrl.u32 %v10931_v11, 16  ;;  %v1430_v56 = vshrl.u32 %v272_v23, 16 }
 0x302   : > { %v7080_v41 = vmul.f32 0.1, %v6952_v31  ;;  %8664 = vmatmul.msk.bf16.gmra.mxu3 %vm1957_vm0, %v6194_v20  ;;  %v6195_v34 = vpack.c.b16 %v6115_v38, %v6114_v2  ;;  %v5671_v48 = vrot.slane %v5670_v57, 4  ;;  %v5681_v42 = vrot.slane %v5680_v39, 4  ;;  %v274_v39 = vld [vmem:[%s8904_s7 + $0x1f8] sm:$0xf] }
 0x303   : > { %8429 = vmatmul.msk.bf16.gmra.mxu2 %vm1957_vm0, %v8799_v7  ;;  %v1422_v0 = vrot.slane %v1420_v60, 4  ;;  %v1432_v18 = vrot.slane %v1430_v56, 4  ;;  %v8571_v60 = vld [vmem:[%s8904_s7 + $0x208] sm:$0xf] }
 0x304   : > { %7969 = vmatmul.msk.bf16.gmra.mxu1 %vm1957_vm0, %v8731_v47  ;;  %v7208_v24 = vmax.f32 %v6952_v31, %v7080_v41  ;;  %v2351_v52 = vpop.f32.mrf.mxu0  ;;  %v1414_v47 = vrot.slane %v1413_v58, 4  ;;  %v8569_v41 = vld [vmem:[%s8904_s7 + $0x200] sm:$0xf]  ;;  %v5676_v11 = vsel %vm8919_vm3, %v5671_v48, %v10942_v27  ;;  %v5686_v19 = vsel %vm8919_vm3, %v5681_v42, %v10964_v51 }
 0x305   : > { %v6615_v55 = vpop.f32.mrf.mxu3  ;;  %v3205_v15 = vadd.f32 %v10890_v36, %v2351_v52  ;;  %v1426_v52 = vshll.u32 %v272_v23, 16  ;;  %v5697_v59 = vshrl.u32 %v8569_v41, 16  ;;  %v6117_v27 = vunpack.c.l.b16 %v5686_v19 }
 0x306   : > { %v4194_v35 = vpop.f32.mrf.mxu2  ;;  %v7336_v3 = vpack.c.bf16 %v7208_v24, %v7208_v24  ;;  %v6821_v62 = vadd.f32 %v6615_v55, %v4395_v54  ;;  %v5687_v24 = vshrl.u32 %v8568_v16, 16  ;;  %v5693_v55 = vshll.u32 %v8569_v41, 16 }
 0x307   : > { %v4396_v36 = vadd.f32 %v10901_v44, %v3205_v15  ;;  %v8800_v44 = vld [vmem:[%s8904_s7 + $0x1f4] sm:$0xff]  ;;  %v10977_v13 = vrot.slane %v1426_v52, 5  ;;  %v5699_v58 = vrot.slane %v5697_v59, 4  ;;  %v1423_v30 = vor.u32 %v1422_v0, %v10947_v5 }
 0x308   : > { %7465 = vst.msk [vmem:[%s9151_s16 + $0x12c] sm:$0xf] %vm7389_vm4, %v7336_v3  ;;  %v6953_v10 = vadd.f32 %v10886_v12, %v6821_v62  ;;  %v5689_v2 = vrot.slane %v5687_v24, 4  ;;  %v10986_v17 = vrot.slane %v5693_v55, 5  ;;  %v1450_v48 = vshll.u32 %v274_v39, 16 }
 0x309   : > { %v10937_v26 = vpop.f32.mrf.mxu1  ;;  %v1454_v42 = vshrl.u32 %v274_v39, 16  ;;  %v8572_v55 = vld [vmem:[%s8904_s7 + $0x20c] sm:$0xf] }
 0x30a   : > { %v7081_v21 = vmul.f32 0.1, %v6953_v10  ;;  %v5700_v37 = vor.u32 %v5699_v58, %v10986_v17  ;;  %v11021_v19 = vrot.slane %v1450_v48, 5  ;;  %v276_v48 = vld [vmem:[%s8904_s7 + $0x200] sm:$0xf] }
 0x30b   : > { %v1456_v0 = vrot.slane %v1454_v42, 4 }
 0x30c   : > { %v7209_v14 = vmax.f32 %v6953_v10, %v7081_v21  ;;  %v2354_v46 = vpop.f32.mrf.mxu0  ;;  %v6116_v21 = vunpack.c.l.b16 %v5676_v11  ;;  %v5701_v41 = vrot.slane %v5700_v37, 4 }
 0x30d   : > { %v6617_v20 = vpop.f32.mrf.mxu3  ;;  %v3208_v31 = vadd.f32 %v10911_v28, %v2354_v46  ;;  %v1419_v28 = vsel %vm8919_vm3, %v1414_v47, %v10947_v5  ;;  %v273_v5 = vld [vmem:[%s8904_s7 + $0x1f4] sm:$0xf] }
 0x30e   : > { %v10945_v7 = vpop.f32.mrf.mxu2  ;;  %v7337_v40 = vpack.c.bf16 %v7209_v14, %v7209_v14  ;;  %v6822_v43 = vadd.f32 %v6617_v20, %v4396_v36  ;;  %v1850_v8 = vunpack.c.l.b16 %v1419_v28  ;;  %v1436_v14 = vshll.u32 %v329_v22, 16 }
 0x30f   : > { %7641 = vmatmul.msk.bf16.gmra.mxu0 %vm1957_vm0, %v1928_v29  ;;  %v4397_v6 = vadd.f32 %v4194_v35, %v3208_v31  ;;  %v1849_v35 = vunpack.c.l.b16 %v1409_v49  ;;  %v1433_v29 = vor.u32 %v1432_v18, %v10977_v13  ;;  %v5703_v20 = vshll.u32 %v8570_v9, 16 }
 0x310   : > { %7466 = vst.msk [vmem:[%s9151_s16 + $0x130] sm:$0xf] %vm7389_vm4, %v7337_v40  ;;  %v6954_v63 = vadd.f32 %v10886_v12, %v6822_v43  ;;  %v6196_v31 = vpack.c.b16 %v6117_v27, %v6116_v21  ;;  %v1438_v23 = vrot.slane %v1436_v14, 5  ;;  %v5721_v22 = vshrl.u32 %v8572_v55, 16 }
 0x311   : > { %v3212_v53 = vpop.f32.mrf.mxu1  ;;  %v1929_v25 = vpack.c.b16 %v1850_v8, %v1849_v35  ;;  %v5708_v8 = vshrl.u32 %v8571_v60, 16  ;;  %v1457_v14 = vor.u32 %v1456_v0, %v11021_v19 }
 0x312   : > { %v7082_v54 = vmul.f32 0.1, %v6954_v63  ;;  %8665 = vmatmul.msk.bf16.gmra.mxu3 %vm1957_vm0, %v6195_v34 }
 0x313   : > { %8430 = vmatmul.msk.bf16.gmra.mxu2 %vm1957_vm0, %v8800_v44  ;;  %v8801_v44 = vld [vmem:[%s8904_s7 + $0x1fc] sm:$0xff] }
 0x314   : > { %7970 = vmatmul.msk.bf16.gmra.mxu1 %vm1957_vm0, %v8732_v45  ;;  %v7210_v50 = vmax.f32 %v6954_v63, %v7082_v54  ;;  %v2356_v1 = vpop.f32.mrf.mxu0  ;;  %v8733_v45 = vld [vmem:[%s8904_s7 + $0x1e8] sm:$0xff]  ;;  %v1434_v63 = vrot.slane %v1433_v29, 4  ;;  %v1441_v54 = vshrl.u32 %v273_v5, 16 }
 0x315   : > { %v6620_v4 = vpop.f32.mrf.mxu3  ;;  %v3210_v15 = vadd.f32 %v10937_v26, %v2356_v1  ;;  %v5690_v26 = vor.u32 %v5689_v2, %v10964_v51 }
 0x316   : > { %v4199_v61 = vpop.f32.mrf.mxu2  ;;  %v7338_v3 = vpack.c.bf16 %v7210_v50, %v7210_v50  ;;  %v6823_v62 = vadd.f32 %v6620_v4, %v4397_v6  ;;  %v1444_v6 = vshll.u32 %v273_v5, 16  ;;  %v1439_v50 = vsel %vm8919_vm3, %v1434_v63, %v1438_v23 }
 0x317   : > { %v4398_v46 = vadd.f32 %v10945_v7, %v3210_v15  ;;  %v1424_v7 = vrot.slane %v1423_v30, 4  ;;  %v5691_v49 = vrot.slane %v5690_v26, 4  ;;  %v1443_v35 = vrot.slane %v1441_v54, 4 }
 0x318   : > { %7467 = vst.msk [vmem:[%s9151_s16 + $0x134] sm:$0xf] %vm7389_vm4, %v7338_v3  ;;  %v6955_v10 = vadd.f32 %v10886_v12, %v6823_v62  ;;  %v1446_v11 = vrot.slane %v1444_v6, 5  ;;  %v5717_v15 = vshll.u32 %v8572_v55, 16  ;;  %v1852_v58 = vunpack.c.l.b16 %v1439_v50 }
 0x319   : > { %v10983_v38 = vpop.f32.mrf.mxu1  ;;  %v1429_v56 = vsel %vm8919_vm3, %v1424_v7, %v10977_v13  ;;  %v5696_v1 = vsel %vm8919_vm3, %v5691_v49, %v10986_v17  ;;  %v5711_v13 = vshll.u32 %v8571_v60, 16  ;;  %v5710_v30 = vrot.slane %v5708_v8, 4 }
 0x31a   : > { %v7083_v16 = vmul.f32 0.1, %v6955_v10  ;;  %v1851_v17 = vunpack.c.l.b16 %v1429_v56  ;;  %v6118_v9 = vunpack.c.l.b16 %v5696_v1  ;;  %v1447_v29 = vor.u32 %v1446_v11, %v1443_v35 }
 0x31b   : > { %v11035_v37 = vrot.slane %v5717_v15, 5 }
 0x31c   : > { %v7211_v36 = vmax.f32 %v6955_v10, %v7083_v16  ;;  %v2359_v34 = vpop.f32.mrf.mxu0  ;;  %v11024_v10 = vld [vmem:[%s8904_s7 + $0x1fc] sm:$0xf]  ;;  %v1448_v39 = vrot.slane %v1447_v29, 4 }
 0x31d   : > { %v6622_v32 = vpop.f32.mrf.mxu3  ;;  %v3213_v43 = vadd.f32 %v3212_v53, %v2359_v34  ;;  %v5705_v53 = vrot.slane %v5703_v20, 5  ;;  %v1460_v26 = vshll.u32 %v11024_v10, 16  ;;  %v5723_v20 = vrot.slane %v5721_v22, 4 }
 0x31e   : > { %v10994_v47 = vpop.f32.mrf.mxu2  ;;  %v7339_v57 = vpack.c.bf16 %v7211_v36, %v7211_v36  ;;  %v6824_v40 = vadd.f32 %v6622_v32, %v4398_v46  ;;  %v8573_v36 = vld [vmem:[%s8904_s7 + $0x210] sm:$0xf]  ;;  %v5713_v46 = vrot.slane %v5711_v13, 5  ;;  %v1930_v32 = vpack.c.b16 %v1852_v58, %v1851_v17 }
 0x31f   : > { %7642 = vmatmul.msk.bf16.gmra.mxu0 %vm1957_vm0, %v1929_v25  ;;  %v4399_v52 = vadd.f32 %v4199_v61, %v3213_v43  ;;  %v5706_v61 = vsel %vm8919_vm3, %v5701_v41, %v5705_v53  ;;  %v5727_v43 = vshll.u32 %v8573_v36, 16  ;;  %v11040_v7 = vrot.slane %v1460_v26, 5  ;;  %v8734_v53 = vld [vmem:[%s8904_s7 + $0x1f4] sm:$0xff] }
 0x320   : > { %7468 = vst.msk [vmem:[%s9151_s16 + $0x138] sm:$0xf] %vm7389_vm4, %v7339_v57  ;;  %v6956_v28 = vadd.f32 %v10886_v12, %v6824_v40  ;;  %v6119_v27 = vunpack.c.l.b16 %v5706_v61  ;;  %v5714_v63 = vor.u32 %v5713_v46, %v5710_v30  ;;  %v5724_v41 = vor.u32 %v5723_v20, %v11035_v37  ;;  %v330_v30 = vld [vmem:[%s8904_s7 + $0x204] sm:$0x1]  ;;  %v8575_v26 = vld [vmem:[%s8904_s7 + $0x218] sm:$0x1] }
 0x321   : > { %v11004_v51 = vpop.f32.mrf.mxu1  ;;  %v1453_v42 = vsel %vm8919_vm3, %v1448_v39, %v11021_v19  ;;  %v11057_v60 = vrot.slane %v5727_v43, 5  ;;  %v1464_v55 = vshrl.u32 %v11024_v10, 16  ;;  %v1474_v61 = vshrl.u32 %v276_v48, 16 }
 0x322   : > { %v7084_v24 = vmul.f32 0.1, %v6956_v28  ;;  %8666 = vmatmul.msk.bf16.gmra.mxu3 %vm1957_vm0, %v6196_v31  ;;  %v6197_v40 = vpack.c.b16 %v6119_v27, %v6118_v9  ;;  %v5715_v50 = vrot.slane %v5714_v63, 4  ;;  %v5725_v1 = vrot.slane %v5724_v41, 4  ;;  %v278_v41 = vld [vmem:[%s8904_s7 + $0x20c] sm:$0xf] }
 0x323   : > { %8431 = vmatmul.msk.bf16.gmra.mxu2 %vm1957_vm0, %v8801_v44  ;;  %v1466_v22 = vrot.slane %v1464_v55, 4  ;;  %v1476_v58 = vrot.slane %v1474_v61, 4  ;;  %v8576_v55 = vld [vmem:[%s8904_s7 + $0x21c] sm:$0xf] }
 0x324   : > { %7971 = vmatmul.msk.bf16.gmra.mxu1 %vm1957_vm0, %v8733_v45  ;;  %v7212_v59 = vmax.f32 %v6956_v28, %v7084_v24  ;;  %v2361_v4 = vpop.f32.mrf.mxu0  ;;  %v1458_v45 = vrot.slane %v1457_v14, 4  ;;  %v8574_v24 = vld [vmem:[%s8904_s7 + $0x214] sm:$0xf]  ;;  %v5720_v10 = vsel %vm8919_vm3, %v5715_v50, %v11035_v37  ;;  %v5730_v15 = vsel %vm8919_vm3, %v5725_v1, %v11057_v60 }
 0x325   : > { %v6625_v3 = vpop.f32.mrf.mxu3  ;;  %v3215_v25 = vadd.f32 %v10983_v38, %v2361_v4  ;;  %v1470_v4 = vshll.u32 %v276_v48, 16  ;;  %v5741_v11 = vshrl.u32 %v8574_v24, 16  ;;  %v6121_v37 = vunpack.c.l.b16 %v5730_v15 }
 0x326   : > { %v4204_v62 = vpop.f32.mrf.mxu2  ;;  %v7340_v18 = vpack.c.bf16 %v7212_v59, %v7212_v59  ;;  %v6825_v2 = vadd.f32 %v6625_v3, %v4399_v52  ;;  %v5731_v59 = vshrl.u32 %v8573_v36, 16  ;;  %v5737_v3 = vshll.u32 %v8574_v24, 16 }
 0x327   : > { %v4400_v38 = vadd.f32 %v10994_v47, %v3215_v25  ;;  %v8802_v47 = vld [vmem:[%s8904_s7 + $0x208] sm:$0xff]  ;;  %v11070_v17 = vrot.slane %v1470_v4, 5  ;;  %v5743_v14 = vrot.slane %v5741_v11, 4  ;;  %v1467_v20 = vor.u32 %v1466_v22, %v11040_v7 }
 0x328   : > { %7469 = vst.msk [vmem:[%s9151_s16 + $0x13c] sm:$0xf] %vm7389_vm4, %v7340_v18  ;;  %v6957_v16 = vadd.f32 %v10886_v12, %v6825_v2  ;;  %v5733_v9 = vrot.slane %v5731_v59, 4  ;;  %v11079_v29 = vrot.slane %v5737_v3, 5  ;;  %v1494_v50 = vshll.u32 %v278_v41, 16 }
 0x329   : > { %v11030_v21 = vpop.f32.mrf.mxu1  ;;  %v1498_v1 = vshrl.u32 %v278_v41, 16  ;;  %v8577_v3 = vld [vmem:[%s8904_s7 + $0x220] sm:$0xf] }
 0x32a   : > { %v7085_v34 = vmul.f32 0.1, %v6957_v16  ;;  %v5744_v43 = vor.u32 %v5743_v14, %v11079_v29  ;;  %v11114_v15 = vrot.slane %v1494_v50, 5  ;;  %v280_v50 = vld [vmem:[%s8904_s7 + $0x214] sm:$0xf] }
 0x32b   : > { %v1500_v22 = vrot.slane %v1498_v1, 4 }
 0x32c   : > { %v7213_v5 = vmax.f32 %v6957_v16, %v7085_v34  ;;  %v2364_v57 = vpop.f32.mrf.mxu0  ;;  %v6120_v34 = vunpack.c.l.b16 %v5720_v10  ;;  %v5745_v24 = vrot.slane %v5744_v43, 4 }
 0x32d   : > { %v6627_v31 = vpop.f32.mrf.mxu3  ;;  %v3218_v28 = vadd.f32 %v11004_v51, %v2364_v57  ;;  %v1463_v51 = vsel %vm8919_vm3, %v1458_v45, %v11040_v7  ;;  %v277_v7 = vld [vmem:[%s8904_s7 + $0x208] sm:$0xf] }
 0x32e   : > { %v11038_v44 = vpop.f32.mrf.mxu2  ;;  %v7341_v23 = vpack.c.bf16 %v7213_v5, %v7213_v5  ;;  %v6826_v49 = vadd.f32 %v6627_v31, %v4400_v38  ;;  %v1854_v13 = vunpack.c.l.b16 %v1463_v51  ;;  %v1480_v5 = vshll.u32 %v330_v30, 16 }
 0x32f   : > { %7643 = vmatmul.msk.bf16.gmra.mxu0 %vm1957_vm0, %v1930_v32  ;;  %v4401_v56 = vadd.f32 %v4204_v62, %v3218_v28  ;;  %v1853_v62 = vunpack.c.l.b16 %v1453_v42  ;;  %v1477_v32 = vor.u32 %v1476_v58, %v11070_v17  ;;  %v5747_v31 = vshll.u32 %v8575_v26, 16 }
 0x330   : > { %7470 = vst.msk [vmem:[%s9151_s16 + $0x140] sm:$0xf] %vm7389_vm4, %v7341_v23  ;;  %v6958_v54 = vadd.f32 %v10886_v12, %v6826_v49  ;;  %v6198_v28 = vpack.c.b16 %v6121_v37, %v6120_v34  ;;  %v1482_v48 = vrot.slane %v1480_v5, 5  ;;  %v5765_v30 = vshrl.u32 %v8577_v3, 16 }
 0x331   : > { %v3222_v6 = vpop.f32.mrf.mxu1  ;;  %v1931_v46 = vpack.c.b16 %v1854_v13, %v1853_v62  ;;  %v5752_v13 = vshrl.u32 %v8576_v55, 16  ;;  %v1501_v5 = vor.u32 %v1500_v22, %v11114_v15 }
 0x332   : > { %v7086_v52 = vmul.f32 0.1, %v6958_v54  ;;  %8667 = vmatmul.msk.bf16.gmra.mxu3 %vm1957_vm0, %v6197_v40 }
 0x333   : > { %8432 = vmatmul.msk.bf16.gmra.mxu2 %vm1957_vm0, %v8802_v47  ;;  %v8803_v47 = vld [vmem:[%s8904_s7 + $0x210] sm:$0xff] }
 0x334   : > { %7972 = vmatmul.msk.bf16.gmra.mxu1 %vm1957_vm0, %v8734_v53  ;;  %v7214_v35 = vmax.f32 %v6958_v54, %v7086_v52  ;;  %v2366_v8 = vpop.f32.mrf.mxu0  ;;  %v8735_v53 = vld [vmem:[%s8904_s7 + $0x1fc] sm:$0xff]  ;;  %v1478_v54 = vrot.slane %v1477_v32, 4  ;;  %v1485_v52 = vshrl.u32 %v277_v7, 16 }
 0x335   : > { %v6630_v19 = vpop.f32.mrf.mxu3  ;;  %v3220_v25 = vadd.f32 %v11030_v21, %v2366_v8  ;;  %v5734_v21 = vor.u32 %v5733_v9, %v11057_v60 }
 0x336   : > { %v4209_v0 = vpop.f32.mrf.mxu2  ;;  %v7342_v18 = vpack.c.bf16 %v7214_v35, %v7214_v35  ;;  %v6827_v2 = vadd.f32 %v6630_v19, %v4401_v56  ;;  %v1488_v56 = vshll.u32 %v277_v7, 16  ;;  %v1483_v35 = vsel %vm8919_vm3, %v1478_v54, %v1482_v48 }
 0x337   : > { %v4402_v57 = vadd.f32 %v11038_v44, %v3220_v25  ;;  %v1468_v44 = vrot.slane %v1467_v20, 4  ;;  %v5735_v42 = vrot.slane %v5734_v21, 4  ;;  %v1487_v62 = vrot.slane %v1485_v52, 4 }
 0x338   : > { %7471 = vst.msk [vmem:[%s9151_s16 + $0x144] sm:$0xf] %vm7389_vm4, %v7342_v18  ;;  %v6959_v16 = vadd.f32 %v10886_v12, %v6827_v2  ;;  %v1490_v10 = vrot.slane %v1488_v56, 5  ;;  %v5761_v25 = vshll.u32 %v8577_v3, 16  ;;  %v1856_v14 = vunpack.c.l.b16 %v1483_v35 }
 0x339   : > { %v11076_v27 = vpop.f32.mrf.mxu1  ;;  %v1473_v61 = vsel %vm8919_vm3, %v1468_v44, %v11070_v17  ;;  %v5740_v8 = vsel %vm8919_vm3, %v5735_v42, %v11079_v29  ;;  %v5755_v17 = vshll.u32 %v8576_v55, 16  ;;  %v5754_v20 = vrot.slane %v5752_v13, 4 }
 0x33a   : > { %v7087_v36 = vmul.f32 0.1, %v6959_v16  ;;  %v1855_v29 = vunpack.c.l.b16 %v1473_v61  ;;  %v6122_v26 = vunpack.c.l.b16 %v5740_v8  ;;  %v1491_v32 = vor.u32 %v1490_v10, %v1487_v62 }
 0x33b   : > { %v11128_v43 = vrot.slane %v5761_v25, 5 }
 0x33c   : > { %v7215_v38 = vmax.f32 %v6959_v16, %v7087_v36  ;;  %v2369_v40 = vpop.f32.mrf.mxu0  ;;  %v11117_v16 = vld [vmem:[%s8904_s7 + $0x210] sm:$0xf]  ;;  %v1492_v41 = vrot.slane %v1491_v32, 4 }
 0x33d   : > { %v6632_v39 = vpop.f32.mrf.mxu3  ;;  %v3223_v49 = vadd.f32 %v3222_v6, %v2369_v40  ;;  %v5749_v6 = vrot.slane %v5747_v31, 5  ;;  %v1504_v21 = vshll.u32 %v11117_v16, 16  ;;  %v5767_v31 = vrot.slane %v5765_v30, 4 }
 0x33e   : > { %v11087_v45 = vpop.f32.mrf.mxu2  ;;  %v7343_v63 = vpack.c.bf16 %v7215_v38, %v7215_v38  ;;  %v6828_v23 = vadd.f32 %v6632_v39, %v4402_v57  ;;  %v8578_v38 = vld [vmem:[%s8904_s7 + $0x224] sm:$0xf]  ;;  %v5757_v57 = vrot.slane %v5755_v17, 5  ;;  %v1932_v39 = vpack.c.b16 %v1856_v14, %v1855_v29 }
 0x33f   : > { %7644 = vmatmul.msk.bf16.gmra.mxu0 %vm1957_vm0, %v1931_v46  ;;  %v4403_v4 = vadd.f32 %v4209_v0, %v3223_v49  ;;  %v5750_v0 = vsel %vm8919_vm3, %v5745_v24, %v5749_v6  ;;  %v5771_v49 = vshll.u32 %v8578_v38, 16  ;;  %v11133_v44 = vrot.slane %v1504_v21, 5  ;;  %v8736_v6 = vld [vmem:[%s8904_s7 + $0x208] sm:$0xff] }
 0x340   : > { %7472 = vst.msk [vmem:[%s9151_s16 + $0x148] sm:$0xf] %vm7389_vm4, %v7343_v63  ;;  %v6960_v51 = vadd.f32 %v10886_v12, %v6828_v23  ;;  %v6123_v37 = vunpack.c.l.b16 %v5750_v0  ;;  %v5758_v54 = vor.u32 %v5757_v57, %v5754_v20  ;;  %v5768_v24 = vor.u32 %v5767_v31, %v11128_v43  ;;  %v331_v20 = vld [vmem:[%s8904_s7 + $0x218] sm:$0x1]  ;;  %v8580_v21 = vld [vmem:[%s8904_s7 + $0x22c] sm:$0x1] }
 0x341   : > { %v11097_v60 = vpop.f32.mrf.mxu1  ;;  %v1497_v1 = vsel %vm8919_vm3, %v1492_v41, %v11114_v15  ;;  %v11150_v55 = vrot.slane %v5771_v49, 5  ;;  %v1508_v3 = vshrl.u32 %v11117_v16, 16  ;;  %v1518_v0 = vshrl.u32 %v280_v50, 16 }
 0x342   : > { %v7088_v59 = vmul.f32 0.1, %v6960_v51  ;;  %8668 = vmatmul.msk.bf16.gmra.mxu3 %vm1957_vm0, %v6198_v28  ;;  %v6199_v23 = vpack.c.b16 %v6123_v37, %v6122_v26  ;;  %v5759_v35 = vrot.slane %v5758_v54, 4  ;;  %v5769_v8 = vrot.slane %v5768_v24, 4  ;;  %v282_v24 = vld [vmem:[%s8904_s7 + $0x220] sm:$0xf] }
 0x343   : > { %8433 = vmatmul.msk.bf16.gmra.mxu2 %vm1957_vm0, %v8803_v47  ;;  %v1510_v30 = vrot.slane %v1508_v3, 4  ;;  %v1520_v14 = vrot.slane %v1518_v0, 4  ;;  %v8581_v3 = vld [vmem:[%s8904_s7 + $0x230] sm:$0xf] }
 0x344   : > { %7973 = vmatmul.msk.bf16.gmra.mxu1 %vm1957_vm0, %v8735_v53  ;;  %v7216_v11 = vmax.f32 %v6960_v51, %v7088_v59  ;;  %v2371_v19 = vpop.f32.mrf.mxu0  ;;  %v1502_v53 = vrot.slane %v1501_v5, 4  ;;  %v8579_v59 = vld [vmem:[%s8904_s7 + $0x228] sm:$0xf]  ;;  %v5764_v16 = vsel %vm8919_vm3, %v5759_v35, %v11128_v43  ;;  %v5774_v25 = vsel %vm8919_vm3, %v5769_v8, %v11150_v55 }
 0x345   : > { %v6635_v18 = vpop.f32.mrf.mxu3  ;;  %v3225_v46 = vadd.f32 %v11076_v27, %v2371_v19  ;;  %v1514_v19 = vshll.u32 %v280_v50, 16  ;;  %v5785_v10 = vshrl.u32 %v8579_v59, 16  ;;  %v6125_v43 = vunpack.c.l.b16 %v5774_v25 }
 0x346   : > { %v4214_v2 = vpop.f32.mrf.mxu2  ;;  %v7344_v58 = vpack.c.bf16 %v7216_v11, %v7216_v11  ;;  %v6829_v9 = vadd.f32 %v6635_v18, %v4403_v4  ;;  %v5775_v11 = vshrl.u32 %v8578_v38, 16  ;;  %v5781_v18 = vshll.u32 %v8579_v59, 16 }
 0x347   : > { %v4404_v27 = vadd.f32 %v11087_v45, %v3225_v46  ;;  %v8804_v45 = vld [vmem:[%s8904_s7 + $0x21c] sm:$0xff]  ;;  %v11163_v29 = vrot.slane %v1514_v19, 5  ;;  %v5787_v5 = vrot.slane %v5785_v10, 4  ;;  %v1511_v31 = vor.u32 %v1510_v30, %v11133_v44 }
 0x348   : > { %7473 = vst.msk [vmem:[%s9151_s16 + $0x14c] sm:$0xf] %vm7389_vm4, %v7344_v58  ;;  %v6961_v36 = vadd.f32 %v10886_v12, %v6829_v9  ;;  %v5777_v26 = vrot.slane %v5775_v11, 4  ;;  %v11172_v32 = vrot.slane %v5781_v18, 5  ;;  %v1538_v35 = vshll.u32 %v282_v24, 16 }
 0x349   : > { %v11123_v34 = vpop.f32.mrf.mxu1  ;;  %v1542_v8 = vshrl.u32 %v282_v24, 16  ;;  %v8582_v18 = vld [vmem:[%s8904_s7 + $0x234] sm:$0xf] }
 0x34a   : > { %v7089_v40 = vmul.f32 0.1, %v6961_v36  ;;  %v5788_v49 = vor.u32 %v5787_v5, %v11172_v32  ;;  %v11207_v25 = vrot.slane %v1538_v35, 5  ;;  %v284_v35 = vld [vmem:[%s8904_s7 + $0x228] sm:$0xf] }
 0x34b   : > { %v1544_v30 = vrot.slane %v1542_v8, 4 }
 0x34c   : > { %v7217_v7 = vmax.f32 %v6961_v36, %v7089_v40  ;;  %v2374_v63 = vpop.f32.mrf.mxu0  ;;  %v6124_v40 = vunpack.c.l.b16 %v5764_v16  ;;  %v5789_v59 = vrot.slane %v5788_v49, 4 }
 0x34d   : > { %v6637_v28 = vpop.f32.mrf.mxu3  ;;  %v3228_v51 = vadd.f32 %v11097_v60, %v2374_v63  ;;  %v1507_v60 = vsel %vm8919_vm3, %v1502_v53, %v11133_v44  ;;  %v281_v44 = vld [vmem:[%s8904_s7 + $0x21c] sm:$0xf] }
 0x34e   : > { %v11131_v47 = vpop.f32.mrf.mxu2  ;;  %v7345_v48 = vpack.c.bf16 %v7217_v7, %v7217_v7  ;;  %v6830_v42 = vadd.f32 %v6637_v28, %v4404_v27  ;;  %v1858_v17 = vunpack.c.l.b16 %v1507_v60  ;;  %v1524_v7 = vshll.u32 %v331_v20, 16 }
 0x34f   : > { %7645 = vmatmul.msk.bf16.gmra.mxu0 %vm1957_vm0, %v1932_v39  ;;  %v4405_v61 = vadd.f32 %v4214_v2, %v3228_v51  ;;  %v1857_v2 = vunpack.c.l.b16 %v1497_v1  ;;  %v1521_v39 = vor.u32 %v1520_v14, %v11163_v29  ;;  %v5791_v28 = vshll.u32 %v8580_v21, 16 }
 0x350   : > { %7474 = vst.msk [vmem:[%s9151_s16 + $0x150] sm:$0xf] %vm7389_vm4, %v7345_v48  ;;  %v6962_v52 = vadd.f32 %v10886_v12, %v6830_v42  ;;  %v6200_v51 = vpack.c.b16 %v6125_v43, %v6124_v40  ;;  %v1526_v50 = vrot.slane %v1524_v7, 5  ;;  %v5809_v20 = vshrl.u32 %v8582_v18, 16 }
 0x351   : > { %v3232_v56 = vpop.f32.mrf.mxu1  ;;  %v1933_v57 = vpack.c.b16 %v1858_v17, %v1857_v2  ;;  %v5796_v17 = vshrl.u32 %v8581_v3, 16  ;;  %v1545_v7 = vor.u32 %v1544_v30, %v11207_v25 }
 0x352   : > { %v7090_v4 = vmul.f32 0.1, %v6962_v52  ;;  %8669 = vmatmul.msk.bf16.gmra.mxu3 %vm1957_vm0, %v6199_v23 }
 0x353   : > { %8434 = vmatmul.msk.bf16.gmra.mxu2 %vm1957_vm0, %v8804_v45  ;;  %v8805_v45 = vld [vmem:[%s8904_s7 + $0x224] sm:$0xff]  ;;  %v1546_v24 = vrot.slane %v1545_v7, 4 }
 0x354   : > { %7974 = vmatmul.msk.bf16.gmra.mxu1 %vm1957_vm0, %v8736_v6  ;;  %v7218_v62 = vmax.f32 %v6962_v52, %v7090_v4  ;;  %v2376_v13 = vpop.f32.mrf.mxu0  ;;  %v8737_v6 = vld [vmem:[%s8904_s7 + $0x210] sm:$0xff]  ;;  %v1522_v52 = vrot.slane %v1521_v39, 4  ;;  %v1529_v4 = vshrl.u32 %v281_v44, 16 }
 0x355   : > { %v6640_v15 = vpop.f32.mrf.mxu3  ;;  %v3230_v46 = vadd.f32 %v11123_v34, %v2376_v13  ;;  %v5778_v34 = vor.u32 %v5777_v26, %v11150_v55 }
 0x356   : > { %v4219_v22 = vpop.f32.mrf.mxu2  ;;  %v7346_v58 = vpack.c.bf16 %v7218_v62, %v7218_v62  ;;  %v6831_v9 = vadd.f32 %v6640_v15, %v4405_v61  ;;  %v1532_v61 = vshll.u32 %v281_v44, 16  ;;  %v1527_v62 = vsel %vm8919_vm3, %v1522_v52, %v1526_v50 }
 0x357   : > { %v4406_v63 = vadd.f32 %v11131_v47, %v3230_v46  ;;  %v1512_v47 = vrot.slane %v1511_v31, 4  ;;  %v5779_v1 = vrot.slane %v5778_v34, 4  ;;  %v1531_v2 = vrot.slane %v1529_v4, 4 }
 0x358   : > { %7475 = vst.msk [vmem:[%s9151_s16 + $0x154] sm:$0xf] %vm7389_vm4, %v7346_v58  ;;  %v6963_v36 = vadd.f32 %v10886_v12, %v6831_v9  ;;  %v1534_v16 = vrot.slane %v1532_v61, 5  ;;  %v5805_v46 = vshll.u32 %v8582_v18, 16  ;;  %v1860_v5 = vunpack.c.l.b16 %v1527_v62 }
 0x359   : > { %v11169_v37 = vpop.f32.mrf.mxu1  ;;  %v1517_v0 = vsel %vm8919_vm3, %v1512_v47, %v11163_v29  ;;  %v5784_v13 = vsel %vm8919_vm3, %v5779_v1, %v11172_v32  ;;  %v5799_v29 = vshll.u32 %v8581_v3, 16  ;;  %v5798_v31 = vrot.slane %v5796_v17, 4 }
 0x35a   : > { %v7091_v38 = vmul.f32 0.1, %v6963_v36  ;;  %v1859_v32 = vunpack.c.l.b16 %v1517_v0  ;;  %v6126_v21 = vunpack.c.l.b16 %v5784_v13  ;;  %v1535_v39 = vor.u32 %v1534_v16, %v1531_v2 }
 0x35b   : > { %v11221_v49 = vrot.slane %v5805_v46, 5 }
 0x35c   : > { %v7219_v27 = vmax.f32 %v6963_v36, %v7091_v38  ;;  %v2379_v23 = vpop.f32.mrf.mxu0  ;;  %v11210_v36 = vld [vmem:[%s8904_s7 + $0x224] sm:$0xf] }
 0x35d   : > { %v6642_v41 = vpop.f32.mrf.mxu3  ;;  %v3233_v42 = vadd.f32 %v3232_v56, %v2379_v23  ;;  %v5793_v56 = vrot.slane %v5791_v28, 5  ;;  %v1548_v34 = vshll.u32 %v11210_v36, 16  ;;  %v5811_v28 = vrot.slane %v5809_v20, 4 }
 0x35e   : > { %v11180_v53 = vpop.f32.mrf.mxu2  ;;  %v7347_v54 = vpack.c.bf16 %v7219_v27, %v7219_v27  ;;  %v6832_v48 = vadd.f32 %v6642_v41, %v4406_v63  ;;  %v8583_v27 = vld [vmem:[%s8904_s7 + $0x238] sm:$0xf]  ;;  %v5801_v63 = vrot.slane %v5799_v29, 5  ;;  %v1934_v41 = vpack.c.b16 %v1860_v5, %v1859_v32 }
 0x35f   : > { %7646 = vmatmul.msk.bf16.gmra.mxu0 %vm1957_vm0, %v1933_v57  ;;  %v4407_v19 = vadd.f32 %v4219_v22, %v3233_v42  ;;  %v5794_v22 = vsel %vm8919_vm3, %v5789_v59, %v5793_v56  ;;  %v8738_v59 = vld [vmem:[%s8904_s7 + $0x21c] sm:$0xff]  ;;  %v1552_v18 = vshrl.u32 %v11210_v36, 16 }
 0x360   : > { %7476 = vst.msk [vmem:[%s9151_s16 + $0x158] sm:$0xf] %vm7389_vm4, %v7347_v54  ;;  %v6964_v60 = vadd.f32 %v10886_v12, %v6832_v48  ;;  %v6127_v43 = vunpack.c.l.b16 %v5794_v22  ;;  %v5815_v48 = vshll.u32 %v8583_v27, 16  ;;  %v5802_v47 = vor.u32 %v5801_v63, %v5798_v31  ;;  %v11238_v56 = vld [vmem:[%s11730_s2] ss:$0 sm:$0xff] }
 0x361   : > { %v11190_v55 = vpop.f32.mrf.mxu1  ;;  %v1562_v22 = vshrl.u32 %v284_v35, 16  ;;  %v1554_v20 = vrot.slane %v1552_v18, 4  ;;  %v332_v31 = vld [vmem:[%s8904_s7 + $0x22c] sm:$0x1]  ;;  %v8586_v18 = vld [vmem:[%s8904_s7 + $0x244] sm:$0xf] }
 0x362   : > { %v7092_v11 = vmul.f32 0.1, %v6964_v60  ;;  %8670 = vmatmul.msk.bf16.gmra.mxu3 %vm1957_vm0, %v6200_v51  ;;  %v6201_v54 = vpack.c.b16 %v6127_v43, %v6126_v21  ;;  %v11248_v3 = vrot.slane %v5815_v48, 5  ;;  %v5803_v62 = vrot.slane %v5802_v47, 4 }
 0x363   : > { %8435 = vmatmul.msk.bf16.gmra.mxu2 %vm1957_vm0, %v8805_v45  ;;  %v1536_v45 = vrot.slane %v1535_v39, 4  ;;  %v1564_v5 = vrot.slane %v1562_v22, 4 }
 0x364   : > { %7975 = vmatmul.msk.bf16.gmra.mxu1 %vm1957_vm0, %v8737_v6  ;;  %v7220_v10 = vmax.f32 %v6964_v60, %v7092_v11  ;;  %v2381_v15 = vpop.f32.mrf.mxu0  ;;  %v11226_v6 = vrot.slane %v1548_v34, 5  ;;  %v5812_v60 = vor.u32 %v5811_v28, %v11221_v49  ;;  %v8584_v11 = vld [vmem:[%s8904_s7 + $0x23c] sm:$0xf]  ;;  %v5808_v36 = vsel %vm8919_vm3, %v5803_v62, %v11221_v49  ;;  %v8585_v34 = vld [vmem:[%s8904_s7 + $0x240] sm:$0x1] }
 0x365   : > { %v6645_v58 = vpop.f32.mrf.mxu3  ;;  %v3235_v57 = vadd.f32 %v11169_v37, %v2381_v15  ;;  %v1558_v15 = vshll.u32 %v284_v35, 16  ;;  %v5829_v16 = vshrl.u32 %v8584_v11, 16 }
 0x366   : > { %v4224_v9 = vpop.f32.mrf.mxu2  ;;  %v7348_v14 = vpack.c.bf16 %v7220_v10, %v7220_v10  ;;  %v6833_v26 = vadd.f32 %v6645_v58, %v4407_v19  ;;  %v1551_v8 = vsel %vm8919_vm3, %v1546_v24, %v11226_v6  ;;  %v5813_v13 = vrot.slane %v5812_v60, 4  ;;  %v286_v60 = vld [vmem:[%s8904_s7 + $0x234] sm:$0xf] }
 0x367   : > { %v4408_v37 = vadd.f32 %v11180_v53, %v3235_v57  ;;  %v8806_v53 = vld [vmem:[%s8904_s7 + $0x230] sm:$0xff]  ;;  %v5819_v10 = vshrl.u32 %v8583_v27, 16  ;;  %v5825_v58 = vshll.u32 %v8584_v11, 16  ;;  %v1862_v29 = vunpack.c.l.b16 %v1551_v8 }
 0x368   : > { %7477 = vst.msk [vmem:[%s9151_s16 + $0x15c] sm:$0xf] %vm7389_vm4, %v7348_v14  ;;  %v6965_v38 = vadd.f32 %v10886_v12, %v6833_v26  ;;  %v5818_v46 = vsel %vm8919_vm3, %v5813_v13, %v11248_v3  ;;  %v11261_v32 = vrot.slane %v1558_v15, 5  ;;  %v5831_v7 = vrot.slane %v5829_v16, 4 }
 0x369   : > { %v11216_v40 = vpop.f32.mrf.mxu1  ;;  %v5821_v21 = vrot.slane %v5819_v10, 4  ;;  %v11270_v39 = vrot.slane %v5825_v58, 5  ;;  %v6129_v49 = vunpack.c.l.b16 %v5818_v46  ;;  %v1555_v28 = vor.u32 %v1554_v20, %v11226_v6  ;;  %v285_v6 = vld [vmem:[%s8904_s7 + $0x230] sm:$0xf]  ;;  %v8587_v58 = vld [vmem:[%s8904_s7 + $0x248] sm:$0xf] }
 0x36a   : > { %v7093_v23 = vmul.f32 0.1, %v6965_v38  ;;  %v1582_v62 = vshll.u32 %v286_v60, 16  ;;  %v1586_v13 = vshrl.u32 %v286_v60, 16 }
 0x36b   : > { %v5832_v48 = vor.u32 %v5831_v7, %v11270_v39 }
 0x36c   : > { %v7221_v12 = vmax.f32 %v6965_v38, %v7093_v23  ;;  %v2384_v44 = vpop.f32.mrf.mxu0  ;;  %v6128_v23 = vunpack.c.l.b16 %v5808_v36  ;;  %v11305_v46 = vrot.slane %v1582_v62, 5  ;;  %v1588_v20 = vrot.slane %v1586_v13, 4  ;;  %v288_v62 = vld [vmem:[%s8904_s7 + $0x23c] sm:$0xf] }
 0x36d   : > { %v6647_v42 = vpop.f32.mrf.mxu3  ;;  %v3238_v1 = vadd.f32 %v11190_v55, %v2384_v44  ;;  %v1541_v55 = vsel %vm8919_vm3, %v1536_v45, %v11207_v25  ;;  %v5833_v11 = vrot.slane %v5832_v48, 4 }
 0x36e   : > { %v11224_v51 = vpop.f32.mrf.mxu2  ;;  %v7349_v52 = vpack.c.bf16 %v7221_v12, %v7221_v12  ;;  %v6834_v50 = vadd.f32 %v6647_v42, %v4408_v37  ;;  %v1568_v12 = vshll.u32 %v332_v31, 16  ;;  %v5835_v42 = vshll.u32 %v8585_v34, 16 }
 0x36f   : > { %7647 = vmatmul.msk.bf16.gmra.mxu0 %vm1957_vm0, %v1934_v41  ;;  %v4409_v0 = vadd.f32 %v4224_v9, %v3238_v1  ;;  %v1861_v9 = vunpack.c.l.b16 %v1541_v55  ;;  %v1565_v41 = vor.u32 %v1564_v5, %v11261_v32  ;;  %v6202_v1 = vpack.c.b16 %v6129_v49, %v6128_v23 }
 0x370   : > { %7478 = vst.msk [vmem:[%s9151_s16 + $0x160] sm:$0xf] %vm7389_vm4, %v7349_v52  ;;  %v6966_v4 = vadd.f32 %v11238_v56, %v6834_v50  ;;  %v1570_v35 = vrot.slane %v1568_v12, 5  ;;  %v5853_v31 = vshrl.u32 %v8587_v58, 16  ;;  %v1589_v12 = vor.u32 %v1588_v20, %v11305_v46 }
 0x371   : > { %v3242_v61 = vpop.f32.mrf.mxu1  ;;  %v1935_v63 = vpack.c.b16 %v1862_v29, %v1861_v9  ;;  %v5840_v29 = vshrl.u32 %v8586_v18, 16 }
 0x372   : > { %v7094_v19 = vmul.f32 0.1, %v6966_v4  ;;  %8671 = vmatmul.msk.bf16.gmra.mxu3 %vm1957_vm0, %v6201_v54 }
 0x373   : > { %8436 = vmatmul.msk.bf16.gmra.mxu2 %vm1957_vm0, %v8806_v53  ;;  %v8807_v53 = vld [vmem:[%s8904_s7 + $0x238] sm:$0xff] }
 0x374   : > { %7976 = vmatmul.msk.bf16.gmra.mxu1 %vm1957_vm0, %v8738_v59  ;;  %v7222_v2 = vmax.f32 %v6966_v4, %v7094_v19  ;;  %v2386_v17 = vpop.f32.mrf.mxu0  ;;  %v8739_v59 = vld [vmem:[%s8904_s7 + $0x224] sm:$0xff]  ;;  %v1566_v4 = vrot.slane %v1565_v41, 4  ;;  %v1573_v19 = vshrl.u32 %v285_v6, 16 }
 0x375   : > { %v6650_v25 = vpop.f32.mrf.mxu3  ;;  %v3240_v57 = vadd.f32 %v11216_v40, %v2386_v17  ;;  %v5822_v40 = vor.u32 %v5821_v21, %v11248_v3 }
 0x376   : > { %v4229_v30 = vpop.f32.mrf.mxu2  ;;  %v7350_v14 = vpack.c.bf16 %v7222_v2, %v7222_v2  ;;  %v6835_v26 = vadd.f32 %v6650_v25, %v4409_v0  ;;  %v1576_v0 = vshll.u32 %v285_v6, 16  ;;  %v1571_v2 = vsel %vm8919_vm3, %v1566_v4, %v1570_v35 }
 0x377   : > { %v4410_v44 = vadd.f32 %v11224_v51, %v3240_v57  ;;  %v1556_v51 = vrot.slane %v1555_v28, 4  ;;  %v5823_v55 = vrot.slane %v5822_v40, 4  ;;  %v1575_v9 = vrot.slane %v1573_v19, 4 }
 0x378   : > { %7479 = vst.msk [vmem:[%s9151_s16 + $0x164] sm:$0xf] %vm7389_vm4, %v7350_v14  ;;  %v6967_v38 = vadd.f32 %v11238_v56, %v6835_v26  ;;  %v1578_v36 = vrot.slane %v1576_v0, 5  ;;  %v5849_v57 = vshll.u32 %v8587_v58, 16  ;;  %v1864_v7 = vunpack.c.l.b16 %v1571_v2 }
 0x379   : > { %v11267_v43 = vpop.f32.mrf.mxu1  ;;  %v1561_v22 = vsel %vm8919_vm3, %v1556_v51, %v11261_v32  ;;  %v5828_v17 = vsel %vm8919_vm3, %v5823_v55, %v11270_v39  ;;  %v5843_v32 = vshll.u32 %v8586_v18, 16  ;;  %v5842_v28 = vrot.slane %v5840_v29, 4 }
 0x37a   : > { %v7095_v27 = vmul.f32 0.1, %v6967_v38  ;;  %v1863_v39 = vunpack.c.l.b16 %v1561_v22  ;;  %v6130_v34 = vunpack.c.l.b16 %v5828_v17  ;;  %v1579_v41 = vor.u32 %v1578_v36, %v1575_v9 }
 0x37b   : > { %v11319_v48 = vrot.slane %v5849_v57, 5 }
 0x37c   : > { %v7223_v37 = vmax.f32 %v6967_v38, %v7095_v27  ;;  %v2389_v54 = vpop.f32.mrf.mxu0  ;;  %v11308_v38 = vld [vmem:[%s8904_s7 + $0x238] sm:$0xf]  ;;  %v1580_v60 = vrot.slane %v1579_v41, 4 }
 0x37d   : > { %v6652_v45 = vpop.f32.mrf.mxu3  ;;  %v3243_v50 = vadd.f32 %v3242_v61, %v2389_v54  ;;  %v5837_v61 = vrot.slane %v5835_v42, 5  ;;  %v1592_v40 = vshll.u32 %v11308_v38, 16  ;;  %v5855_v42 = vrot.slane %v5853_v31, 4 }
 0x37e   : > { %v11278_v24 = vpop.f32.mrf.mxu2  ;;  %v7351_v47 = vpack.c.bf16 %v7223_v37, %v7223_v37  ;;  %v6836_v52 = vadd.f32 %v6652_v45, %v4410_v44  ;;  %v8588_v37 = vld [vmem:[%s8904_s7 + $0x24c] sm:$0xf]  ;;  %v5845_v44 = vrot.slane %v5843_v32, 5  ;;  %v1936_v45 = vpack.c.b16 %v1864_v7, %v1863_v39 }
 0x37f   : > { %7648 = vmatmul.msk.bf16.gmra.mxu0 %vm1957_vm0, %v1935_v63  ;;  %v4411_v15 = vadd.f32 %v4229_v30, %v3243_v50  ;;  %v5838_v30 = vsel %vm8919_vm3, %v5833_v11, %v5837_v61  ;;  %v5859_v50 = vshll.u32 %v8588_v37, 16  ;;  %v11324_v51 = vrot.slane %v1592_v40, 5  ;;  %v8740_v61 = vld [vmem:[%s8904_s7 + $0x230] sm:$0xff] }
 0x380   : > { %7480 = vst.msk [vmem:[%s9151_s16 + $0x168] sm:$0xf] %vm7389_vm4, %v7351_v47  ;;  %v6968_v8 = vadd.f32 %v11238_v56, %v6836_v52  ;;  %v6131_v49 = vunpack.c.l.b16 %v5838_v30  ;;  %v5846_v4 = vor.u32 %v5845_v44, %v5842_v28  ;;  %v5856_v11 = vor.u32 %v5855_v42, %v11319_v48  ;;  %v333_v28 = vld [vmem:[%s8904_s7 + $0x240] sm:$0x1]  ;;  %v8590_v40 = vld [vmem:[%s8904_s7 + $0x254] sm:$0x1] }
 0x381   : > { %v11288_v3 = vpop.f32.mrf.mxu1  ;;  %v1585_v13 = vsel %vm8919_vm3, %v1580_v60, %v11305_v46  ;;  %v11341_v18 = vrot.slane %v5859_v50, 5  ;;  %v1596_v58 = vshrl.u32 %v11308_v38, 16  ;;  %v1606_v30 = vshrl.u32 %v288_v62, 16 }
 0x382   : > { %v7096_v10 = vmul.f32 0.1, %v6968_v8  ;;  %8672 = vmatmul.msk.bf16.gmra.mxu3 %vm1957_vm0, %v6202_v1  ;;  %v6203_v52 = vpack.c.b16 %v6131_v49, %v6130_v34  ;;  %v5847_v2 = vrot.slane %v5846_v4, 4  ;;  %v5857_v17 = vrot.slane %v5856_v11, 4  ;;  %v290_v11 = vld [vmem:[%s8904_s7 + $0x248] sm:$0xf] }
 0x383   : > { %8437 = vmatmul.msk.bf16.gmra.mxu2 %vm1957_vm0, %v8807_v53  ;;  %v1598_v31 = vrot.slane %v1596_v58, 4  ;;  %v1608_v7 = vrot.slane %v1606_v30, 4  ;;  %v8591_v58 = vld [vmem:[%s8904_s7 + $0x258] sm:$0xf] }
 0x384   : > { %7977 = vmatmul.msk.bf16.gmra.mxu1 %vm1957_vm0, %v8739_v59  ;;  %v7224_v16 = vmax.f32 %v6968_v8, %v7096_v10  ;;  %v2391_v25 = vpop.f32.mrf.mxu0  ;;  %v1590_v59 = vrot.slane %v1589_v12, 4  ;;  %v8589_v10 = vld [vmem:[%s8904_s7 + $0x250] sm:$0xf]  ;;  %v5852_v38 = vsel %vm8919_vm3, %v5847_v2, %v11319_v48  ;;  %v5862_v57 = vsel %vm8919_vm3, %v5857_v17, %v11341_v18 }
 0x385   : > { %v6655_v14 = vpop.f32.mrf.mxu3  ;;  %v3245_v63 = vadd.f32 %v11267_v43, %v2391_v25  ;;  %v1602_v25 = vshll.u32 %v288_v62, 16  ;;  %v5873_v36 = vshrl.u32 %v8589_v10, 16  ;;  %v6133_v48 = vunpack.c.l.b16 %v5862_v57 }
 0x386   : > { %v4234_v26 = vpop.f32.mrf.mxu2  ;;  %v7352_v5 = vpack.c.bf16 %v7224_v16, %v7224_v16  ;;  %v6837_v21 = vadd.f32 %v6655_v14, %v4411_v15  ;;  %v5863_v16 = vshrl.u32 %v8588_v37, 16  ;;  %v5869_v14 = vshll.u32 %v8589_v10, 16 }
 0x387   : > { %v4412_v43 = vadd.f32 %v11278_v24, %v3245_v63  ;;  %v8808_v24 = vld [vmem:[%s8904_s7 + $0x244] sm:$0xff]  ;;  %v11354_v39 = vrot.slane %v1602_v25, 5  ;;  %v5875_v12 = vrot.slane %v5873_v36, 4  ;;  %v1599_v42 = vor.u32 %v1598_v31, %v11324_v51 }
 0x388   : > { %7481 = vst.msk [vmem:[%s9151_s16 + $0x16c] sm:$0xf] %vm7389_vm4, %v7352_v5  ;;  %v6969_v27 = vadd.f32 %v11238_v56, %v6837_v21  ;;  %v5865_v34 = vrot.slane %v5863_v16, 4  ;;  %v11363_v41 = vrot.slane %v5869_v14, 5  ;;  %v1626_v2 = vshll.u32 %v290_v11, 16 }
 0x389   : > { %v11314_v23 = vpop.f32.mrf.mxu1  ;;  %v1630_v17 = vshrl.u32 %v290_v11, 16  ;;  %v8592_v14 = vld [vmem:[%s8904_s7 + $0x25c] sm:$0xf] }
 0x38a   : > { %v7097_v54 = vmul.f32 0.1, %v6969_v27  ;;  %v5876_v50 = vor.u32 %v5875_v12, %v11363_v41  ;;  %v11398_v57 = vrot.slane %v1626_v2, 5  ;;  %v292_v2 = vld [vmem:[%s8904_s7 + $0x250] sm:$0xf] }
 0x38b   : > { %v1632_v31 = vrot.slane %v1630_v17, 4 }
 0x38c   : > { %v7225_v6 = vmax.f32 %v6969_v27, %v7097_v54  ;;  %v2394_v47 = vpop.f32.mrf.mxu0  ;;  %v6132_v54 = vunpack.c.l.b16 %v5852_v38  ;;  %v5877_v10 = vrot.slane %v5876_v50, 4 }
 0x38d   : > { %v6657_v1 = vpop.f32.mrf.mxu3  ;;  %v3248_v8 = vadd.f32 %v11288_v3, %v2394_v47  ;;  %v1595_v3 = vsel %vm8919_vm3, %v1590_v59, %v11324_v51  ;;  %v289_v51 = vld [vmem:[%s8904_s7 + $0x244] sm:$0xf] }
 0x38e   : > { %v11322_v53 = vpop.f32.mrf.mxu2  ;;  %v7353_v35 = vpack.c.bf16 %v7225_v6, %v7225_v6  ;;  %v6838_v55 = vadd.f32 %v6657_v1, %v4412_v43  ;;  %v1866_v32 = vunpack.c.l.b16 %v1595_v3  ;;  %v1612_v6 = vshll.u32 %v333_v28, 16 }
 0x38f   : > { %7649 = vmatmul.msk.bf16.gmra.mxu0 %vm1957_vm0, %v1936_v45  ;;  %v4413_v22 = vadd.f32 %v4234_v26, %v3248_v8  ;;  %v1865_v26 = vunpack.c.l.b16 %v1585_v13  ;;  %v1609_v45 = vor.u32 %v1608_v7, %v11354_v39  ;;  %v5879_v1 = vshll.u32 %v8590_v40, 16 }
 0x390   : > { %7482 = vst.msk [vmem:[%s9151_s16 + $0x170] sm:$0xf] %vm7389_vm4, %v7353_v35  ;;  %v6970_v19 = vadd.f32 %v11238_v56, %v6838_v55  ;;  %v6204_v8 = vpack.c.b16 %v6133_v48, %v6132_v54  ;;  %v1614_v62 = vrot.slane %v1612_v6, 5  ;;  %v5897_v28 = vshrl.u32 %v8592_v14, 16 }
 0x391   : > { %v3252_v0 = vpop.f32.mrf.mxu1  ;;  %v1937_v44 = vpack.c.b16 %v1866_v32, %v1865_v26  ;;  %v5884_v32 = vshrl.u32 %v8591_v58, 16  ;;  %v1633_v6 = vor.u32 %v1632_v31, %v11398_v57 }
 0x392   : > { %v7098_v15 = vmul.f32 0.1, %v6970_v19  ;;  %8673 = vmatmul.msk.bf16.gmra.mxu3 %vm1957_vm0, %v6203_v52 }
 0x393   : > { %8438 = vmatmul.msk.bf16.gmra.mxu2 %vm1957_vm0, %v8808_v24  ;;  %v8809_v24 = vld [vmem:[%s8904_s7 + $0x24c] sm:$0xff] }
 0x394   : > { %7978 = vmatmul.msk.bf16.gmra.mxu1 %vm1957_vm0, %v8740_v61  ;;  %v7226_v9 = vmax.f32 %v6970_v19, %v7098_v15  ;;  %v2396_v29 = vpop.f32.mrf.mxu0  ;;  %v8741_v61 = vld [vmem:[%s8904_s7 + $0x238] sm:$0xff]  ;;  %v1610_v19 = vrot.slane %v1609_v45, 4  ;;  %v1617_v15 = vshrl.u32 %v289_v51, 16 }
 0x395   : > { %v6660_v46 = vpop.f32.mrf.mxu3  ;;  %v3250_v63 = vadd.f32 %v11314_v23, %v2396_v29  ;;  %v5866_v23 = vor.u32 %v5865_v34, %v11341_v18 }
 0x396   : > { %v4239_v20 = vpop.f32.mrf.mxu2  ;;  %v7354_v5 = vpack.c.bf16 %v7226_v9, %v7226_v9  ;;  %v6839_v21 = vadd.f32 %v6660_v46, %v4413_v22  ;;  %v1620_v22 = vshll.u32 %v289_v51, 16  ;;  %v1615_v9 = vsel %vm8919_vm3, %v1610_v19, %v1614_v62 }
 0x397   : > { %v4414_v47 = vadd.f32 %v11322_v53, %v3250_v63  ;;  %v1600_v53 = vrot.slane %v1599_v42, 4  ;;  %v5867_v13 = vrot.slane %v5866_v23, 4  ;;  %v1619_v26 = vrot.slane %v1617_v15, 4 }
 0x398   : > { %7483 = vst.msk [vmem:[%s9151_s16 + $0x174] sm:$0xf] %vm7389_vm4, %v7354_v5  ;;  %v6971_v27 = vadd.f32 %v11238_v56, %v6839_v21  ;;  %v1622_v38 = vrot.slane %v1620_v22, 5  ;;  %v5893_v63 = vshll.u32 %v8592_v14, 16  ;;  %v1868_v12 = vunpack.c.l.b16 %v1615_v9 }
 0x399   : > { %v11360_v49 = vpop.f32.mrf.mxu1  ;;  %v1605_v30 = vsel %vm8919_vm3, %v1600_v53, %v11354_v39  ;;  %v5872_v29 = vsel %vm8919_vm3, %v5867_v13, %v11363_v41  ;;  %v5887_v39 = vshll.u32 %v8591_v58, 16  ;;  %v5886_v42 = vrot.slane %v5884_v32, 4 }
 0x39a   : > { %v7099_v37 = vmul.f32 0.1, %v6971_v27  ;;  %v1867_v41 = vunpack.c.l.b16 %v1605_v30  ;;  %v6134_v40 = vunpack.c.l.b16 %v5872_v29  ;;  %v1623_v45 = vor.u32 %v1622_v38, %v1619_v26 }
 0x39b   : > { %v11412_v50 = vrot.slane %v5893_v63, 5 }
 0x39c   : > { %v7227_v43 = vmax.f32 %v6971_v27, %v7099_v37  ;;  %v2399_v52 = vpop.f32.mrf.mxu0  ;;  %v11401_v27 = vld [vmem:[%s8904_s7 + $0x24c] sm:$0xf]  ;;  %v1624_v11 = vrot.slane %v1623_v45, 4 }
 0x39d   : > { %v6662_v60 = vpop.f32.mrf.mxu3  ;;  %v3253_v55 = vadd.f32 %v3252_v0, %v2399_v52  ;;  %v5881_v0 = vrot.slane %v5879_v1, 5  ;;  %v1636_v23 = vshll.u32 %v11401_v27, 16  ;;  %v5899_v1 = vrot.slane %v5897_v28, 4 }
 0x39e   : > { %v11371_v59 = vpop.f32.mrf.mxu2  ;;  %v7355_v4 = vpack.c.bf16 %v7227_v43, %v7227_v43  ;;  %v6840_v35 = vadd.f32 %v6662_v60, %v4414_v47  ;;  %v8593_v43 = vld [vmem:[%s8904_s7 + $0x260] sm:$0xf]  ;;  %v5889_v47 = vrot.slane %v5887_v39, 5  ;;  %v1938_v60 = vpack.c.b16 %v1868_v12, %v1867_v41 }
 0x39f   : > { %7650 = vmatmul.msk.bf16.gmra.mxu0 %vm1957_vm0, %v1937_v44  ;;  %v4415_v25 = vadd.f32 %v4239_v20, %v3253_v55  ;;  %v5882_v20 = vsel %vm8919_vm3, %v5877_v10, %v5881_v0  ;;  %v5903_v55 = vshll.u32 %v8593_v43, 16  ;;  %v11417_v53 = vrot.slane %v1636_v23, 5  ;;  %v8742_v0 = vld [vmem:[%s8904_s7 + $0x244] sm:$0xff] }
 0x3a0   : > { %7484 = vst.msk [vmem:[%s9151_s16 + $0x178] sm:$0xf] %vm7389_vm4, %v7355_v4  ;;  %v6972_v3 = vadd.f32 %v11238_v56, %v6840_v35  ;;  %v6135_v48 = vunpack.c.l.b16 %v5882_v20  ;;  %v5890_v19 = vor.u32 %v5889_v47, %v5886_v42  ;;  %v5900_v10 = vor.u32 %v5899_v1, %v11412_v50  ;;  %v334_v42 = vld [vmem:[%s8904_s7 + $0x254] sm:$0x1]  ;;  %v8595_v23 = vld [vmem:[%s8904_s7 + $0x268] sm:$0x1] }
 0x3a1   : > { %v11381_v18 = vpop.f32.mrf.mxu1  ;;  %v1629_v17 = vsel %vm8919_vm3, %v1624_v11, %v11398_v57  ;;  %v11434_v58 = vrot.slane %v5903_v55, 5  ;;  %v1640_v14 = vshrl.u32 %v11401_v27, 16  ;;  %v1650_v20 = vshrl.u32 %v292_v2, 16 }
 0x3a2   : > { %v7100_v16 = vmul.f32 0.1, %v6972_v3  ;;  %8674 = vmatmul.msk.bf16.gmra.mxu3 %vm1957_vm0, %v6204_v8  ;;  %v6205_v35 = vpack.c.b16 %v6135_v48, %v6134_v40  ;;  %v5891_v9 = vrot.slane %v5890_v19, 4  ;;  %v5901_v29 = vrot.slane %v5900_v10, 4  ;;  %v294_v10 = vld [vmem:[%s8904_s7 + $0x25c] sm:$0xf] }
 0x3a3   : > { %8439 = vmatmul.msk.bf16.gmra.mxu2 %vm1957_vm0, %v8809_v24  ;;  %v1642_v28 = vrot.slane %v1640_v14, 4  ;;  %v1652_v12 = vrot.slane %v1650_v20, 4  ;;  %v8596_v14 = vld [vmem:[%s8904_s7 + $0x26c] sm:$0xf] }
 0x3a4   : > { %7979 = vmatmul.msk.bf16.gmra.mxu1 %vm1957_vm0, %v8741_v61  ;;  %v7228_v36 = vmax.f32 %v6972_v3, %v7100_v16  ;;  %v2401_v46 = vpop.f32.mrf.mxu0  ;;  %v1634_v61 = vrot.slane %v1633_v6, 4  ;;  %v8594_v16 = vld [vmem:[%s8904_s7 + $0x264] sm:$0xf]  ;;  %v5896_v27 = vsel %vm8919_vm3, %v5891_v9, %v11412_v50  ;;  %v5906_v63 = vsel %vm8919_vm3, %v5901_v29, %v11434_v58 }
 0x3a5   : > { %v6665_v5 = vpop.f32.mrf.mxu3  ;;  %v3255_v44 = vadd.f32 %v11360_v49, %v2401_v46  ;;  %v1646_v46 = vshll.u32 %v292_v2, 16  ;;  %v5917_v38 = vshrl.u32 %v8594_v16, 16  ;;  %v6137_v50 = vunpack.c.l.b16 %v5906_v63 }
 0x3a6   : > { %v4244_v21 = vpop.f32.mrf.mxu2  ;;  %v7356_v7 = vpack.c.bf16 %v7228_v36, %v7228_v36  ;;  %v6841_v34 = vadd.f32 %v6665_v5, %v4415_v25  ;;  %v5907_v36 = vshrl.u32 %v8593_v43, 16  ;;  %v5913_v5 = vshll.u32 %v8594_v16, 16 }
 0x3a7   : > { %v4416_v49 = vadd.f32 %v11371_v59, %v3255_v44  ;;  %v8810_v59 = vld [vmem:[%s8904_s7 + $0x258] sm:$0xff]  ;;  %v11447_v41 = vrot.slane %v1646_v46, 5  ;;  %v5919_v6 = vrot.slane %v5917_v38, 4  ;;  %v1643_v1 = vor.u32 %v1642_v28, %v11417_v53 }
 0x3a8   : > { %7485 = vst.msk [vmem:[%s9151_s16 + $0x17c] sm:$0xf] %vm7389_vm4, %v7356_v7  ;;  %v6973_v37 = vadd.f32 %v11238_v56, %v6841_v34  ;;  %v5909_v40 = vrot.slane %v5907_v36, 4  ;;  %v11456_v45 = vrot.slane %v5913_v5, 5  ;;  %v1670_v9 = vshll.u32 %v294_v10, 16 }
 0x3a9   : > { %v11407_v54 = vpop.f32.mrf.mxu1  ;;  %v1674_v29 = vshrl.u32 %v294_v10, 16  ;;  %v8597_v5 = vld [vmem:[%s8904_s7 + $0x270] sm:$0xf] }
 0x3aa   : > { %v7101_v52 = vmul.f32 0.1, %v6973_v37  ;;  %v5920_v55 = vor.u32 %v5919_v6, %v11456_v45  ;;  %v11491_v63 = vrot.slane %v1670_v9, 5  ;;  %v296_v9 = vld [vmem:[%s8904_s7 + $0x264] sm:$0xf] }
 0x3ab   : > { %v1676_v28 = vrot.slane %v1674_v29, 4 }
 0x3ac   : > { %v7229_v51 = vmax.f32 %v6973_v37, %v7101_v52  ;;  %v2404_v4 = vpop.f32.mrf.mxu0  ;;  %v6136_v52 = vunpack.c.l.b16 %v5896_v27  ;;  %v5921_v16 = vrot.slane %v5920_v55, 4 }
 0x3ad   : > { %v6667_v8 = vpop.f32.mrf.mxu3  ;;  %v3258_v3 = vadd.f32 %v11381_v18, %v2404_v4  ;;  %v1639_v18 = vsel %vm8919_vm3, %v1634_v61, %v11417_v53  ;;  %v293_v53 = vld [vmem:[%s8904_s7 + $0x258] sm:$0xf] }
 0x3ae   : > { %v11415_v24 = vpop.f32.mrf.mxu2  ;;  %v7357_v62 = vpack.c.bf16 %v7229_v51, %v7229_v51  ;;  %v6842_v13 = vadd.f32 %v6667_v8, %v4416_v49  ;;  %v1870_v39 = vunpack.c.l.b16 %v1639_v18  ;;  %v1656_v51 = vshll.u32 %v334_v42, 16 }
 0x3af   : > { %7651 = vmatmul.msk.bf16.gmra.mxu0 %vm1957_vm0, %v1938_v60  ;;  %v4417_v30 = vadd.f32 %v4244_v21, %v3258_v3  ;;  %v1869_v21 = vunpack.c.l.b16 %v1629_v17  ;;  %v1653_v60 = vor.u32 %v1652_v12, %v11447_v41  ;;  %v5923_v8 = vshll.u32 %v8595_v23, 16 }
 0x3b0   : > { %7486 = vst.msk [vmem:[%s9151_s16 + $0x180] sm:$0xf] %vm7389_vm4, %v7357_v62  ;;  %v6974_v15 = vadd.f32 %v11238_v56, %v6842_v13  ;;  %v6206_v3 = vpack.c.b16 %v6137_v50, %v6136_v52  ;;  %v1658_v2 = vrot.slane %v1656_v51, 5  ;;  %v5941_v42 = vshrl.u32 %v8597_v5, 16 }
 0x3b1   : > { %v3262_v22 = vpop.f32.mrf.mxu1  ;;  %v1939_v47 = vpack.c.b16 %v1870_v39, %v1869_v21  ;;  %v5928_v39 = vshrl.u32 %v8596_v14, 16  ;;  %v1677_v51 = vor.u32 %v1676_v28, %v11491_v63 }
 0x3b2   : > { %v7102_v25 = vmul.f32 0.1, %v6974_v15  ;;  %8675 = vmatmul.msk.bf16.gmra.mxu3 %vm1957_vm0, %v6205_v35 }
 0x3b3   : > { %8440 = vmatmul.msk.bf16.gmra.mxu2 %vm1957_vm0, %v8810_v59  ;;  %v8811_v59 = vld [vmem:[%s8904_s7 + $0x260] sm:$0xff] }
 0x3b4   : > { %7980 = vmatmul.msk.bf16.gmra.mxu1 %vm1957_vm0, %v8742_v0  ;;  %v7230_v26 = vmax.f32 %v6974_v15, %v7102_v25  ;;  %v2406_v32 = vpop.f32.mrf.mxu0  ;;  %v8743_v0 = vld [vmem:[%s8904_s7 + $0x24c] sm:$0xff]  ;;  %v1654_v15 = vrot.slane %v1653_v60, 4  ;;  %v1661_v25 = vshrl.u32 %v293_v53, 16 }
 0x3b5   : > { %v6670_v57 = vpop.f32.mrf.mxu3  ;;  %v3260_v44 = vadd.f32 %v11407_v54, %v2406_v32  ;;  %v5910_v54 = vor.u32 %v5909_v40, %v11434_v58 }
 0x3b6   : > { %v4249_v31 = vpop.f32.mrf.mxu2  ;;  %v7358_v7 = vpack.c.bf16 %v7230_v26, %v7230_v26  ;;  %v6843_v34 = vadd.f32 %v6670_v57, %v4417_v30  ;;  %v1664_v30 = vshll.u32 %v293_v53, 16  ;;  %v1659_v26 = vsel %vm8919_vm3, %v1654_v15, %v1658_v2 }
 0x3b7   : > { %v4418_v4 = vadd.f32 %v11415_v24, %v3260_v44  ;;  %v1644_v24 = vrot.slane %v1643_v1, 4  ;;  %v5911_v17 = vrot.slane %v5910_v54, 4  ;;  %v1663_v21 = vrot.slane %v1661_v25, 4 }
 0x3b8   : > { %7487 = vst.msk [vmem:[%s9151_s16 + $0x184] sm:$0xf] %vm7389_vm4, %v7358_v7  ;;  %v6975_v37 = vadd.f32 %v11238_v56, %v6843_v34  ;;  %v1666_v27 = vrot.slane %v1664_v30, 5  ;;  %v5937_v44 = vshll.u32 %v8597_v5, 16  ;;  %v1872_v6 = vunpack.c.l.b16 %v1659_v26 }
 0x3b9   : > { %v11453_v48 = vpop.f32.mrf.mxu1  ;;  %v1649_v20 = vsel %vm8919_vm3, %v1644_v24, %v11447_v41  ;;  %v5916_v32 = vsel %vm8919_vm3, %v5911_v17, %v11456_v45  ;;  %v5931_v41 = vshll.u32 %v8596_v14, 16  ;;  %v5930_v1 = vrot.slane %v5928_v39, 4 }
 0x3ba   : > { %v7103_v43 = vmul.f32 0.1, %v6975_v37  ;;  %v1871_v45 = vunpack.c.l.b16 %v1649_v20  ;;  %v6138_v23 = vunpack.c.l.b16 %v5916_v32  ;;  %v1667_v60 = vor.u32 %v1666_v27, %v1663_v21 }
 0x3bb   : > { %v11505_v55 = vrot.slane %v5937_v44, 5 }
 0x3bc   : > { %v7231_v49 = vmax.f32 %v6975_v37, %v7103_v43  ;;  %v2409_v35 = vpop.f32.mrf.mxu0  ;;  %v11494_v37 = vld [vmem:[%s8904_s7 + $0x260] sm:$0xf]  ;;  %v1668_v10 = vrot.slane %v1667_v60, 4 }
 0x3bd   : > { %v6672_v11 = vpop.f32.mrf.mxu3  ;;  %v3263_v13 = vadd.f32 %v3262_v22, %v2409_v35  ;;  %v5925_v22 = vrot.slane %v5923_v8, 5  ;;  %v1680_v54 = vshll.u32 %v11494_v37, 16  ;;  %v5943_v8 = vrot.slane %v5941_v42, 4 }
 0x3be   : > { %v11464_v61 = vpop.f32.mrf.mxu2  ;;  %v7359_v19 = vpack.c.bf16 %v7231_v49, %v7231_v49  ;;  %v6844_v62 = vadd.f32 %v6672_v11, %v4418_v4  ;;  %v8598_v49 = vld [vmem:[%s8904_s7 + $0x274] sm:$0xf]  ;;  %v5933_v4 = vrot.slane %v5931_v41, 5  ;;  %v1940_v11 = vpack.c.b16 %v1872_v6, %v1871_v45 }
 0x3bf   : > { %7652 = vmatmul.msk.bf16.gmra.mxu0 %vm1957_vm0, %v1939_v47  ;;  %v4419_v46 = vadd.f32 %v4249_v31, %v3263_v13  ;;  %v5926_v31 = vsel %vm8919_vm3, %v5921_v16, %v5925_v22  ;;  %v5947_v13 = vshll.u32 %v8598_v49, 16  ;;  %v11510_v24 = vrot.slane %v1680_v54, 5  ;;  %v8744_v22 = vld [vmem:[%s8904_s7 + $0x258] sm:$0xff] }
 0x3c0   : > { %7488 = vst.msk [vmem:[%s9151_s16 + $0x188] sm:$0xf] %vm7389_vm4, %v7359_v19  ;;  %v6976_v18 = vadd.f32 %v11238_v56, %v6844_v62  ;;  %v6139_v50 = vunpack.c.l.b16 %v5926_v31  ;;  %v5934_v15 = vor.u32 %v5933_v4, %v5930_v1  ;;  %v5944_v16 = vor.u32 %v5943_v8, %v11505_v55  ;;  %v335_v1 = vld [vmem:[%s8904_s7 + $0x268] sm:$0x1]  ;;  %v8600_v54 = vld [vmem:[%s8904_s7 + $0x27c] sm:$0x1] }
 0x3c1   : > { %v11474_v58 = vpop.f32.mrf.mxu1  ;;  %v1673_v29 = vsel %vm8919_vm3, %v1668_v10, %v11491_v63  ;;  %v11527_v14 = vrot.slane %v5947_v13, 5  ;;  %v1684_v5 = vshrl.u32 %v11494_v37, 16  ;;  %v1694_v31 = vshrl.u32 %v296_v9, 16 }
 0x3c2   : > { %v7104_v36 = vmul.f32 0.1, %v6976_v18  ;;  %8676 = vmatmul.msk.bf16.gmra.mxu3 %vm1957_vm0, %v6206_v3  ;;  %v6207_v62 = vpack.c.b16 %v6139_v50, %v6138_v23  ;;  %v5935_v26 = vrot.slane %v5934_v15, 4  ;;  %v5945_v32 = vrot.slane %v5944_v16, 4  ;;  %v298_v16 = vld [vmem:[%s8904_s7 + $0x270] sm:$0xf] }
 0x3c3   : > { %8441 = vmatmul.msk.bf16.gmra.mxu2 %vm1957_vm0, %v8811_v59  ;;  %v1686_v42 = vrot.slane %v1684_v5, 4  ;;  %v1696_v6 = vrot.slane %v1694_v31, 4  ;;  %v8601_v5 = vld [vmem:[%s8904_s7 + $0x280] sm:$0xf] }
 0x3c4   : > { %7981 = vmatmul.msk.bf16.gmra.mxu1 %vm1957_vm0, %v8743_v0  ;;  %v7232_v38 = vmax.f32 %v6976_v18, %v7104_v36  ;;  %v2411_v57 = vpop.f32.mrf.mxu0  ;;  %v1678_v0 = vrot.slane %v1677_v51, 4  ;;  %v8599_v36 = vld [vmem:[%s8904_s7 + $0x278] sm:$0xf]  ;;  %v5940_v37 = vsel %vm8919_vm3, %v5935_v26, %v11505_v55  ;;  %v5950_v44 = vsel %vm8919_vm3, %v5945_v32, %v11527_v14 }
 0x3c5   : > { %v6675_v7 = vpop.f32.mrf.mxu3  ;;  %v3265_v47 = vadd.f32 %v11453_v48, %v2411_v57  ;;  %v1690_v57 = vshll.u32 %v296_v9, 16  ;;  %v5961_v27 = vshrl.u32 %v8599_v36, 16  ;;  %v6141_v55 = vunpack.c.l.b16 %v5950_v44 }
 0x3c6   : > { %v4254_v34 = vpop.f32.mrf.mxu2  ;;  %v7360_v12 = vpack.c.bf16 %v7232_v38, %v7232_v38  ;;  %v6845_v40 = vadd.f32 %v6675_v7, %v4419_v46  ;;  %v5951_v38 = vshrl.u32 %v8598_v49, 16  ;;  %v5957_v7 = vshll.u32 %v8599_v36, 16 }
 0x3c7   : > { %v4420_v48 = vadd.f32 %v11464_v61, %v3265_v47  ;;  %v8812_v61 = vld [vmem:[%s8904_s7 + $0x26c] sm:$0xff]  ;;  %v11540_v45 = vrot.slane %v1690_v57, 5  ;;  %v5963_v51 = vrot.slane %v5961_v27, 4  ;;  %v1687_v8 = vor.u32 %v1686_v42, %v11510_v24 }
 0x3c8   : > { %7489 = vst.msk [vmem:[%s9151_s16 + $0x18c] sm:$0xf] %vm7389_vm4, %v7360_v12  ;;  %v6977_v43 = vadd.f32 %v11238_v56, %v6845_v40  ;;  %v5953_v23 = vrot.slane %v5951_v38, 4  ;;  %v11549_v60 = vrot.slane %v5957_v7, 5  ;;  %v1714_v26 = vshll.u32 %v298_v16, 16 }
 0x3c9   : > { %v11500_v52 = vpop.f32.mrf.mxu1  ;;  %v1718_v32 = vshrl.u32 %v298_v16, 16  ;;  %v5975_v42 = vshll.u32 %v8601_v5, 16 }
 0x3ca   : > { %v7105_v35 = vmul.f32 0.1, %v6977_v43  ;;  %v5964_v13 = vor.u32 %v5963_v51, %v11549_v60 }
 0x3cb   : > { %v1720_v44 = vrot.slane %v1718_v32, 4 }
 0x3cc   : > { %v7233_v53 = vmax.f32 %v6977_v43, %v7105_v35  ;;  %v2414_v19 = vpop.f32.mrf.mxu0  ;;  %v6140_v35 = vunpack.c.l.b16 %v5940_v37  ;;  %v5965_v36 = vrot.slane %v5964_v13, 4  ;;  %v11584_v37 = vrot.slane %v1714_v26, 5 }
 0x3cd   : > { %v6677_v3 = vpop.f32.mrf.mxu3  ;;  %v3268_v18 = vadd.f32 %v11474_v58, %v2414_v19  ;;  %v1683_v58 = vsel %vm8919_vm3, %v1678_v0, %v11510_v24  ;;  %v297_v24 = vld [vmem:[%s8904_s7 + $0x26c] sm:$0xf] }
 0x3ce   : > { %v11508_v59 = vpop.f32.mrf.mxu2  ;;  %v7361_v2 = vpack.c.bf16 %v7233_v53, %v7233_v53  ;;  %v6846_v17 = vadd.f32 %v6677_v3, %v4420_v48  ;;  %v1874_v41 = vunpack.c.l.b16 %v1683_v58  ;;  %v1700_v53 = vshll.u32 %v335_v1, 16 }
 0x3cf   : > { %7653 = vmatmul.msk.bf16.gmra.mxu0 %vm1957_vm0, %v1940_v11  ;;  %v4421_v20 = vadd.f32 %v4254_v34, %v3268_v18  ;;  %v1873_v34 = vunpack.c.l.b16 %v1673_v29  ;;  %v1697_v11 = vor.u32 %v1696_v6, %v11540_v45  ;;  %v5967_v3 = vshll.u32 %v8600_v54, 16  ;;  %v11594_v54 = vld [vmem:[%s11730_s2] ss:$0 sm:$0xff] }
 0x3d0   : > { %7490 = vst.msk [vmem:[%s9151_s16 + $0x190] sm:$0xf] %vm7389_vm4, %v7361_v2  ;;  %v6978_v25 = vadd.f32 %v11238_v56, %v6846_v17  ;;  %v6208_v18 = vpack.c.b16 %v6141_v55, %v6140_v35  ;;  %v1702_v9 = vrot.slane %v1700_v53, 5  ;;  %v1721_v53 = vor.u32 %v1720_v44, %v11584_v37 }
 0x3d1   : > { %v3272_v30 = vpop.f32.mrf.mxu1  ;;  %v1941_v4 = vpack.c.b16 %v1874_v41, %v1873_v34  ;;  %v5972_v34 = vshrl.u32 %v8601_v5, 16  ;;  %v300_v5 = vld [vmem:[%s8904_s7 + $0x278] sm:$0xf] }
 0x3d2   : > { %v7106_v46 = vmul.f32 0.1, %v6978_v25  ;;  %8677 = vmatmul.msk.bf16.gmra.mxu3 %vm1957_vm0, %v6207_v62 }
 0x3d3   : > { %8442 = vmatmul.msk.bf16.gmra.mxu2 %vm1957_vm0, %v8812_v61  ;;  %v8813_v61 = vld [vmem:[%s8904_s7 + $0x274] sm:$0xff] }
 0x3d4   : > { %7982 = vmatmul.msk.bf16.gmra.mxu1 %vm1957_vm0, %v8744_v22  ;;  %v7234_v21 = vmax.f32 %v6978_v25, %v7106_v46  ;;  %v2416_v39 = vpop.f32.mrf.mxu0  ;;  %v8745_v22 = vld [vmem:[%s8904_s7 + $0x260] sm:$0xff]  ;;  %v1698_v25 = vrot.slane %v1697_v11, 4  ;;  %v1705_v46 = vshrl.u32 %v297_v24, 16 }
 0x3d5   : > { %v6680_v63 = vpop.f32.mrf.mxu3  ;;  %v3270_v47 = vadd.f32 %v11500_v52, %v2416_v39  ;;  %v5954_v52 = vor.u32 %v5953_v23, %v11527_v14  ;;  %v8602_v39 = vld [vmem:[%s8904_s7 + $0x284] sm:$0xf]  ;;  %v11587_v23 = vld [vmem:[%s8904_s7 + $0x274] sm:$0xf] }
 0x3d6   : > { %v4259_v28 = vpop.f32.mrf.mxu2  ;;  %v7362_v12 = vpack.c.bf16 %v7234_v21, %v7234_v21  ;;  %v6847_v40 = vadd.f32 %v6680_v63, %v4421_v20  ;;  %v1708_v20 = vshll.u32 %v297_v24, 16  ;;  %v1703_v31 = vsel %vm8919_vm3, %v1698_v25, %v1702_v9 }
 0x3d7   : > { %v4422_v19 = vadd.f32 %v11508_v59, %v3270_v47  ;;  %v1688_v59 = vrot.slane %v1687_v8, 4  ;;  %v5955_v29 = vrot.slane %v5954_v52, 4  ;;  %v5985_v47 = vshrl.u32 %v8602_v39, 16 }
 0x3d8   : > { %7491 = vst.msk [vmem:[%s9151_s16 + $0x194] sm:$0xf] %vm7389_vm4, %v7362_v12  ;;  %v6979_v43 = vadd.f32 %v11238_v56, %v6847_v40  ;;  %v1710_v40 = vrot.slane %v1708_v20, 5  ;;  %v5974_v8 = vrot.slane %v5972_v34, 4  ;;  %v1724_v52 = vshll.u32 %v11587_v23, 16 }
 0x3d9   : > { %v11546_v50 = vpop.f32.mrf.mxu1  ;;  %v5960_v21 = vsel %vm8919_vm3, %v5955_v29, %v11549_v60  ;;  %v1876_v60 = vunpack.c.l.b16 %v1703_v31 }
 0x3da   : > { %v7107_v49 = vmul.f32 0.1, %v6979_v43  ;;  %v6142_v51 = vunpack.c.l.b16 %v5960_v21  ;;  %v1728_v21 = vshrl.u32 %v11587_v23, 16 }
 0x3dc   : > { %v7235_v48 = vmax.f32 %v6979_v43, %v7107_v49  ;;  %v2419_v62 = vpop.f32.mrf.mxu0  ;;  %v5981_v43 = vshll.u32 %v8602_v39, 16  ;;  %v1730_v23 = vrot.slane %v1728_v21, 4 }
 0x3dd   : > { %v6682_v10 = vpop.f32.mrf.mxu3  ;;  %v3273_v17 = vadd.f32 %v3272_v30, %v2419_v62  ;;  %v5969_v30 = vrot.slane %v5967_v3, 5  ;;  %v5987_v3 = vrot.slane %v5985_v47, 4 }
 0x3de   : > { %v11557_v0 = vpop.f32.mrf.mxu2  ;;  %v7363_v15 = vpack.c.bf16 %v7235_v48, %v7235_v48  ;;  %v6848_v2 = vadd.f32 %v6682_v10, %v4422_v19  ;;  %v11603_v48 = vld [vmem:[%s8904_s7 + $0x288] sm:$0xf]  ;;  %v5977_v19 = vrot.slane %v5975_v42, 5  ;;  %v5983_v13 = vrot.slane %v5981_v43, 5 }
 0x3df   : > { %7654 = vmatmul.msk.bf16.gmra.mxu0 %vm1957_vm0, %v1941_v4  ;;  %v4423_v57 = vadd.f32 %v4259_v28, %v3273_v17  ;;  %v5970_v63 = vsel %vm8919_vm3, %v5965_v36, %v5969_v30  ;;  %v1707_v28 = vrot.slane %v1705_v46, 4  ;;  %v5991_v17 = vshll.u32 %v11603_v48, 16  ;;  %v8814_v36 = vld [vmem:[%s8904_s7 + $0x280] sm:$0xff]  ;;  %v8746_v30 = vld [vmem:[%s8904_s7 + $0x26c] sm:$0xff] }
 0x3e0   : > { %7492 = vst.msk [vmem:[%s9151_s16 + $0x198] sm:$0xf] %vm7389_vm4, %v7363_v15  ;;  %v6980_v58 = vadd.f32 %v11238_v56, %v6848_v2  ;;  %v1693_v56 = vsel %vm8919_vm3, %v1688_v59, %v11540_v45  ;;  %v6143_v55 = vunpack.c.l.b16 %v5970_v63  ;;  %v11607_v59 = vrot.slane %v1724_v52, 5 }
 0x3e1   : > { %v11567_v14 = vpop.f32.mrf.mxu1  ;;  %v1875_v1 = vunpack.c.l.b16 %v1693_v56  ;;  %v1711_v11 = vor.u32 %v1710_v40, %v1707_v28  ;;  %v5978_v25 = vor.u32 %v5977_v19, %v5974_v8  ;;  %v1738_v63 = vshrl.u32 %v300_v5, 16  ;;  %v8604_v28 = vld [vmem:[%s8904_s7 + $0x28c] sm:$0xf] }
 0x3e2   : > { %v7108_v38 = vmul.f32 0.1, %v6980_v58  ;;  %8678 = vmatmul.msk.bf16.gmra.mxu3 %vm1957_vm0, %v6208_v18  ;;  %v6209_v2 = vpack.c.b16 %v6143_v55, %v6142_v51  ;;  %v6001_v43 = vshll.u32 %v8604_v28, 16  ;;  %v6005_v47 = vshrl.u32 %v8604_v28, 16  ;;  %v336_v55 = vld [vmem:[%s8904_s7 + $0x27c] sm:$0x1] }
 0x3e3   : > { %8443 = vmatmul.msk.bf16.gmra.mxu2 %vm1957_vm0, %v8813_v61  ;;  %v1942_v10 = vpack.c.b16 %v1876_v60, %v1875_v1  ;;  %v1712_v16 = vrot.slane %v1711_v11, 4  ;;  %v5979_v56 = vrot.slane %v5978_v25, 4 }
 0x3e4   : > { %7983 = vmatmul.msk.bf16.gmra.mxu1 %vm1957_vm0, %v8745_v22  ;;  %v7236_v7 = vmax.f32 %v6980_v58, %v7108_v38  ;;  %v2421_v27 = vpop.f32.mrf.mxu0  ;;  %v1722_v22 = vrot.slane %v1721_v53, 4 }
 0x3e5   : > { %v6685_v41 = vpop.f32.mrf.mxu3  ;;  %v3275_v4 = vadd.f32 %v11546_v50, %v2421_v27  ;;  %v1717_v26 = vsel %vm8919_vm3, %v1712_v16, %v11584_v37  ;;  %v1734_v27 = vshll.u32 %v300_v5, 16  ;;  %v5984_v42 = vsel %vm8919_vm3, %v5979_v56, %v5983_v13 }
 0x3e6   : > { %v4264_v12 = vpop.f32.mrf.mxu2  ;;  %v7364_v45 = vpack.c.bf16 %v7236_v7, %v7236_v7  ;;  %v6849_v6 = vadd.f32 %v6685_v41, %v4423_v57  ;;  %v1727_v32 = vsel %vm8919_vm3, %v1722_v22, %v11607_v59  ;;  %v1877_v40 = vunpack.c.l.b16 %v1717_v26 }
 0x3e7   : > { %v4424_v50 = vadd.f32 %v11557_v0, %v3275_v4  ;;  %v5988_v0 = vor.u32 %v5987_v3, %v5983_v13  ;;  %v1878_v37 = vunpack.c.l.b16 %v1727_v32  ;;  %v1740_v4 = vrot.slane %v1738_v63, 4 }
 0x3e8   : > { %7493 = vst.msk [vmem:[%s9151_s16 + $0x19c] sm:$0xf] %vm7389_vm4, %v7364_v45  ;;  %v6981_v49 = vadd.f32 %v11594_v54, %v6849_v6  ;;  %v5995_v6 = vshrl.u32 %v11603_v48, 16  ;;  %v6144_v53 = vunpack.c.l.b16 %v5984_v42  ;;  %v1731_v48 = vor.u32 %v1730_v23, %v11607_v59  ;;  %v8747_v59 = vld [vmem:[%s8904_s7 + $0x274] sm:$0xff] }
 0x3e9   : > { %v11598_v35 = vpop.f32.mrf.mxu1  ;;  %v5989_v31 = vrot.slane %v5988_v0, 4  ;;  %v1943_v11 = vpack.c.b16 %v1878_v37, %v1877_v40  ;;  %v6007_v13 = vrot.slane %v6005_v47, 4 }
 0x3ea   : > { %v7109_v62 = vmul.f32 0.1, %v6981_v49  ;;  %v5997_v19 = vrot.slane %v5995_v6, 4 }
 0x3ec   : > { %v7237_v24 = vmax.f32 %v6981_v49, %v7109_v62  ;;  %v2424_v15 = vpop.f32.mrf.mxu0  ;;  %v1736_v49 = vrot.slane %v1734_v27, 5  ;;  %v6003_v62 = vrot.slane %v6001_v43, 5 }
 0x3ed   : > { %v6687_v18 = vpop.f32.mrf.mxu3  ;;  %v3278_v58 = vadd.f32 %v11567_v14, %v2424_v15  ;;  %v11622_v14 = vrot.slane %v5991_v17, 5  ;;  %v8605_v15 = vld [vmem:[%s8904_s7 + $0x290] sm:$0x1] }
 0x3ee   : > { %v4266_v61 = vpop.f32.mrf.mxu2  ;;  %v7365_v9 = vpack.c.bf16 %v7237_v24, %v7237_v24  ;;  %v6850_v29 = vadd.f32 %v6687_v18, %v4424_v50  ;;  %v1744_v50 = vshll.u32 %v336_v55, 16 }
 0x3ef   : > { %7655 = vmatmul.msk.bf16.gmra.mxu0 %vm1957_vm0, %v1942_v10  ;;  %v4425_v57 = vadd.f32 %v4264_v12, %v3278_v58  ;;  %v5994_v45 = vsel %vm8919_vm3, %v5989_v31, %v11622_v14  ;;  %v6008_v58 = vor.u32 %v6007_v13, %v6003_v62 }
 0x3f0   : > { %7494 = vst.msk [vmem:[%s9151_s16 + $0x1a0] sm:$0xf] %vm7389_vm4, %v7365_v9  ;;  %v6982_v46 = vadd.f32 %v11594_v54, %v6850_v29  ;;  %v6145_v52 = vunpack.c.l.b16 %v5994_v45  ;;  %v8815_v9 = vld [vmem:[%s8904_s7 + $0x288] sm:$0xff]  ;;  %v5998_v29 = vor.u32 %v5997_v19, %v11622_v14  ;;  %v1746_v26 = vrot.slane %v1744_v50, 5 }
 0x3f1   : > { %v3282_v20 = vpop.f32.mrf.mxu1  ;;  %v6009_v5 = vrot.slane %v6008_v58, 4 }
 0x3f2   : > { %v7110_v38 = vmul.f32 0.1, %v6982_v46  ;;  %8679 = vmatmul.msk.bf16.gmra.mxu3 %vm1957_vm0, %v6209_v2  ;;  %v6210_v25 = vpack.c.b16 %v6145_v52, %v6144_v53  ;;  %v5999_v14 = vrot.slane %v5998_v29, 4 }
 0x3f3   : > { %8444 = vmatmul.msk.bf16.gmra.mxu2 %vm1957_vm0, %v8814_v36  ;;  %v6011_v36 = vshll.u32 %v8605_v15, 16 }
 0x3f4   : > { %7984 = vmatmul.msk.bf16.gmra.mxu1 %vm1957_vm0, %v8746_v30  ;;  %v7238_v39 = vmax.f32 %v6982_v46, %v7110_v38  ;;  %v2426_v7 = vpop.f32.mrf.mxu0  ;;  %v1732_v30 = vrot.slane %v1731_v48, 4 }
 0x3f5   : > { %v6690_v34 = vpop.f32.mrf.mxu3  ;;  %v3280_v60 = vadd.f32 %v11598_v35, %v2426_v7  ;;  %v1741_v35 = vor.u32 %v1740_v4, %v1736_v49  ;;  %v6013_v38 = vrot.slane %v6011_v36, 5 }
 0x3f6   : > { %v4269_v41 = vpop.f32.mrf.mxu2  ;;  %v7366_v12 = vpack.c.bf16 %v7238_v39, %v7238_v39  ;;  %v6851_v44 = vadd.f32 %v6690_v34, %v4425_v57  ;;  %v1737_v31 = vsel %vm8919_vm3, %v1732_v30, %v1736_v49 }
 0x3f7   : > { %v4426_v10 = vadd.f32 %v4266_v61, %v3280_v60  ;;  %v1742_v46 = vrot.slane %v1741_v35, 4  ;;  %v1879_v28 = vunpack.c.l.b16 %v1737_v31  ;;  %v6014_v40 = vsel %vm8919_vm3, %v6009_v5, %v6013_v38 }
 0x3f8   : > { %7495 = vst.msk [vmem:[%s9151_s16 + $0x1a4] sm:$0xf] %vm7389_vm4, %v7366_v12  ;;  %v6983_v1 = vadd.f32 %v11594_v54, %v6851_v44  ;;  %v6147_v6 = vunpack.c.l.b16 %v6014_v40 }
 0x3f9   : > { %v3284_v51 = vpop.f32.mrf.mxu1  ;;  %v1747_v21 = vsel %vm8919_vm3, %v1742_v46, %v1746_v26 }
 0x3fa   : > { %v7111_v8 = vmul.f32 0.1, %v6983_v1  ;;  %v1880_v34 = vunpack.c.l.b16 %v1747_v21 }
 0x3fc   : > { %v7239_v3 = vmax.f32 %v6983_v1, %v7111_v8  ;;  %v2429_v24 = vpop.f32.mrf.mxu0  ;;  %v1944_v23 = vpack.c.b16 %v1880_v34, %v1879_v28 }
 0x3fd   : > { %v6692_v2 = vpop.f32.mrf.mxu3  ;;  %v3283_v22 = vadd.f32 %v3282_v20, %v2429_v24 }
 0x3fe   : > { %v4271_v17 = vpop.f32.mrf.mxu2  ;;  %v7367_v18 = vpack.c.bf16 %v7239_v3, %v7239_v3  ;;  %v6852_v16 = vadd.f32 %v6692_v2, %v4426_v10 }
 0x3ff   : > { %7656 = vmatmul.msk.bf16.gmra.mxu0 %vm1957_vm0, %v1943_v11  ;;  %v4427_v20 = vadd.f32 %v4269_v41, %v3283_v22  ;;  %v6004_v41 = vsel %vm8919_vm3, %v5999_v14, %v6003_v62 }
 0x400   : > { %7496 = vst.msk [vmem:[%s9151_s16 + $0x1a8] sm:$0xf] %vm7389_vm4, %v7367_v18  ;;  %v6984_v61 = vadd.f32 %v11594_v54, %v6852_v16  ;;  %v6146_v45 = vunpack.c.l.b16 %v6004_v41 }
 0x401   : > { %v3287_v0 = vpop.f32.mrf.mxu1 }
 0x402   : > { %v7112_v32 = vmul.f32 0.1, %v6984_v61  ;;  %8680 = vmatmul.msk.bf16.gmra.mxu3 %vm1957_vm0, %v6210_v25  ;;  %v6211_v8 = vpack.c.b16 %v6147_v6, %v6146_v45 }
 0x403   : > { %8445 = vmatmul.msk.bf16.gmra.mxu2 %vm1957_vm0, %v8815_v9 }
 0x404   : > { %7985 = vmatmul.msk.bf16.gmra.mxu1 %vm1957_vm0, %v8747_v59  ;;  %v7240_v57 = vmax.f32 %v6984_v61, %v7112_v32  ;;  %v2431_v56 = vpop.f32.mrf.mxu0 }
 0x405   : > { %v6695_v39 = vpop.f32.mrf.mxu3  ;;  %v3285_v12 = vadd.f32 %v3284_v51, %v2431_v56 }
 0x406   : > { %v4274_v7 = vpop.f32.mrf.mxu2  ;;  %v7368_v27 = vpack.c.bf16 %v7240_v57, %v7240_v57  ;;  %v6853_v63 = vadd.f32 %v6695_v39, %v4427_v20 }
 0x407   : > { %v4428_v47 = vadd.f32 %v4271_v17, %v3285_v12 }
 0x408   : > { %7497 = vst.msk [vmem:[%s9151_s16 + $0x1ac] sm:$0xf] %vm7389_vm4, %v7368_v27  ;;  %v6985_v37 = vadd.f32 %v11594_v54, %v6853_v63 }
 0x409   : > { %v3289_v44 = vpop.f32.mrf.mxu1 }
 0x40a   : > { %v7113_v42 = vmul.f32 0.1, %v6985_v37 }
 0x40c   : > { %v7241_v43 = vmax.f32 %v6985_v37, %v7113_v42  ;;  %v2434_v1 = vpop.f32.mrf.mxu0 }
 0x40d   : > { %v6697_v60 = vpop.f32.mrf.mxu3  ;;  %v3288_v33 = vadd.f32 %v3287_v0, %v2434_v1 }
 0x40e   : > { %v4276_v49 = vpop.f32.mrf.mxu2  ;;  %v7369_v4 = vpack.c.bf16 %v7241_v43, %v7241_v43  ;;  %v6854_v55 = vadd.f32 %v6697_v60, %v4428_v47 }
 0x40f   : > { %7657 = vmatmul.msk.bf16.gmra.mxu0 %vm1957_vm0, %v1944_v23  ;;  %v4429_v52 = vadd.f32 %v4274_v7, %v3288_v33 }
 0x410   : > { %7498 = vst.msk [vmem:[%s9151_s16 + $0x1b0] sm:$0xf] %vm7389_vm4, %v7369_v4  ;;  %v6986_v51 = vadd.f32 %v11594_v54, %v6854_v55 }
 0x411   : > { %v3292_v11 = vpop.f32.mrf.mxu1 }
 0x412   : > { %v7114_v53 = vmul.f32 0.1, %v6986_v51  ;;  %8681 = vmatmul.msk.bf16.gmra.mxu3 %vm1957_vm0, %v6211_v8 }
 0x414   : > { %v7242_v48 = vmax.f32 %v6986_v51, %v7114_v53  ;;  %v2436_v19 = vpop.f32.mrf.mxu0 }
 0x415   : > { %v6700_v62 = vpop.f32.mrf.mxu3  ;;  %v3290_v35 = vadd.f32 %v3289_v44, %v2436_v19 }
 0x416   : > { %v4279_v13 = vpop.f32.mrf.mxu2  ;;  %v7370_v3 = vpack.c.bf16 %v7242_v48, %v7242_v48  ;;  %v6855_v10 = vadd.f32 %v6700_v62, %v4429_v52 }
 0x417   : > { %v4430_v17 = vadd.f32 %v4276_v49, %v3290_v35 }
 0x418   : > { %7499 = vst.msk [vmem:[%s9151_s16 + $0x1b4] sm:$0xf] %vm7389_vm4, %v7370_v3  ;;  %v6987_v24 = vadd.f32 %v11594_v54, %v6855_v10 }
 0x419   : > { %v3294_v50 = vpop.f32.mrf.mxu1 }
 0x41a   : > { %v7115_v15 = vmul.f32 0.1, %v6987_v24 }
 0x41c   : > { %v7243_v2 = vmax.f32 %v6987_v24, %v7115_v15  ;;  %v2439_v18 = vpop.f32.mrf.mxu0 }
 0x41d   : > { %v6702_v16 = vpop.f32.mrf.mxu3  ;;  %v3293_v59 = vadd.f32 %v3292_v11, %v2439_v18 }
 0x41e   : > { %v4281_v22 = vpop.f32.mrf.mxu2  ;;  %v7371_v25 = vpack.c.bf16 %v7243_v2, %v7243_v2  ;;  %v6856_v9 = vadd.f32 %v6702_v16, %v4430_v17 }
 0x41f   : > { %v4431_v61 = vadd.f32 %v4279_v13, %v3293_v59 }
 0x420   : > { %7500 = vst.msk [vmem:[%s9151_s16 + $0x1b8] sm:$0xf] %vm7389_vm4, %v7371_v25  ;;  %v6988_v29 = vadd.f32 %v11594_v54, %v6856_v9 }
 0x421   : > { %v3297_v58 = vpop.f32.mrf.mxu1 }
 0x422   : > { %v7116_v36 = vmul.f32 0.1, %v6988_v29 }
 0x424   : > { %v7244_v0 = vmax.f32 %v6988_v29, %v7116_v36  ;;  %v2441_v30 = vpop.f32.mrf.mxu0 }
 0x425   : > { %v6705_v46 = vpop.f32.mrf.mxu3  ;;  %v3295_v5 = vadd.f32 %v3294_v50, %v2441_v30 }
 0x426   : > { %v4284_v26 = vpop.f32.mrf.mxu2  ;;  %v7372_v32 = vpack.c.bf16 %v7244_v0, %v7244_v0  ;;  %v6857_v20 = vadd.f32 %v6705_v46, %v4431_v61 }
 0x427   : > { %v4432_v31 = vadd.f32 %v4281_v22, %v3295_v5 }
 0x428   : > { %7501 = vst.msk [vmem:[%s9151_s16 + $0x1bc] sm:$0xf] %vm7389_vm4, %v7372_v32  ;;  %v6989_v14 = vadd.f32 %v11594_v54, %v6857_v20 }
 0x429   : > { %v3299_v38 = vpop.f32.mrf.mxu1 }
 0x42a   : > { %v7117_v57 = vmul.f32 0.1, %v6989_v14 }
 0x42c   : > { %v7245_v56 = vmax.f32 %v6989_v14, %v7117_v57  ;;  %v2444_v21 = vpop.f32.mrf.mxu0 }
 0x42d   : > { %v6707_v39 = vpop.f32.mrf.mxu3  ;;  %v3298_v28 = vadd.f32 %v3297_v58, %v2444_v21 }
 0x42e   : > { %v4286_v7 = vpop.f32.mrf.mxu2  ;;  %v7373_v27 = vpack.c.bf16 %v7245_v56, %v7245_v56  ;;  %v6858_v63 = vadd.f32 %v6707_v39, %v4432_v31 }
 0x42f   : > { %v4433_v37 = vadd.f32 %v4284_v26, %v3298_v28 }
 0x430   : > { %7502 = vst.msk [vmem:[%s9151_s16 + $0x1c0] sm:$0xf] %vm7389_vm4, %v7373_v27  ;;  %v6990_v34 = vadd.f32 %v11594_v54, %v6858_v63 }
 0x431   : > { %v3302_v41 = vpop.f32.mrf.mxu1 }
 0x432   : > { %v7118_v40 = vmul.f32 0.1, %v6990_v34 }
 0x434   : > { %v7246_v12 = vmax.f32 %v6990_v34, %v7118_v40  ;;  %v2446_v44 = vpop.f32.mrf.mxu0 }
 0x435   : > { %v6710_v42 = vpop.f32.mrf.mxu3  ;;  %v3300_v47 = vadd.f32 %v3299_v38, %v2446_v44 }
 0x436   : > { %v4289_v45 = vpop.f32.mrf.mxu2  ;;  %v7374_v6 = vpack.c.bf16 %v7246_v12, %v7246_v12  ;;  %v6859_v23 = vadd.f32 %v6710_v42, %v4433_v37 }
 0x437   : > { %v4434_v4 = vadd.f32 %v4286_v7, %v3300_v47 }
 0x438   : > { %7503 = vst.msk [vmem:[%s9151_s16 + $0x1c4] sm:$0xf] %vm7389_vm4, %v7374_v6  ;;  %v6991_v43 = vadd.f32 %v11594_v54, %v6859_v23 }
 0x439   : > { %v3304_v1 = vpop.f32.mrf.mxu1 }
 0x43a   : > { %v7119_v60 = vmul.f32 0.1, %v6991_v43 }
 0x43c   : > { %v7247_v49 = vmax.f32 %v6991_v43, %v7119_v60  ;;  %v2449_v55 = vpop.f32.mrf.mxu0 }
 0x43d   : > { %v6712_v33 = vpop.f32.mrf.mxu3  ;;  %v3303_v53 = vadd.f32 %v3302_v41, %v2449_v55 }
 0x43e   : > { %v4291_v8 = vpop.f32.mrf.mxu2  ;;  %v7375_v51 = vpack.c.bf16 %v7247_v49, %v7247_v49  ;;  %v6860_v11 = vadd.f32 %v6712_v33, %v4434_v4 }
 0x43f   : > { %v4435_v62 = vadd.f32 %v4289_v45, %v3303_v53 }
 0x440   : > { %7504 = vst.msk [vmem:[%s9151_s16 + $0x1c8] sm:$0xf] %vm7389_vm4, %v7375_v51  ;;  %v6992_v52 = vadd.f32 %v11594_v54, %v6860_v11 }
 0x441   : > { %v3307_v48 = vpop.f32.mrf.mxu1 }
 0x442   : > { %v7120_v19 = vmul.f32 0.1, %v6992_v52 }
 0x444   : > { %v7248_v13 = vmax.f32 %v6992_v52, %v7120_v19  ;;  %v2451_v3 = vpop.f32.mrf.mxu0 }
 0x445   : > { %v6715_v10 = vpop.f32.mrf.mxu3  ;;  %v3305_v2 = vadd.f32 %v3304_v1, %v2451_v3 }
 0x446   : > { %v4294_v24 = vpop.f32.mrf.mxu2  ;;  %v7376_v35 = vpack.c.bf16 %v7248_v13, %v7248_v13  ;;  %v6861_v50 = vadd.f32 %v6715_v10, %v4435_v62 }
 0x447   : > { %v4436_v22 = vadd.f32 %v4291_v8, %v3305_v2 }
 0x448   : > { %7505 = vst.msk [vmem:[%s9151_s16 + $0x1cc] sm:$0xf] %vm7389_vm4, %v7376_v35  ;;  %v6993_v15 = vadd.f32 %v11594_v54, %v6861_v50 }
 0x449   : > { %v3309_v17 = vpop.f32.mrf.mxu1 }
 0x44a   : > { %v7121_v18 = vmul.f32 0.1, %v6993_v15 }
 0x44c   : > { %v7249_v16 = vmax.f32 %v6993_v15, %v7121_v18  ;;  %v2454_v25 = vpop.f32.mrf.mxu0 }
 0x44d   : > { %v6717_v9 = vpop.f32.mrf.mxu3  ;;  %v3308_v36 = vadd.f32 %v3307_v48, %v2454_v25 }
 0x44e   : > { %v4296_v59 = vpop.f32.mrf.mxu2  ;;  %v7377_v29 = vpack.c.bf16 %v7249_v16, %v7249_v16  ;;  %v6862_v58 = vadd.f32 %v6717_v9, %v4436_v22 }
 0x44f   : > { %v4437_v46 = vadd.f32 %v4294_v24, %v3308_v36 }
 0x450   : > { %7506 = vst.msk [vmem:[%s9151_s16 + $0x1d0] sm:$0xf] %vm7389_vm4, %v7377_v29  ;;  %v6994_v61 = vadd.f32 %v11594_v54, %v6862_v58 }
 0x451   : > { %v3312_v0 = vpop.f32.mrf.mxu1 }
 0x452   : > { %v7122_v30 = vmul.f32 0.1, %v6994_v61 }
 0x454   : > { %v7250_v26 = vmax.f32 %v6994_v61, %v7122_v30  ;;  %v2456_v32 = vpop.f32.mrf.mxu0 }
 0x455   : > { %v6720_v20 = vpop.f32.mrf.mxu3  ;;  %v3310_v56 = vadd.f32 %v3309_v17, %v2456_v32 }
 0x456   : > { %v4299_v14 = vpop.f32.mrf.mxu2  ;;  %v7378_v5 = vpack.c.bf16 %v7250_v26, %v7250_v26  ;;  %v6863_v38 = vadd.f32 %v6720_v20, %v4437_v46 }
 0x457   : > { %v4438_v7 = vadd.f32 %v4296_v59, %v3310_v56 }
 0x458   : > { %7507 = vst.msk [vmem:[%s9151_s16 + $0x1d4] sm:$0xf] %vm7389_vm4, %v7378_v5  ;;  %v6995_v57 = vadd.f32 %v11594_v54, %v6863_v38 }
 0x459   : > { %v3314_v21 = vpop.f32.mrf.mxu1 }
 0x45a   : > { %v7123_v31 = vmul.f32 0.1, %v6995_v57 }
 0x45c   : > { %v7251_v39 = vmax.f32 %v6995_v57, %v7123_v31  ;;  %v2459_v27 = vpop.f32.mrf.mxu0 }
 0x45d   : > { %v6722_v63 = vpop.f32.mrf.mxu3  ;;  %v3313_v41 = vadd.f32 %v3312_v0, %v2459_v27 }
 0x45e   : > { %v7379_v28 = vpack.c.bf16 %v7251_v39, %v7251_v39  ;;  %v6864_v34 = vadd.f32 %v6722_v63, %v4438_v7  ;;  %v4301_v40 = vpop.f32.mrf.mxu2 }
 0x45f   : > { %v4439_v44 = vadd.f32 %v4299_v14, %v3313_v41 }
 0x460   : > { %7508 = vst.msk [vmem:[%s9151_s16 + $0x1d8] sm:$0xf] %vm7389_vm4, %v7379_v28  ;;  %v6996_v37 = vadd.f32 %v11594_v54, %v6864_v34 }
 0x461   : > { %v3317_v23 = vpop.f32.mrf.mxu1 }
 0x462   : > { %v7124_v12 = vmul.f32 0.1, %v6996_v37 }
 0x464   : > { %v7252_v42 = vmax.f32 %v6996_v37, %v7124_v12  ;;  %v2461_v45 = vpop.f32.mrf.mxu0 }
 0x465   : > { %v6725_v6 = vpop.f32.mrf.mxu3  ;;  %v3315_v60 = vadd.f32 %v3314_v21, %v2461_v45 }
 0x466   : > { %v7380_v43 = vpack.c.bf16 %v7252_v42, %v7252_v42  ;;  %v6865_v47 = vadd.f32 %v6725_v6, %v4439_v44  ;;  %v4304_v49 = vpop.f32.mrf.mxu2 }
 0x467   : > { %v4440_v33 = vadd.f32 %v4301_v40, %v3315_v60 }
 0x468   : > { %7509 = vst.msk [vmem:[%s9151_s16 + $0x1dc] sm:$0xf] %vm7389_vm4, %v7380_v43  ;;  %v6997_v1 = vadd.f32 %v11594_v54, %v6865_v47 }
 0x469   : > { %v3319_v48 = vpop.f32.mrf.mxu1 }
 0x46a   : > { %v7125_v4 = vmul.f32 0.1, %v6997_v1 }
 0x46c   : > { %v7253_v55 = vmax.f32 %v6997_v1, %v7125_v4  ;;  %v2464_v8 = vpop.f32.mrf.mxu0 }
 0x46d   : > { %v6727_v51 = vpop.f32.mrf.mxu3  ;;  %v3318_v52 = vadd.f32 %v3317_v23, %v2464_v8 }
 0x46e   : > { %v7381_v11 = vpack.c.bf16 %v7253_v55, %v7253_v55  ;;  %v6866_v53 = vadd.f32 %v6727_v51, %v4440_v33  ;;  %v4306_v3 = vpop.f32.mrf.mxu2 }
 0x46f   : > { %v4441_v13 = vadd.f32 %v4304_v49, %v3318_v52 }
 0x470   : > { %7510 = vst.msk [vmem:[%s9151_s16 + $0x1e0] sm:$0xf] %vm7389_vm4, %v7381_v11  ;;  %v6998_v19 = vadd.f32 %v11594_v54, %v6866_v53 }
 0x471   : > { %v3322_v18 = vpop.f32.mrf.mxu1 }
 0x472   : > { %v7126_v62 = vmul.f32 0.1, %v6998_v19 }
 0x474   : > { %v7254_v10 = vmax.f32 %v6998_v19, %v7126_v62  ;;  %v2466_v24 = vpop.f32.mrf.mxu0 }
 0x475   : > { %v6730_v35 = vpop.f32.mrf.mxu3  ;;  %v3320_v17 = vadd.f32 %v3319_v48, %v2466_v24 }
 0x476   : > { %v7382_v50 = vpack.c.bf16 %v7254_v10, %v7254_v10  ;;  %v6867_v15 = vadd.f32 %v6730_v35, %v4441_v13  ;;  %v4309_v59 = vpop.f32.mrf.mxu2 }
 0x477   : > { %v4442_v25 = vadd.f32 %v4306_v3, %v3320_v17 }
 0x478   : > { %7511 = vst.msk [vmem:[%s9151_s16 + $0x1e4] sm:$0xf] %vm7389_vm4, %v7382_v50  ;;  %v6999_v2 = vadd.f32 %v11594_v54, %v6867_v15 }
 0x479   : > { %v3324_v26 = vpop.f32.mrf.mxu1 }
 0x47a   : > { %v7127_v16 = vmul.f32 0.1, %v6999_v2 }
 0x47c   : > { %v7255_v22 = vmax.f32 %v6999_v2, %v7127_v16  ;;  %v2469_v9 = vpop.f32.mrf.mxu0 }
 0x47d   : > { %v6732_v29 = vpop.f32.mrf.mxu3  ;;  %v3323_v61 = vadd.f32 %v3322_v18, %v2469_v9 }
 0x47e   : > { %v7383_v58 = vpack.c.bf16 %v7255_v22, %v7255_v22  ;;  %v6868_v36 = vadd.f32 %v6732_v29, %v4442_v25  ;;  %v4311_v57 = vpop.f32.mrf.mxu2 }
 0x47f   : > { %v4443_v46 = vadd.f32 %v4309_v59, %v3323_v61 }
 0x480   : > { %7512 = vst.msk [vmem:[%s9151_s16 + $0x1e8] sm:$0xf] %vm7389_vm4, %v7383_v58  ;;  %v7000_v0 = vadd.f32 %v11594_v54, %v6868_v36 }
 0x481   : > { %v3327_v63 = vpop.f32.mrf.mxu1 }
 0x482   : > { %v7128_v30 = vmul.f32 0.1, %v7000_v0 }
 0x484   : > { %v7256_v32 = vmax.f32 %v7000_v0, %v7128_v30  ;;  %v2471_v20 = vpop.f32.mrf.mxu0 }
 0x485   : > { %v6735_v14 = vpop.f32.mrf.mxu3  ;;  %v3325_v31 = vadd.f32 %v3324_v26, %v2471_v20 }
 0x486   : > { %v7384_v5 = vpack.c.bf16 %v7256_v32, %v7256_v32  ;;  %v6869_v38 = vadd.f32 %v6735_v14, %v4443_v46  ;;  %v4314_v12 = vpop.f32.mrf.mxu2 }
 0x487   : > { %v4444_v7 = vadd.f32 %v4311_v57, %v3325_v31 }
 0x488   : > { %7513 = vst.msk [vmem:[%s9151_s16 + $0x1ec] sm:$0xf] %vm7389_vm4, %v7384_v5  ;;  %v7001_v56 = vadd.f32 %v11594_v54, %v6869_v38 }
 0x489   : > { %v3329_v1 = vpop.f32.mrf.mxu1 }
 0x48a   : > { %v7129_v21 = vmul.f32 0.1, %v7001_v56 }
 0x48c   : > { %v7257_v39 = vmax.f32 %v7001_v56, %v7129_v21  ;;  %v2474_v27 = vpop.f32.mrf.mxu0 }
 0x48d   : > { %v6737_v28 = vpop.f32.mrf.mxu3  ;;  %v3328_v40 = vadd.f32 %v3327_v63, %v2474_v27 }
 0x48e   : > { %v7385_v34 = vpack.c.bf16 %v7257_v39, %v7257_v39  ;;  %v6870_v41 = vadd.f32 %v6737_v28, %v4444_v7  ;;  %v4316_v55 = vpop.f32.mrf.mxu2 }
 0x48f   : > { %v4445_v42 = vadd.f32 %v4314_v12, %v3328_v40 }
 0x490   : > { %7514 = vst.msk [vmem:[%s9151_s16 + $0x1f0] sm:$0xf] %vm7389_vm4, %v7385_v34  ;;  %v7002_v37 = vadd.f32 %v11594_v54, %v6870_v41 }
 0x492   : > { %v7130_v44 = vmul.f32 0.1, %v7002_v37 }
 0x494   : > { %v7258_v45 = vmax.f32 %v7002_v37, %v7130_v44  ;;  %v2476_v23 = vpop.f32.mrf.mxu0 }
 0x495   : > { %v6740_v6 = vpop.f32.mrf.mxu3  ;;  %v3330_v49 = vadd.f32 %v3329_v1, %v2476_v23 }
 0x496   : > { %v7386_v43 = vpack.c.bf16 %v7258_v45, %v7258_v45  ;;  %v6871_v47 = vadd.f32 %v6740_v6, %v4445_v42 }
 0x497   : > { %v4446_v8 = vadd.f32 %v4316_v55, %v3330_v49 }
 0x498   : > { %7515 = vst.msk [vmem:[%s9151_s16 + $0x1f4] sm:$0xf] %vm7389_vm4, %v7386_v43  ;;  %v7003_v60 = vadd.f32 %v11594_v54, %v6871_v47 }
 0x49a   : > { %v7131_v4 = vmul.f32 0.1, %v7003_v60 }
 0x49c   : > { %v7259_v33 = vmax.f32 %v7003_v60, %v7131_v4 }
 0x49d   : > { %v6742_v51 = vpop.f32.mrf.mxu3 }
 0x49e   : > { %v7387_v11 = vpack.c.bf16 %v7259_v33, %v7259_v33  ;;  %v6872_v53 = vadd.f32 %v6742_v51, %v4446_v8 }
 0x4a0   : > { %7516 = vst.msk [vmem:[%s9151_s16 + $0x1f8] sm:$0xf] %vm7389_vm4, %v7387_v11  ;;  %v7004_v52 = vadd.f32 %v11594_v54, %v6872_v53 }
 0x4a2   : > { %v7132_v48 = vmul.f32 0.1, %v7004_v52 }
 0x4a4   : > { %v7260_v19 = vmax.f32 %v7004_v52, %v7132_v48 }
 0x4a6   : > { %v7388_v62 = vpack.c.bf16 %v7260_v19, %v7260_v19 }
 0x4a8   : > { %7517 = vst.msk [vmem:[%s9151_s16 + $0x1fc] sm:$0xf] %vm7389_vm4, %v7388_v62 }
 0x4a9 PF: > { %s13_s12 = sadd.s32 1, %s8843_s12  }
 0x4aa   : > { %p10_p5 = scmp.ge.s32.totalorder %s13_s12, 4  }
 0x4ac   :  { %12 = sbr.rel (!%p10_p5) target bundleno = 1 (0x1), region = 66 }

// kernel: netd_dcgan_forward.6
= control target key start
LH: loop header
LB: loop body
LE: loop exit
PB: predicated region body
PF: predicated region fallthrough
CT: control target
= control target key end

     0   :  { %s1572_s15 = smov 0   ;;  %s1574_s16 = smov 0   ;;  %s1901_s0 = inlined_call_operand.vmem [shape: bf16[2,9,9,128], index: 0, kind: input, shape index: {}]   ;;  %s1902_s1 = inlined_call_operand.vmem [shape: bf16[4,128,64], index: 1, kind: input, shape index: {}]   ;;  %s1903_s2 = inlined_call_operand.vmem [shape: f32[1,64], index: 2, kind: input, shape index: {}]   ;;  %s1904_s3 = inlined_call_operand.vmem [shape: f32[1,64], index: 3, kind: input, shape index: {}]   ;;  %s1905_s4 = inlined_call_operand.vmem [shape: bf16[128,64], index: 4, kind: output, shape index: {}]  }
   0x1   :  { %s1576_s17 = smov 0   ;;  %s1578_s18 = smov 0  }
   0x2   :  { %s1580_s19 = smov 0  }
   0x3 LB: > { %s23_s20 = sadd.s32 1, %s1536_s17  ;;  %s26_s21 = sadd.s32 1, %s1540_s18  ;;  %s1544_s19 = sphi %s1580_s19, %s14_s19   ;;  %s1540_s18 = sphi %s1578_s18, %s1911_s18   ;;  %s1536_s17 = sphi %s1576_s17, %s1910_s17   ;;  %s1532_s16 = sphi %s1574_s16, %s1909_s16   ;;  %s1528_s15 = sphi %s1572_s15, %s1908_s15  }
   0x4   : > { %p24_p0 = scmp.ge.s32.totalorder %s23_s20, 2  ;;  %p1182_p1 = scmp.ge.s32.totalorder %s1544_s19, 1 }
   0x5   : > { %p176_p2 = scmp.lt.s32.totalorder %s1544_s19, 5 }
   0x6   : > { %s1913_s20 = smov (%p24_p0, %s23_s20), 0  ;;  %s1915_s21 = smov (!%p24_p0, %s26_s21), %s1540_s18 }
   0x7   : > { %p177_p3 = pnand %p1182_p1, %p176_p2  ;;  %p28_p4 = scmp.ge.s32.totalorder %s1915_s21, 2 }
   0x8   : > { %p203_p5 = scmp.lt.s32.totalorder (!%p177_p3), %s1528_s15, 1  ;;  %s208_s22 = smul.u32 (!%p177_p3), %s1528_s15, %s1532_s16 }
   0x9   : > { %s1917_s21 = smov (%p28_p4, %s1915_s21), 0  ;;  %180 = sbr.rel (%p177_p3) target bundleno = 342 (0x156), region = 36 }
   0xa   : > { %p216_p6 = scmp.eq.s32.totalorder (!%p177_p3), %s1532_s16, 0  ;;  %p217_p7 = scmp.eq.s32.totalorder (!%p177_p3), %s1528_s15, 0 }
   0xb   : > { %s1184_s23 = sshll.u32 (!%p177_p3), %s208_s22, 3 }
   0xc   : > { %p218_p8 = pnand (!%p177_p3), %p217_p7, %p216_p6  ;;  %p210_p9 = scmp.lt.s32.totalorder (!%p177_p3), %s1184_s23, 15 }
   0xe   : > { %s1919_s15 = smov (!%p203_p5, %s1528_s15), 1  ;;  %s1921_s23 = smov (!%p210_p9, %s1184_s23), 15 }
   0xf   : > { %s1462_s24 = smul.u32 72, %s1919_s15  ;;  %s1185_s28 = sshll.u32 %s1921_s23, 2 }
  0x10   : > { %s1614_s5 = scalar_lea.vmem %s1905_s4, %s1185_s28  ;;  %221 = sbr.rel (%p218_p8) target bundleno = 24 (0x18), region = 40 }
  0x11   : > { %s1609_s27 = scalar_lea.vmem %s1901_s0, %s1462_s24 }
  0x15   : > { %vm222_vm0 = vcmask 516096   ;;  %v1546_v0 = vmov 0.0  }
  0x16   : > { %223 = vst.msk [vmem:[#allocation2] sm:$0x1] %vm222_vm0, %v1546_v0 }
  0x17   : > { %224 = vst.msk [vmem:[#allocation3] sm:$0x1] %vm222_vm0, %v1546_v0 }
  0x18 PF: > { %v1441_v1 = vld [vmem:[%s1902_s1 + $0x78] sm:$0xff]  ;;  %v1440_v5 = vld [vmem:[%s1902_s1 + $0x70] sm:$0xff]  ;;  %v1439_v9 = vld [vmem:[%s1902_s1 + $0x68] sm:$0xff]  ;;  %vm257_vm1 = vsmask.f32 3328  ;;  %p1418_p10 = scmp.ne.s32.totalorder %s1532_s16, 0 }
  0x19   : > { %v1433_v2 = vld [vmem:[%s1902_s1 + $0x38] sm:$0xff]  ;;  %453 = vmatpush.bf16.msra.mxu0 %v1441_v1  ;;  %v1432_v6 = vld [vmem:[%s1902_s1 + $0x30] sm:$0xff]  ;;  %v1431_v10 = vld [vmem:[%s1902_s1 + $0x28] sm:$0xff]  ;;  %vm258_vm2 = vsmask.f32 7440 }
  0x1a   : > { %v1453_v3 = vld [vmem:[%s1902_s1 + $0xb8] sm:$0xff]  ;;  %554 = vmatpush.bf16.msra.mxu1 %v1433_v2  ;;  %v1452_v7 = vld [vmem:[%s1902_s1 + $0xb0] sm:$0xff]  ;;  %v1451_v11 = vld [vmem:[%s1902_s1 + $0xa8] sm:$0xff] }
  0x1b   : > { %v1461_v4 = vld [vmem:[%s1902_s1 + $0xf8] sm:$0xff]  ;;  %681 = vmatpush.bf16.msra.mxu2 %v1453_v3  ;;  %v1460_v8 = vld [vmem:[%s1902_s1 + $0xf0] sm:$0xff]  ;;  %v1459_v12 = vld [vmem:[%s1902_s1 + $0xe8] sm:$0xff] }
  0x1c   : > { %927 = vmatpush.bf16.msra.mxu3 %v1461_v4  ;;  %v1438_v13 = vld [vmem:[%s1902_s1 + $0x60] sm:$0xff]  ;;  %v226_v18 = vld [vmem:[%s1609_s27 + $0x8] sm:$0xf]  ;;  %v250_v20 = vld [vmem:[%s1609_s27 + $0xc] sm:$0x1] }
  0x1d   : > { %454 = vmatpush.bf16.msra.mxu0 %v1440_v5  ;;  %v1430_v14 = vld [vmem:[%s1902_s1 + $0x20] sm:$0xff]  ;;  %v275_v24 = vshrl.u32 %v226_v18, 16  ;;  %v1437_v25 = vld [vmem:[%s1902_s1 + $0x58] sm:$0xff]  ;;  %v278_v27 = vshll.u32 %v226_v18, 16  ;;  %v284_v28 = vshll.u32 %v250_v20, 16  ;;  %vm1686_vm3 = vmor %vm257_vm1, %vm258_vm2 }
  0x1e   : > { %555 = vmatpush.bf16.msra.mxu1 %v1432_v6  ;;  %v1450_v15 = vld [vmem:[%s1902_s1 + $0xa0] sm:$0xff]  ;;  %v1429_v26 = vld [vmem:[%s1902_s1 + $0x18] sm:$0xff]  ;;  %v1354_v37 = vld [vmem:[%s1609_s27 + $0x8] sm:$0xf] }
  0x1f   : > { %682 = vmatpush.bf16.msra.mxu2 %v1452_v7  ;;  %v1458_v16 = vld [vmem:[%s1902_s1 + $0xe0] sm:$0xff]  ;;  %v1449_v29 = vld [vmem:[%s1902_s1 + $0x98] sm:$0xff]  ;;  %v277_v34 = vrot.slane %v275_v24, 4  ;;  %v280_v35 = vrot.slane %v278_v27, 5  ;;  %v286_v36 = vrot.slane %v284_v28, 5  ;;  %v735_v42 = vshrl.u32 %v1354_v37, 16 }
  0x20   : > { %928 = vmatpush.bf16.msra.mxu3 %v1460_v8  ;;  %v225_v17 = vld [vmem:[%s1609_s27] sm:$0xf]  ;;  %v249_v19 = vld [vmem:[%s1609_s27 + $0x4] sm:$0x1]  ;;  %v1457_v30 = vld [vmem:[%s1902_s1 + $0xd8] sm:$0xff]  ;;  %v738_v43 = vshll.u32 %v1354_v37, 16 }
  0x21   : > { %455 = vmatpush.bf16.msra.mxu0 %v1439_v9  ;;  %v261_v21 = vshrl.u32 %v225_v17, 16  ;;  %v264_v22 = vshll.u32 %v225_v17, 16  ;;  %v270_v23 = vshll.u32 %v249_v19, 16  ;;  %v1355_v38 = vld [vmem:[%s1609_s27 + $0xc] sm:$0x1]  ;;  %v281_v45 = vor.u32 %v280_v35, %v277_v34  ;;  %v1436_v50 = vld [vmem:[%s1902_s1 + $0x50] sm:$0xff] }
  0x22   : > { %556 = vmatpush.bf16.msra.mxu1 %v1431_v10  ;;  %v1356_v40 = vld [vmem:[%s1609_s27 + $0x10] sm:$0xf]  ;;  %v1357_v41 = vld [vmem:[%s1609_s27 + $0x14] sm:$0x1]  ;;  %v744_v46 = vshll.u32 %v1355_v38, 16  ;;  %v737_v53 = vrot.slane %v735_v42, 4 }
  0x23   : > { %683 = vmatpush.bf16.msra.mxu2 %v1451_v11  ;;  %v263_v31 = vrot.slane %v261_v21, 4  ;;  %v266_v32 = vrot.slane %v264_v22, 5  ;;  %v272_v33 = vrot.slane %v270_v23, 5  ;;  %v749_v47 = vshrl.u32 %v1356_v40, 16  ;;  %v227_v49 = vld [vmem:[%s1609_s27 + $0x10] sm:$0xf] }
  0x24   : > { %929 = vmatpush.bf16.msra.mxu3 %v1459_v12  ;;  %v752_v48 = vshll.u32 %v1356_v40, 16  ;;  %v1428_v51 = vld [vmem:[%s1902_s1 + $0x10] sm:$0xff]  ;;  %v740_v54 = vrot.slane %v738_v43, 5  ;;  %v758_v55 = vshll.u32 %v1357_v41, 16  ;;  %v282_v58 = vrot.slane %v281_v45, 4  ;;  %v1435_v2 = vld [vmem:[%s1902_s1 + $0x48] sm:$0xff] }
  0x25   : > { %456 = vmatpush.bf16.msra.mxu0 %v1438_v13  ;;  %v267_v39 = vor.u32 %v266_v32, %v263_v31  ;;  %v1448_v56 = vld [vmem:[%s1902_s1 + $0x90] sm:$0xff]  ;;  %v751_v59 = vrot.slane %v749_v47, 4  ;;  %v746_v63 = vrot.slane %v744_v46, 5  ;;  %v228_v0 = vld [vmem:[%s1609_s27 + $0x18] sm:$0xf]  ;;  %v289_v1 = vshrl.u32 %v227_v49, 16 }
  0x26   : > { %557 = vmatpush.bf16.msra.mxu1 %v1430_v14  ;;  %v1456_v57 = vld [vmem:[%s1902_s1 + $0xd0] sm:$0xff]  ;;  %v754_v60 = vrot.slane %v752_v48, 5  ;;  %v741_v62 = vor.u32 %v740_v54, %v737_v53  ;;  %v287_v3 = vsel %vm1686_vm3, %v282_v58, %v286_v36  ;;  %v760_v5 = vrot.slane %v758_v55, 5  ;;  %v1427_v7 = vld [vmem:[%s1902_s1 + $0x8] sm:$0xff]  ;;  %v1236_v9 = vld [vmem:[%s1609_s27] sm:$0xf] }
  0x27   : > { %684 = vmatpush.bf16.msra.mxu2 %v1450_v15  ;;  %v268_v52 = vrot.slane %v267_v39, 4  ;;  %v292_v6 = vshll.u32 %v227_v49, 16  ;;  %v1447_v8 = vld [vmem:[%s1902_s1 + $0x88] sm:$0xff]  ;;  %v303_v15 = vshrl.u32 %v228_v0, 16  ;;  %v390_v17 = vunpack.c.l.b16 %v287_v3  ;;  %v251_v19 = vld [vmem:[%s1609_s27 + $0x14] sm:$0x1] }
  0x28   : > { %930 = vmatpush.bf16.msra.mxu3 %v1458_v16  ;;  %v755_v4 = vor.u32 %v754_v60, %v751_v59  ;;  %v742_v10 = vrot.slane %v741_v62, 4  ;;  %v1455_v11 = vld [vmem:[%s1902_s1 + $0xc8] sm:$0xff]  ;;  %v306_v16 = vshll.u32 %v228_v0, 16  ;;  %v291_v20 = vrot.slane %v289_v1, 4  ;;  %v1358_v22 = vld [vmem:[%s1609_s27 + $0x18] sm:$0xf] }
  0x29   : > { %457 = vmatpush.bf16.msra.mxu0 %v1437_v25  ;;  %v273_v61 = vsel %vm1686_vm3, %v268_v52, %v272_v33  ;;  %v1422_v13 = vld [vmem:[%s1609_s27 + $0x4] sm:$0xf0]  ;;  %v294_v21 = vrot.slane %v292_v6, 5  ;;  %v1434_v23 = vld [vmem:[%s1902_s1 + $0x40] sm:$0xff]  ;;  %v252_v25 = vld [vmem:[%s1609_s27 + $0x1c] sm:$0x1] }
  0x2a   : > { %558 = vmatpush.bf16.msra.mxu1 %v1429_v26  ;;  %v389_v12 = vunpack.c.l.b16 %v273_v61  ;;  %v756_v14 = vrot.slane %v755_v4, 4  ;;  %v747_v18 = vsel %vm1686_vm3, %v742_v10, %v746_v63  ;;  %v305_v26 = vrot.slane %v303_v15, 4  ;;  %v1360_v27 = vld [vmem:[%s1609_s27 + $0x20] sm:$0xf]  ;;  %v1442_v36 = vld [vmem:[%s1609_s27 + $0xc] sm:$0xf0] }
  0x2b   : > { %685 = vmatpush.bf16.msra.mxu2 %v1449_v29  ;;  %v1426_v28 = vld [vmem:[%s1902_s1] sm:$0xff]  ;;  %v863_v31 = vunpack.c.l.b16 %v747_v18  ;;  %v308_v33 = vrot.slane %v306_v16, 5  ;;  %v1237_v35 = vor.u32 %v1422_v13, %v1236_v9  ;;  %v298_v37 = vshll.u32 %v251_v19, 16  ;;  %v1359_v43 = vld [vmem:[%s1609_s27 + $0x1c] sm:$0x1] }
  0x2c   : > { %931 = vmatpush.bf16.msra.mxu3 %v1457_v30  ;;  %v761_v24 = vsel %vm1686_vm3, %v756_v14, %v760_v5  ;;  %v1446_v29 = vld [vmem:[%s1902_s1 + $0x80] sm:$0xff]  ;;  %v1308_v30 = vld [vmem:[%s1609_s27 + $0x8] sm:$0xf]  ;;  %v763_v38 = vshrl.u32 %v1358_v22, 16  ;;  %v766_v39 = vshll.u32 %v1358_v22, 16  ;;  %v397_v40 = vpack.c.b16 %v390_v17, %v389_v12 }
  0x2d   : > { %458 = vmatpush.bf16.msra.mxu0 %v1436_v50  ;;  %v864_v32 = vunpack.c.l.b16 %v761_v24  ;;  %v1454_v34 = vld [vmem:[%s1902_s1 + $0xc0] sm:$0xff]  ;;  %v295_v41 = vor.u32 %v294_v21, %v291_v20  ;;  %v312_v42 = vshll.u32 %v252_v25, 16  ;;  %v777_v46 = vshrl.u32 %v1360_v27, 16  ;;  %v230_v0 = vld [vmem:[%s1609_s27 + $0x28] sm:$0xf] }
  0x2e   : > { %559 = vmatpush.bf16.msra.mxu1 %v1428_v51  ;;  %v1361_v45 = vld [vmem:[%s1609_s27 + $0x24] sm:$0x1]  ;;  %v309_v47 = vor.u32 %v308_v33, %v305_v26  ;;  %v765_v48 = vrot.slane %v763_v38, 4  ;;  %v768_v49 = vrot.slane %v766_v39, 5  ;;  %v780_v50 = vshll.u32 %v1360_v27, 16 }
  0x2f   : > { %686 = vmatpush.bf16.msra.mxu2 %v1448_v56  ;;  %v1309_v51 = vor.u32 %v1442_v36, %v1308_v30  ;;  %v871_v52 = vpack.c.b16 %v864_v32, %v863_v31  ;;  %v779_v53 = vrot.slane %v777_v46, 4  ;;  %v772_v55 = vshll.u32 %v1359_v43, 16  ;;  %v229_v63 = vld [vmem:[%s1609_s27 + $0x20] sm:$0xf]  ;;  %v1362_v5 = vld [vmem:[%s1609_s27 + $0x28] sm:$0xf] }
  0x30   : > { %932 = vmatpush.bf16.msra.mxu3 %v1456_v57  ;;  %v769_v54 = vor.u32 %v768_v49, %v765_v48  ;;  %v782_v56 = vrot.slane %v780_v50, 5  ;;  %v786_v57 = vshll.u32 %v1361_v45, 16  ;;  %v296_v58 = vrot.slane %v295_v41, 4  ;;  %v1240_v20 = vld [vmem:[%s1609_s27 + $0x10] sm:$0xf] }
  0x31   : > { %459 = vmatpush.bf16.msra.mxu0 %v1435_v2  ;;  %v300_v59 = vrot.slane %v298_v37, 5  ;;  %v310_v60 = vrot.slane %v309_v47, 4  ;;  %v314_v61 = vrot.slane %v312_v42, 5  ;;  %v774_v2 = vrot.slane %v772_v55, 5  ;;  %v1423_v21 = vld [vmem:[%s1609_s27 + $0x14] sm:$0xf0] }
  0x32   : > { %560 = vmatpush.bf16.msra.mxu1 %v1427_v7  ;;  %v783_v62 = vor.u32 %v782_v56, %v779_v53  ;;  %v770_v1 = vrot.slane %v769_v54, 4  ;;  %v788_v4 = vrot.slane %v786_v57, 5  ;;  %v317_v7 = vshrl.u32 %v229_v63, 16  ;;  %v254_v31 = vld [vmem:[%s1609_s27 + $0x2c] sm:$0x1] }
  0x33   : > { %687 = vmatpush.bf16.msra.mxu2 %v1447_v8  ;;  %v301_v6 = vsel %vm1686_vm3, %v296_v58, %v300_v59  ;;  %v1364_v8 = vld [vmem:[%s1609_s27 + $0x30] sm:$0xf]  ;;  %v315_v9 = vsel %vm1686_vm3, %v310_v60, %v314_v61  ;;  %v320_v10 = vshll.u32 %v229_v63, 16  ;;  %v334_v12 = vshll.u32 %v230_v0, 16  ;;  %v232_v61 = vld [vmem:[%s1609_s27 + $0x38] sm:$0xf] }
  0x34   : > { %933 = vmatpush.bf16.msra.mxu3 %v1455_v11  ;;  %v784_v3 = vrot.slane %v783_v62, 4  ;;  %v331_v11 = vshrl.u32 %v230_v0, 16  ;;  %v791_v13 = vshrl.u32 %v1362_v5, 16  ;;  %v794_v14 = vshll.u32 %v1362_v5, 16  ;;  %v231_v58 = vld [vmem:[%s1609_s27 + $0x30] sm:$0xf] }
  0x35   : > { %460 = vmatpush.bf16.msra.mxu0 %v1434_v23  ;;  %v775_v15 = vsel %vm1686_vm3, %v770_v1, %v774_v2  ;;  %v805_v17 = vshrl.u32 %v1364_v8, 16  ;;  %v391_v18 = vunpack.c.l.b16 %v301_v6  ;;  %v392_v19 = vunpack.c.l.b16 %v315_v9  ;;  %v253_v23 = vld [vmem:[%s1609_s27 + $0x24] sm:$0x1]  ;;  %v1366_v62 = vld [vmem:[%s1609_s27 + $0x38] sm:$0xf] }
  0x36   : > { %561 = vmatpush.bf16.msra.mxu1 %v1426_v28  ;;  %v789_v16 = vsel %vm1686_vm3, %v784_v3, %v788_v4  ;;  %v808_v22 = vshll.u32 %v1364_v8, 16  ;;  %v319_v24 = vrot.slane %v317_v7, 4  ;;  %v322_v25 = vrot.slane %v320_v10, 5  ;;  %v1312_v28 = vld [vmem:[%s1609_s27 + $0x18] sm:$0xf] }
  0x37   : > { %688 = vmatpush.bf16.msra.mxu2 %v1446_v29  ;;  %v333_v26 = vrot.slane %v331_v11, 4  ;;  %v336_v27 = vrot.slane %v334_v12, 5  ;;  %v865_v29 = vunpack.c.l.b16 %v775_v15  ;;  %v866_v30 = vunpack.c.l.b16 %v789_v16  ;;  %v1368_v63 = vld [vmem:[%s1609_s27 + $0x40] sm:$0xf]  ;;  %v1424_v15 = vld [vmem:[%s1609_s27 + $0x24] sm:$0xf0] }
  0x38   : > { %934 = vmatpush.bf16.msra.mxu3 %v1454_v34  ;;  %461 = vmatmul.bf16.vlgmr.msra.gmra.mxu0 %v397_v40  ;;  %v793_v32 = vrot.slane %v791_v13, 4  ;;  %v796_v33 = vrot.slane %v794_v14, 5  ;;  %v1443_v34 = vld [vmem:[%s1609_s27 + $0x1c] sm:$0xf0]  ;;  %v807_v36 = vrot.slane %v805_v17, 4  ;;  %v810_v37 = vrot.slane %v808_v22, 5 }
  0x39   : > { %562 = vmatmul.bf16.vlgmr.msra.gmra.mxu1 %v1237_v35  ;;  %v1363_v35 = vld [vmem:[%s1609_s27 + $0x2c] sm:$0x1]  ;;  %v1241_v38 = vor.u32 %v1423_v21, %v1240_v20  ;;  %v326_v39 = vshll.u32 %v253_v23, 16  ;;  %v1365_v40 = vld [vmem:[%s1609_s27 + $0x34] sm:$0x1]  ;;  %v398_v41 = vpack.c.b16 %v392_v19, %v391_v18  ;;  %v323_v42 = vor.u32 %v322_v25, %v319_v24 }
  0x3a   : > { %689 = vmatmul.bf16.vlgmr.msra.gmra.mxu2 %v1309_v51  ;;  %v337_v43 = vor.u32 %v336_v27, %v333_v26  ;;  %v340_v45 = vshll.u32 %v254_v31, 16  ;;  %v1313_v46 = vor.u32 %v1443_v34, %v1312_v28  ;;  %v872_v47 = vpack.c.b16 %v866_v30, %v865_v29  ;;  %v1244_v12 = vld [vmem:[%s1609_s27 + $0x20] sm:$0xf]  ;;  %v1316_v16 = vld [vmem:[%s1609_s27 + $0x28] sm:$0xf] }
  0x3b   : > { %935 = vmatmul.bf16.vlgmr.msra.gmra.mxu3 %v871_v52  ;;  %v797_v48 = vor.u32 %v796_v33, %v793_v32  ;;  %v800_v49 = vshll.u32 %v1363_v35, 16  ;;  %v811_v50 = vor.u32 %v810_v37, %v807_v36  ;;  %v814_v51 = vshll.u32 %v1365_v40, 16  ;;  %v1444_v19 = vld [vmem:[%s1609_s27 + $0x2c] sm:$0xf0]  ;;  %v255_v22 = vld [vmem:[%s1609_s27 + $0x34] sm:$0x1] }
  0x3c   : > { %v324_v52 = vrot.slane %v323_v42, 4  ;;  %v328_v53 = vrot.slane %v326_v39, 5  ;;  %v338_v54 = vrot.slane %v337_v43, 4  ;;  %v342_v55 = vrot.slane %v340_v45, 5  ;;  %v256_v25 = vld [vmem:[%s1609_s27 + $0x3c] sm:$0x1] }
  0x3d   : > { %v798_v56 = vrot.slane %v797_v48, 4  ;;  %v802_v57 = vrot.slane %v800_v49, 5  ;;  %v812_v59 = vrot.slane %v811_v50, 4  ;;  %v816_v60 = vrot.slane %v814_v51, 5  ;;  %v1367_v30 = vld [vmem:[%s1609_s27 + $0x3c] sm:$0x1] }
  0x3e   : > { %v329_v0 = vsel %vm1686_vm3, %v324_v52, %v328_v53  ;;  %v343_v1 = vsel %vm1686_vm3, %v338_v54, %v342_v55  ;;  %v345_v2 = vshrl.u32 %v231_v58, 16  ;;  %v348_v3 = vshll.u32 %v231_v58, 16  ;;  %v1369_v31 = vld [vmem:[%s1609_s27 + $0x44] sm:$0x1] }
  0x3f   : > { %v803_v4 = vsel %vm1686_vm3, %v798_v56, %v802_v57  ;;  %v359_v5 = vshrl.u32 %v232_v61, 16  ;;  %v362_v6 = vshll.u32 %v232_v61, 16  ;;  %v819_v7 = vshrl.u32 %v1366_v62, 16 }
  0x40   : > { %v817_v8 = vsel %vm1686_vm3, %v812_v59, %v816_v60  ;;  %v822_v9 = vshll.u32 %v1366_v62, 16  ;;  %v833_v10 = vshrl.u32 %v1368_v63, 16  ;;  %v836_v11 = vshll.u32 %v1368_v63, 16  ;;  %v1248_v59 = vld [vmem:[%s1609_s27 + $0x30] sm:$0xf] }
  0x41   : > { %v393_v13 = vunpack.c.l.b16 %v329_v0  ;;  %v394_v14 = vunpack.c.l.b16 %v343_v1  ;;  %v347_v17 = vrot.slane %v345_v2, 4  ;;  %v350_v18 = vrot.slane %v348_v3, 5  ;;  %v1425_v60 = vld [vmem:[%s1609_s27 + $0x34] sm:$0xf0]  ;;  %v1445_v0 = vld [vmem:[%s1609_s27 + $0x3c] sm:$0xf0] }
  0x42   : > { %v867_v20 = vunpack.c.l.b16 %v803_v4  ;;  %v868_v21 = vunpack.c.l.b16 %v817_v8  ;;  %v361_v23 = vrot.slane %v359_v5, 4  ;;  %v364_v24 = vrot.slane %v362_v6, 5  ;;  %v1320_v63 = vld [vmem:[%s1609_s27 + $0x38] sm:$0xf] }
  0x43   : > { %v821_v26 = vrot.slane %v819_v7, 4  ;;  %v824_v27 = vrot.slane %v822_v9, 5  ;;  %v835_v28 = vrot.slane %v833_v10, 4  ;;  %v838_v29 = vrot.slane %v836_v11, 5 }
  0x44   : > { %v399_v32 = vpack.c.b16 %v394_v14, %v393_v13  ;;  %v1245_v33 = vor.u32 %v1424_v15, %v1244_v12  ;;  %v1317_v34 = vor.u32 %v1444_v19, %v1316_v16  ;;  %v354_v35 = vshll.u32 %v255_v22, 16 }
  0x45   : > { %v873_v36 = vpack.c.b16 %v868_v21, %v867_v20  ;;  %v351_v37 = vor.u32 %v350_v18, %v347_v17  ;;  %v368_v39 = vshll.u32 %v256_v25, 16  ;;  %v825_v40 = vor.u32 %v824_v27, %v821_v26 }
  0x46   : > { %v839_v42 = vor.u32 %v838_v29, %v835_v28  ;;  %v842_v43 = vshll.u32 %v1369_v31, 16  ;;  %v1249_v2 = vor.u32 %v1425_v60, %v1248_v59  ;;  %v1321_v3 = vor.u32 %v1445_v0, %v1320_v63 }
  0x47   : > { %v352_v45 = vrot.slane %v351_v37, 4  ;;  %v370_v48 = vrot.slane %v368_v39, 5  ;;  %v826_v49 = vrot.slane %v825_v40, 4 }
  0x48   : > { %466 = vmatmul.bf16.gmra.mxu0 %v398_v41  ;;  %v828_v41 = vshll.u32 %v1367_v30, 16  ;;  %v840_v51 = vrot.slane %v839_v42, 4  ;;  %v844_v52 = vrot.slane %v842_v43, 5 }
  0x49   : > { %567 = vmatmul.bf16.gmra.mxu1 %v1241_v38  ;;  %v365_v38 = vor.u32 %v364_v24, %v361_v23 }
  0x4a   : > { %694 = vmatmul.bf16.gmra.mxu2 %v1313_v46  ;;  %v356_v46 = vrot.slane %v354_v35, 5  ;;  %v830_v50 = vrot.slane %v828_v41, 5  ;;  %v845_v56 = vsel %vm1686_vm3, %v840_v51, %v844_v52 }
  0x4b   : > { %940 = vmatmul.bf16.gmra.mxu3 %v872_v47  ;;  %v366_v47 = vrot.slane %v365_v38, 4  ;;  %v870_v62 = vunpack.c.l.b16 %v845_v56 }
  0x4c   : > { %v357_v53 = vsel %vm1686_vm3, %v352_v45, %v356_v46  ;;  %v831_v55 = vsel %vm1686_vm3, %v826_v49, %v830_v50 }
  0x4d   : > { %v371_v54 = vsel %vm1686_vm3, %v366_v47, %v370_v48  ;;  %v395_v57 = vunpack.c.l.b16 %v357_v53  ;;  %v869_v61 = vunpack.c.l.b16 %v831_v55 }
  0x4e   : > { %v396_v58 = vunpack.c.l.b16 %v371_v54 }
  0x4f   : > { %v874_v4 = vpack.c.b16 %v870_v62, %v869_v61 }
  0x50   : > { %v400_v1 = vpack.c.b16 %v396_v58, %v395_v57 }
  0x58   : > { %471 = vmatmul.bf16.gmra.mxu0 %v399_v32 }
  0x59   : > { %572 = vmatmul.bf16.gmra.mxu1 %v1245_v33 }
  0x5a   : > { %699 = vmatmul.bf16.gmra.mxu2 %v1317_v34 }
  0x5b   : > { %945 = vmatmul.bf16.gmra.mxu3 %v873_v36 }
  0x68   : > { %476 = vmatmul.bf16.gmra.mxu0 %v400_v1 }
  0x69   : > { %577 = vmatmul.bf16.gmra.mxu1 %v1249_v2 }
  0x6a   : > { %704 = vmatmul.bf16.gmra.mxu2 %v1321_v3 }
  0x6b   : > { %950 = vmatmul.bf16.gmra.mxu3 %v874_v4 }
  0xb5   : > { %v462_v5 = vpop.f32.mrf.mxu0 }
  0xb6   : > { %v563_v6 = vpop.f32.mrf.mxu1 }
  0xb7   : > { %v564_v44 = vadd.f32 %v563_v6, %v462_v5 }
  0xbd   : > { %v690_v7 = vpop.f32.mrf.mxu2  ;;  %v464_v10 = vpop.f32.mrf.mxu0 }
  0xbe   : > { %v936_v8 = vpop.f32.mrf.mxu3  ;;  %v710_v9 = vadd.f32 %v690_v7, %v564_v44  ;;  %v565_v11 = vpop.f32.mrf.mxu1 }
  0xbf   : > { %v566_v13 = vadd.f32 %v565_v11, %v464_v10 }
  0xc0   : > { %v1798_v12 = vadd.f32 %v936_v8, %v710_v9 }
  0xc5   : > { %v692_v14 = vpop.f32.mrf.mxu2  ;;  %v467_v17 = vpop.f32.mrf.mxu0 }
  0xc6   : > { %v938_v15 = vpop.f32.mrf.mxu3  ;;  %v711_v16 = vadd.f32 %v692_v14, %v566_v13  ;;  %v568_v18 = vpop.f32.mrf.mxu1 }
  0xc7   : > { %v569_v20 = vadd.f32 %v568_v18, %v467_v17 }
  0xc8   : > { %v1800_v19 = vadd.f32 %v938_v15, %v711_v16 }
  0xcd   : > { %v695_v21 = vpop.f32.mrf.mxu2  ;;  %v469_v24 = vpop.f32.mrf.mxu0 }
  0xce   : > { %v941_v22 = vpop.f32.mrf.mxu3  ;;  %v712_v23 = vadd.f32 %v695_v21, %v569_v20  ;;  %v570_v25 = vpop.f32.mrf.mxu1 }
  0xcf   : > { %v571_v27 = vadd.f32 %v570_v25, %v469_v24 }
  0xd0   : > { %v1802_v26 = vadd.f32 %v941_v22, %v712_v23 }
  0xd5   : > { %v697_v28 = vpop.f32.mrf.mxu2  ;;  %v472_v31 = vpop.f32.mrf.mxu0 }
  0xd6   : > { %v943_v29 = vpop.f32.mrf.mxu3  ;;  %v713_v30 = vadd.f32 %v697_v28, %v571_v27  ;;  %v573_v32 = vpop.f32.mrf.mxu1 }
  0xd7   : > { %v574_v34 = vadd.f32 %v573_v32, %v472_v31 }
  0xd8   : > { %v1804_v33 = vadd.f32 %v943_v29, %v713_v30 }
  0xdd   : > { %v700_v35 = vpop.f32.mrf.mxu2  ;;  %v474_v38 = vpop.f32.mrf.mxu0 }
  0xde   : > { %v946_v36 = vpop.f32.mrf.mxu3  ;;  %v714_v37 = vadd.f32 %v700_v35, %v574_v34  ;;  %v575_v39 = vpop.f32.mrf.mxu1 }
  0xdf   : > { %v576_v41 = vadd.f32 %v575_v39, %v474_v38 }
  0xe0   : > { %v1806_v40 = vadd.f32 %v946_v36, %v714_v37 }
  0xe5   : > { %v702_v42 = vpop.f32.mrf.mxu2  ;;  %v477_v46 = vpop.f32.mrf.mxu0 }
  0xe6   : > { %v948_v43 = vpop.f32.mrf.mxu3  ;;  %v715_v45 = vadd.f32 %v702_v42, %v576_v41  ;;  %v578_v47 = vpop.f32.mrf.mxu1 }
  0xe7   : > { %v579_v49 = vadd.f32 %v578_v47, %v477_v46 }
  0xe8   : > { %v1808_v48 = vadd.f32 %v948_v43, %v715_v45 }
  0xed   : > { %v705_v50 = vpop.f32.mrf.mxu2  ;;  %v479_v54 = vpop.f32.mrf.mxu0 }
  0xee   : > { %v951_v51 = vpop.f32.mrf.mxu3  ;;  %v716_v52 = vadd.f32 %v705_v50, %v579_v49  ;;  %v580_v55 = vpop.f32.mrf.mxu1 }
  0xef   : > { %v581_v56 = vadd.f32 %v580_v55, %v479_v54 }
  0xf0   : > { %v1810_v53 = vadd.f32 %v951_v51, %v716_v52 }
  0xf4   : > { %966 = sbr.rel (%p1418_p10) target bundleno = 282 (0x11a), region = 44 }
  0xf5   : > { %v707_v57 = vpop.f32.mrf.mxu2 }
  0xf6   : > { %v717_v58 = vadd.f32 %v707_v57, %v581_v56  ;;  %v953_v59 = vpop.f32.mrf.mxu3 }
  0xf8   : > { %v1812_v60 = vadd.f32 %v953_v59, %v717_v58 }
  0xf9   : > { %vm968_vm4 = vcmask 523264   ;;  %v994_v61 = vmul.f32 %v1798_v12, %v1798_v12  ;;  %v995_v1 = vmul.f32 %v1800_v19, %v1800_v19  ;;  %v996_v4 = vmul.f32 %v1802_v26, %v1802_v26  ;;  %v967_v49 = vld [vmem:[#allocation2] sm:$0x1]  ;;  %v993_v55 = vld [vmem:[#allocation3] sm:$0x1] }
  0xfa   : > { %v969_v62 = vsel %vm968_vm4, %v1798_v12, 0.0  ;;  %v970_v63 = vsel %vm968_vm4, %v1800_v19, 0.0  ;;  %v972_v0 = vsel %vm968_vm4, %v1802_v26, 0.0  ;;  %v974_v3 = vsel %vm968_vm4, %v1804_v33, 0.0 }
  0xfb   : > { %v971_v2 = vadd.f32 %v970_v63, %v969_v62  ;;  %v997_v5 = vmul.f32 %v1804_v33, %v1804_v33  ;;  %v976_v44 = vsel %vm968_vm4, %v1806_v40, 0.0  ;;  %v998_v7 = vmul.f32 %v1806_v40, %v1806_v40 }
  0xfc   : > { %v1002_v8 = vsel %vm968_vm4, %v994_v61, 0.0  ;;  %v1003_v9 = vsel %vm968_vm4, %v995_v1, 0.0  ;;  %v1005_v10 = vsel %vm968_vm4, %v996_v4, 0.0  ;;  %v978_v14 = vsel %vm968_vm4, %v1808_v48, 0.0 }
  0xfd   : > { %v973_v6 = vadd.f32 %v972_v0, %v971_v2  ;;  %v1004_v13 = vadd.f32 %v1003_v9, %v1002_v8  ;;  %v999_v15 = vmul.f32 %v1808_v48, %v1808_v48  ;;  %v1007_v16 = vsel %vm968_vm4, %v997_v5, 0.0 }
  0xfe   : > { %v980_v20 = vsel %vm968_vm4, %v1810_v53, 0.0  ;;  %v1000_v21 = vmul.f32 %v1810_v53, %v1810_v53  ;;  %v1009_v22 = vsel %vm968_vm4, %v998_v7, 0.0  ;;  %v982_v25 = vsel %vm968_vm4, %v1812_v60, 0.0 }
  0xff   : > { %v975_v11 = vadd.f32 %v974_v3, %v973_v6  ;;  %v1006_v18 = vadd.f32 %v1005_v10, %v1004_v13  ;;  %v1001_v27 = vmul.f32 %v1812_v60, %v1812_v60  ;;  %v1011_v28 = vsel %vm968_vm4, %v999_v15, 0.0 }
 0x100   : > { %v1013_v31 = vsel %vm968_vm4, %v1000_v21, 0.0  ;;  %vm991_vm5 = vcmask 516096  }
 0x101   : > { %v977_v17 = vadd.f32 %v976_v44, %v975_v11  ;;  %v1008_v24 = vadd.f32 %v1007_v16, %v1006_v18  ;;  %v1015_v35 = vsel %vm968_vm4, %v1001_v27, 0.0 }
 0x103   : > { %v979_v23 = vadd.f32 %v978_v14, %v977_v17  ;;  %v1010_v30 = vadd.f32 %v1009_v22, %v1008_v24 }
 0x105   : > { %v981_v29 = vadd.f32 %v980_v20, %v979_v23  ;;  %v1012_v34 = vadd.f32 %v1011_v28, %v1010_v30 }
 0x107   : > { %v983_v32 = vadd.f32 %v982_v25, %v981_v29  ;;  %v1014_v37 = vadd.f32 %v1013_v31, %v1012_v34 }
 0x109   : > { %v984_v36 = vrot.slane %v983_v32, 4  ;;  %v1016_v39 = vadd.f32 %v1015_v35, %v1014_v37 }
 0x10b   : > { %v985_v38 = vadd.f32 %v984_v36, %v983_v32  ;;  %v1017_v42 = vrot.slane %v1016_v39, 4 }
 0x10d   : > { %v986_v41 = vrot.slane %v985_v38, 2  ;;  %v1018_v45 = vadd.f32 %v1017_v42, %v1016_v39 }
 0x10f   : > { %v987_v43 = vadd.f32 %v986_v41, %v985_v38  ;;  %v1019_v47 = vrot.slane %v1018_v45, 2 }
 0x111   : > { %v988_v46 = vrot.slane %v987_v43, 1  ;;  %v1020_v51 = vadd.f32 %v1019_v47, %v1018_v45 }
 0x113   : > { %v989_v50 = vadd.f32 %v988_v46, %v987_v43  ;;  %v1021_v54 = vrot.slane %v1020_v51, 1 }
 0x115   : > { %v990_v52 = vadd.f32 %v989_v50, %v967_v49  ;;  %v1022_v56 = vadd.f32 %v1021_v54, %v1020_v51 }
 0x117   : > { %992 = vst.msk [vmem:[#allocation2] sm:$0x1] %vm991_vm5, %v990_v52  ;;  %v1023_v57 = vadd.f32 %v1022_v56, %v993_v55 }
 0x119   : > { %1024 = vst.msk [vmem:[#allocation3] sm:$0x1] %vm991_vm5, %v1023_v57 }
 0x11a PF: > { %p1419_p11 = scmp.ne.s32.totalorder %s1532_s16, 1 }
 0x11c   : > { %1028 = sbr.rel (%p1419_p11) target bundleno = 342 (0x156), region = 48 }
 0x121   : > { %v1029_v58 = vld [vmem:[#allocation2] sm:$0x1]  ;;  %v1030_v59 = vld [vmem:[#allocation3] sm:$0x1]  ;;  %vm1098_vm9 = vcmask 519168  }
 0x122   : > { %v1033_v61 = vmul.f32 0.0078125, %v1029_v58  ;;  %v1034_v62 = vmul.f32 0.0078125, %v1030_v59  ;;  %v1031_v7 = vld [vmem:[%s1903_s2] sm:$0x1] }
 0x123   : > { %v1032_v11 = vld [vmem:[%s1904_s3] sm:$0x1] }
 0x124   : > { %v1035_v63 = vmul.f32 %v1033_v61, %v1033_v61 }
 0x126   : > { %v1036_v0 = vsub.f32 %v1034_v62, %v1035_v63 }
 0x128   : > { %v1037_v1 = vmax.f32 %v1036_v0, 0.0 }
 0x12a   : > { %v1038_v2 = vadd.f32 1e-05, %v1037_v1 }
 0x12c   : > { %1504 = vrsqrt.f32 %v1038_v2  ;;  %vm1045_vm6 = vweird.f32 %v1038_v2 }
 0x132   : > { %v1505_v3 = vpop.eup %1504 }
 0x133   : > { %v1040_v4 = vmul.f32 %v1505_v3, %v1038_v2  ;;  %vm1046_vm7 = vweird.f32 %v1505_v3 }
 0x134   : > { %vm1047_vm8 = vmor %vm1045_vm6, %vm1046_vm7 }
 0x135   : > { %v1041_v5 = vmul.f32 %v1505_v3, %v1040_v4 }
 0x137   : > { %v1042_v6 = vmul.f32 0.5, %v1041_v5 }
 0x139   : > { %v1043_v44 = vsub.f32 1.5, %v1042_v6 }
 0x13b   : > { %v1044_v8 = vmul.f32 %v1505_v3, %v1043_v44 }
 0x13d   : > { %v1048_v9 = vsel %vm1047_vm8, %v1505_v3, %v1044_v8 }
 0x13e   : > { %v1049_v10 = vmul.f32 %v1048_v9, %v1031_v7 }
 0x140   : > { %v1050_v13 = vmul.f32 %v1049_v10, %v1033_v61  ;;  %v1053_v14 = vperm.slane %v1049_v10, 0 }
 0x142   : > { %v1051_v15 = vsub.f32 %v1032_v11, %v1050_v13  ;;  %v1055_v16 = vmul.f32 %v1053_v14, %v1798_v12  ;;  %v1056_v17 = vmul.f32 %v1053_v14, %v1800_v19  ;;  %v1057_v18 = vmul.f32 %v1053_v14, %v1802_v26 }
 0x143   : > { %v1058_v20 = vmul.f32 %v1053_v14, %v1804_v33  ;;  %v1059_v21 = vmul.f32 %v1053_v14, %v1806_v40  ;;  %v1060_v22 = vmul.f32 %v1053_v14, %v1808_v48  ;;  %v1061_v23 = vmul.f32 %v1053_v14, %v1810_v53 }
 0x144   : > { %v1064_v24 = vperm.slane %v1051_v15, 0  ;;  %v1062_v25 = vmul.f32 %v1053_v14, %v1812_v60 }
 0x146   : > { %v1066_v27 = vadd.f32 %v1064_v24, %v1055_v16  ;;  %v1067_v28 = vadd.f32 %v1064_v24, %v1056_v17  ;;  %v1068_v29 = vadd.f32 %v1064_v24, %v1057_v18  ;;  %v1069_v12 = vadd.f32 %v1064_v24, %v1058_v20 }
 0x147   : > { %v1070_v30 = vadd.f32 %v1064_v24, %v1059_v21  ;;  %v1071_v19 = vadd.f32 %v1064_v24, %v1060_v22  ;;  %v1072_v31 = vadd.f32 %v1064_v24, %v1061_v23  ;;  %v1073_v26 = vadd.f32 %v1064_v24, %v1062_v25 }
 0x148   : > { %v1074_v32 = vmul.f32 0.1, %v1066_v27  ;;  %v1075_v33 = vmul.f32 0.1, %v1067_v28  ;;  %v1076_v34 = vmul.f32 0.1, %v1068_v29 }
 0x149   : > { %v1077_v40 = vmul.f32 0.1, %v1069_v12  ;;  %v1078_v35 = vmul.f32 0.1, %v1070_v30  ;;  %v1079_v48 = vmul.f32 0.1, %v1071_v19 }
 0x14a   : > { %v1082_v53 = vmax.f32 %v1066_v27, %v1074_v32  ;;  %v1083_v36 = vmax.f32 %v1067_v28, %v1075_v33  ;;  %v1084_v60 = vmax.f32 %v1068_v29, %v1076_v34  ;;  %v1080_v37 = vmul.f32 0.1, %v1072_v31 }
 0x14b   : > { %v1085_v38 = vmax.f32 %v1069_v12, %v1077_v40  ;;  %v1086_v39 = vmax.f32 %v1070_v30, %v1078_v35  ;;  %v1087_v41 = vmax.f32 %v1071_v19, %v1079_v48  ;;  %v1081_v42 = vmul.f32 0.1, %v1073_v26 }
 0x14c   : > { %v1090_v43 = vpack.c.bf16 %v1082_v53, %v1082_v53  ;;  %v1091_v45 = vpack.c.bf16 %v1083_v36, %v1083_v36  ;;  %v1092_v46 = vpack.c.bf16 %v1084_v60, %v1084_v60  ;;  %v1088_v47 = vmax.f32 %v1072_v31, %v1080_v37 }
 0x14d   : > { %v1093_v49 = vpack.c.bf16 %v1085_v38, %v1085_v38  ;;  %v1089_v50 = vmax.f32 %v1073_v26, %v1081_v42  ;;  %v1094_v51 = vpack.c.bf16 %v1086_v39, %v1086_v39  ;;  %v1095_v52 = vpack.c.bf16 %v1087_v41, %v1087_v41 }
 0x14e   : > { %1099 = vst.msk [vmem:[%s1614_s5] sm:$0xf] %vm1098_vm9, %v1090_v43  ;;  %v1096_v54 = vpack.c.bf16 %v1088_v47, %v1088_v47 }
 0x14f   : > { %1100 = vst.msk [vmem:[%s1614_s5 + $0x4] sm:$0xf] %vm1098_vm9, %v1091_v45  ;;  %v1097_v55 = vpack.c.bf16 %v1089_v50, %v1089_v50 }
 0x150   : > { %1101 = vst.msk [vmem:[%s1614_s5 + $0x8] sm:$0xf] %vm1098_vm9, %v1092_v46 }
 0x151   : > { %1102 = vst.msk [vmem:[%s1614_s5 + $0xc] sm:$0xf] %vm1098_vm9, %v1093_v49 }
 0x152   : > { %1103 = vst.msk [vmem:[%s1614_s5 + $0x10] sm:$0xf] %vm1098_vm9, %v1094_v51 }
 0x153   : > { %1104 = vst.msk [vmem:[%s1614_s5 + $0x14] sm:$0xf] %vm1098_vm9, %v1095_v52 }
 0x154   : > { %1105 = vst.msk [vmem:[%s1614_s5 + $0x18] sm:$0xf] %vm1098_vm9, %v1096_v54 }
 0x155   : > { %1106 = vst.msk [vmem:[%s1614_s5 + $0x1c] sm:$0xf] %vm1098_vm9, %v1097_v55 }
 0x156 PF: > { %s14_s19 = sadd.s32 1, %s1544_s19   ;;  %s1908_s15 = smov %s1536_s17 }
 0x157   : > { %p11_p12 = scmp.ge.s32.totalorder %s14_s19, 6   ;;  %s1909_s16 = smov %s1540_s18 }
 0x158   : > { %s1910_s17 = smov %s1913_s20  ;;  %s1911_s18 = smov %s1917_s21 }
 0x159   :  { %13 = sbr.rel (!%p11_p12) target bundleno = 3 (0x3), region = 82 }

// kernel: netd_dcgan_forward.7
= control target key start
LH: loop header
LB: loop body
LE: loop exit
PB: predicated region body
PF: predicated region fallthrough
CT: control target
= control target key end

     0   :  { %s1736_s23 = smov 0   ;;  %s1738_s24 = smov 0   ;;  %s2086_s0 = inlined_call_operand.vmem [shape: bf16[32,1024], index: 0, kind: input, shape index: {}]   ;;  %s2087_s1 = inlined_call_operand.vmem [shape: bf16[1024,128], index: 1, kind: input, shape index: {}]   ;;  %s2088_s2 = inlined_call_operand.vmem [shape: f32[1,128], index: 2, kind: input, shape index: {}]   ;;  %s2089_s3 = inlined_call_operand.vmem [shape: f32[1,128], index: 3, kind: input, shape index: {}]   ;;  %s2090_s4 = inlined_call_operand.vmem [shape: bf16[16,128], index: 4, kind: input, shape index: {}]   ;;  %s2091_s5 = inlined_call_operand.<no memory space> [shape: f32[1,1], index: 5, kind: input, shape index: {}]   ;;  %s2092_s6 = inlined_call_operand.vmem [shape: f32[2,1], index: 6, kind: output, shape index: {}]  }
   0x1   :  { %v11_v0 = vstv %s2091_s5  ;;  %s1740_s25 = smov 0  }
   0x2   :  { %12 = vst [vmem:[#allocation4] sm:$0x1] %v11_v0 }
   0x3 LB: > { %s30_s5 = sadd.s32 1, %s1691_s24  ;;  %p1232_p0 = scmp.ge.s32.totalorder %s1695_s25, 1  ;;  %s1695_s25 = sphi %s1740_s25, %s18_s25   ;;  %s1691_s24 = sphi %s1738_s24, %s2094_s24   ;;  %s1687_s23 = sphi %s1736_s23, %s2093_s23  }
   0x4   : > { %p32_p1 = scmp.ge.s32.totalorder %s30_s5, 2  ;;  %p230_p2 = scmp.lt.s32.totalorder %s1695_s25, 3 }
   0x6   : > { %s2096_s5 = smov (%p32_p1, %s30_s5), 0  ;;  %p231_p3 = pnand %p1232_p0, %p230_p2 }
   0x7   : > { %p274_p4 = scmp.eq.s32.totalorder (!%p231_p3), %s1687_s23, 0 }
   0x8   : > { %234 = sbr.rel (%p231_p3) target bundleno = 454 (0x1c6), region = 44 }
   0xd   : > { %279 = sbr.rel (!%p274_p4) target bundleno = 18 (0x12), region = 48  ;;  %v1697_v1 = vmov (%p274_p4), 0.0  }
   0xe   : > { %280 = vst [vmem:[#allocation2] sm:$0x1] (%p274_p4), %v1697_v1 }
   0xf   : > { %281 = vst [vmem:[#allocation3] sm:$0x1] (%p274_p4), %v1697_v1 }
  0x12 PF: > { %v1584_v2 = vld [vmem:[%s2087_s1 + $0x38] sm:$0xff]  ;;  %v1583_v6 = vld [vmem:[%s2087_s1 + $0x30] sm:$0xff]  ;;  %v1582_v10 = vld [vmem:[%s2087_s1 + $0x28] sm:$0xff]  ;;  %p1554_p5 = scmp.ne.s32.totalorder %s1687_s23, 0 }
  0x13   : > { %v1592_v3 = vld [vmem:[%s2087_s1 + $0x78] sm:$0xff]  ;;  %890 = vmatpush.bf16.msra.mxu0 %v1584_v2  ;;  %v1591_v7 = vld [vmem:[%s2087_s1 + $0x70] sm:$0xff]  ;;  %v1590_v11 = vld [vmem:[%s2087_s1 + $0x68] sm:$0xff] }
  0x14   : > { %v1600_v4 = vld [vmem:[%s2087_s1 + $0xb8] sm:$0xff]  ;;  %909 = vmatpush.bf16.msra.mxu1 %v1592_v3  ;;  %v1599_v8 = vld [vmem:[%s2087_s1 + $0xb0] sm:$0xff]  ;;  %v1598_v12 = vld [vmem:[%s2087_s1 + $0xa8] sm:$0xff] }
  0x15   : > { %v1608_v5 = vld [vmem:[%s2087_s1 + $0xf8] sm:$0xff]  ;;  %928 = vmatpush.bf16.msra.mxu2 %v1600_v4  ;;  %v1607_v9 = vld [vmem:[%s2087_s1 + $0xf0] sm:$0xff]  ;;  %v1606_v13 = vld [vmem:[%s2087_s1 + $0xe8] sm:$0xff] }
  0x16   : > { %947 = vmatpush.bf16.msra.mxu3 %v1608_v5  ;;  %v1581_v14 = vld [vmem:[%s2087_s1 + $0x20] sm:$0xff]  ;;  %v1580_v18 = vld [vmem:[%s2087_s1 + $0x18] sm:$0xff]  ;;  %v1579_v22 = vld [vmem:[%s2087_s1 + $0x10] sm:$0xff] }
  0x17   : > { %891 = vmatpush.bf16.msra.mxu0 %v1583_v6  ;;  %v1589_v15 = vld [vmem:[%s2087_s1 + $0x60] sm:$0xff]  ;;  %v1588_v19 = vld [vmem:[%s2087_s1 + $0x58] sm:$0xff]  ;;  %v1587_v23 = vld [vmem:[%s2087_s1 + $0x50] sm:$0xff] }
  0x18   : > { %910 = vmatpush.bf16.msra.mxu1 %v1591_v7  ;;  %v1597_v16 = vld [vmem:[%s2087_s1 + $0xa0] sm:$0xff]  ;;  %v1596_v20 = vld [vmem:[%s2087_s1 + $0x98] sm:$0xff]  ;;  %v1595_v24 = vld [vmem:[%s2087_s1 + $0x90] sm:$0xff] }
  0x19   : > { %929 = vmatpush.bf16.msra.mxu2 %v1599_v8  ;;  %v1605_v17 = vld [vmem:[%s2087_s1 + $0xe0] sm:$0xff]  ;;  %v1604_v21 = vld [vmem:[%s2087_s1 + $0xd8] sm:$0xff]  ;;  %v1603_v25 = vld [vmem:[%s2087_s1 + $0xd0] sm:$0xff] }
  0x1a   : > { %948 = vmatpush.bf16.msra.mxu3 %v1607_v9  ;;  %v1578_v26 = vld [vmem:[%s2087_s1 + $0x8] sm:$0xff]  ;;  %v1577_v30 = vld [vmem:[%s2087_s1] sm:$0xff]  ;;  %v1632_v42 = vld [vmem:[%s2087_s1 + $0x1b8] sm:$0xff] }
  0x1b   : > { %892 = vmatpush.bf16.msra.mxu0 %v1582_v10  ;;  %v1586_v27 = vld [vmem:[%s2087_s1 + $0x48] sm:$0xff]  ;;  %v1585_v31 = vld [vmem:[%s2087_s1 + $0x40] sm:$0xff]  ;;  %v1616_v43 = vld [vmem:[%s2087_s1 + $0x138] sm:$0xff] }
  0x1c   : > { %911 = vmatpush.bf16.msra.mxu1 %v1590_v11  ;;  %v1594_v28 = vld [vmem:[%s2087_s1 + $0x88] sm:$0xff]  ;;  %v1593_v32 = vld [vmem:[%s2087_s1 + $0x80] sm:$0xff]  ;;  %v1624_v48 = vld [vmem:[%s2087_s1 + $0x178] sm:$0xff] }
  0x1d   : > { %930 = vmatpush.bf16.msra.mxu2 %v1598_v12  ;;  %v1602_v29 = vld [vmem:[%s2087_s1 + $0xc8] sm:$0xff]  ;;  %v1601_v33 = vld [vmem:[%s2087_s1 + $0xc0] sm:$0xff]  ;;  %v1640_v49 = vld [vmem:[%s2087_s1 + $0x1f8] sm:$0xff] }
  0x1e   : > { %949 = vmatpush.bf16.msra.mxu3 %v1606_v13  ;;  %v1236_v34 = vld [vmem:[%s2086_s0] sm:$0xf]  ;;  %v1561_v36 = vld [vmem:[%s2086_s0 + $0x4] sm:$0xf]  ;;  %v1244_v38 = vld [vmem:[%s2086_s0 + $0x8] sm:$0xf] }
  0x1f   : > { %893 = vmatpush.bf16.msra.mxu0 %v1581_v14  ;;  %v1565_v35 = vld [vmem:[%s2086_s0 + $0x1c] sm:$0xf0]  ;;  %v1238_v37 = vld [vmem:[%s2086_s0 + $0x20] sm:$0xf0]  ;;  %v1566_v39 = vld [vmem:[%s2086_s0 + $0x24] sm:$0xf0] }
  0x20   : > { %912 = vmatpush.bf16.msra.mxu1 %v1589_v15  ;;  %v1562_v40 = vld [vmem:[%s2086_s0 + $0xc] sm:$0xf]  ;;  %v1237_v44 = vor.u32 %v1565_v35, %v1236_v34  ;;  %v1241_v45 = vor.u32 %v1561_v36, %v1238_v37  ;;  %v1245_v46 = vor.u32 %v1566_v39, %v1244_v38  ;;  %v1631_v50 = vld [vmem:[%s2087_s1 + $0x1b0] sm:$0xff]  ;;  %v1629_v58 = vld [vmem:[%s2087_s1 + $0x1a0] sm:$0xff] }
  0x21   : > { %931 = vmatpush.bf16.msra.mxu2 %v1597_v16  ;;  %v1246_v41 = vld [vmem:[%s2086_s0 + $0x28] sm:$0xf0]  ;;  %v1615_v51 = vld [vmem:[%s2087_s1 + $0x130] sm:$0xff]  ;;  %v1613_v59 = vld [vmem:[%s2087_s1 + $0x120] sm:$0xff] }
  0x22   : > { %950 = vmatpush.bf16.msra.mxu3 %v1605_v17  ;;  %v1249_v47 = vor.u32 %v1562_v40, %v1246_v41  ;;  %v1623_v52 = vld [vmem:[%s2087_s1 + $0x170] sm:$0xff]  ;;  %v1630_v54 = vld [vmem:[%s2087_s1 + $0x1a8] sm:$0xff]  ;;  %v1621_v60 = vld [vmem:[%s2087_s1 + $0x160] sm:$0xff] }
  0x23   : > { %894 = vmatpush.bf16.msra.mxu0 %v1580_v18  ;;  %v1639_v53 = vld [vmem:[%s2087_s1 + $0x1f0] sm:$0xff]  ;;  %v1614_v55 = vld [vmem:[%s2087_s1 + $0x128] sm:$0xff]  ;;  %v1637_v61 = vld [vmem:[%s2087_s1 + $0x1e0] sm:$0xff] }
  0x24   : > { %913 = vmatpush.bf16.msra.mxu1 %v1588_v19  ;;  %v1622_v56 = vld [vmem:[%s2087_s1 + $0x168] sm:$0xff]  ;;  %v1268_v62 = vld [vmem:[%s2086_s0 + $0x40] sm:$0xf]  ;;  %v1569_v0 = vld [vmem:[%s2086_s0 + $0x44] sm:$0xf] }
  0x25   : > { %932 = vmatpush.bf16.msra.mxu2 %v1596_v20  ;;  %v1638_v57 = vld [vmem:[%s2087_s1 + $0x1e8] sm:$0xff]  ;;  %v1573_v63 = vld [vmem:[%s2086_s0 + $0x5c] sm:$0xf0]  ;;  %v1270_v1 = vld [vmem:[%s2086_s0 + $0x60] sm:$0xf0] }
  0x26   : > { %951 = vmatpush.bf16.msra.mxu3 %v1604_v21  ;;  %v1276_v2 = vld [vmem:[%s2086_s0 + $0x48] sm:$0xf]  ;;  %v1570_v4 = vld [vmem:[%s2086_s0 + $0x4c] sm:$0xf]  ;;  %v1628_v6 = vld [vmem:[%s2087_s1 + $0x198] sm:$0xff]  ;;  %v1269_v8 = vor.u32 %v1573_v63, %v1268_v62  ;;  %v1273_v9 = vor.u32 %v1569_v0, %v1270_v1 }
  0x27   : > { %895 = vmatpush.bf16.msra.mxu0 %v1579_v22  ;;  %v1574_v3 = vld [vmem:[%s2086_s0 + $0x64] sm:$0xf0]  ;;  %v1278_v5 = vld [vmem:[%s2086_s0 + $0x68] sm:$0xf0]  ;;  %v1612_v7 = vld [vmem:[%s2087_s1 + $0x118] sm:$0xff] }
  0x28   : > { %914 = vmatpush.bf16.msra.mxu1 %v1587_v23  ;;  %v1277_v10 = vor.u32 %v1574_v3, %v1276_v2  ;;  %v1281_v11 = vor.u32 %v1570_v4, %v1278_v5  ;;  %v1620_v12 = vld [vmem:[%s2087_s1 + $0x158] sm:$0xff]  ;;  %v1627_v14 = vld [vmem:[%s2087_s1 + $0x190] sm:$0xff]  ;;  %v1626_v18 = vld [vmem:[%s2087_s1 + $0x188] sm:$0xff] }
  0x29   : > { %933 = vmatpush.bf16.msra.mxu2 %v1595_v24  ;;  %v1636_v13 = vld [vmem:[%s2087_s1 + $0x1d8] sm:$0xff]  ;;  %v1611_v15 = vld [vmem:[%s2087_s1 + $0x110] sm:$0xff]  ;;  %v1610_v19 = vld [vmem:[%s2087_s1 + $0x108] sm:$0xff] }
  0x2a   : > { %952 = vmatpush.bf16.msra.mxu3 %v1603_v25  ;;  %v1619_v16 = vld [vmem:[%s2087_s1 + $0x150] sm:$0xff]  ;;  %v1618_v20 = vld [vmem:[%s2087_s1 + $0x148] sm:$0xff]  ;;  %v1625_v22 = vld [vmem:[%s2087_s1 + $0x180] sm:$0xff] }
  0x2b   : > { %896 = vmatpush.bf16.msra.mxu0 %v1578_v26  ;;  %v1635_v17 = vld [vmem:[%s2087_s1 + $0x1d0] sm:$0xff]  ;;  %v1634_v21 = vld [vmem:[%s2087_s1 + $0x1c8] sm:$0xff]  ;;  %v1609_v23 = vld [vmem:[%s2087_s1 + $0x100] sm:$0xff] }
  0x2c   : > { %915 = vmatpush.bf16.msra.mxu1 %v1586_v27  ;;  %v1617_v24 = vld [vmem:[%s2087_s1 + $0x140] sm:$0xff]  ;;  %v1252_v26 = vld [vmem:[%s2086_s0 + $0x10] sm:$0xf]  ;;  %v1571_v40 = vld [vmem:[%s2086_s0 + $0x54] sm:$0xf] }
  0x2d   : > { %934 = vmatpush.bf16.msra.mxu2 %v1594_v28  ;;  %v1633_v25 = vld [vmem:[%s2087_s1 + $0x1c0] sm:$0xff]  ;;  %v1567_v27 = vld [vmem:[%s2086_s0 + $0x2c] sm:$0xf0]  ;;  %v1563_v28 = vld [vmem:[%s2086_s0 + $0x14] sm:$0xf] }
  0x2e   : > { %953 = vmatpush.bf16.msra.mxu3 %v1602_v29  ;;  %v1254_v29 = vld [vmem:[%s2086_s0 + $0x30] sm:$0xf0]  ;;  %v1253_v34 = vor.u32 %v1567_v27, %v1252_v26  ;;  %v1284_v38 = vld [vmem:[%s2086_s0 + $0x50] sm:$0xf] }
  0x2f   : > { %897 = vmatpush.bf16.msra.mxu0 %v1577_v30  ;;  %v1260_v30 = vld [vmem:[%s2086_s0 + $0x18] sm:$0xf]  ;;  %v1257_v35 = vor.u32 %v1563_v28, %v1254_v29  ;;  %v1575_v39 = vld [vmem:[%s2086_s0 + $0x6c] sm:$0xf0]  ;;  %v1286_v41 = vld [vmem:[%s2086_s0 + $0x70] sm:$0xf0] }
  0x30   : > { %916 = vmatpush.bf16.msra.mxu1 %v1585_v31  ;;  %v1568_v31 = vld [vmem:[%s2086_s0 + $0x34] sm:$0xf0] }
  0x31   : > { %935 = vmatpush.bf16.msra.mxu2 %v1593_v32  ;;  %v1564_v32 = vld [vmem:[%s2086_s0 + $0x1c] sm:$0xf]  ;;  %v1261_v36 = vor.u32 %v1568_v31, %v1260_v30 }
  0x32   : > { %954 = vmatpush.bf16.msra.mxu3 %v1601_v33  ;;  %898 = vmatmul.bf16.vlgmr.msra.gmra.mxu0 %v1237_v44  ;;  %v1262_v33 = vld [vmem:[%s2086_s0 + $0x38] sm:$0xf0] }
  0x33   : > { %966 = vmatpush.bf16.msrb.mxu0 %v1616_v43  ;;  %917 = vmatmul.bf16.vlgmr.msra.gmra.mxu1 %v1241_v45  ;;  %v1265_v37 = vor.u32 %v1564_v32, %v1262_v33  ;;  %v1576_v43 = vld [vmem:[%s2086_s0 + $0x74] sm:$0xf0]  ;;  %v1572_v44 = vld [vmem:[%s2086_s0 + $0x5c] sm:$0xf] }
  0x34   : > { %936 = vmatmul.bf16.vlgmr.msra.gmra.mxu2 %v1245_v46  ;;  %985 = vmatpush.bf16.msrb.mxu1 %v1624_v48  ;;  %v1294_v45 = vld [vmem:[%s2086_s0 + $0x78] sm:$0xf0]  ;;  %v1285_v46 = vor.u32 %v1575_v39, %v1284_v38 }
  0x35   : > { %1004 = vmatpush.bf16.msrb.mxu2 %v1632_v42  ;;  %955 = vmatmul.bf16.vlgmr.msra.gmra.mxu3 %v1249_v47  ;;  %v1292_v42 = vld [vmem:[%s2086_s0 + $0x58] sm:$0xf]  ;;  %v1289_v47 = vor.u32 %v1571_v40, %v1286_v41 }
  0x36   : > { %1023 = vmatpush.bf16.msrb.mxu3 %v1640_v49  ;;  %v1293_v48 = vor.u32 %v1576_v43, %v1292_v42  ;;  %v1297_v49 = vor.u32 %v1572_v44, %v1294_v45 }
  0x37   : > { %967 = vmatpush.bf16.msrb.mxu0 %v1615_v51 }
  0x38   : > { %986 = vmatpush.bf16.msrb.mxu1 %v1623_v52 }
  0x39   : > { %1005 = vmatpush.bf16.msrb.mxu2 %v1631_v50 }
  0x3a   : > { %1024 = vmatpush.bf16.msrb.mxu3 %v1639_v53 }
  0x3b   : > { %968 = vmatpush.bf16.msrb.mxu0 %v1614_v55 }
  0x3c   : > { %987 = vmatpush.bf16.msrb.mxu1 %v1622_v56 }
  0x3d   : > { %1006 = vmatpush.bf16.msrb.mxu2 %v1630_v54 }
  0x3e   : > { %1025 = vmatpush.bf16.msrb.mxu3 %v1638_v57 }
  0x3f   : > { %969 = vmatpush.bf16.msrb.mxu0 %v1613_v59 }
  0x40   : > { %988 = vmatpush.bf16.msrb.mxu1 %v1621_v60 }
  0x41   : > { %1007 = vmatpush.bf16.msrb.mxu2 %v1629_v58 }
  0x42   : > { %1026 = vmatpush.bf16.msrb.mxu3 %v1637_v61  ;;  %903 = vmatmul.bf16.gmra.mxu0 %v1269_v8 }
  0x43   : > { %970 = vmatpush.bf16.msrb.mxu0 %v1612_v7  ;;  %922 = vmatmul.bf16.gmra.mxu1 %v1273_v9 }
  0x44   : > { %941 = vmatmul.bf16.gmra.mxu2 %v1277_v10  ;;  %989 = vmatpush.bf16.msrb.mxu1 %v1620_v12 }
  0x45   : > { %1008 = vmatpush.bf16.msrb.mxu2 %v1628_v6  ;;  %960 = vmatmul.bf16.gmra.mxu3 %v1281_v11 }
  0x46   : > { %1027 = vmatpush.bf16.msrb.mxu3 %v1636_v13 }
  0x47   : > { %971 = vmatpush.bf16.msrb.mxu0 %v1611_v15 }
  0x48   : > { %990 = vmatpush.bf16.msrb.mxu1 %v1619_v16 }
  0x49   : > { %1009 = vmatpush.bf16.msrb.mxu2 %v1627_v14 }
  0x4a   : > { %1028 = vmatpush.bf16.msrb.mxu3 %v1635_v17 }
  0x4b   : > { %972 = vmatpush.bf16.msrb.mxu0 %v1610_v19 }
  0x4c   : > { %991 = vmatpush.bf16.msrb.mxu1 %v1618_v20 }
  0x4d   : > { %1010 = vmatpush.bf16.msrb.mxu2 %v1626_v18 }
  0x4e   : > { %1029 = vmatpush.bf16.msrb.mxu3 %v1634_v21 }
  0x4f   : > { %973 = vmatpush.bf16.msrb.mxu0 %v1609_v23 }
  0x50   : > { %992 = vmatpush.bf16.msrb.mxu1 %v1617_v24 }
  0x51   : > { %1011 = vmatpush.bf16.msrb.mxu2 %v1625_v22 }
  0x52   : > { %1030 = vmatpush.bf16.msrb.mxu3 %v1633_v25  ;;  %974 = vmatmul.bf16.vlgmr.msrb.gmra.mxu0 %v1253_v34 }
  0x53   : > { %993 = vmatmul.bf16.vlgmr.msrb.gmra.mxu1 %v1257_v35 }
  0x54   : > { %1012 = vmatmul.bf16.vlgmr.msrb.gmra.mxu2 %v1261_v36 }
  0x55   : > { %1031 = vmatmul.bf16.vlgmr.msrb.gmra.mxu3 %v1265_v37 }
  0x62   : > { %979 = vmatmul.bf16.gmra.mxu0 %v1285_v46 }
  0x63   : > { %998 = vmatmul.bf16.gmra.mxu1 %v1289_v47 }
  0x64   : > { %1017 = vmatmul.bf16.gmra.mxu2 %v1293_v48 }
  0x65   : > { %1036 = vmatmul.bf16.gmra.mxu3 %v1297_v49 }
  0xaf   : > { %v899_v50 = vpop.f32.mrf.mxu0 }
  0xb0   : > { %v918_v51 = vpop.f32.mrf.mxu1 }
  0xb1   : > { %v919_v0 = vadd.f32 %v918_v51, %v899_v50 }
  0xb7   : > { %v937_v52 = vpop.f32.mrf.mxu2  ;;  %v901_v54 = vpop.f32.mrf.mxu0 }
  0xb8   : > { %v956_v53 = vpop.f32.mrf.mxu3  ;;  %v920_v55 = vpop.f32.mrf.mxu1  ;;  %v938_v1 = vadd.f32 %v937_v52, %v919_v0 }
  0xb9   : > { %v921_v7 = vadd.f32 %v920_v55, %v901_v54 }
  0xba   : > { %v957_v4 = vadd.f32 %v956_v53, %v938_v1 }
  0xbf   : > { %v939_v56 = vpop.f32.mrf.mxu2  ;;  %v904_v58 = vpop.f32.mrf.mxu0 }
  0xc0   : > { %v958_v57 = vpop.f32.mrf.mxu3  ;;  %v923_v59 = vpop.f32.mrf.mxu1  ;;  %v940_v9 = vadd.f32 %v939_v56, %v921_v7 }
  0xc1   : > { %v924_v17 = vadd.f32 %v923_v59, %v904_v58 }
  0xc2   : > { %v959_v12 = vadd.f32 %v958_v57, %v940_v9 }
  0xc7   : > { %v942_v60 = vpop.f32.mrf.mxu2  ;;  %v906_v62 = vpop.f32.mrf.mxu0 }
  0xc8   : > { %v961_v61 = vpop.f32.mrf.mxu3  ;;  %v925_v63 = vpop.f32.mrf.mxu1  ;;  %v943_v20 = vadd.f32 %v942_v60, %v924_v17 }
  0xc9   : > { %v926_v27 = vadd.f32 %v925_v63, %v906_v62 }
  0xca   : > { %v962_v23 = vadd.f32 %v961_v61, %v943_v20 }
  0xcf   : > { %v944_v2 = vpop.f32.mrf.mxu2  ;;  %v975_v5 = vpop.f32.mrf.mxu0 }
  0xd0   : > { %v963_v3 = vpop.f32.mrf.mxu3  ;;  %v994_v6 = vpop.f32.mrf.mxu1  ;;  %v976_v8 = vadd.f32 %v975_v5, %v957_v4  ;;  %v945_v31 = vadd.f32 %v944_v2, %v926_v27 }
  0xd2   : > { %v995_v10 = vadd.f32 %v994_v6, %v976_v8  ;;  %v964_v34 = vadd.f32 %v963_v3, %v945_v31 }
  0xd7   : > { %v1013_v11 = vpop.f32.mrf.mxu2  ;;  %v977_v15 = vpop.f32.mrf.mxu0 }
  0xd8   : > { %v1014_v13 = vadd.f32 %v1013_v11, %v995_v10  ;;  %v1032_v14 = vpop.f32.mrf.mxu3  ;;  %v996_v16 = vpop.f32.mrf.mxu1  ;;  %v978_v19 = vadd.f32 %v977_v15, %v959_v12 }
  0xda   : > { %v2045_v18 = vadd.f32 %v1032_v14, %v1014_v13  ;;  %v997_v21 = vadd.f32 %v996_v16, %v978_v19 }
  0xdf   : > { %v1015_v22 = vpop.f32.mrf.mxu2  ;;  %v980_v26 = vpop.f32.mrf.mxu0 }
  0xe0   : > { %v1016_v24 = vadd.f32 %v1015_v22, %v997_v21  ;;  %v1034_v25 = vpop.f32.mrf.mxu3  ;;  %v981_v29 = vadd.f32 %v980_v26, %v962_v23  ;;  %v999_v30 = vpop.f32.mrf.mxu1 }
  0xe2   : > { %v2047_v28 = vadd.f32 %v1034_v25, %v1016_v24  ;;  %v1000_v32 = vadd.f32 %v999_v30, %v981_v29 }
  0xe7   : > { %v1018_v33 = vpop.f32.mrf.mxu2  ;;  %v982_v37 = vpop.f32.mrf.mxu0 }
  0xe8   : > { %v1019_v35 = vadd.f32 %v1018_v33, %v1000_v32  ;;  %v1037_v36 = vpop.f32.mrf.mxu3  ;;  %v983_v39 = vadd.f32 %v982_v37, %v964_v34  ;;  %v1001_v40 = vpop.f32.mrf.mxu1 }
  0xea   : > { %v2049_v38 = vadd.f32 %v1037_v36, %v1019_v35  ;;  %v1002_v41 = vadd.f32 %v1001_v40, %v983_v39 }
  0xee   : > { %1044 = sbr.rel (%p1554_p5) target bundleno = 266 (0x10a), region = 52 }
  0xef   : > { %v1020_v42 = vpop.f32.mrf.mxu2 }
  0xf0   : > { %v1021_v43 = vadd.f32 %v1020_v42, %v1002_v41  ;;  %v1039_v44 = vpop.f32.mrf.mxu3 }
  0xf2   : > { %v1040_v45 = vadd.f32 %v1039_v44, %v1021_v43 }
  0xf3   : > { %v1046_v46 = vadd.f32 %v2047_v28, %v2045_v18  ;;  %v1058_v47 = vmul.f32 %v2045_v18, %v2045_v18  ;;  %v1059_v48 = vmul.f32 %v2047_v28, %v2047_v28  ;;  %v1060_v49 = vmul.f32 %v2049_v38, %v2049_v38  ;;  %v1045_v1 = vld [vmem:[#allocation2] sm:$0x1]  ;;  %v1057_v4 = vld [vmem:[#allocation3] sm:$0x1] }
  0xf4   : > { %v1061_v51 = vmul.f32 %v1040_v45, %v1040_v45 }
  0xf5   : > { %v1047_v50 = vadd.f32 %v1046_v46, %v2049_v38  ;;  %v1062_v52 = vadd.f32 %v1059_v48, %v1058_v47 }
  0xf7   : > { %v1048_v53 = vadd.f32 %v1047_v50, %v1040_v45  ;;  %v1063_v54 = vadd.f32 %v1062_v52, %v1060_v49 }
  0xf9   : > { %v1049_v55 = vrot.slane %v1048_v53, 4  ;;  %v1064_v56 = vadd.f32 %v1063_v54, %v1061_v51 }
  0xfb   : > { %v1050_v57 = vadd.f32 %v1049_v55, %v1048_v53  ;;  %v1065_v58 = vrot.slane %v1064_v56, 4 }
  0xfd   : > { %v1051_v59 = vrot.slane %v1050_v57, 2  ;;  %v1066_v60 = vadd.f32 %v1065_v58, %v1064_v56 }
  0xff   : > { %v1052_v61 = vadd.f32 %v1051_v59, %v1050_v57  ;;  %v1067_v62 = vrot.slane %v1066_v60, 2 }
 0x101   : > { %v1053_v63 = vrot.slane %v1052_v61, 1  ;;  %v1068_v0 = vadd.f32 %v1067_v62, %v1066_v60 }
 0x103   : > { %v1054_v2 = vadd.f32 %v1053_v63, %v1052_v61  ;;  %v1069_v3 = vrot.slane %v1068_v0, 1 }
 0x105   : > { %v1055_v5 = vadd.f32 %v1054_v2, %v1045_v1  ;;  %v1070_v6 = vadd.f32 %v1069_v3, %v1068_v0 }
 0x107   : > { %1056 = vst [vmem:[#allocation2] sm:$0x1] %v1055_v5  ;;  %v1071_v7 = vadd.f32 %v1070_v6, %v1057_v4 }
 0x109   : > { %1072 = vst [vmem:[#allocation3] sm:$0x1] %v1071_v7 }
 0x10a PF: > { %p1555_p6 = scmp.ne.s32.totalorder %s1687_s23, 1 }
 0x10c   : > { %1076 = sbr.rel (%p1555_p6) target bundleno = 454 (0x1c6), region = 56 }
 0x111   : > { %v1077_v8 = vld [vmem:[#allocation2] sm:$0x1]  ;;  %v1078_v9 = vld [vmem:[#allocation3] sm:$0x1]  ;;  %vm1146_vm3 = vcmask 1041409   ;;  %vm1149_vm4 = vcmask 1041408  }
 0x112   : > { %v1081_v10 = vmul.f32 0.03125, %v1077_v8  ;;  %v1082_v11 = vmul.f32 0.03125, %v1078_v9  ;;  %v1079_v22 = vld [vmem:[%s2088_s2] sm:$0x1]  ;;  %v1670_v5 = vld [vmem:[#allocation4] ss:$0 sm:$0xff] }
 0x113   : > { %v1080_v26 = vld [vmem:[%s2089_s3] sm:$0x1]  ;;  %vm1158_vm5 = vcmask 1024  }
 0x114   : > { %v1083_v12 = vmul.f32 %v1081_v10, %v1081_v10  ;;  %v1642_v36 = vld [vmem:[%s2090_s4] sm:$0xff]  }
 0x115   : > { %v1643_v42 = vunpack.c.l.bf16 %v1642_v36  ;;  %v1644_v47 = vunpack.c.h.bf16 %v1642_v36 }
 0x116   : > { %v1084_v13 = vsub.f32 %v1082_v11, %v1083_v12 }
 0x118   : > { %v1085_v14 = vmax.f32 %v1084_v13, 0.0 }
 0x11a   : > { %v1086_v15 = vadd.f32 1e-05, %v1085_v14 }
 0x11c   : > { %1671 = vrsqrt.f32 %v1086_v15  ;;  %vm1093_vm0 = vweird.f32 %v1086_v15 }
 0x122   : > { %v1672_v16 = vpop.eup %1671 }
 0x123   : > { %v1088_v17 = vmul.f32 %v1672_v16, %v1086_v15  ;;  %vm1094_vm1 = vweird.f32 %v1672_v16 }
 0x124   : > { %vm1095_vm2 = vmor %vm1093_vm0, %vm1094_vm1 }
 0x125   : > { %v1089_v19 = vmul.f32 %v1672_v16, %v1088_v17 }
 0x127   : > { %v1090_v20 = vmul.f32 0.5, %v1089_v19 }
 0x129   : > { %v1091_v21 = vsub.f32 1.5, %v1090_v20 }
 0x12b   : > { %v1092_v23 = vmul.f32 %v1672_v16, %v1091_v21 }
 0x12d   : > { %v1096_v24 = vsel %vm1095_vm2, %v1672_v16, %v1092_v23 }
 0x12e   : > { %v1097_v25 = vmul.f32 %v1096_v24, %v1079_v22 }
 0x130   : > { %v1098_v27 = vmul.f32 %v1097_v25, %v1081_v10  ;;  %v1101_v29 = vperm.slane %v1097_v25, 0 }
 0x132   : > { %v1099_v30 = vsub.f32 %v1080_v26, %v1098_v27  ;;  %v1103_v31 = vmul.f32 %v1101_v29, %v2045_v18  ;;  %v1104_v32 = vmul.f32 %v1101_v29, %v2047_v28  ;;  %v1105_v33 = vmul.f32 %v1101_v29, %v2049_v38 }
 0x133   : > { %v1106_v34 = vmul.f32 %v1101_v29, %v1040_v45 }
 0x134   : > { %v1108_v35 = vperm.slane %v1099_v30, 0 }
 0x136   : > { %v1110_v37 = vadd.f32 %v1108_v35, %v1103_v31  ;;  %v1111_v39 = vadd.f32 %v1108_v35, %v1104_v32  ;;  %v1112_v40 = vadd.f32 %v1108_v35, %v1105_v33  ;;  %v1113_v41 = vadd.f32 %v1108_v35, %v1106_v34 }
 0x138   : > { %v1114_v43 = vmul.f32 0.1, %v1110_v37  ;;  %v1115_v44 = vmul.f32 0.1, %v1111_v39  ;;  %v1116_v46 = vmul.f32 0.1, %v1112_v40 }
 0x139   : > { %v1117_v18 = vmul.f32 0.1, %v1113_v41 }
 0x13a   : > { %v1118_v48 = vmax.f32 %v1110_v37, %v1114_v43  ;;  %v1119_v28 = vmax.f32 %v1111_v39, %v1115_v44  ;;  %v1120_v49 = vmax.f32 %v1112_v40, %v1116_v46 }
 0x13b   : > { %v1121_v38 = vmax.f32 %v1113_v41, %v1117_v18 }
 0x13c   : > { %v1126_v45 = vmul.f32 %v1643_v42, %v1118_v48  ;;  %v1127_v50 = vmul.f32 %v1644_v47, %v1119_v28  ;;  %v1128_v51 = vmul.f32 %v1643_v42, %v1120_v49 }
 0x13d   : > { %v1129_v52 = vmul.f32 %v1644_v47, %v1121_v38 }
 0x13e   : > { %v1130_v53 = vadd.f32 %v1127_v50, %v1126_v45 }
 0x13f   : > { %v1137_v54 = vadd.f32 %v1129_v52, %v1128_v51 }
 0x140   : > { %v1131_v55 = vrot.slane %v1130_v53, 4 }
 0x141   : > { %v1138_v56 = vrot.slane %v1137_v54, 4 }
 0x142   : > { %v1132_v57 = vadd.f32 %v1131_v55, %v1130_v53 }
 0x143   : > { %v1139_v58 = vadd.f32 %v1138_v56, %v1137_v54 }
 0x144   : > { %v1133_v59 = vrot.slane %v1132_v57, 2 }
 0x145   : > { %v1140_v60 = vrot.slane %v1139_v58, 2 }
 0x146   : > { %v1134_v61 = vadd.f32 %v1133_v59, %v1132_v57 }
 0x147   : > { %v1141_v62 = vadd.f32 %v1140_v60, %v1139_v58 }
 0x148   : > { %v1135_v63 = vrot.slane %v1134_v61, 1 }
 0x149   : > { %v1142_v0 = vrot.slane %v1141_v62, 1 }
 0x14a   : > { %v1136_v1 = vadd.f32 %v1135_v63, %v1134_v61 }
 0x14b   : > { %v1143_v2 = vadd.f32 %v1142_v0, %v1141_v62 }
 0x14d   : > { %v1147_v3 = vsel %vm1146_vm3, %v1143_v2, %v1136_v1 }
 0x14e   : > { %v1150_v4 = vsel %vm1149_vm4, %v1147_v3, 0.0 }
 0x14f   : > { %1151 = vadd.xlane.f32.xlu0 %v1150_v4 }
 0x1c2   : > { %v1152_v6 = vpop.xlane.xlu0 %1151 }
 0x1c3   : > { %v1157_v7 = vadd.f32 %v1670_v5, %v1152_v6 }
 0x1c5   : > { %1159 = vst.msk [vmem:[%s2092_s6] sm:$0x3] %vm1158_vm5, %v1157_v7 }
 0x1c6 PF: > { %s18_s25 = sadd.s32 1, %s1695_s25   ;;  %s2093_s23 = smov %s1691_s24 }
 0x1c7   : > { %p15_p7 = scmp.ge.s32.totalorder %s18_s25, 4   ;;  %s2094_s24 = smov %s2096_s5 }
 0x1c9   :  { %17 = sbr.rel (!%p15_p7) target bundleno = 3 (0x3), region = 86 }

</bundles_post_ra>
